<compile_context>
chip_gen: v5e
topology: v5e:2x2
jax: 0.10.0
libtpu: 0.0.40
codegen_flags: <defaults>
</compile_context>

<pallas_src>
import functools
import math

import jax
import jax.numpy as jnp
from jax.experimental import pallas as pl
from jax.experimental.pallas import tpu as pltpu


# ------------------------------ small helpers -------------------------------

def _round_up(x, m):
    return (x + m - 1) // m * m


def _cparams(*sems):
    return pltpu.CompilerParams(dimension_semantics=tuple(sems),
                                vmem_limit_bytes=32 * 1024 * 1024)


def _relu(y):
    return jnp.maximum(y, 0.0)


def _leaky_relu01(y):
    return jnp.where(y >= 0.0, y, 0.1 * y)


# --------------------------- tiled fused matmul ------------------------------

def _matmul_kernel(activation, a_ref, b_ref, bias_ref, o_ref, acc_ref):
    @pl.when(pl.program_id(2) == 0)
    def _init():
        acc_ref[...] = jnp.zeros_like(acc_ref)

    acc_ref[...] += jnp.dot(a_ref[...], b_ref[...],
                            preferred_element_type=jnp.float32)

    @pl.when(pl.program_id(2) == pl.num_programs(2) - 1)
    def _finalize():
        y = acc_ref[...] + bias_ref[...]
        if activation is not None:
            y = activation(y)
        o_ref[...] = y.astype(o_ref.dtype)


def pallas_matmul(a, b, bias=None, activation=None):
    """(M,K)@(K,N)+bias, fused activation.  bf16 MXU operands, f32 accumulate."""
    M, K = a.shape
    _, N = b.shape
    tm = 256 if M >= 256 else _round_up(M, 8)
    tn = 256 if N >= 256 else _round_up(N, 128)
    tk = 512 if K >= 512 else _round_up(K, 128)
    Mp, Np, Kp = _round_up(M, tm), _round_up(N, tn), _round_up(K, tk)

    ap = jnp.pad(a.astype(jnp.float32), ((0, Mp - M), (0, Kp - K))).astype(jnp.bfloat16)
    bp = jnp.pad(b.astype(jnp.float32), ((0, Kp - K), (0, Np - N))).astype(jnp.bfloat16)
    if bias is None:
        bias = jnp.zeros((N,), jnp.float32)
    biasp = jnp.pad(bias.astype(jnp.float32), (0, Np - N)).reshape(1, Np)

    out = pl.pallas_call(
        functools.partial(_matmul_kernel, activation),
        grid=(Mp // tm, Np // tn, Kp // tk),
        in_specs=[pl.BlockSpec((tm, tk), lambda i, j, k: (i, k)),
                  pl.BlockSpec((tk, tn), lambda i, j, k: (k, j)),
                  pl.BlockSpec((1, tn), lambda i, j, k: (0, j))],
        out_specs=pl.BlockSpec((tm, tn), lambda i, j, k: (i, j)),
        out_shape=jax.ShapeDtypeStruct((Mp, Np), jnp.float32),
        scratch_shapes=[pltpu.VMEM((tm, tn), jnp.float32)],
        compiler_params=_cparams("parallel", "parallel", "arbitrary"),
    )(ap, bp, biasp)
    return out[:M, :N]


# ----------------------- fused conv1d (channels-last) ------------------------

def _conv_kernel(K, S, dilation, activation, x_ref, w_ref, b_ref, o_ref):
    T_out, Cout = o_ref.shape[1], o_ref.shape[2]
    acc = jnp.zeros((T_out, Cout), jnp.float32)
    for k in range(K):                       # static tap loop (fused im2col)
        off = k * dilation
        r, q = off % S, off // S             # stride phase / in-phase offset
        xs = x_ref[r, 0, q:q + T_out, :].astype(jnp.bfloat16)
        acc = acc + jnp.dot(xs, w_ref[k], preferred_element_type=jnp.float32)
    y = acc + b_ref[...]
    if activation is not None:
        y = activation(y)
    o_ref[0] = y


def conv1d_cl(x, w, b, *, stride=1, padding=0, dilation=1, activation=None):
    """Channels-last Conv1d.  x:[B,T,Cin], w:[Cout,Cin,K] (torch layout), b:[Cout]."""
    B, T, Cin = x.shape
    Cout, _, K = w.shape
    S = stride
    Tp = T + 2 * padding
    T_out = (Tp - dilation * (K - 1) - 1) // S + 1
    extra = (-Tp) % S
    xp = jnp.pad(x, ((0, 0), (padding, padding + extra), (0, 0)))
    Tp2 = Tp + extra
    # phase decomposition: partitions the data (no K-fold im2col duplication)
    xs = xp.reshape(B, Tp2 // S, S, Cin).transpose(2, 0, 1, 3)   # [S,B,Tp2/S,Cin]
    wk = jnp.transpose(w, (2, 1, 0)).astype(jnp.bfloat16)        # [K,Cin,Cout]
    bias = b.astype(jnp.float32).reshape(1, Cout)

    return pl.pallas_call(
        functools.partial(_conv_kernel, K, S, dilation, activation),
        grid=(B,),
        in_specs=[pl.BlockSpec((S, 1, Tp2 // S, Cin), lambda i: (0, i, 0, 0)),
                  pl.BlockSpec((K, Cin, Cout), lambda i: (0, 0, 0)),
                  pl.BlockSpec((1, Cout), lambda i: (0, 0))],
        out_specs=pl.BlockSpec((1, T_out, Cout), lambda i: (i, 0, 0)),
        out_shape=jax.ShapeDtypeStruct((B, T_out, Cout), jnp.float32),
        compiler_params=_cparams("parallel"),
    )(xs, wk, bias)


# ----------------------- fused WaveNet layer kernel ---------------------------

def _wn_layer_kernel(K, dilation, pad, last,
                     x_ref, skip_ref, mask_ref, inw_ref, inb_ref,
                     rsw_ref, rsb_ref, xo_ref, so_ref):
    T, H = xo_ref.shape[1], xo_ref.shape[2]
    # dilated conv (fused im2col, static tap loop)
    acc = jnp.zeros((T, 2 * H), jnp.float32)
    for k in range(K):
        off = k * dilation
        xs = x_ref[0, off:off + T, :].astype(jnp.bfloat16)
        acc = acc + jnp.dot(xs, inw_ref[k], preferred_element_type=jnp.float32)
    acc = acc + inb_ref[...]
    # gated activation (EUP tanh/sigmoid, fused)
    g = jnp.tanh(acc[:, :H]) * jax.nn.sigmoid(acc[:, H:])
    # 1x1 residual/skip conv (fused)
    rs = jnp.dot(g.astype(jnp.bfloat16), rsw_ref[...],
                 preferred_element_type=jnp.float32) + rsb_ref[...]
    m = mask_ref[0]                                   # (T, 1)
    x_cur = x_ref[0, pad:pad + T, :]
    if last:
        xo_ref[0] = x_cur
        so_ref[0] = (skip_ref[0] + rs) * m            # final skip, masked
    else:
        xo_ref[0] = (x_cur + rs[:, :H]) * m
        so_ref[0] = skip_ref[0] + rs[:, H:]


def wavenet_cl(x, mask, layers_params, kernel_size, n_layers):
    """Simplified WN block, channels-last.  x:[B,T,H], mask:[B,T,1]."""
    B, T, H = x.shape
    skip = jnp.zeros_like(x)
    for i in range(n_layers):
        dil = 2 ** i
        pad = (kernel_size - 1) // 2 * dil
        lp = layers_params[i]
        last = (i == n_layers - 1)
        rs_out = H if last else 2 * H
        xp = jnp.pad(x, ((0, 0), (pad, pad), (0, 0)))
        inw = jnp.transpose(lp['in_w'], (2, 1, 0)).astype(jnp.bfloat16)  # [K,H,2H]
        rsw = lp['rs_w'][:, :, 0].T.astype(jnp.bfloat16)                 # [H,rs_out]
        x, skip = pl.pallas_call(
            functools.partial(_wn_layer_kernel, kernel_size, dil, pad, last),
            grid=(B,),
            in_specs=[pl.BlockSpec((1, T + 2 * pad, H), lambda i: (i, 0, 0)),
                      pl.BlockSpec((1, T, H), lambda i: (i, 0, 0)),
                      pl.BlockSpec((1, T, 1), lambda i: (i, 0, 0)),
                      pl.BlockSpec((kernel_size, H, 2 * H), lambda i: (0, 0, 0)),
                      pl.BlockSpec((1, 2 * H), lambda i: (0, 0)),
                      pl.BlockSpec((H, rs_out), lambda i: (0, 0)),
                      pl.BlockSpec((1, rs_out), lambda i: (0, 0))],
            out_specs=(pl.BlockSpec((1, T, H), lambda i: (i, 0, 0)),
                       pl.BlockSpec((1, T, H), lambda i: (i, 0, 0))),
            out_shape=(jax.ShapeDtypeStruct((B, T, H), jnp.float32),
                       jax.ShapeDtypeStruct((B, T, H), jnp.float32)),
            compiler_params=_cparams("parallel"),
        )(xp, skip, mask,
          inw, lp['in_b'].reshape(1, -1), rsw, lp['rs_b'].reshape(1, -1))
    return skip


# ----------------------- flash-style masked attention ------------------------

def _attn_kernel(scale, tkv, lens_ref, q_ref, k_ref, v_ref, o_ref,
                 m_sc, l_sc, acc_sc):
    b = pl.program_id(0)
    kv = pl.program_id(2)

    @pl.when(kv == 0)
    def _init():
        m_sc[...] = jnp.full_like(m_sc, -1e30)
        l_sc[...] = jnp.zeros_like(l_sc)
        acc_sc[...] = jnp.zeros_like(acc_sc)

    L = lens_ref[b]
    q = q_ref[0, 0].astype(jnp.bfloat16)
    k = k_ref[0, 0].astype(jnp.bfloat16)
    v = v_ref[0, 0].astype(jnp.bfloat16)
    s = jax.lax.dot_general(q, k, (((1,), (1,)), ((), ())),
                            preferred_element_type=jnp.float32) * scale
    # build the key-length mask in-kernel (no [B*nh,T,T] mask in HBM)
    col = jax.lax.broadcasted_iota(jnp.int32, s.shape, 1) + kv * tkv
    valid = col < L
    s = jnp.where(valid, s, -1e30)

    m_new = jnp.maximum(m_sc[...], jnp.max(s, axis=-1, keepdims=True))
    alpha = jnp.exp(m_sc[...] - m_new)
    p = jnp.where(valid, jnp.exp(s - m_new), 0.0)
    l_sc[...] = alpha * l_sc[...] + jnp.sum(p, axis=-1, keepdims=True)
    acc_sc[...] = alpha * acc_sc[...] + jnp.dot(
        p.astype(jnp.bfloat16), v, preferred_element_type=jnp.float32)
    m_sc[...] = m_new

    @pl.when(kv == pl.num_programs(2) - 1)
    def _finalize():
        o_ref[0, 0] = (acc_sc[...] *
                       pl.reciprocal(l_sc[...], approx=True)).astype(o_ref.dtype)


def pallas_attention(q, k, v, lengths, scale):
    """q,k,v: [B, nh, T, D]; lengths: [B] int32 (key-length mask built in-kernel)."""
    B, nh, T, D = q.shape
    tkv = 128 if T % 128 == 0 else T      # TODO(synk): also tile the q axis for long T
    grid = (B, nh, T // tkv)
    return pl.pallas_call(
        functools.partial(_attn_kernel, scale, tkv),
        grid_spec=pltpu.PrefetchScalarGridSpec(
            num_scalar_prefetch=1,
            grid=grid,
            in_specs=[pl.BlockSpec((1, 1, T, D), lambda b, h, kv, lens: (b, h, 0, 0)),
                      pl.BlockSpec((1, 1, tkv, D), lambda b, h, kv, lens: (b, h, kv, 0)),
                      pl.BlockSpec((1, 1, tkv, D), lambda b, h, kv, lens: (b, h, kv, 0))],
            out_specs=pl.BlockSpec((1, 1, T, D), lambda b, h, kv, lens: (b, h, 0, 0)),
            scratch_shapes=[pltpu.VMEM((T, 1), jnp.float32),
                            pltpu.VMEM((T, 1), jnp.float32),
                            pltpu.VMEM((T, D), jnp.float32)]),
        out_shape=jax.ShapeDtypeStruct((B, nh, T, D), jnp.float32),
        compiler_params=_cparams("parallel", "parallel", "arbitrary"),
    )(lengths.astype(jnp.int32), q, k, v)


# ----------------------- fused residual-add + layernorm ----------------------

def _add_ln_kernel(eps, x_ref, r_ref, g_ref, b_ref, o_ref):
    x = x_ref[...] + r_ref[...]
    mu = jnp.mean(x, axis=-1, keepdims=True)
    xc = x - mu
    var = jnp.mean(xc * xc, axis=-1, keepdims=True)
    o_ref[...] = xc * jax.lax.rsqrt(var + eps) * g_ref[...] + b_ref[...]


def pallas_add_layer_norm(x, res, gamma, beta, eps=1e-5):
    M, H = x.shape
    tm = min(_round_up(M, 8), 256)
    Mp = _round_up(M, tm)
    xp = jnp.pad(x, ((0, Mp - M), (0, 0)))
    rp = jnp.pad(res, ((0, Mp - M), (0, 0)))
    out = pl.pallas_call(
        functools.partial(_add_ln_kernel, eps),
        grid=(Mp // tm,),
        in_specs=[pl.BlockSpec((tm, H), lambda i: (i, 0)),
                  pl.BlockSpec((tm, H), lambda i: (i, 0)),
                  pl.BlockSpec((1, H), lambda i: (0, 0)),
                  pl.BlockSpec((1, H), lambda i: (0, 0))],
        out_specs=pl.BlockSpec((tm, H), lambda i: (i, 0)),
        out_shape=jax.ShapeDtypeStruct((Mp, H), jnp.float32),
        compiler_params=_cparams("parallel"),
    )(xp, rp, gamma.reshape(1, H), beta.reshape(1, H))
    return out[:M]


# ------------------------------- sub-modules ---------------------------------

def text_encoder_fwd(p, text, text_lengths, cfg):
    B, T = text.shape
    H, nh = cfg.hidden, cfg.n_heads
    dh = H // nh
    x = p['emb'][text] * math.sqrt(H)                       # [B, T, H]
    mask = (jnp.arange(T)[None, :] < text_lengths[:, None]).astype(jnp.float32)
    x = x * mask[:, :, None]
    xf = x.reshape(B * T, H)

    # fused QKV projection (one tiled matmul)
    wqkv = jnp.concatenate([p['wq'], p['wk'], p['wv']], axis=1)
    bqkv = jnp.concatenate([p['bq'], p['bk'], p['bv']], axis=0)
    qkv = pallas_matmul(xf, wqkv, bqkv)
    q, k, v = jnp.split(qkv, 3, axis=-1)

    def heads(z):                                          # [B*T,H] -> [B,nh,T,dh]
        return z.reshape(B, T, nh, dh).transpose(0, 2, 1, 3)

    o = pallas_attention(heads(q), heads(k), heads(v),
                         text_lengths, 1.0 / math.sqrt(dh))
    o = o.transpose(0, 2, 1, 3).reshape(B * T, H)
    o = pallas_matmul(o, p['wo'], p['bo'])
    x1 = pallas_add_layer_norm(xf, o, p['ln1_g'], p['ln1_b'])

    # FFN with fused ReLU epilogue
    h = pallas_matmul(x1, p['w1'], p['b1'], activation=_relu)
    h = pallas_matmul(h, p['w2'], p['b2'])
    x2 = pallas_add_layer_norm(x1, h, p['ln2_g'], p['ln2_b'])

    x = x2.reshape(B, T, H) * mask[:, :, None]
    return x.transpose(0, 2, 1), mask[:, None, :]          # [B,H,T], [B,1,T]


def posterior_encoder_fwd(p, mel, mel_lengths, noise, cfg):
    B, _, T = mel.shape
    x = mel.transpose(0, 2, 1)                              # channels-last [B,T,Cmel]
    mask = (jnp.arange(T)[None, :] < mel_lengths[:, None]
            ).astype(jnp.float32)[:, :, None]               # [B,T,1]
    x = conv1d_cl(x, p['pre_w'], p['pre_b']) * mask
    x = wavenet_cl(x, mask, p['wn'], cfg.wn_kernel, cfg.wn_layers)
    stats = conv1d_cl(x, p['proj_w'], p['proj_b']) * mask
    m, logs = jnp.split(stats, 2, axis=-1)
    z = (m + noise.transpose(0, 2, 1) * jnp.exp(logs)) * mask
    return z, m, logs, mask                                 # all channels-last


def coupling_layer_fwd(p, x, mask, cfg):
    half = x.shape[-1] // 2
    x0, x1 = x[..., :half], x[..., half:]
    h = conv1d_cl(x0, p['pre_w'], p['pre_b']) * mask
    h = wavenet_cl(h, mask, p['wn'], cfg.wn_kernel, 1)
    m = conv1d_cl(h, p['post_w'], p['post_b']) * mask       # mean-only coupling
    x1 = (x1 + m) * mask
    return jnp.concatenate([x0, x1], axis=-1)


def flow_fwd(p_list, x, mask, cfg):
    for p in p_list:
        x = coupling_layer_fwd(p, x, mask, cfg)
        x = x[..., ::-1]                                    # Flip (channel dim)
    return x


def sub_discriminator_fwd(p, x):
    # treat the [B, C, T] input as a 1-channel signal of length C*T (simplified)
    B, C, T = x.shape
    h = x.reshape(B, C * T, 1)                              # channels-last
    fmap = []
    h = conv1d_cl(h, p['c1_w'], p['c1_b'], stride=2, padding=2,
                  activation=_leaky_relu01)
    fmap.append(h.transpose(0, 2, 1))
    h = conv1d_cl(h, p['c2_w'], p['c2_b'], stride=2, padding=2,
                  activation=_leaky_relu01)
    fmap.append(h.transpose(0, 2, 1))
    h = conv1d_cl(h, p['c3_w'], p['c3_b'], stride=1, padding=1)
    fmap.append(h.transpose(0, 2, 1))
    return h.reshape(B, -1), fmap


def discriminator_fwd(p_list, y, y_hat):
    y_d_r, y_d_g, fmap_r, fmap_g = [], [], [], []
    for p in p_list:
        o_r, f_r = sub_discriminator_fwd(p, y)
        o_g, f_g = sub_discriminator_fwd(p, y_hat)
        y_d_r.append(o_r)
        y_d_g.append(o_g)
        fmap_r.append(f_r)
        fmap_g.append(f_g)
    return y_d_r, y_d_g, fmap_r, fmap_g


# ----------------------------------- VITS ------------------------------------

def vits_forward(params, text_inputs, text_lengths, mel_inputs, mel_lengths,
                 noise, cfg):
    text_enc, text_mask = text_encoder_fwd(params['text_encoder'],
                                           text_inputs, text_lengths, cfg)
    z_cl, m_cl, logs_cl, mask_cl = posterior_encoder_fwd(
        params['posterior'], mel_inputs, mel_lengths, noise, cfg)
    zp_cl = flow_fwd(params['flow'], z_cl, mask_cl, cfg)

    # interface-boundary NCW conversions only
    z = z_cl.transpose(0, 2, 1)
    m_q = m_cl.transpose(0, 2, 1)
    logs_q = logs_cl.transpose(0, 2, 1)
    z_p = zp_cl.transpose(0, 2, 1)
    y_mask = mask_cl.transpose(0, 2, 1)                     # [B,1,T]

    y_d_hat_r, y_d_hat_g, fmap_r, fmap_g = discriminator_fwd(
        params['disc'], mel_inputs, z_p)
    return {'z': z, 'z_p': z_p, 'm_q': m_q, 'logs_q': logs_q, 'y_mask': y_mask,
            'y_d_hat_r': y_d_hat_r, 'y_d_hat_g': y_d_hat_g,
            'fmap_r': fmap_r, 'fmap_g': fmap_g,
            'text_enc': text_enc, 'text_mask': text_mask}


# ------------------------------ config & params ------------------------------

class Cfg:
    n_vocab = 32
    hidden = 16        # hidden_channels
    filter_ch = 32     # filter_channels (FFN)
    n_heads = 2
    inter = 16         # inter_channels
    n_mel = 8
    wn_hidden = 16
    wn_kernel = 5
    wn_layers = 2
    n_flows = 2


def init_params(key, cfg):
    keys = iter(jax.random.split(key, 256))

    def nrm(*shape, scale=0.02):
        return scale * jax.random.normal(next(keys), shape, jnp.float32)

    def zeros(*shape):
        return jnp.zeros(shape, jnp.float32)

    H, F, I, W = cfg.hidden, cfg.filter_ch, cfg.inter, cfg.wn_hidden

    te = dict(
        emb=nrm(cfg.n_vocab, H, scale=1.0),
        wq=nrm(H, H), bq=zeros(H), wk=nrm(H, H), bk=zeros(H),
        wv=nrm(H, H), bv=zeros(H), wo=nrm(H, H), bo=zeros(H),
        ln1_g=jnp.ones((H,), jnp.float32), ln1_b=zeros(H),
        w1=nrm(H, F), b1=zeros(F), w2=nrm(F, H), b2=zeros(H),
        ln2_g=jnp.ones((H,), jnp.float32), ln2_b=zeros(H),
    )

    def wn_params(n_layers, k):
        layers = []
        for i in range(n_layers):
            rs_out = 2 * W if i < n_layers - 1 else W
            layers.append(dict(
                in_w=nrm(2 * W, W, k), in_b=zeros(2 * W),
                rs_w=nrm(rs_out, W, 1), rs_b=zeros(rs_out)))
        return layers

    pe = dict(pre_w=nrm(W, cfg.n_mel, 1), pre_b=zeros(W),
              wn=wn_params(cfg.wn_layers, cfg.wn_kernel),
              proj_w=nrm(2 * I, W, 1), proj_b=zeros(2 * I))

    half = I // 2
    flows = []
    for _ in range(cfg.n_flows):
        # TODO(synk): real VITS zero-inits the coupling `post` conv; we use a
        # small deterministic init so the flow path is numerically non-trivial.
        flows.append(dict(pre_w=nrm(W, half, 1), pre_b=zeros(W),
                          wn=wn_params(1, cfg.wn_kernel),
                          post_w=nrm(half, W, 1), post_b=zeros(half)))

    discs = []
    for _ in range(2):
        discs.append(dict(c1_w=nrm(8, 1, 5), c1_b=zeros(8),
                          c2_w=nrm(16, 8, 5), c2_b=zeros(16),
                          c3_w=nrm(1, 16, 3), c3_b=zeros(1)))

    return dict(text_encoder=te, posterior=pe, flow=flows, disc=discs)


# ----------------------------------- main -------------------------------------

if __name__ == "__main__":
    cfg = Cfg()
    key = jax.random.PRNGKey(0)
    k_text, k_mel, k_noise, k_params = jax.random.split(key, 4)

    B, T_text, T_mel = 2, 8, 16
    text_inputs = jax.random.randint(k_text, (B, T_text), 0, cfg.n_vocab)
    text_lengths = jnp.array([8, 6], dtype=jnp.int32)
    mel_inputs = jax.random.normal(k_mel, (B, cfg.n_mel, T_mel), jnp.float32)
    mel_lengths = jnp.array([16, 12], dtype=jnp.int32)
    # deterministic "reparameterization" noise for the posterior sample
    noise = jax.random.normal(k_noise, (B, cfg.inter, T_mel), jnp.float32)

    params = init_params(k_params, cfg)

    fwd = jax.jit(functools.partial(vits_forward, cfg=cfg))
    outputs = fwd(params, text_inputs, text_lengths,
                  mel_inputs, mel_lengths, noise)
    outputs = jax.block_until_ready(outputs)
    print("KERNEL_OK")
</pallas_src>

<mosaic_0001>
module attributes {stable_mosaic.version = 11 : i64} {
  func.func @_conv_kernel(%arg0: i32, %arg1: memref<1x1x16x8xf32, #tpu.memory_space<vmem>>, %arg2: memref<1x8x16xbf16, #tpu.memory_space<vmem>>, %arg3: memref<1x16xf32, #tpu.memory_space<vmem>>, %arg4: memref<1x16x16xf32, #tpu.memory_space<vmem>>) attributes {dimension_semantics = [#tpu.dimension_semantics<parallel>], iteration_bounds = array<i64: 2>, scalar_prefetch = 0 : i64, scratch_operands = 0 : i64, tpu.core_type = #tpu.core_type<tc>, window_params = [{transform_indices = @transform_0, window_bounds = array<i64: 1, 1, 16, 8>}, {pipeline_mode = #tpu.pipeline_mode<synchronous>, transform_indices = @transform_1, window_bounds = array<i64: 1, 8, 16>}, {pipeline_mode = #tpu.pipeline_mode<synchronous>, transform_indices = @transform_2, window_bounds = array<i64: 1, 16>}, {transform_indices = @transform_3, window_bounds = array<i64: 1, 16, 16>}]} {
    %cst = arith.constant 0.000000e+00 : f32
    %0 = vector.broadcast %cst : f32 to vector<16x16xf32>
    %c0 = arith.constant 0 : index
    %c0_0 = arith.constant 0 : index
    %c0_1 = arith.constant 0 : index
    %c0_2 = arith.constant 0 : index
    %1 = vector.load %arg1[%c0, %c0_0, %c0_1, %c0_2] : memref<1x1x16x8xf32, #tpu.memory_space<vmem>>, vector<1x1x16x8xf32>
    %2 = vector.shape_cast %1 : vector<1x1x16x8xf32> to vector<16x8xf32>
    %3 = arith.truncf %2 : vector<16x8xf32> to vector<16x8xbf16>
    %c0_3 = arith.constant 0 : index
    %c0_4 = arith.constant 0 : index
    %c0_5 = arith.constant 0 : index
    %4 = vector.load %arg2[%c0_3, %c0_4, %c0_5] : memref<1x8x16xbf16, #tpu.memory_space<vmem>>, vector<1x8x16xbf16>
    %5 = vector.shape_cast %4 : vector<1x8x16xbf16> to vector<8x16xbf16>
    %cst_6 = arith.constant dense<0.000000e+00> : vector<16x16xf32>
    %6 = tpu.matmul %3, %5, %cst_6 {dimension_numbers = #tpu.dot_dimension_numbers<[1], [0], [0], [1], [0, 0, 1, 1], [], []>} : vector<16x8xbf16>, vector<8x16xbf16>, vector<16x16xf32> -> vector<16x16xf32>
    %7 = arith.addf %0, %6 : vector<16x16xf32>
    %c0_7 = arith.constant 0 : index
    %c0_8 = arith.constant 0 : index
    %8 = vector.load %arg3[%c0_7, %c0_8] : memref<1x16xf32, #tpu.memory_space<vmem>>, vector<1x16xf32>
    %9 = vector.broadcast %8 : vector<1x16xf32> to vector<16x16xf32>
    %10 = arith.addf %7, %9 : vector<16x16xf32>
    %c0_9 = arith.constant 0 : index
    %c0_10 = arith.constant 0 : index
    %c0_11 = arith.constant 0 : index
    %11 = vector.load %arg4[%c0_9, %c0_10, %c0_11] : memref<1x16x16xf32, #tpu.memory_space<vmem>>, vector<1x16x16xf32>
    %12 = vector.shape_cast %11 : vector<1x16x16xf32> to vector<16x16xf32>
    %13 = vector.shape_cast %10 : vector<16x16xf32> to vector<1x16x16xf32>
    tpu.vector_store %arg4[%c0_9, %c0_10, %c0_11], %13 {strides = array<i32>} : memref<1x16x16xf32, #tpu.memory_space<vmem>>, vector<1x16x16xf32>,
    return
  }
  func.func @transform_0(%arg0: i32) -> (i32, i32, i32, i32) {
    %c0_i32 = arith.constant 0 : i32
    %c0_i32_0 = arith.constant 0 : i32
    %c0_i32_1 = arith.constant 0 : i32
    %c0_i32_2 = arith.constant 0 : i32
    return %c0_i32, %arg0, %c0_i32_0, %c0_i32_1 : i32, i32, i32, i32
  }
  func.func @transform_1(%arg0: i32) -> (i32, i32, i32) {
    %c0_i32 = arith.constant 0 : i32
    %c0_i32_0 = arith.constant 0 : i32
    %c0_i32_1 = arith.constant 0 : i32
    %c0_i32_2 = arith.constant 0 : i32
    return %c0_i32, %c0_i32_0, %c0_i32_1 : i32, i32, i32
  }
  func.func @transform_2(%arg0: i32) -> (i32, i32) {
    %c0_i32 = arith.constant 0 : i32
    %c0_i32_0 = arith.constant 0 : i32
    %c0_i32_1 = arith.constant 0 : i32
    return %c0_i32, %c0_i32_0 : i32, i32
  }
  func.func @transform_3(%arg0: i32) -> (i32, i32, i32) {
    %c0_i32 = arith.constant 0 : i32
    %c0_i32_0 = arith.constant 0 : i32
    %c0_i32_1 = arith.constant 0 : i32
    return %arg0, %c0_i32, %c0_i32_0 : i32, i32, i32
  }
}

module attributes {stable_mosaic.version = 11 : i64} {
  func.func @_wn_layer_kernel(%arg0: i32, %arg1: memref<1x24x16xf32, #tpu.memory_space<vmem>>, %arg2: memref<1x16x16xf32, #tpu.memory_space<vmem>>, %arg3: memref<1x16x1xf32, #tpu.memory_space<vmem>>, %arg4: memref<5x16x32xbf16, #tpu.memory_space<vmem>>, %arg5: memref<1x32xf32, #tpu.memory_space<vmem>>, %arg6: memref<16x16xbf16, #tpu.memory_space<vmem>>, %arg7: memref<1x16xf32, #tpu.memory_space<vmem>>, %arg8: memref<1x16x16xf32, #tpu.memory_space<vmem>>, %arg9: memref<1x16x16xf32, #tpu.memory_space<vmem>>) attributes {dimension_semantics = [#tpu.dimension_semantics<parallel>], iteration_bounds = array<i64: 2>, scalar_prefetch = 0 : i64, scratch_operands = 0 : i64, tpu.core_type = #tpu.core_type<tc>, window_params = [{transform_indices = @transform_0, window_bounds = array<i64: 1, 24, 16>}, {transform_indices = @transform_1, window_bounds = array<i64: 1, 16, 16>}, {transform_indices = @transform_2, window_bounds = array<i64: 1, 16, 1>}, {pipeline_mode = #tpu.pipeline_mode<synchronous>, transform_indices = @transform_3, window_bounds = array<i64: 5, 16, 32>}, {pipeline_mode = #tpu.pipeline_mode<synchronous>, transform_indices = @transform_4, window_bounds = array<i64: 1, 32>}, {pipeline_mode = #tpu.pipeline_mode<synchronous>, transform_indices = @transform_5, window_bounds = array<i64: 16, 16>}, {pipeline_mode = #tpu.pipeline_mode<synchronous>, transform_indices = @transform_6, window_bounds = array<i64: 1, 16>}, {transform_indices = @transform_7, window_bounds = array<i64: 1, 16, 16>}, {transform_indices = @transform_8, window_bounds = array<i64: 1, 16, 16>}]} {
    %cst = arith.constant 0.000000e+00 : f32
    %0 = vector.broadcast %cst : f32 to vector<16x32xf32>
    %c0 = arith.constant 0 : index
    %c0_0 = arith.constant 0 : index
    %c0_1 = arith.constant 0 : index
    %1 = vector.load %arg1[%c0, %c0_0, %c0_1] : memref<1x24x16xf32, #tpu.memory_space<vmem>>, vector<1x16x16xf32>
    %2 = vector.shape_cast %1 : vector<1x16x16xf32> to vector<16x16xf32>
    %3 = arith.truncf %2 : vector<16x16xf32> to vector<16x16xbf16>
    %c0_2 = arith.constant 0 : index
    %c0_3 = arith.constant 0 : index
    %c0_4 = arith.constant 0 : index
    %4 = vector.load %arg4[%c0_2, %c0_3, %c0_4] : memref<5x16x32xbf16, #tpu.memory_space<vmem>>, vector<1x16x32xbf16>
    %5 = vector.shape_cast %4 : vector<1x16x32xbf16> to vector<16x32xbf16>
    %cst_5 = arith.constant dense<0.000000e+00> : vector<16x32xf32>
    %6 = tpu.matmul %3, %5, %cst_5 {dimension_numbers = #tpu.dot_dimension_numbers<[1], [0], [0], [1], [0, 0, 1, 1], [], []>} : vector<16x16xbf16>, vector<16x32xbf16>, vector<16x32xf32> -> vector<16x32xf32>
    %7 = arith.addf %0, %6 : vector<16x32xf32>
    %c0_6 = arith.constant 0 : index
    %c2 = arith.constant 2 : index
    %c0_7 = arith.constant 0 : index
    %8 = vector.load %arg1[%c0_6, %c2, %c0_7] : memref<1x24x16xf32, #tpu.memory_space<vmem>>, vector<1x16x16xf32>
    %9 = vector.shape_cast %8 : vector<1x16x16xf32> to vector<16x16xf32>
    %10 = arith.truncf %9 : vector<16x16xf32> to vector<16x16xbf16>
    %c1 = arith.constant 1 : index
    %c0_8 = arith.constant 0 : index
    %c0_9 = arith.constant 0 : index
    %11 = vector.load %arg4[%c1, %c0_8, %c0_9] : memref<5x16x32xbf16, #tpu.memory_space<vmem>>, vector<1x16x32xbf16>
    %12 = vector.shape_cast %11 : vector<1x16x32xbf16> to vector<16x32xbf16>
    %cst_10 = arith.constant dense<0.000000e+00> : vector<16x32xf32>
    %13 = tpu.matmul %10, %12, %cst_10 {dimension_numbers = #tpu.dot_dimension_numbers<[1], [0], [0], [1], [0, 0, 1, 1], [], []>} : vector<16x16xbf16>, vector<16x32xbf16>, vector<16x32xf32> -> vector<16x32xf32>
    %14 = arith.addf %7, %13 : vector<16x32xf32>
    %c0_11 = arith.constant 0 : index
    %c4 = arith.constant 4 : index
    %c0_12 = arith.constant 0 : index
    %15 = vector.load %arg1[%c0_11, %c4, %c0_12] : memref<1x24x16xf32, #tpu.memory_space<vmem>>, vector<1x16x16xf32>
    %16 = vector.shape_cast %15 : vector<1x16x16xf32> to vector<16x16xf32>
    %17 = arith.truncf %16 : vector<16x16xf32> to vector<16x16xbf16>
    %c2_13 = arith.constant 2 : index
    %c0_14 = arith.constant 0 : index
    %c0_15 = arith.constant 0 : index
    %18 = vector.load %arg4[%c2_13, %c0_14, %c0_15] : memref<5x16x32xbf16, #tpu.memory_space<vmem>>, vector<1x16x32xbf16>
    %19 = vector.shape_cast %18 : vector<1x16x32xbf16> to vector<16x32xbf16>
    %cst_16 = arith.constant dense<0.000000e+00> : vector<16x32xf32>
    %20 = tpu.matmul %17, %19, %cst_16 {dimension_numbers = #tpu.dot_dimension_numbers<[1], [0], [0], [1], [0, 0, 1, 1], [], []>} : vector<16x16xbf16>, vector<16x32xbf16>, vector<16x32xf32> -> vector<16x32xf32>
    %21 = arith.addf %14, %20 : vector<16x32xf32>
    %c0_17 = arith.constant 0 : index
    %c6 = arith.constant 6 : index
    %c0_18 = arith.constant 0 : index
    %22 = vector.load %arg1[%c0_17, %c6, %c0_18] : memref<1x24x16xf32, #tpu.memory_space<vmem>>, vector<1x16x16xf32>
    %23 = vector.shape_cast %22 : vector<1x16x16xf32> to vector<16x16xf32>
    %24 = arith.truncf %23 : vector<16x16xf32> to vector<16x16xbf16>
    %c3 = arith.constant 3 : index
    %c0_19 = arith.constant 0 : index
    %c0_20 = arith.constant 0 : index
    %25 = vector.load %arg4[%c3, %c0_19, %c0_20] : memref<5x16x32xbf16, #tpu.memory_space<vmem>>, vector<1x16x32xbf16>
    %26 = vector.shape_cast %25 : vector<1x16x32xbf16> to vector<16x32xbf16>
    %cst_21 = arith.constant dense<0.000000e+00> : vector<16x32xf32>
    %27 = tpu.matmul %24, %26, %cst_21 {dimension_numbers = #tpu.dot_dimension_numbers<[1], [0], [0], [1], [0, 0, 1, 1], [], []>} : vector<16x16xbf16>, vector<16x32xbf16>, vector<16x32xf32> -> vector<16x32xf32>
    %28 = arith.addf %21, %27 : vector<16x32xf32>
    %c0_22 = arith.constant 0 : index
    %c8 = arith.constant 8 : index
    %c0_23 = arith.constant 0 : index
    %29 = vector.load %arg1[%c0_22, %c8, %c0_23] : memref<1x24x16xf32, #tpu.memory_space<vmem>>, vector<1x16x16xf32>
    %30 = vector.shape_cast %29 : vector<1x16x16xf32> to vector<16x16xf32>
    %31 = arith.truncf %30 : vector<16x16xf32> to vector<16x16xbf16>
    %c4_24 = arith.constant 4 : index
    %c0_25 = arith.constant 0 : index
    %c0_26 = arith.constant 0 : index
    %32 = vector.load %arg4[%c4_24, %c0_25, %c0_26] : memref<5x16x32xbf16, #tpu.memory_space<vmem>>, vector<1x16x32xbf16>
    %33 = vector.shape_cast %32 : vector<1x16x32xbf16> to vector<16x32xbf16>
    %cst_27 = arith.constant dense<0.000000e+00> : vector<16x32xf32>
    %34 = tpu.matmul %31, %33, %cst_27 {dimension_numbers = #tpu.dot_dimension_numbers<[1], [0], [0], [1], [0, 0, 1, 1], [], []>} : vector<16x16xbf16>, vector<16x32xbf16>, vector<16x32xf32> -> vector<16x32xf32>
    %35 = arith.addf %28, %34 : vector<16x32xf32>
    %c0_28 = arith.constant 0 : index
    %c0_29 = arith.constant 0 : index
    %36 = vector.load %arg5[%c0_28, %c0_29] : memref<1x32xf32, #tpu.memory_space<vmem>>, vector<1x32xf32>
    %37 = vector.broadcast %36 : vector<1x32xf32> to vector<16x32xf32>
    %38 = arith.addf %35, %37 : vector<16x32xf32>
    %39 = vector.extract_strided_slice %38 {offsets = [0, 0], sizes = [16, 16], strides = [1, 1]} : vector<16x32xf32> to vector<16x16xf32>
    %40 = math.tanh %39 : vector<16x16xf32>
    %41 = vector.extract_strided_slice %38 {offsets = [0, 16], sizes = [16, 16], strides = [1, 1]} : vector<16x32xf32> to vector<16x16xf32>
    %42 = arith.negf %41 : vector<16x16xf32>
    %43 = math.exp %42 : vector<16x16xf32>
    %cst_30 = arith.constant 1.000000e+00 : f32
    %44 = vector.broadcast %cst_30 : f32 to vector<16x16xf32>
    %45 = arith.addf %44, %43 : vector<16x16xf32>
    %46 = arith.divf %44, %45 : vector<16x16xf32>
    %47 = arith.mulf %40, %46 : vector<16x16xf32>
    %48 = arith.truncf %47 : vector<16x16xf32> to vector<16x16xbf16>
    %c0_31 = arith.constant 0 : index
    %c0_32 = arith.constant 0 : index
    %49 = vector.load %arg6[%c0_31, %c0_32] : memref<16x16xbf16, #tpu.memory_space<vmem>>, vector<16x16xbf16>
    %cst_33 = arith.constant dense<0.000000e+00> : vector<16x16xf32>
    %50 = tpu.matmul %48, %49, %cst_33 {dimension_numbers = #tpu.dot_dimension_numbers<[1], [0], [0], [1], [0, 0, 1, 1], [], []>} : vector<16x16xbf16>, vector<16x16xbf16>, vector<16x16xf32> -> vector<16x16xf32>
    %c0_34 = arith.constant 0 : index
    %c0_35 = arith.constant 0 : index
    %51 = vector.load %arg7[%c0_34, %c0_35] : memref<1x16xf32, #tpu.memory_space<vmem>>, vector<1x16xf32>
    %52 = vector.broadcast %51 : vector<1x16xf32> to vector<16x16xf32>
    %53 = arith.addf %50, %52 : vector<16x16xf32>
    %c0_36 = arith.constant 0 : index
    %c0_37 = arith.constant 0 : index
    %c0_38 = arith.constant 0 : index
    %54 = vector.load %arg3[%c0_36, %c0_37, %c0_38] : memref<1x16x1xf32, #tpu.memory_space<vmem>>, vector<1x16x1xf32>
    %55 = vector.shape_cast %54 : vector<1x16x1xf32> to vector<16x1xf32>
    %c0_39 = arith.constant 0 : index
    %c4_40 = arith.constant 4 : index
    %c0_41 = arith.constant 0 : index
    %56 = vector.load %arg1[%c0_39, %c4_40, %c0_41] : memref<1x24x16xf32, #tpu.memory_space<vmem>>, vector<1x16x16xf32>
    %57 = vector.shape_cast %56 : vector<1x16x16xf32> to vector<16x16xf32>
    %c0_42 = arith.constant 0 : index
    %c0_43 = arith.constant 0 : index
    %c0_44 = arith.constant 0 : index
    %58 = vector.load %arg8[%c0_42, %c0_43, %c0_44] : memref<1x16x16xf32, #tpu.memory_space<vmem>>, vector<1x16x16xf32>
    %59 = vector.shape_cast %58 : vector<1x16x16xf32> to vector<16x16xf32>
    %60 = vector.shape_cast %57 : vector<16x16xf32> to vector<1x16x16xf32>
    tpu.vector_store %arg8[%c0_42, %c0_43, %c0_44], %60 {strides = array<i32>} : memref<1x16x16xf32, #tpu.memory_space<vmem>>, vector<1x16x16xf32>,
    %c0_45 = arith.constant 0 : index
    %c0_46 = arith.constant 0 : index
    %c0_47 = arith.constant 0 : index
    %61 = vector.load %arg2[%c0_45, %c0_46, %c0_47] : memref<1x16x16xf32, #tpu.memory_space<vmem>>, vector<1x16x16xf32>
    %62 = vector.shape_cast %61 : vector<1x16x16xf32> to vector<16x16xf32>
    %63 = arith.addf %62, %53 : vector<16x16xf32>
    %64 = vector.broadcast %55 : vector<16x1xf32> to vector<16x16xf32>
    %65 = arith.mulf %63, %64 : vector<16x16xf32>
    %c0_48 = arith.constant 0 : index
    %c0_49 = arith.constant 0 : index
    %c0_50 = arith.constant 0 : index
    %66 = vector.load %arg9[%c0_48, %c0_49, %c0_50] : memref<1x16x16xf32, #tpu.memory_space<vmem>>, vector<1x16x16xf32>
    %67 = vector.shape_cast %66 : vector<1x16x16xf32> to vector<16x16xf32>
    %68 = vector.shape_cast %65 : vector<16x16xf32> to vector<1x16x16xf32>
    tpu.vector_store %arg9[%c0_48, %c0_49, %c0_50], %68 {strides = array<i32>} : memref<1x16x16xf32, #tpu.memory_space<vmem>>, vector<1x16x16xf32>,
    return
  }
  func.func @transform_0(%arg0: i32) -> (i32, i32, i32) {
    %c0_i32 = arith.constant 0 : i32
    %c0_i32_0 = arith.constant 0 : i32
    %c0_i32_1 = arith.constant 0 : i32
    return %arg0, %c0_i32, %c0_i32_0 : i32, i32, i32
  }
  func.func @transform_1(%arg0: i32) -> (i32, i32, i32) {
    %c0_i32 = arith.constant 0 : i32
    %c0_i32_0 = arith.constant 0 : i32
    %c0_i32_1 = arith.constant 0 : i32
    return %arg0, %c0_i32, %c0_i32_0 : i32, i32, i32
  }
  func.func @transform_2(%arg0: i32) -> (i32, i32, i32) {
    %c0_i32 = arith.constant 0 : i32
    %c0_i32_0 = arith.constant 0 : i32
    %c0_i32_1 = arith.constant 0 : i32
    return %arg0, %c0_i32, %c0_i32_0 : i32, i32, i32
  }
  func.func @transform_3(%arg0: i32) -> (i32, i32, i32) {
    %c0_i32 = arith.constant 0 : i32
    %c0_i32_0 = arith.constant 0 : i32
    %c0_i32_1 = arith.constant 0 : i32
    %c0_i32_2 = arith.constant 0 : i32
    return %c0_i32, %c0_i32_0, %c0_i32_1 : i32, i32, i32
  }
  func.func @transform_4(%arg0: i32) -> (i32, i32) {
    %c0_i32 = arith.constant 0 : i32
    %c0_i32_0 = arith.constant 0 : i32
    %c0_i32_1 = arith.constant 0 : i32
    return %c0_i32, %c0_i32_0 : i32, i32
  }
  func.func @transform_5(%arg0: i32) -> (i32, i32) {
    %c0_i32 = arith.constant 0 : i32
    %c0_i32_0 = arith.constant 0 : i32
    %c0_i32_1 = arith.constant 0 : i32
    return %c0_i32, %c0_i32_0 : i32, i32
  }
  func.func @transform_6(%arg0: i32) -> (i32, i32) {
    %c0_i32 = arith.constant 0 : i32
    %c0_i32_0 = arith.constant 0 : i32
    %c0_i32_1 = arith.constant 0 : i32
    return %c0_i32, %c0_i32_0 : i32, i32
  }
  func.func @transform_7(%arg0: i32) -> (i32, i32, i32) {
    %c0_i32 = arith.constant 0 : i32
    %c0_i32_0 = arith.constant 0 : i32
    %c0_i32_1 = arith.constant 0 : i32
    return %arg0, %c0_i32, %c0_i32_0 : i32, i32, i32
  }
  func.func @transform_8(%arg0: i32) -> (i32, i32, i32) {
    %c0_i32 = arith.constant 0 : i32
    %c0_i32_0 = arith.constant 0 : i32
    %c0_i32_1 = arith.constant 0 : i32
    return %arg0, %c0_i32, %c0_i32_0 : i32, i32, i32
  }
}

module attributes {stable_mosaic.version = 11 : i64} {
  func.func @_wn_layer_kernel(%arg0: i32, %arg1: memref<1x20x16xf32, #tpu.memory_space<vmem>>, %arg2: memref<1x16x16xf32, #tpu.memory_space<vmem>>, %arg3: memref<1x16x1xf32, #tpu.memory_space<vmem>>, %arg4: memref<5x16x32xbf16, #tpu.memory_space<vmem>>, %arg5: memref<1x32xf32, #tpu.memory_space<vmem>>, %arg6: memref<16x32xbf16, #tpu.memory_space<vmem>>, %arg7: memref<1x32xf32, #tpu.memory_space<vmem>>, %arg8: memref<1x16x16xf32, #tpu.memory_space<vmem>>, %arg9: memref<1x16x16xf32, #tpu.memory_space<vmem>>) attributes {dimension_semantics = [#tpu.dimension_semantics<parallel>], iteration_bounds = array<i64: 2>, scalar_prefetch = 0 : i64, scratch_operands = 0 : i64, tpu.core_type = #tpu.core_type<tc>, window_params = [{transform_indices = @transform_0, window_bounds = array<i64: 1, 20, 16>}, {transform_indices = @transform_1, window_bounds = array<i64: 1, 16, 16>}, {transform_indices = @transform_2, window_bounds = array<i64: 1, 16, 1>}, {pipeline_mode = #tpu.pipeline_mode<synchronous>, transform_indices = @transform_3, window_bounds = array<i64: 5, 16, 32>}, {pipeline_mode = #tpu.pipeline_mode<synchronous>, transform_indices = @transform_4, window_bounds = array<i64: 1, 32>}, {pipeline_mode = #tpu.pipeline_mode<synchronous>, transform_indices = @transform_5, window_bounds = array<i64: 16, 32>}, {pipeline_mode = #tpu.pipeline_mode<synchronous>, transform_indices = @transform_6, window_bounds = array<i64: 1, 32>}, {transform_indices = @transform_7, window_bounds = array<i64: 1, 16, 16>}, {transform_indices = @transform_8, window_bounds = array<i64: 1, 16, 16>}]} {
    %cst = arith.constant 0.000000e+00 : f32
    %0 = vector.broadcast %cst : f32 to vector<16x32xf32>
    %c0 = arith.constant 0 : index
    %c0_0 = arith.constant 0 : index
    %c0_1 = arith.constant 0 : index
    %1 = vector.load %arg1[%c0, %c0_0, %c0_1] : memref<1x20x16xf32, #tpu.memory_space<vmem>>, vector<1x16x16xf32>
    %2 = vector.shape_cast %1 : vector<1x16x16xf32> to vector<16x16xf32>
    %3 = arith.truncf %2 : vector<16x16xf32> to vector<16x16xbf16>
    %c0_2 = arith.constant 0 : index
    %c0_3 = arith.constant 0 : index
    %c0_4 = arith.constant 0 : index
    %4 = vector.load %arg4[%c0_2, %c0_3, %c0_4] : memref<5x16x32xbf16, #tpu.memory_space<vmem>>, vector<1x16x32xbf16>
    %5 = vector.shape_cast %4 : vector<1x16x32xbf16> to vector<16x32xbf16>
    %cst_5 = arith.constant dense<0.000000e+00> : vector<16x32xf32>
    %6 = tpu.matmul %3, %5, %cst_5 {dimension_numbers = #tpu.dot_dimension_numbers<[1], [0], [0], [1], [0, 0, 1, 1], [], []>} : vector<16x16xbf16>, vector<16x32xbf16>, vector<16x32xf32> -> vector<16x32xf32>
    %7 = arith.addf %0, %6 : vector<16x32xf32>
    %c0_6 = arith.constant 0 : index
    %c1 = arith.constant 1 : index
    %c0_7 = arith.constant 0 : index
    %8 = vector.load %arg1[%c0_6, %c1, %c0_7] : memref<1x20x16xf32, #tpu.memory_space<vmem>>, vector<1x16x16xf32>
    %9 = vector.shape_cast %8 : vector<1x16x16xf32> to vector<16x16xf32>
    %10 = arith.truncf %9 : vector<16x16xf32> to vector<16x16xbf16>
    %c1_8 = arith.constant 1 : index
    %c0_9 = arith.constant 0 : index
    %c0_10 = arith.constant 0 : index
    %11 = vector.load %arg4[%c1_8, %c0_9, %c0_10] : memref<5x16x32xbf16, #tpu.memory_space<vmem>>, vector<1x16x32xbf16>
    %12 = vector.shape_cast %11 : vector<1x16x32xbf16> to vector<16x32xbf16>
    %cst_11 = arith.constant dense<0.000000e+00> : vector<16x32xf32>
    %13 = tpu.matmul %10, %12, %cst_11 {dimension_numbers = #tpu.dot_dimension_numbers<[1], [0], [0], [1], [0, 0, 1, 1], [], []>} : vector<16x16xbf16>, vector<16x32xbf16>, vector<16x32xf32> -> vector<16x32xf32>
    %14 = arith.addf %7, %13 : vector<16x32xf32>
    %c0_12 = arith.constant 0 : index
    %c2 = arith.constant 2 : index
    %c0_13 = arith.constant 0 : index
    %15 = vector.load %arg1[%c0_12, %c2, %c0_13] : memref<1x20x16xf32, #tpu.memory_space<vmem>>, vector<1x16x16xf32>
    %16 = vector.shape_cast %15 : vector<1x16x16xf32> to vector<16x16xf32>
    %17 = arith.truncf %16 : vector<16x16xf32> to vector<16x16xbf16>
    %c2_14 = arith.constant 2 : index
    %c0_15 = arith.constant 0 : index
    %c0_16 = arith.constant 0 : index
    %18 = vector.load %arg4[%c2_14, %c0_15, %c0_16] : memref<5x16x32xbf16, #tpu.memory_space<vmem>>, vector<1x16x32xbf16>
    %19 = vector.shape_cast %18 : vector<1x16x32xbf16> to vector<16x32xbf16>
    %cst_17 = arith.constant dense<0.000000e+00> : vector<16x32xf32>
    %20 = tpu.matmul %17, %19, %cst_17 {dimension_numbers = #tpu.dot_dimension_numbers<[1], [0], [0], [1], [0, 0, 1, 1], [], []>} : vector<16x16xbf16>, vector<16x32xbf16>, vector<16x32xf32> -> vector<16x32xf32>
    %21 = arith.addf %14, %20 : vector<16x32xf32>
    %c0_18 = arith.constant 0 : index
    %c3 = arith.constant 3 : index
    %c0_19 = arith.constant 0 : index
    %22 = vector.load %arg1[%c0_18, %c3, %c0_19] : memref<1x20x16xf32, #tpu.memory_space<vmem>>, vector<1x16x16xf32>
    %23 = vector.shape_cast %22 : vector<1x16x16xf32> to vector<16x16xf32>
    %24 = arith.truncf %23 : vector<16x16xf32> to vector<16x16xbf16>
    %c3_20 = arith.constant 3 : index
    %c0_21 = arith.constant 0 : index
    %c0_22 = arith.constant 0 : index
    %25 = vector.load %arg4[%c3_20, %c0_21, %c0_22] : memref<5x16x32xbf16, #tpu.memory_space<vmem>>, vector<1x16x32xbf16>
    %26 = vector.shape_cast %25 : vector<1x16x32xbf16> to vector<16x32xbf16>
    %cst_23 = arith.constant dense<0.000000e+00> : vector<16x32xf32>
    %27 = tpu.matmul %24, %26, %cst_23 {dimension_numbers = #tpu.dot_dimension_numbers<[1], [0], [0], [1], [0, 0, 1, 1], [], []>} : vector<16x16xbf16>, vector<16x32xbf16>, vector<16x32xf32> -> vector<16x32xf32>
    %28 = arith.addf %21, %27 : vector<16x32xf32>
    %c0_24 = arith.constant 0 : index
    %c4 = arith.constant 4 : index
    %c0_25 = arith.constant 0 : index
    %29 = vector.load %arg1[%c0_24, %c4, %c0_25] : memref<1x20x16xf32, #tpu.memory_space<vmem>>, vector<1x16x16xf32>
    %30 = vector.shape_cast %29 : vector<1x16x16xf32> to vector<16x16xf32>
    %31 = arith.truncf %30 : vector<16x16xf32> to vector<16x16xbf16>
    %c4_26 = arith.constant 4 : index
    %c0_27 = arith.constant 0 : index
    %c0_28 = arith.constant 0 : index
    %32 = vector.load %arg4[%c4_26, %c0_27, %c0_28] : memref<5x16x32xbf16, #tpu.memory_space<vmem>>, vector<1x16x32xbf16>
    %33 = vector.shape_cast %32 : vector<1x16x32xbf16> to vector<16x32xbf16>
    %cst_29 = arith.constant dense<0.000000e+00> : vector<16x32xf32>
    %34 = tpu.matmul %31, %33, %cst_29 {dimension_numbers = #tpu.dot_dimension_numbers<[1], [0], [0], [1], [0, 0, 1, 1], [], []>} : vector<16x16xbf16>, vector<16x32xbf16>, vector<16x32xf32> -> vector<16x32xf32>
    %35 = arith.addf %28, %34 : vector<16x32xf32>
    %c0_30 = arith.constant 0 : index
    %c0_31 = arith.constant 0 : index
    %36 = vector.load %arg5[%c0_30, %c0_31] : memref<1x32xf32, #tpu.memory_space<vmem>>, vector<1x32xf32>
    %37 = vector.broadcast %36 : vector<1x32xf32> to vector<16x32xf32>
    %38 = arith.addf %35, %37 : vector<16x32xf32>
    %39 = vector.extract_strided_slice %38 {offsets = [0, 0], sizes = [16, 16], strides = [1, 1]} : vector<16x32xf32> to vector<16x16xf32>
    %40 = math.tanh %39 : vector<16x16xf32>
    %41 = vector.extract_strided_slice %38 {offsets = [0, 16], sizes = [16, 16], strides = [1, 1]} : vector<16x32xf32> to vector<16x16xf32>
    %42 = arith.negf %41 : vector<16x16xf32>
    %43 = math.exp %42 : vector<16x16xf32>
    %cst_32 = arith.constant 1.000000e+00 : f32
    %44 = vector.broadcast %cst_32 : f32 to vector<16x16xf32>
    %45 = arith.addf %44, %43 : vector<16x16xf32>
    %46 = arith.divf %44, %45 : vector<16x16xf32>
    %47 = arith.mulf %40, %46 : vector<16x16xf32>
    %48 = arith.truncf %47 : vector<16x16xf32> to vector<16x16xbf16>
    %c0_33 = arith.constant 0 : index
    %c0_34 = arith.constant 0 : index
    %49 = vector.load %arg6[%c0_33, %c0_34] : memref<16x32xbf16, #tpu.memory_space<vmem>>, vector<16x32xbf16>
    %cst_35 = arith.constant dense<0.000000e+00> : vector<16x32xf32>
    %50 = tpu.matmul %48, %49, %cst_35 {dimension_numbers = #tpu.dot_dimension_numbers<[1], [0], [0], [1], [0, 0, 1, 1], [], []>} : vector<16x16xbf16>, vector<16x32xbf16>, vector<16x32xf32> -> vector<16x32xf32>
    %c0_36 = arith.constant 0 : index
    %c0_37 = arith.constant 0 : index
    %51 = vector.load %arg7[%c0_36, %c0_37] : memref<1x32xf32, #tpu.memory_space<vmem>>, vector<1x32xf32>
    %52 = vector.broadcast %51 : vector<1x32xf32> to vector<16x32xf32>
    %53 = arith.addf %50, %52 : vector<16x32xf32>
    %c0_38 = arith.constant 0 : index
    %c0_39 = arith.constant 0 : index
    %c0_40 = arith.constant 0 : index
    %54 = vector.load %arg3[%c0_38, %c0_39, %c0_40] : memref<1x16x1xf32, #tpu.memory_space<vmem>>, vector<1x16x1xf32>
    %55 = vector.shape_cast %54 : vector<1x16x1xf32> to vector<16x1xf32>
    %c0_41 = arith.constant 0 : index
    %c2_42 = arith.constant 2 : index
    %c0_43 = arith.constant 0 : index
    %56 = vector.load %arg1[%c0_41, %c2_42, %c0_43] : memref<1x20x16xf32, #tpu.memory_space<vmem>>, vector<1x16x16xf32>
    %57 = vector.shape_cast %56 : vector<1x16x16xf32> to vector<16x16xf32>
    %58 = vector.extract_strided_slice %53 {offsets = [0, 0], sizes = [16, 16], strides = [1, 1]} : vector<16x32xf32> to vector<16x16xf32>
    %59 = arith.addf %57, %58 : vector<16x16xf32>
    %60 = vector.broadcast %55 : vector<16x1xf32> to vector<16x16xf32>
    %61 = arith.mulf %59, %60 : vector<16x16xf32>
    %c0_44 = arith.constant 0 : index
    %c0_45 = arith.constant 0 : index
    %c0_46 = arith.constant 0 : index
    %62 = vector.load %arg8[%c0_44, %c0_45, %c0_46] : memref<1x16x16xf32, #tpu.memory_space<vmem>>, vector<1x16x16xf32>
    %63 = vector.shape_cast %62 : vector<1x16x16xf32> to vector<16x16xf32>
    %64 = vector.shape_cast %61 : vector<16x16xf32> to vector<1x16x16xf32>
    tpu.vector_store %arg8[%c0_44, %c0_45, %c0_46], %64 {strides = array<i32>} : memref<1x16x16xf32, #tpu.memory_space<vmem>>, vector<1x16x16xf32>,
    %c0_47 = arith.constant 0 : index
    %c0_48 = arith.constant 0 : index
    %c0_49 = arith.constant 0 : index
    %65 = vector.load %arg2[%c0_47, %c0_48, %c0_49] : memref<1x16x16xf32, #tpu.memory_space<vmem>>, vector<1x16x16xf32>
    %66 = vector.shape_cast %65 : vector<1x16x16xf32> to vector<16x16xf32>
    %67 = vector.extract_strided_slice %53 {offsets = [0, 16], sizes = [16, 16], strides = [1, 1]} : vector<16x32xf32> to vector<16x16xf32>
    %68 = arith.addf %66, %67 : vector<16x16xf32>
    %c0_50 = arith.constant 0 : index
    %c0_51 = arith.constant 0 : index
    %c0_52 = arith.constant 0 : index
    %69 = vector.load %arg9[%c0_50, %c0_51, %c0_52] : memref<1x16x16xf32, #tpu.memory_space<vmem>>, vector<1x16x16xf32>
    %70 = vector.shape_cast %69 : vector<1x16x16xf32> to vector<16x16xf32>
    %71 = vector.shape_cast %68 : vector<16x16xf32> to vector<1x16x16xf32>
    tpu.vector_store %arg9[%c0_50, %c0_51, %c0_52], %71 {strides = array<i32>} : memref<1x16x16xf32, #tpu.memory_space<vmem>>, vector<1x16x16xf32>,
    return
  }
  func.func @transform_0(%arg0: i32) -> (i32, i32, i32) {
    %c0_i32 = arith.constant 0 : i32
    %c0_i32_0 = arith.constant 0 : i32
    %c0_i32_1 = arith.constant 0 : i32
    return %arg0, %c0_i32, %c0_i32_0 : i32, i32, i32
  }
  func.func @transform_1(%arg0: i32) -> (i32, i32, i32) {
    %c0_i32 = arith.constant 0 : i32
    %c0_i32_0 = arith.constant 0 : i32
    %c0_i32_1 = arith.constant 0 : i32
    return %arg0, %c0_i32, %c0_i32_0 : i32, i32, i32
  }
  func.func @transform_2(%arg0: i32) -> (i32, i32, i32) {
    %c0_i32 = arith.constant 0 : i32
    %c0_i32_0 = arith.constant 0 : i32
    %c0_i32_1 = arith.constant 0 : i32
    return %arg0, %c0_i32, %c0_i32_0 : i32, i32, i32
  }
  func.func @transform_3(%arg0: i32) -> (i32, i32, i32) {
    %c0_i32 = arith.constant 0 : i32
    %c0_i32_0 = arith.constant 0 : i32
    %c0_i32_1 = arith.constant 0 : i32
    %c0_i32_2 = arith.constant 0 : i32
    return %c0_i32, %c0_i32_0, %c0_i32_1 : i32, i32, i32
  }
  func.func @transform_4(%arg0: i32) -> (i32, i32) {
    %c0_i32 = arith.constant 0 : i32
    %c0_i32_0 = arith.constant 0 : i32
    %c0_i32_1 = arith.constant 0 : i32
    return %c0_i32, %c0_i32_0 : i32, i32
  }
  func.func @transform_5(%arg0: i32) -> (i32, i32) {
    %c0_i32 = arith.constant 0 : i32
    %c0_i32_0 = arith.constant 0 : i32
    %c0_i32_1 = arith.constant 0 : i32
    return %c0_i32, %c0_i32_0 : i32, i32
  }
  func.func @transform_6(%arg0: i32) -> (i32, i32) {
    %c0_i32 = arith.constant 0 : i32
    %c0_i32_0 = arith.constant 0 : i32
    %c0_i32_1 = arith.constant 0 : i32
    return %c0_i32, %c0_i32_0 : i32, i32
  }
  func.func @transform_7(%arg0: i32) -> (i32, i32, i32) {
    %c0_i32 = arith.constant 0 : i32
    %c0_i32_0 = arith.constant 0 : i32
    %c0_i32_1 = arith.constant 0 : i32
    return %arg0, %c0_i32, %c0_i32_0 : i32, i32, i32
  }
  func.func @transform_8(%arg0: i32) -> (i32, i32, i32) {
    %c0_i32 = arith.constant 0 : i32
    %c0_i32_0 = arith.constant 0 : i32
    %c0_i32_1 = arith.constant 0 : i32
    return %arg0, %c0_i32, %c0_i32_0 : i32, i32, i32
  }
}

module attributes {stable_mosaic.version = 11 : i64} {
  func.func @_conv_kernel(%arg0: i32, %arg1: memref<1x1x16x16xf32, #tpu.memory_space<vmem>>, %arg2: memref<1x16x32xbf16, #tpu.memory_space<vmem>>, %arg3: memref<1x32xf32, #tpu.memory_space<vmem>>, %arg4: memref<1x16x32xf32, #tpu.memory_space<vmem>>) attributes {dimension_semantics = [#tpu.dimension_semantics<parallel>], iteration_bounds = array<i64: 2>, scalar_prefetch = 0 : i64, scratch_operands = 0 : i64, tpu.core_type = #tpu.core_type<tc>, window_params = [{transform_indices = @transform_0, window_bounds = array<i64: 1, 1, 16, 16>}, {pipeline_mode = #tpu.pipeline_mode<synchronous>, transform_indices = @transform_1, window_bounds = array<i64: 1, 16, 32>}, {pipeline_mode = #tpu.pipeline_mode<synchronous>, transform_indices = @transform_2, window_bounds = array<i64: 1, 32>}, {transform_indices = @transform_3, window_bounds = array<i64: 1, 16, 32>}]} {
    %cst = arith.constant 0.000000e+00 : f32
    %0 = vector.broadcast %cst : f32 to vector<16x32xf32>
    %c0 = arith.constant 0 : index
    %c0_0 = arith.constant 0 : index
    %c0_1 = arith.constant 0 : index
    %c0_2 = arith.constant 0 : index
    %1 = vector.load %arg1[%c0, %c0_0, %c0_1, %c0_2] : memref<1x1x16x16xf32, #tpu.memory_space<vmem>>, vector<1x1x16x16xf32>
    %2 = vector.shape_cast %1 : vector<1x1x16x16xf32> to vector<16x16xf32>
    %3 = arith.truncf %2 : vector<16x16xf32> to vector<16x16xbf16>
    %c0_3 = arith.constant 0 : index
    %c0_4 = arith.constant 0 : index
    %c0_5 = arith.constant 0 : index
    %4 = vector.load %arg2[%c0_3, %c0_4, %c0_5] : memref<1x16x32xbf16, #tpu.memory_space<vmem>>, vector<1x16x32xbf16>
    %5 = vector.shape_cast %4 : vector<1x16x32xbf16> to vector<16x32xbf16>
    %cst_6 = arith.constant dense<0.000000e+00> : vector<16x32xf32>
    %6 = tpu.matmul %3, %5, %cst_6 {dimension_numbers = #tpu.dot_dimension_numbers<[1], [0], [0], [1], [0, 0, 1, 1], [], []>} : vector<16x16xbf16>, vector<16x32xbf16>, vector<16x32xf32> -> vector<16x32xf32>
    %7 = arith.addf %0, %6 : vector<16x32xf32>
    %c0_7 = arith.constant 0 : index
    %c0_8 = arith.constant 0 : index
    %8 = vector.load %arg3[%c0_7, %c0_8] : memref<1x32xf32, #tpu.memory_space<vmem>>, vector<1x32xf32>
    %9 = vector.broadcast %8 : vector<1x32xf32> to vector<16x32xf32>
    %10 = arith.addf %7, %9 : vector<16x32xf32>
    %c0_9 = arith.constant 0 : index
    %c0_10 = arith.constant 0 : index
    %c0_11 = arith.constant 0 : index
    %11 = vector.load %arg4[%c0_9, %c0_10, %c0_11] : memref<1x16x32xf32, #tpu.memory_space<vmem>>, vector<1x16x32xf32>
    %12 = vector.shape_cast %11 : vector<1x16x32xf32> to vector<16x32xf32>
    %13 = vector.shape_cast %10 : vector<16x32xf32> to vector<1x16x32xf32>
    tpu.vector_store %arg4[%c0_9, %c0_10, %c0_11], %13 {strides = array<i32>} : memref<1x16x32xf32, #tpu.memory_space<vmem>>, vector<1x16x32xf32>,
    return
  }
  func.func @transform_0(%arg0: i32) -> (i32, i32, i32, i32) {
    %c0_i32 = arith.constant 0 : i32
    %c0_i32_0 = arith.constant 0 : i32
    %c0_i32_1 = arith.constant 0 : i32
    %c0_i32_2 = arith.constant 0 : i32
    return %c0_i32, %arg0, %c0_i32_0, %c0_i32_1 : i32, i32, i32, i32
  }
  func.func @transform_1(%arg0: i32) -> (i32, i32, i32) {
    %c0_i32 = arith.constant 0 : i32
    %c0_i32_0 = arith.constant 0 : i32
    %c0_i32_1 = arith.constant 0 : i32
    %c0_i32_2 = arith.constant 0 : i32
    return %c0_i32, %c0_i32_0, %c0_i32_1 : i32, i32, i32
  }
  func.func @transform_2(%arg0: i32) -> (i32, i32) {
    %c0_i32 = arith.constant 0 : i32
    %c0_i32_0 = arith.constant 0 : i32
    %c0_i32_1 = arith.constant 0 : i32
    return %c0_i32, %c0_i32_0 : i32, i32
  }
  func.func @transform_3(%arg0: i32) -> (i32, i32, i32) {
    %c0_i32 = arith.constant 0 : i32
    %c0_i32_0 = arith.constant 0 : i32
    %c0_i32_1 = arith.constant 0 : i32
    return %arg0, %c0_i32, %c0_i32_0 : i32, i32, i32
  }
}

module attributes {stable_mosaic.version = 11 : i64} {
  func.func @_conv_kernel(%arg0: i32, %arg1: memref<1x1x16x16xf32, #tpu.memory_space<vmem>>, %arg2: memref<1x16x8xbf16, #tpu.memory_space<vmem>>, %arg3: memref<1x8xf32, #tpu.memory_space<vmem>>, %arg4: memref<1x16x8xf32, #tpu.memory_space<vmem>>) attributes {dimension_semantics = [#tpu.dimension_semantics<parallel>], iteration_bounds = array<i64: 2>, scalar_prefetch = 0 : i64, scratch_operands = 0 : i64, tpu.core_type = #tpu.core_type<tc>, window_params = [{transform_indices = @transform_0, window_bounds = array<i64: 1, 1, 16, 16>}, {pipeline_mode = #tpu.pipeline_mode<synchronous>, transform_indices = @transform_1, window_bounds = array<i64: 1, 16, 8>}, {pipeline_mode = #tpu.pipeline_mode<synchronous>, transform_indices = @transform_2, window_bounds = array<i64: 1, 8>}, {transform_indices = @transform_3, window_bounds = array<i64: 1, 16, 8>}]} {
    %cst = arith.constant 0.000000e+00 : f32
    %0 = vector.broadcast %cst : f32 to vector<16x8xf32>
    %c0 = arith.constant 0 : index
    %c0_0 = arith.constant 0 : index
    %c0_1 = arith.constant 0 : index
    %c0_2 = arith.constant 0 : index
    %1 = vector.load %arg1[%c0, %c0_0, %c0_1, %c0_2] : memref<1x1x16x16xf32, #tpu.memory_space<vmem>>, vector<1x1x16x16xf32>
    %2 = vector.shape_cast %1 : vector<1x1x16x16xf32> to vector<16x16xf32>
    %3 = arith.truncf %2 : vector<16x16xf32> to vector<16x16xbf16>
    %c0_3 = arith.constant 0 : index
    %c0_4 = arith.constant 0 : index
    %c0_5 = arith.constant 0 : index
    %4 = vector.load %arg2[%c0_3, %c0_4, %c0_5] : memref<1x16x8xbf16, #tpu.memory_space<vmem>>, vector<1x16x8xbf16>
    %5 = vector.shape_cast %4 : vector<1x16x8xbf16> to vector<16x8xbf16>
    %cst_6 = arith.constant dense<0.000000e+00> : vector<16x8xf32>
    %6 = tpu.matmul %3, %5, %cst_6 {dimension_numbers = #tpu.dot_dimension_numbers<[1], [0], [0], [1], [0, 0, 1, 1], [], []>} : vector<16x16xbf16>, vector<16x8xbf16>, vector<16x8xf32> -> vector<16x8xf32>
    %7 = arith.addf %0, %6 : vector<16x8xf32>
    %c0_7 = arith.constant 0 : index
    %c0_8 = arith.constant 0 : index
    %8 = vector.load %arg3[%c0_7, %c0_8] : memref<1x8xf32, #tpu.memory_space<vmem>>, vector<1x8xf32>
    %9 = vector.broadcast %8 : vector<1x8xf32> to vector<16x8xf32>
    %10 = arith.addf %7, %9 : vector<16x8xf32>
    %c0_9 = arith.constant 0 : index
    %c0_10 = arith.constant 0 : index
    %c0_11 = arith.constant 0 : index
    %11 = vector.load %arg4[%c0_9, %c0_10, %c0_11] : memref<1x16x8xf32, #tpu.memory_space<vmem>>, vector<1x16x8xf32>
    %12 = vector.shape_cast %11 : vector<1x16x8xf32> to vector<16x8xf32>
    %13 = vector.shape_cast %10 : vector<16x8xf32> to vector<1x16x8xf32>
    tpu.vector_store %arg4[%c0_9, %c0_10, %c0_11], %13 {strides = array<i32>} : memref<1x16x8xf32, #tpu.memory_space<vmem>>, vector<1x16x8xf32>,
    return
  }
  func.func @transform_0(%arg0: i32) -> (i32, i32, i32, i32) {
    %c0_i32 = arith.constant 0 : i32
    %c0_i32_0 = arith.constant 0 : i32
    %c0_i32_1 = arith.constant 0 : i32
    %c0_i32_2 = arith.constant 0 : i32
    return %c0_i32, %arg0, %c0_i32_0, %c0_i32_1 : i32, i32, i32, i32
  }
  func.func @transform_1(%arg0: i32) -> (i32, i32, i32) {
    %c0_i32 = arith.constant 0 : i32
    %c0_i32_0 = arith.constant 0 : i32
    %c0_i32_1 = arith.constant 0 : i32
    %c0_i32_2 = arith.constant 0 : i32
    return %c0_i32, %c0_i32_0, %c0_i32_1 : i32, i32, i32
  }
  func.func @transform_2(%arg0: i32) -> (i32, i32) {
    %c0_i32 = arith.constant 0 : i32
    %c0_i32_0 = arith.constant 0 : i32
    %c0_i32_1 = arith.constant 0 : i32
    return %c0_i32, %c0_i32_0 : i32, i32
  }
  func.func @transform_3(%arg0: i32) -> (i32, i32, i32) {
    %c0_i32 = arith.constant 0 : i32
    %c0_i32_0 = arith.constant 0 : i32
    %c0_i32_1 = arith.constant 0 : i32
    return %arg0, %c0_i32, %c0_i32_0 : i32, i32, i32
  }
}

module attributes {stable_mosaic.version = 11 : i64} {
  func.func @_wn_layer_kernel(%arg0: i32, %arg1: memref<1x20x16xf32, #tpu.memory_space<vmem>>, %arg2: memref<1x16x16xf32, #tpu.memory_space<vmem>>, %arg3: memref<1x16x1xf32, #tpu.memory_space<vmem>>, %arg4: memref<5x16x32xbf16, #tpu.memory_space<vmem>>, %arg5: memref<1x32xf32, #tpu.memory_space<vmem>>, %arg6: memref<16x16xbf16, #tpu.memory_space<vmem>>, %arg7: memref<1x16xf32, #tpu.memory_space<vmem>>, %arg8: memref<1x16x16xf32, #tpu.memory_space<vmem>>, %arg9: memref<1x16x16xf32, #tpu.memory_space<vmem>>) attributes {dimension_semantics = [#tpu.dimension_semantics<parallel>], iteration_bounds = array<i64: 2>, scalar_prefetch = 0 : i64, scratch_operands = 0 : i64, tpu.core_type = #tpu.core_type<tc>, window_params = [{transform_indices = @transform_0, window_bounds = array<i64: 1, 20, 16>}, {transform_indices = @transform_1, window_bounds = array<i64: 1, 16, 16>}, {transform_indices = @transform_2, window_bounds = array<i64: 1, 16, 1>}, {pipeline_mode = #tpu.pipeline_mode<synchronous>, transform_indices = @transform_3, window_bounds = array<i64: 5, 16, 32>}, {pipeline_mode = #tpu.pipeline_mode<synchronous>, transform_indices = @transform_4, window_bounds = array<i64: 1, 32>}, {pipeline_mode = #tpu.pipeline_mode<synchronous>, transform_indices = @transform_5, window_bounds = array<i64: 16, 16>}, {pipeline_mode = #tpu.pipeline_mode<synchronous>, transform_indices = @transform_6, window_bounds = array<i64: 1, 16>}, {transform_indices = @transform_7, window_bounds = array<i64: 1, 16, 16>}, {transform_indices = @transform_8, window_bounds = array<i64: 1, 16, 16>}]} {
    %cst = arith.constant 0.000000e+00 : f32
    %0 = vector.broadcast %cst : f32 to vector<16x32xf32>
    %c0 = arith.constant 0 : index
    %c0_0 = arith.constant 0 : index
    %c0_1 = arith.constant 0 : index
    %1 = vector.load %arg1[%c0, %c0_0, %c0_1] : memref<1x20x16xf32, #tpu.memory_space<vmem>>, vector<1x16x16xf32>
    %2 = vector.shape_cast %1 : vector<1x16x16xf32> to vector<16x16xf32>
    %3 = arith.truncf %2 : vector<16x16xf32> to vector<16x16xbf16>
    %c0_2 = arith.constant 0 : index
    %c0_3 = arith.constant 0 : index
    %c0_4 = arith.constant 0 : index
    %4 = vector.load %arg4[%c0_2, %c0_3, %c0_4] : memref<5x16x32xbf16, #tpu.memory_space<vmem>>, vector<1x16x32xbf16>
    %5 = vector.shape_cast %4 : vector<1x16x32xbf16> to vector<16x32xbf16>
    %cst_5 = arith.constant dense<0.000000e+00> : vector<16x32xf32>
    %6 = tpu.matmul %3, %5, %cst_5 {dimension_numbers = #tpu.dot_dimension_numbers<[1], [0], [0], [1], [0, 0, 1, 1], [], []>} : vector<16x16xbf16>, vector<16x32xbf16>, vector<16x32xf32> -> vector<16x32xf32>
    %7 = arith.addf %0, %6 : vector<16x32xf32>
    %c0_6 = arith.constant 0 : index
    %c1 = arith.constant 1 : index
    %c0_7 = arith.constant 0 : index
    %8 = vector.load %arg1[%c0_6, %c1, %c0_7] : memref<1x20x16xf32, #tpu.memory_space<vmem>>, vector<1x16x16xf32>
    %9 = vector.shape_cast %8 : vector<1x16x16xf32> to vector<16x16xf32>
    %10 = arith.truncf %9 : vector<16x16xf32> to vector<16x16xbf16>
    %c1_8 = arith.constant 1 : index
    %c0_9 = arith.constant 0 : index
    %c0_10 = arith.constant 0 : index
    %11 = vector.load %arg4[%c1_8, %c0_9, %c0_10] : memref<5x16x32xbf16, #tpu.memory_space<vmem>>, vector<1x16x32xbf16>
    %12 = vector.shape_cast %11 : vector<1x16x32xbf16> to vector<16x32xbf16>
    %cst_11 = arith.constant dense<0.000000e+00> : vector<16x32xf32>
    %13 = tpu.matmul %10, %12, %cst_11 {dimension_numbers = #tpu.dot_dimension_numbers<[1], [0], [0], [1], [0, 0, 1, 1], [], []>} : vector<16x16xbf16>, vector<16x32xbf16>, vector<16x32xf32> -> vector<16x32xf32>
    %14 = arith.addf %7, %13 : vector<16x32xf32>
    %c0_12 = arith.constant 0 : index
    %c2 = arith.constant 2 : index
    %c0_13 = arith.constant 0 : index
    %15 = vector.load %arg1[%c0_12, %c2, %c0_13] : memref<1x20x16xf32, #tpu.memory_space<vmem>>, vector<1x16x16xf32>
    %16 = vector.shape_cast %15 : vector<1x16x16xf32> to vector<16x16xf32>
    %17 = arith.truncf %16 : vector<16x16xf32> to vector<16x16xbf16>
    %c2_14 = arith.constant 2 : index
    %c0_15 = arith.constant 0 : index
    %c0_16 = arith.constant 0 : index
    %18 = vector.load %arg4[%c2_14, %c0_15, %c0_16] : memref<5x16x32xbf16, #tpu.memory_space<vmem>>, vector<1x16x32xbf16>
    %19 = vector.shape_cast %18 : vector<1x16x32xbf16> to vector<16x32xbf16>
    %cst_17 = arith.constant dense<0.000000e+00> : vector<16x32xf32>
    %20 = tpu.matmul %17, %19, %cst_17 {dimension_numbers = #tpu.dot_dimension_numbers<[1], [0], [0], [1], [0, 0, 1, 1], [], []>} : vector<16x16xbf16>, vector<16x32xbf16>, vector<16x32xf32> -> vector<16x32xf32>
    %21 = arith.addf %14, %20 : vector<16x32xf32>
    %c0_18 = arith.constant 0 : index
    %c3 = arith.constant 3 : index
    %c0_19 = arith.constant 0 : index
    %22 = vector.load %arg1[%c0_18, %c3, %c0_19] : memref<1x20x16xf32, #tpu.memory_space<vmem>>, vector<1x16x16xf32>
    %23 = vector.shape_cast %22 : vector<1x16x16xf32> to vector<16x16xf32>
    %24 = arith.truncf %23 : vector<16x16xf32> to vector<16x16xbf16>
    %c3_20 = arith.constant 3 : index
    %c0_21 = arith.constant 0 : index
    %c0_22 = arith.constant 0 : index
    %25 = vector.load %arg4[%c3_20, %c0_21, %c0_22] : memref<5x16x32xbf16, #tpu.memory_space<vmem>>, vector<1x16x32xbf16>
    %26 = vector.shape_cast %25 : vector<1x16x32xbf16> to vector<16x32xbf16>
    %cst_23 = arith.constant dense<0.000000e+00> : vector<16x32xf32>
    %27 = tpu.matmul %24, %26, %cst_23 {dimension_numbers = #tpu.dot_dimension_numbers<[1], [0], [0], [1], [0, 0, 1, 1], [], []>} : vector<16x16xbf16>, vector<16x32xbf16>, vector<16x32xf32> -> vector<16x32xf32>
    %28 = arith.addf %21, %27 : vector<16x32xf32>
    %c0_24 = arith.constant 0 : index
    %c4 = arith.constant 4 : index
    %c0_25 = arith.constant 0 : index
    %29 = vector.load %arg1[%c0_24, %c4, %c0_25] : memref<1x20x16xf32, #tpu.memory_space<vmem>>, vector<1x16x16xf32>
    %30 = vector.shape_cast %29 : vector<1x16x16xf32> to vector<16x16xf32>
    %31 = arith.truncf %30 : vector<16x16xf32> to vector<16x16xbf16>
    %c4_26 = arith.constant 4 : index
    %c0_27 = arith.constant 0 : index
    %c0_28 = arith.constant 0 : index
    %32 = vector.load %arg4[%c4_26, %c0_27, %c0_28] : memref<5x16x32xbf16, #tpu.memory_space<vmem>>, vector<1x16x32xbf16>
    %33 = vector.shape_cast %32 : vector<1x16x32xbf16> to vector<16x32xbf16>
    %cst_29 = arith.constant dense<0.000000e+00> : vector<16x32xf32>
    %34 = tpu.matmul %31, %33, %cst_29 {dimension_numbers = #tpu.dot_dimension_numbers<[1], [0], [0], [1], [0, 0, 1, 1], [], []>} : vector<16x16xbf16>, vector<16x32xbf16>, vector<16x32xf32> -> vector<16x32xf32>
    %35 = arith.addf %28, %34 : vector<16x32xf32>
    %c0_30 = arith.constant 0 : index
    %c0_31 = arith.constant 0 : index
    %36 = vector.load %arg5[%c0_30, %c0_31] : memref<1x32xf32, #tpu.memory_space<vmem>>, vector<1x32xf32>
    %37 = vector.broadcast %36 : vector<1x32xf32> to vector<16x32xf32>
    %38 = arith.addf %35, %37 : vector<16x32xf32>
    %39 = vector.extract_strided_slice %38 {offsets = [0, 0], sizes = [16, 16], strides = [1, 1]} : vector<16x32xf32> to vector<16x16xf32>
    %40 = math.tanh %39 : vector<16x16xf32>
    %41 = vector.extract_strided_slice %38 {offsets = [0, 16], sizes = [16, 16], strides = [1, 1]} : vector<16x32xf32> to vector<16x16xf32>
    %42 = arith.negf %41 : vector<16x16xf32>
    %43 = math.exp %42 : vector<16x16xf32>
    %cst_32 = arith.constant 1.000000e+00 : f32
    %44 = vector.broadcast %cst_32 : f32 to vector<16x16xf32>
    %45 = arith.addf %44, %43 : vector<16x16xf32>
    %46 = arith.divf %44, %45 : vector<16x16xf32>
    %47 = arith.mulf %40, %46 : vector<16x16xf32>
    %48 = arith.truncf %47 : vector<16x16xf32> to vector<16x16xbf16>
    %c0_33 = arith.constant 0 : index
    %c0_34 = arith.constant 0 : index
    %49 = vector.load %arg6[%c0_33, %c0_34] : memref<16x16xbf16, #tpu.memory_space<vmem>>, vector<16x16xbf16>
    %cst_35 = arith.constant dense<0.000000e+00> : vector<16x16xf32>
    %50 = tpu.matmul %48, %49, %cst_35 {dimension_numbers = #tpu.dot_dimension_numbers<[1], [0], [0], [1], [0, 0, 1, 1], [], []>} : vector<16x16xbf16>, vector<16x16xbf16>, vector<16x16xf32> -> vector<16x16xf32>
    %c0_36 = arith.constant 0 : index
    %c0_37 = arith.constant 0 : index
    %51 = vector.load %arg7[%c0_36, %c0_37] : memref<1x16xf32, #tpu.memory_space<vmem>>, vector<1x16xf32>
    %52 = vector.broadcast %51 : vector<1x16xf32> to vector<16x16xf32>
    %53 = arith.addf %50, %52 : vector<16x16xf32>
    %c0_38 = arith.constant 0 : index
    %c0_39 = arith.constant 0 : index
    %c0_40 = arith.constant 0 : index
    %54 = vector.load %arg3[%c0_38, %c0_39, %c0_40] : memref<1x16x1xf32, #tpu.memory_space<vmem>>, vector<1x16x1xf32>
    %55 = vector.shape_cast %54 : vector<1x16x1xf32> to vector<16x1xf32>
    %c0_41 = arith.constant 0 : index
    %c2_42 = arith.constant 2 : index
    %c0_43 = arith.constant 0 : index
    %56 = vector.load %arg1[%c0_41, %c2_42, %c0_43] : memref<1x20x16xf32, #tpu.memory_space<vmem>>, vector<1x16x16xf32>
    %57 = vector.shape_cast %56 : vector<1x16x16xf32> to vector<16x16xf32>
    %c0_44 = arith.constant 0 : index
    %c0_45 = arith.constant 0 : index
    %c0_46 = arith.constant 0 : index
    %58 = vector.load %arg8[%c0_44, %c0_45, %c0_46] : memref<1x16x16xf32, #tpu.memory_space<vmem>>, vector<1x16x16xf32>
    %59 = vector.shape_cast %58 : vector<1x16x16xf32> to vector<16x16xf32>
    %60 = vector.shape_cast %57 : vector<16x16xf32> to vector<1x16x16xf32>
    tpu.vector_store %arg8[%c0_44, %c0_45, %c0_46], %60 {strides = array<i32>} : memref<1x16x16xf32, #tpu.memory_space<vmem>>, vector<1x16x16xf32>,
    %c0_47 = arith.constant 0 : index
    %c0_48 = arith.constant 0 : index
    %c0_49 = arith.constant 0 : index
    %61 = vector.load %arg2[%c0_47, %c0_48, %c0_49] : memref<1x16x16xf32, #tpu.memory_space<vmem>>, vector<1x16x16xf32>
    %62 = vector.shape_cast %61 : vector<1x16x16xf32> to vector<16x16xf32>
    %63 = arith.addf %62, %53 : vector<16x16xf32>
    %64 = vector.broadcast %55 : vector<16x1xf32> to vector<16x16xf32>
    %65 = arith.mulf %63, %64 : vector<16x16xf32>
    %c0_50 = arith.constant 0 : index
    %c0_51 = arith.constant 0 : index
    %c0_52 = arith.constant 0 : index
    %66 = vector.load %arg9[%c0_50, %c0_51, %c0_52] : memref<1x16x16xf32, #tpu.memory_space<vmem>>, vector<1x16x16xf32>
    %67 = vector.shape_cast %66 : vector<1x16x16xf32> to vector<16x16xf32>
    %68 = vector.shape_cast %65 : vector<16x16xf32> to vector<1x16x16xf32>
    tpu.vector_store %arg9[%c0_50, %c0_51, %c0_52], %68 {strides = array<i32>} : memref<1x16x16xf32, #tpu.memory_space<vmem>>, vector<1x16x16xf32>,
    return
  }
  func.func @transform_0(%arg0: i32) -> (i32, i32, i32) {
    %c0_i32 = arith.constant 0 : i32
    %c0_i32_0 = arith.constant 0 : i32
    %c0_i32_1 = arith.constant 0 : i32
    return %arg0, %c0_i32, %c0_i32_0 : i32, i32, i32
  }
  func.func @transform_1(%arg0: i32) -> (i32, i32, i32) {
    %c0_i32 = arith.constant 0 : i32
    %c0_i32_0 = arith.constant 0 : i32
    %c0_i32_1 = arith.constant 0 : i32
    return %arg0, %c0_i32, %c0_i32_0 : i32, i32, i32
  }
  func.func @transform_2(%arg0: i32) -> (i32, i32, i32) {
    %c0_i32 = arith.constant 0 : i32
    %c0_i32_0 = arith.constant 0 : i32
    %c0_i32_1 = arith.constant 0 : i32
    return %arg0, %c0_i32, %c0_i32_0 : i32, i32, i32
  }
  func.func @transform_3(%arg0: i32) -> (i32, i32, i32) {
    %c0_i32 = arith.constant 0 : i32
    %c0_i32_0 = arith.constant 0 : i32
    %c0_i32_1 = arith.constant 0 : i32
    %c0_i32_2 = arith.constant 0 : i32
    return %c0_i32, %c0_i32_0, %c0_i32_1 : i32, i32, i32
  }
  func.func @transform_4(%arg0: i32) -> (i32, i32) {
    %c0_i32 = arith.constant 0 : i32
    %c0_i32_0 = arith.constant 0 : i32
    %c0_i32_1 = arith.constant 0 : i32
    return %c0_i32, %c0_i32_0 : i32, i32
  }
  func.func @transform_5(%arg0: i32) -> (i32, i32) {
    %c0_i32 = arith.constant 0 : i32
    %c0_i32_0 = arith.constant 0 : i32
    %c0_i32_1 = arith.constant 0 : i32
    return %c0_i32, %c0_i32_0 : i32, i32
  }
  func.func @transform_6(%arg0: i32) -> (i32, i32) {
    %c0_i32 = arith.constant 0 : i32
    %c0_i32_0 = arith.constant 0 : i32
    %c0_i32_1 = arith.constant 0 : i32
    return %c0_i32, %c0_i32_0 : i32, i32
  }
  func.func @transform_7(%arg0: i32) -> (i32, i32, i32) {
    %c0_i32 = arith.constant 0 : i32
    %c0_i32_0 = arith.constant 0 : i32
    %c0_i32_1 = arith.constant 0 : i32
    return %arg0, %c0_i32, %c0_i32_0 : i32, i32, i32
  }
  func.func @transform_8(%arg0: i32) -> (i32, i32, i32) {
    %c0_i32 = arith.constant 0 : i32
    %c0_i32_0 = arith.constant 0 : i32
    %c0_i32_1 = arith.constant 0 : i32
    return %arg0, %c0_i32, %c0_i32_0 : i32, i32, i32
  }
}

module attributes {stable_mosaic.version = 11 : i64} {
  func.func @_conv_kernel(%arg0: i32, %arg1: memref<2x1x130x1xf32, #tpu.memory_space<vmem>>, %arg2: memref<5x1x8xbf16, #tpu.memory_space<vmem>>, %arg3: memref<1x8xf32, #tpu.memory_space<vmem>>, %arg4: memref<1x128x8xf32, #tpu.memory_space<vmem>>) attributes {dimension_semantics = [#tpu.dimension_semantics<parallel>], iteration_bounds = array<i64: 2>, scalar_prefetch = 0 : i64, scratch_operands = 0 : i64, tpu.core_type = #tpu.core_type<tc>, window_params = [{transform_indices = @transform_0, window_bounds = array<i64: 2, 1, 130, 1>}, {pipeline_mode = #tpu.pipeline_mode<synchronous>, transform_indices = @transform_1, window_bounds = array<i64: 5, 1, 8>}, {pipeline_mode = #tpu.pipeline_mode<synchronous>, transform_indices = @transform_2, window_bounds = array<i64: 1, 8>}, {transform_indices = @transform_3, window_bounds = array<i64: 1, 128, 8>}]} {
    %cst = arith.constant 0.000000e+00 : f32
    %0 = vector.broadcast %cst : f32 to vector<128x8xf32>
    %c0 = arith.constant 0 : index
    %c0_0 = arith.constant 0 : index
    %c0_1 = arith.constant 0 : index
    %c0_2 = arith.constant 0 : index
    %1 = vector.load %arg1[%c0, %c0_0, %c0_1, %c0_2] : memref<2x1x130x1xf32, #tpu.memory_space<vmem>>, vector<1x1x128x1xf32>
    %2 = vector.shape_cast %1 : vector<1x1x128x1xf32> to vector<128x1xf32>
    %3 = arith.truncf %2 : vector<128x1xf32> to vector<128x1xbf16>
    %c0_3 = arith.constant 0 : index
    %c0_4 = arith.constant 0 : index
    %c0_5 = arith.constant 0 : index
    %4 = vector.load %arg2[%c0_3, %c0_4, %c0_5] : memref<5x1x8xbf16, #tpu.memory_space<vmem>>, vector<1x1x8xbf16>
    %5 = vector.shape_cast %4 : vector<1x1x8xbf16> to vector<1x8xbf16>
    %cst_6 = arith.constant dense<0.000000e+00> : vector<128x8xf32>
    %6 = tpu.matmul %3, %5, %cst_6 {dimension_numbers = #tpu.dot_dimension_numbers<[1], [0], [0], [1], [0, 0, 1, 1], [], []>} : vector<128x1xbf16>, vector<1x8xbf16>, vector<128x8xf32> -> vector<128x8xf32>
    %7 = arith.addf %0, %6 : vector<128x8xf32>
    %c1 = arith.constant 1 : index
    %c0_7 = arith.constant 0 : index
    %c0_8 = arith.constant 0 : index
    %c0_9 = arith.constant 0 : index
    %8 = vector.load %arg1[%c1, %c0_7, %c0_8, %c0_9] : memref<2x1x130x1xf32, #tpu.memory_space<vmem>>, vector<1x1x128x1xf32>
    %9 = vector.shape_cast %8 : vector<1x1x128x1xf32> to vector<128x1xf32>
    %10 = arith.truncf %9 : vector<128x1xf32> to vector<128x1xbf16>
    %c1_10 = arith.constant 1 : index
    %c0_11 = arith.constant 0 : index
    %c0_12 = arith.constant 0 : index
    %11 = vector.load %arg2[%c1_10, %c0_11, %c0_12] : memref<5x1x8xbf16, #tpu.memory_space<vmem>>, vector<1x1x8xbf16>
    %12 = vector.shape_cast %11 : vector<1x1x8xbf16> to vector<1x8xbf16>
    %cst_13 = arith.constant dense<0.000000e+00> : vector<128x8xf32>
    %13 = tpu.matmul %10, %12, %cst_13 {dimension_numbers = #tpu.dot_dimension_numbers<[1], [0], [0], [1], [0, 0, 1, 1], [], []>} : vector<128x1xbf16>, vector<1x8xbf16>, vector<128x8xf32> -> vector<128x8xf32>
    %14 = arith.addf %7, %13 : vector<128x8xf32>
    %c0_14 = arith.constant 0 : index
    %c0_15 = arith.constant 0 : index
    %c1_16 = arith.constant 1 : index
    %c0_17 = arith.constant 0 : index
    %15 = vector.load %arg1[%c0_14, %c0_15, %c1_16, %c0_17] : memref<2x1x130x1xf32, #tpu.memory_space<vmem>>, vector<1x1x128x1xf32>
    %16 = vector.shape_cast %15 : vector<1x1x128x1xf32> to vector<128x1xf32>
    %17 = arith.truncf %16 : vector<128x1xf32> to vector<128x1xbf16>
    %c2 = arith.constant 2 : index
    %c0_18 = arith.constant 0 : index
    %c0_19 = arith.constant 0 : index
    %18 = vector.load %arg2[%c2, %c0_18, %c0_19] : memref<5x1x8xbf16, #tpu.memory_space<vmem>>, vector<1x1x8xbf16>
    %19 = vector.shape_cast %18 : vector<1x1x8xbf16> to vector<1x8xbf16>
    %cst_20 = arith.constant dense<0.000000e+00> : vector<128x8xf32>
    %20 = tpu.matmul %17, %19, %cst_20 {dimension_numbers = #tpu.dot_dimension_numbers<[1], [0], [0], [1], [0, 0, 1, 1], [], []>} : vector<128x1xbf16>, vector<1x8xbf16>, vector<128x8xf32> -> vector<128x8xf32>
    %21 = arith.addf %14, %20 : vector<128x8xf32>
    %c1_21 = arith.constant 1 : index
    %c0_22 = arith.constant 0 : index
    %c1_23 = arith.constant 1 : index
    %c0_24 = arith.constant 0 : index
    %22 = vector.load %arg1[%c1_21, %c0_22, %c1_23, %c0_24] : memref<2x1x130x1xf32, #tpu.memory_space<vmem>>, vector<1x1x128x1xf32>
    %23 = vector.shape_cast %22 : vector<1x1x128x1xf32> to vector<128x1xf32>
    %24 = arith.truncf %23 : vector<128x1xf32> to vector<128x1xbf16>
    %c3 = arith.constant 3 : index
    %c0_25 = arith.constant 0 : index
    %c0_26 = arith.constant 0 : index
    %25 = vector.load %arg2[%c3, %c0_25, %c0_26] : memref<5x1x8xbf16, #tpu.memory_space<vmem>>, vector<1x1x8xbf16>
    %26 = vector.shape_cast %25 : vector<1x1x8xbf16> to vector<1x8xbf16>
    %cst_27 = arith.constant dense<0.000000e+00> : vector<128x8xf32>
    %27 = tpu.matmul %24, %26, %cst_27 {dimension_numbers = #tpu.dot_dimension_numbers<[1], [0], [0], [1], [0, 0, 1, 1], [], []>} : vector<128x1xbf16>, vector<1x8xbf16>, vector<128x8xf32> -> vector<128x8xf32>
    %28 = arith.addf %21, %27 : vector<128x8xf32>
    %c0_28 = arith.constant 0 : index
    %c0_29 = arith.constant 0 : index
    %c2_30 = arith.constant 2 : index
    %c0_31 = arith.constant 0 : index
    %29 = vector.load %arg1[%c0_28, %c0_29, %c2_30, %c0_31] : memref<2x1x130x1xf32, #tpu.memory_space<vmem>>, vector<1x1x128x1xf32>
    %30 = vector.shape_cast %29 : vector<1x1x128x1xf32> to vector<128x1xf32>
    %31 = arith.truncf %30 : vector<128x1xf32> to vector<128x1xbf16>
    %c4 = arith.constant 4 : index
    %c0_32 = arith.constant 0 : index
    %c0_33 = arith.constant 0 : index
    %32 = vector.load %arg2[%c4, %c0_32, %c0_33] : memref<5x1x8xbf16, #tpu.memory_space<vmem>>, vector<1x1x8xbf16>
    %33 = vector.shape_cast %32 : vector<1x1x8xbf16> to vector<1x8xbf16>
    %cst_34 = arith.constant dense<0.000000e+00> : vector<128x8xf32>
    %34 = tpu.matmul %31, %33, %cst_34 {dimension_numbers = #tpu.dot_dimension_numbers<[1], [0], [0], [1], [0, 0, 1, 1], [], []>} : vector<128x1xbf16>, vector<1x8xbf16>, vector<128x8xf32> -> vector<128x8xf32>
    %35 = arith.addf %28, %34 : vector<128x8xf32>
    %c0_35 = arith.constant 0 : index
    %c0_36 = arith.constant 0 : index
    %36 = vector.load %arg3[%c0_35, %c0_36] : memref<1x8xf32, #tpu.memory_space<vmem>>, vector<1x8xf32>
    %37 = vector.broadcast %36 : vector<1x8xf32> to vector<128x8xf32>
    %38 = arith.addf %35, %37 : vector<128x8xf32>
    %cst_37 = arith.constant 0.000000e+00 : f32
    %39 = vector.broadcast %cst_37 : f32 to vector<128x8xf32>
    %40 = arith.cmpf oge, %38, %39 : vector<128x8xf32>
    %cst_38 = arith.constant 1.000000e-01 : f32
    %41 = vector.broadcast %cst_38 : f32 to vector<128x8xf32>
    %42 = arith.mulf %41, %38 : vector<128x8xf32>
    %43 = arith.select %40, %38, %42 : vector<128x8xi1>, vector<128x8xf32>
    %c0_39 = arith.constant 0 : index
    %c0_40 = arith.constant 0 : index
    %c0_41 = arith.constant 0 : index
    %44 = vector.load %arg4[%c0_39, %c0_40, %c0_41] : memref<1x128x8xf32, #tpu.memory_space<vmem>>, vector<1x128x8xf32>
    %45 = vector.shape_cast %44 : vector<1x128x8xf32> to vector<128x8xf32>
    %46 = vector.shape_cast %43 : vector<128x8xf32> to vector<1x128x8xf32>
    tpu.vector_store %arg4[%c0_39, %c0_40, %c0_41], %46 {strides = array<i32>} : memref<1x128x8xf32, #tpu.memory_space<vmem>>, vector<1x128x8xf32>,
    return
  }
  func.func @transform_0(%arg0: i32) -> (i32, i32, i32, i32) {
    %c0_i32 = arith.constant 0 : i32
    %c0_i32_0 = arith.constant 0 : i32
    %c0_i32_1 = arith.constant 0 : i32
    %c0_i32_2 = arith.constant 0 : i32
    return %c0_i32, %arg0, %c0_i32_0, %c0_i32_1 : i32, i32, i32, i32
  }
  func.func @transform_1(%arg0: i32) -> (i32, i32, i32) {
    %c0_i32 = arith.constant 0 : i32
    %c0_i32_0 = arith.constant 0 : i32
    %c0_i32_1 = arith.constant 0 : i32
    %c0_i32_2 = arith.constant 0 : i32
    return %c0_i32, %c0_i32_0, %c0_i32_1 : i32, i32, i32
  }
  func.func @transform_2(%arg0: i32) -> (i32, i32) {
    %c0_i32 = arith.constant 0 : i32
    %c0_i32_0 = arith.constant 0 : i32
    %c0_i32_1 = arith.constant 0 : i32
    return %c0_i32, %c0_i32_0 : i32, i32
  }
  func.func @transform_3(%arg0: i32) -> (i32, i32, i32) {
    %c0_i32 = arith.constant 0 : i32
    %c0_i32_0 = arith.constant 0 : i32
    %c0_i32_1 = arith.constant 0 : i32
    return %arg0, %c0_i32, %c0_i32_0 : i32, i32, i32
  }
}

module attributes {stable_mosaic.version = 11 : i64} {
  func.func @_conv_kernel(%arg0: i32, %arg1: memref<2x1x66x8xf32, #tpu.memory_space<vmem>>, %arg2: memref<5x8x16xbf16, #tpu.memory_space<vmem>>, %arg3: memref<1x16xf32, #tpu.memory_space<vmem>>, %arg4: memref<1x64x16xf32, #tpu.memory_space<vmem>>) attributes {dimension_semantics = [#tpu.dimension_semantics<parallel>], iteration_bounds = array<i64: 2>, scalar_prefetch = 0 : i64, scratch_operands = 0 : i64, tpu.core_type = #tpu.core_type<tc>, window_params = [{transform_indices = @transform_0, window_bounds = array<i64: 2, 1, 66, 8>}, {pipeline_mode = #tpu.pipeline_mode<synchronous>, transform_indices = @transform_1, window_bounds = array<i64: 5, 8, 16>}, {pipeline_mode = #tpu.pipeline_mode<synchronous>, transform_indices = @transform_2, window_bounds = array<i64: 1, 16>}, {transform_indices = @transform_3, window_bounds = array<i64: 1, 64, 16>}]} {
    %cst = arith.constant 0.000000e+00 : f32
    %0 = vector.broadcast %cst : f32 to vector<64x16xf32>
    %c0 = arith.constant 0 : index
    %c0_0 = arith.constant 0 : index
    %c0_1 = arith.constant 0 : index
    %c0_2 = arith.constant 0 : index
    %1 = vector.load %arg1[%c0, %c0_0, %c0_1, %c0_2] : memref<2x1x66x8xf32, #tpu.memory_space<vmem>>, vector<1x1x64x8xf32>
    %2 = vector.shape_cast %1 : vector<1x1x64x8xf32> to vector<64x8xf32>
    %3 = arith.truncf %2 : vector<64x8xf32> to vector<64x8xbf16>
    %c0_3 = arith.constant 0 : index
    %c0_4 = arith.constant 0 : index
    %c0_5 = arith.constant 0 : index
    %4 = vector.load %arg2[%c0_3, %c0_4, %c0_5] : memref<5x8x16xbf16, #tpu.memory_space<vmem>>, vector<1x8x16xbf16>
    %5 = vector.shape_cast %4 : vector<1x8x16xbf16> to vector<8x16xbf16>
    %cst_6 = arith.constant dense<0.000000e+00> : vector<64x16xf32>
    %6 = tpu.matmul %3, %5, %cst_6 {dimension_numbers = #tpu.dot_dimension_numbers<[1], [0], [0], [1], [0, 0, 1, 1], [], []>} : vector<64x8xbf16>, vector<8x16xbf16>, vector<64x16xf32> -> vector<64x16xf32>
    %7 = arith.addf %0, %6 : vector<64x16xf32>
    %c1 = arith.constant 1 : index
    %c0_7 = arith.constant 0 : index
    %c0_8 = arith.constant 0 : index
    %c0_9 = arith.constant 0 : index
    %8 = vector.load %arg1[%c1, %c0_7, %c0_8, %c0_9] : memref<2x1x66x8xf32, #tpu.memory_space<vmem>>, vector<1x1x64x8xf32>
    %9 = vector.shape_cast %8 : vector<1x1x64x8xf32> to vector<64x8xf32>
    %10 = arith.truncf %9 : vector<64x8xf32> to vector<64x8xbf16>
    %c1_10 = arith.constant 1 : index
    %c0_11 = arith.constant 0 : index
    %c0_12 = arith.constant 0 : index
    %11 = vector.load %arg2[%c1_10, %c0_11, %c0_12] : memref<5x8x16xbf16, #tpu.memory_space<vmem>>, vector<1x8x16xbf16>
    %12 = vector.shape_cast %11 : vector<1x8x16xbf16> to vector<8x16xbf16>
    %cst_13 = arith.constant dense<0.000000e+00> : vector<64x16xf32>
    %13 = tpu.matmul %10, %12, %cst_13 {dimension_numbers = #tpu.dot_dimension_numbers<[1], [0], [0], [1], [0, 0, 1, 1], [], []>} : vector<64x8xbf16>, vector<8x16xbf16>, vector<64x16xf32> -> vector<64x16xf32>
    %14 = arith.addf %7, %13 : vector<64x16xf32>
    %c0_14 = arith.constant 0 : index
    %c0_15 = arith.constant 0 : index
    %c1_16 = arith.constant 1 : index
    %c0_17 = arith.constant 0 : index
    %15 = vector.load %arg1[%c0_14, %c0_15, %c1_16, %c0_17] : memref<2x1x66x8xf32, #tpu.memory_space<vmem>>, vector<1x1x64x8xf32>
    %16 = vector.shape_cast %15 : vector<1x1x64x8xf32> to vector<64x8xf32>
    %17 = arith.truncf %16 : vector<64x8xf32> to vector<64x8xbf16>
    %c2 = arith.constant 2 : index
    %c0_18 = arith.constant 0 : index
    %c0_19 = arith.constant 0 : index
    %18 = vector.load %arg2[%c2, %c0_18, %c0_19] : memref<5x8x16xbf16, #tpu.memory_space<vmem>>, vector<1x8x16xbf16>
    %19 = vector.shape_cast %18 : vector<1x8x16xbf16> to vector<8x16xbf16>
    %cst_20 = arith.constant dense<0.000000e+00> : vector<64x16xf32>
    %20 = tpu.matmul %17, %19, %cst_20 {dimension_numbers = #tpu.dot_dimension_numbers<[1], [0], [0], [1], [0, 0, 1, 1], [], []>} : vector<64x8xbf16>, vector<8x16xbf16>, vector<64x16xf32> -> vector<64x16xf32>
    %21 = arith.addf %14, %20 : vector<64x16xf32>
    %c1_21 = arith.constant 1 : index
    %c0_22 = arith.constant 0 : index
    %c1_23 = arith.constant 1 : index
    %c0_24 = arith.constant 0 : index
    %22 = vector.load %arg1[%c1_21, %c0_22, %c1_23, %c0_24] : memref<2x1x66x8xf32, #tpu.memory_space<vmem>>, vector<1x1x64x8xf32>
    %23 = vector.shape_cast %22 : vector<1x1x64x8xf32> to vector<64x8xf32>
    %24 = arith.truncf %23 : vector<64x8xf32> to vector<64x8xbf16>
    %c3 = arith.constant 3 : index
    %c0_25 = arith.constant 0 : index
    %c0_26 = arith.constant 0 : index
    %25 = vector.load %arg2[%c3, %c0_25, %c0_26] : memref<5x8x16xbf16, #tpu.memory_space<vmem>>, vector<1x8x16xbf16>
    %26 = vector.shape_cast %25 : vector<1x8x16xbf16> to vector<8x16xbf16>
    %cst_27 = arith.constant dense<0.000000e+00> : vector<64x16xf32>
    %27 = tpu.matmul %24, %26, %cst_27 {dimension_numbers = #tpu.dot_dimension_numbers<[1], [0], [0], [1], [0, 0, 1, 1], [], []>} : vector<64x8xbf16>, vector<8x16xbf16>, vector<64x16xf32> -> vector<64x16xf32>
    %28 = arith.addf %21, %27 : vector<64x16xf32>
    %c0_28 = arith.constant 0 : index
    %c0_29 = arith.constant 0 : index
    %c2_30 = arith.constant 2 : index
    %c0_31 = arith.constant 0 : index
    %29 = vector.load %arg1[%c0_28, %c0_29, %c2_30, %c0_31] : memref<2x1x66x8xf32, #tpu.memory_space<vmem>>, vector<1x1x64x8xf32>
    %30 = vector.shape_cast %29 : vector<1x1x64x8xf32> to vector<64x8xf32>
    %31 = arith.truncf %30 : vector<64x8xf32> to vector<64x8xbf16>
    %c4 = arith.constant 4 : index
    %c0_32 = arith.constant 0 : index
    %c0_33 = arith.constant 0 : index
    %32 = vector.load %arg2[%c4, %c0_32, %c0_33] : memref<5x8x16xbf16, #tpu.memory_space<vmem>>, vector<1x8x16xbf16>
    %33 = vector.shape_cast %32 : vector<1x8x16xbf16> to vector<8x16xbf16>
    %cst_34 = arith.constant dense<0.000000e+00> : vector<64x16xf32>
    %34 = tpu.matmul %31, %33, %cst_34 {dimension_numbers = #tpu.dot_dimension_numbers<[1], [0], [0], [1], [0, 0, 1, 1], [], []>} : vector<64x8xbf16>, vector<8x16xbf16>, vector<64x16xf32> -> vector<64x16xf32>
    %35 = arith.addf %28, %34 : vector<64x16xf32>
    %c0_35 = arith.constant 0 : index
    %c0_36 = arith.constant 0 : index
    %36 = vector.load %arg3[%c0_35, %c0_36] : memref<1x16xf32, #tpu.memory_space<vmem>>, vector<1x16xf32>
    %37 = vector.broadcast %36 : vector<1x16xf32> to vector<64x16xf32>
    %38 = arith.addf %35, %37 : vector<64x16xf32>
    %cst_37 = arith.constant 0.000000e+00 : f32
    %39 = vector.broadcast %cst_37 : f32 to vector<64x16xf32>
    %40 = arith.cmpf oge, %38, %39 : vector<64x16xf32>
    %cst_38 = arith.constant 1.000000e-01 : f32
    %41 = vector.broadcast %cst_38 : f32 to vector<64x16xf32>
    %42 = arith.mulf %41, %38 : vector<64x16xf32>
    %43 = arith.select %40, %38, %42 : vector<64x16xi1>, vector<64x16xf32>
    %c0_39 = arith.constant 0 : index
    %c0_40 = arith.constant 0 : index
    %c0_41 = arith.constant 0 : index
    %44 = vector.load %arg4[%c0_39, %c0_40, %c0_41] : memref<1x64x16xf32, #tpu.memory_space<vmem>>, vector<1x64x16xf32>
    %45 = vector.shape_cast %44 : vector<1x64x16xf32> to vector<64x16xf32>
    %46 = vector.shape_cast %43 : vector<64x16xf32> to vector<1x64x16xf32>
    tpu.vector_store %arg4[%c0_39, %c0_40, %c0_41], %46 {strides = array<i32>} : memref<1x64x16xf32, #tpu.memory_space<vmem>>, vector<1x64x16xf32>,
    return
  }
  func.func @transform_0(%arg0: i32) -> (i32, i32, i32, i32) {
    %c0_i32 = arith.constant 0 : i32
    %c0_i32_0 = arith.constant 0 : i32
    %c0_i32_1 = arith.constant 0 : i32
    %c0_i32_2 = arith.constant 0 : i32
    return %c0_i32, %arg0, %c0_i32_0, %c0_i32_1 : i32, i32, i32, i32
  }
  func.func @transform_1(%arg0: i32) -> (i32, i32, i32) {
    %c0_i32 = arith.constant 0 : i32
    %c0_i32_0 = arith.constant 0 : i32
    %c0_i32_1 = arith.constant 0 : i32
    %c0_i32_2 = arith.constant 0 : i32
    return %c0_i32, %c0_i32_0, %c0_i32_1 : i32, i32, i32
  }
  func.func @transform_2(%arg0: i32) -> (i32, i32) {
    %c0_i32 = arith.constant 0 : i32
    %c0_i32_0 = arith.constant 0 : i32
    %c0_i32_1 = arith.constant 0 : i32
    return %c0_i32, %c0_i32_0 : i32, i32
  }
  func.func @transform_3(%arg0: i32) -> (i32, i32, i32) {
    %c0_i32 = arith.constant 0 : i32
    %c0_i32_0 = arith.constant 0 : i32
    %c0_i32_1 = arith.constant 0 : i32
    return %arg0, %c0_i32, %c0_i32_0 : i32, i32, i32
  }
}

module attributes {stable_mosaic.version = 11 : i64} {
  func.func @_conv_kernel(%arg0: i32, %arg1: memref<1x1x66x16xf32, #tpu.memory_space<vmem>>, %arg2: memref<3x16x1xbf16, #tpu.memory_space<vmem>>, %arg3: memref<1x1xf32, #tpu.memory_space<vmem>>, %arg4: memref<1x64x1xf32, #tpu.memory_space<vmem>>) attributes {dimension_semantics = [#tpu.dimension_semantics<parallel>], iteration_bounds = array<i64: 2>, scalar_prefetch = 0 : i64, scratch_operands = 0 : i64, tpu.core_type = #tpu.core_type<tc>, window_params = [{transform_indices = @transform_0, window_bounds = array<i64: 1, 1, 66, 16>}, {pipeline_mode = #tpu.pipeline_mode<synchronous>, transform_indices = @transform_1, window_bounds = array<i64: 3, 16, 1>}, {pipeline_mode = #tpu.pipeline_mode<synchronous>, transform_indices = @transform_2, window_bounds = array<i64: 1, 1>}, {transform_indices = @transform_3, window_bounds = array<i64: 1, 64, 1>}]} {
    %cst = arith.constant 0.000000e+00 : f32
    %0 = vector.broadcast %cst : f32 to vector<64x1xf32>
    %c0 = arith.constant 0 : index
    %c0_0 = arith.constant 0 : index
    %c0_1 = arith.constant 0 : index
    %c0_2 = arith.constant 0 : index
    %1 = vector.load %arg1[%c0, %c0_0, %c0_1, %c0_2] : memref<1x1x66x16xf32, #tpu.memory_space<vmem>>, vector<1x1x64x16xf32>
    %2 = vector.shape_cast %1 : vector<1x1x64x16xf32> to vector<64x16xf32>
    %3 = arith.truncf %2 : vector<64x16xf32> to vector<64x16xbf16>
    %c0_3 = arith.constant 0 : index
    %c0_4 = arith.constant 0 : index
    %c0_5 = arith.constant 0 : index
    %4 = vector.load %arg2[%c0_3, %c0_4, %c0_5] : memref<3x16x1xbf16, #tpu.memory_space<vmem>>, vector<1x16x1xbf16>
    %5 = vector.shape_cast %4 : vector<1x16x1xbf16> to vector<16x1xbf16>
    %cst_6 = arith.constant dense<0.000000e+00> : vector<64x1xf32>
    %6 = tpu.matmul %3, %5, %cst_6 {dimension_numbers = #tpu.dot_dimension_numbers<[1], [0], [0], [1], [0, 0, 1, 1], [], []>} : vector<64x16xbf16>, vector<16x1xbf16>, vector<64x1xf32> -> vector<64x1xf32>
    %7 = arith.addf %0, %6 : vector<64x1xf32>
    %c0_7 = arith.constant 0 : index
    %c0_8 = arith.constant 0 : index
    %c1 = arith.constant 1 : index
    %c0_9 = arith.constant 0 : index
    %8 = vector.load %arg1[%c0_7, %c0_8, %c1, %c0_9] : memref<1x1x66x16xf32, #tpu.memory_space<vmem>>, vector<1x1x64x16xf32>
    %9 = vector.shape_cast %8 : vector<1x1x64x16xf32> to vector<64x16xf32>
    %10 = arith.truncf %9 : vector<64x16xf32> to vector<64x16xbf16>
    %c1_10 = arith.constant 1 : index
    %c0_11 = arith.constant 0 : index
    %c0_12 = arith.constant 0 : index
    %11 = vector.load %arg2[%c1_10, %c0_11, %c0_12] : memref<3x16x1xbf16, #tpu.memory_space<vmem>>, vector<1x16x1xbf16>
    %12 = vector.shape_cast %11 : vector<1x16x1xbf16> to vector<16x1xbf16>
    %cst_13 = arith.constant dense<0.000000e+00> : vector<64x1xf32>
    %13 = tpu.matmul %10, %12, %cst_13 {dimension_numbers = #tpu.dot_dimension_numbers<[1], [0], [0], [1], [0, 0, 1, 1], [], []>} : vector<64x16xbf16>, vector<16x1xbf16>, vector<64x1xf32> -> vector<64x1xf32>
    %14 = arith.addf %7, %13 : vector<64x1xf32>
    %c0_14 = arith.constant 0 : index
    %c0_15 = arith.constant 0 : index
    %c2 = arith.constant 2 : index
    %c0_16 = arith.constant 0 : index
    %15 = vector.load %arg1[%c0_14, %c0_15, %c2, %c0_16] : memref<1x1x66x16xf32, #tpu.memory_space<vmem>>, vector<1x1x64x16xf32>
    %16 = vector.shape_cast %15 : vector<1x1x64x16xf32> to vector<64x16xf32>
    %17 = arith.truncf %16 : vector<64x16xf32> to vector<64x16xbf16>
    %c2_17 = arith.constant 2 : index
    %c0_18 = arith.constant 0 : index
    %c0_19 = arith.constant 0 : index
    %18 = vector.load %arg2[%c2_17, %c0_18, %c0_19] : memref<3x16x1xbf16, #tpu.memory_space<vmem>>, vector<1x16x1xbf16>
    %19 = vector.shape_cast %18 : vector<1x16x1xbf16> to vector<16x1xbf16>
    %cst_20 = arith.constant dense<0.000000e+00> : vector<64x1xf32>
    %20 = tpu.matmul %17, %19, %cst_20 {dimension_numbers = #tpu.dot_dimension_numbers<[1], [0], [0], [1], [0, 0, 1, 1], [], []>} : vector<64x16xbf16>, vector<16x1xbf16>, vector<64x1xf32> -> vector<64x1xf32>
    %21 = arith.addf %14, %20 : vector<64x1xf32>
    %c0_21 = arith.constant 0 : index
    %c0_22 = arith.constant 0 : index
    %22 = vector.load %arg3[%c0_21, %c0_22] : memref<1x1xf32, #tpu.memory_space<vmem>>, vector<1x1xf32>
    %23 = vector.broadcast %22 : vector<1x1xf32> to vector<64x1xf32>
    %24 = arith.addf %21, %23 : vector<64x1xf32>
    %c0_23 = arith.constant 0 : index
    %c0_24 = arith.constant 0 : index
    %c0_25 = arith.constant 0 : index
    %25 = vector.load %arg4[%c0_23, %c0_24, %c0_25] : memref<1x64x1xf32, #tpu.memory_space<vmem>>, vector<1x64x1xf32>
    %26 = vector.shape_cast %25 : vector<1x64x1xf32> to vector<64x1xf32>
    %27 = vector.shape_cast %24 : vector<64x1xf32> to vector<1x64x1xf32>
    tpu.vector_store %arg4[%c0_23, %c0_24, %c0_25], %27 {strides = array<i32>} : memref<1x64x1xf32, #tpu.memory_space<vmem>>, vector<1x64x1xf32>,
    return
  }
  func.func @transform_0(%arg0: i32) -> (i32, i32, i32, i32) {
    %c0_i32 = arith.constant 0 : i32
    %c0_i32_0 = arith.constant 0 : i32
    %c0_i32_1 = arith.constant 0 : i32
    %c0_i32_2 = arith.constant 0 : i32
    return %c0_i32, %arg0, %c0_i32_0, %c0_i32_1 : i32, i32, i32, i32
  }
  func.func @transform_1(%arg0: i32) -> (i32, i32, i32) {
    %c0_i32 = arith.constant 0 : i32
    %c0_i32_0 = arith.constant 0 : i32
    %c0_i32_1 = arith.constant 0 : i32
    %c0_i32_2 = arith.constant 0 : i32
    return %c0_i32, %c0_i32_0, %c0_i32_1 : i32, i32, i32
  }
  func.func @transform_2(%arg0: i32) -> (i32, i32) {
    %c0_i32 = arith.constant 0 : i32
    %c0_i32_0 = arith.constant 0 : i32
    %c0_i32_1 = arith.constant 0 : i32
    return %c0_i32, %c0_i32_0 : i32, i32
  }
  func.func @transform_3(%arg0: i32) -> (i32, i32, i32) {
    %c0_i32 = arith.constant 0 : i32
    %c0_i32_0 = arith.constant 0 : i32
    %c0_i32_1 = arith.constant 0 : i32
    return %arg0, %c0_i32, %c0_i32_0 : i32, i32, i32
  }
}

module attributes {stable_mosaic.version = 11 : i64} {
  func.func @_conv_kernel(%arg0: i32, %arg1: memref<2x1x66x1xf32, #tpu.memory_space<vmem>>, %arg2: memref<5x1x8xbf16, #tpu.memory_space<vmem>>, %arg3: memref<1x8xf32, #tpu.memory_space<vmem>>, %arg4: memref<1x64x8xf32, #tpu.memory_space<vmem>>) attributes {dimension_semantics = [#tpu.dimension_semantics<parallel>], iteration_bounds = array<i64: 2>, scalar_prefetch = 0 : i64, scratch_operands = 0 : i64, tpu.core_type = #tpu.core_type<tc>, window_params = [{transform_indices = @transform_0, window_bounds = array<i64: 2, 1, 66, 1>}, {pipeline_mode = #tpu.pipeline_mode<synchronous>, transform_indices = @transform_1, window_bounds = array<i64: 5, 1, 8>}, {pipeline_mode = #tpu.pipeline_mode<synchronous>, transform_indices = @transform_2, window_bounds = array<i64: 1, 8>}, {transform_indices = @transform_3, window_bounds = array<i64: 1, 64, 8>}]} {
    %cst = arith.constant 0.000000e+00 : f32
    %0 = vector.broadcast %cst : f32 to vector<64x8xf32>
    %c0 = arith.constant 0 : index
    %c0_0 = arith.constant 0 : index
    %c0_1 = arith.constant 0 : index
    %c0_2 = arith.constant 0 : index
    %1 = vector.load %arg1[%c0, %c0_0, %c0_1, %c0_2] : memref<2x1x66x1xf32, #tpu.memory_space<vmem>>, vector<1x1x64x1xf32>
    %2 = vector.shape_cast %1 : vector<1x1x64x1xf32> to vector<64x1xf32>
    %3 = arith.truncf %2 : vector<64x1xf32> to vector<64x1xbf16>
    %c0_3 = arith.constant 0 : index
    %c0_4 = arith.constant 0 : index
    %c0_5 = arith.constant 0 : index
    %4 = vector.load %arg2[%c0_3, %c0_4, %c0_5] : memref<5x1x8xbf16, #tpu.memory_space<vmem>>, vector<1x1x8xbf16>
    %5 = vector.shape_cast %4 : vector<1x1x8xbf16> to vector<1x8xbf16>
    %cst_6 = arith.constant dense<0.000000e+00> : vector<64x8xf32>
    %6 = tpu.matmul %3, %5, %cst_6 {dimension_numbers = #tpu.dot_dimension_numbers<[1], [0], [0], [1], [0, 0, 1, 1], [], []>} : vector<64x1xbf16>, vector<1x8xbf16>, vector<64x8xf32> -> vector<64x8xf32>
    %7 = arith.addf %0, %6 : vector<64x8xf32>
    %c1 = arith.constant 1 : index
    %c0_7 = arith.constant 0 : index
    %c0_8 = arith.constant 0 : index
    %c0_9 = arith.constant 0 : index
    %8 = vector.load %arg1[%c1, %c0_7, %c0_8, %c0_9] : memref<2x1x66x1xf32, #tpu.memory_space<vmem>>, vector<1x1x64x1xf32>
    %9 = vector.shape_cast %8 : vector<1x1x64x1xf32> to vector<64x1xf32>
    %10 = arith.truncf %9 : vector<64x1xf32> to vector<64x1xbf16>
    %c1_10 = arith.constant 1 : index
    %c0_11 = arith.constant 0 : index
    %c0_12 = arith.constant 0 : index
    %11 = vector.load %arg2[%c1_10, %c0_11, %c0_12] : memref<5x1x8xbf16, #tpu.memory_space<vmem>>, vector<1x1x8xbf16>
    %12 = vector.shape_cast %11 : vector<1x1x8xbf16> to vector<1x8xbf16>
    %cst_13 = arith.constant dense<0.000000e+00> : vector<64x8xf32>
    %13 = tpu.matmul %10, %12, %cst_13 {dimension_numbers = #tpu.dot_dimension_numbers<[1], [0], [0], [1], [0, 0, 1, 1], [], []>} : vector<64x1xbf16>, vector<1x8xbf16>, vector<64x8xf32> -> vector<64x8xf32>
    %14 = arith.addf %7, %13 : vector<64x8xf32>
    %c0_14 = arith.constant 0 : index
    %c0_15 = arith.constant 0 : index
    %c1_16 = arith.constant 1 : index
    %c0_17 = arith.constant 0 : index
    %15 = vector.load %arg1[%c0_14, %c0_15, %c1_16, %c0_17] : memref<2x1x66x1xf32, #tpu.memory_space<vmem>>, vector<1x1x64x1xf32>
    %16 = vector.shape_cast %15 : vector<1x1x64x1xf32> to vector<64x1xf32>
    %17 = arith.truncf %16 : vector<64x1xf32> to vector<64x1xbf16>
    %c2 = arith.constant 2 : index
    %c0_18 = arith.constant 0 : index
    %c0_19 = arith.constant 0 : index
    %18 = vector.load %arg2[%c2, %c0_18, %c0_19] : memref<5x1x8xbf16, #tpu.memory_space<vmem>>, vector<1x1x8xbf16>
    %19 = vector.shape_cast %18 : vector<1x1x8xbf16> to vector<1x8xbf16>
    %cst_20 = arith.constant dense<0.000000e+00> : vector<64x8xf32>
    %20 = tpu.matmul %17, %19, %cst_20 {dimension_numbers = #tpu.dot_dimension_numbers<[1], [0], [0], [1], [0, 0, 1, 1], [], []>} : vector<64x1xbf16>, vector<1x8xbf16>, vector<64x8xf32> -> vector<64x8xf32>
    %21 = arith.addf %14, %20 : vector<64x8xf32>
    %c1_21 = arith.constant 1 : index
    %c0_22 = arith.constant 0 : index
    %c1_23 = arith.constant 1 : index
    %c0_24 = arith.constant 0 : index
    %22 = vector.load %arg1[%c1_21, %c0_22, %c1_23, %c0_24] : memref<2x1x66x1xf32, #tpu.memory_space<vmem>>, vector<1x1x64x1xf32>
    %23 = vector.shape_cast %22 : vector<1x1x64x1xf32> to vector<64x1xf32>
    %24 = arith.truncf %23 : vector<64x1xf32> to vector<64x1xbf16>
    %c3 = arith.constant 3 : index
    %c0_25 = arith.constant 0 : index
    %c0_26 = arith.constant 0 : index
    %25 = vector.load %arg2[%c3, %c0_25, %c0_26] : memref<5x1x8xbf16, #tpu.memory_space<vmem>>, vector<1x1x8xbf16>
    %26 = vector.shape_cast %25 : vector<1x1x8xbf16> to vector<1x8xbf16>
    %cst_27 = arith.constant dense<0.000000e+00> : vector<64x8xf32>
    %27 = tpu.matmul %24, %26, %cst_27 {dimension_numbers = #tpu.dot_dimension_numbers<[1], [0], [0], [1], [0, 0, 1, 1], [], []>} : vector<64x1xbf16>, vector<1x8xbf16>, vector<64x8xf32> -> vector<64x8xf32>
    %28 = arith.addf %21, %27 : vector<64x8xf32>
    %c0_28 = arith.constant 0 : index
    %c0_29 = arith.constant 0 : index
    %c2_30 = arith.constant 2 : index
    %c0_31 = arith.constant 0 : index
    %29 = vector.load %arg1[%c0_28, %c0_29, %c2_30, %c0_31] : memref<2x1x66x1xf32, #tpu.memory_space<vmem>>, vector<1x1x64x1xf32>
    %30 = vector.shape_cast %29 : vector<1x1x64x1xf32> to vector<64x1xf32>
    %31 = arith.truncf %30 : vector<64x1xf32> to vector<64x1xbf16>
    %c4 = arith.constant 4 : index
    %c0_32 = arith.constant 0 : index
    %c0_33 = arith.constant 0 : index
    %32 = vector.load %arg2[%c4, %c0_32, %c0_33] : memref<5x1x8xbf16, #tpu.memory_space<vmem>>, vector<1x1x8xbf16>
    %33 = vector.shape_cast %32 : vector<1x1x8xbf16> to vector<1x8xbf16>
    %cst_34 = arith.constant dense<0.000000e+00> : vector<64x8xf32>
    %34 = tpu.matmul %31, %33, %cst_34 {dimension_numbers = #tpu.dot_dimension_numbers<[1], [0], [0], [1], [0, 0, 1, 1], [], []>} : vector<64x1xbf16>, vector<1x8xbf16>, vector<64x8xf32> -> vector<64x8xf32>
    %35 = arith.addf %28, %34 : vector<64x8xf32>
    %c0_35 = arith.constant 0 : index
    %c0_36 = arith.constant 0 : index
    %36 = vector.load %arg3[%c0_35, %c0_36] : memref<1x8xf32, #tpu.memory_space<vmem>>, vector<1x8xf32>
    %37 = vector.broadcast %36 : vector<1x8xf32> to vector<64x8xf32>
    %38 = arith.addf %35, %37 : vector<64x8xf32>
    %cst_37 = arith.constant 0.000000e+00 : f32
    %39 = vector.broadcast %cst_37 : f32 to vector<64x8xf32>
    %40 = arith.cmpf oge, %38, %39 : vector<64x8xf32>
    %cst_38 = arith.constant 1.000000e-01 : f32
    %41 = vector.broadcast %cst_38 : f32 to vector<64x8xf32>
    %42 = arith.mulf %41, %38 : vector<64x8xf32>
    %43 = arith.select %40, %38, %42 : vector<64x8xi1>, vector<64x8xf32>
    %c0_39 = arith.constant 0 : index
    %c0_40 = arith.constant 0 : index
    %c0_41 = arith.constant 0 : index
    %44 = vector.load %arg4[%c0_39, %c0_40, %c0_41] : memref<1x64x8xf32, #tpu.memory_space<vmem>>, vector<1x64x8xf32>
    %45 = vector.shape_cast %44 : vector<1x64x8xf32> to vector<64x8xf32>
    %46 = vector.shape_cast %43 : vector<64x8xf32> to vector<1x64x8xf32>
    tpu.vector_store %arg4[%c0_39, %c0_40, %c0_41], %46 {strides = array<i32>} : memref<1x64x8xf32, #tpu.memory_space<vmem>>, vector<1x64x8xf32>,
    return
  }
  func.func @transform_0(%arg0: i32) -> (i32, i32, i32, i32) {
    %c0_i32 = arith.constant 0 : i32
    %c0_i32_0 = arith.constant 0 : i32
    %c0_i32_1 = arith.constant 0 : i32
    %c0_i32_2 = arith.constant 0 : i32
    return %c0_i32, %arg0, %c0_i32_0, %c0_i32_1 : i32, i32, i32, i32
  }
  func.func @transform_1(%arg0: i32) -> (i32, i32, i32) {
    %c0_i32 = arith.constant 0 : i32
    %c0_i32_0 = arith.constant 0 : i32
    %c0_i32_1 = arith.constant 0 : i32
    %c0_i32_2 = arith.constant 0 : i32
    return %c0_i32, %c0_i32_0, %c0_i32_1 : i32, i32, i32
  }
  func.func @transform_2(%arg0: i32) -> (i32, i32) {
    %c0_i32 = arith.constant 0 : i32
    %c0_i32_0 = arith.constant 0 : i32
    %c0_i32_1 = arith.constant 0 : i32
    return %c0_i32, %c0_i32_0 : i32, i32
  }
  func.func @transform_3(%arg0: i32) -> (i32, i32, i32) {
    %c0_i32 = arith.constant 0 : i32
    %c0_i32_0 = arith.constant 0 : i32
    %c0_i32_1 = arith.constant 0 : i32
    return %arg0, %c0_i32, %c0_i32_0 : i32, i32, i32
  }
}

module attributes {stable_mosaic.version = 11 : i64} {
  func.func @_conv_kernel(%arg0: i32, %arg1: memref<2x1x34x8xf32, #tpu.memory_space<vmem>>, %arg2: memref<5x8x16xbf16, #tpu.memory_space<vmem>>, %arg3: memref<1x16xf32, #tpu.memory_space<vmem>>, %arg4: memref<1x32x16xf32, #tpu.memory_space<vmem>>) attributes {dimension_semantics = [#tpu.dimension_semantics<parallel>], iteration_bounds = array<i64: 2>, scalar_prefetch = 0 : i64, scratch_operands = 0 : i64, tpu.core_type = #tpu.core_type<tc>, window_params = [{transform_indices = @transform_0, window_bounds = array<i64: 2, 1, 34, 8>}, {pipeline_mode = #tpu.pipeline_mode<synchronous>, transform_indices = @transform_1, window_bounds = array<i64: 5, 8, 16>}, {pipeline_mode = #tpu.pipeline_mode<synchronous>, transform_indices = @transform_2, window_bounds = array<i64: 1, 16>}, {transform_indices = @transform_3, window_bounds = array<i64: 1, 32, 16>}]} {
    %cst = arith.constant 0.000000e+00 : f32
    %0 = vector.broadcast %cst : f32 to vector<32x16xf32>
    %c0 = arith.constant 0 : index
    %c0_0 = arith.constant 0 : index
    %c0_1 = arith.constant 0 : index
    %c0_2 = arith.constant 0 : index
    %1 = vector.load %arg1[%c0, %c0_0, %c0_1, %c0_2] : memref<2x1x34x8xf32, #tpu.memory_space<vmem>>, vector<1x1x32x8xf32>
    %2 = vector.shape_cast %1 : vector<1x1x32x8xf32> to vector<32x8xf32>
    %3 = arith.truncf %2 : vector<32x8xf32> to vector<32x8xbf16>
    %c0_3 = arith.constant 0 : index
    %c0_4 = arith.constant 0 : index
    %c0_5 = arith.constant 0 : index
    %4 = vector.load %arg2[%c0_3, %c0_4, %c0_5] : memref<5x8x16xbf16, #tpu.memory_space<vmem>>, vector<1x8x16xbf16>
    %5 = vector.shape_cast %4 : vector<1x8x16xbf16> to vector<8x16xbf16>
    %cst_6 = arith.constant dense<0.000000e+00> : vector<32x16xf32>
    %6 = tpu.matmul %3, %5, %cst_6 {dimension_numbers = #tpu.dot_dimension_numbers<[1], [0], [0], [1], [0, 0, 1, 1], [], []>} : vector<32x8xbf16>, vector<8x16xbf16>, vector<32x16xf32> -> vector<32x16xf32>
    %7 = arith.addf %0, %6 : vector<32x16xf32>
    %c1 = arith.constant 1 : index
    %c0_7 = arith.constant 0 : index
    %c0_8 = arith.constant 0 : index
    %c0_9 = arith.constant 0 : index
    %8 = vector.load %arg1[%c1, %c0_7, %c0_8, %c0_9] : memref<2x1x34x8xf32, #tpu.memory_space<vmem>>, vector<1x1x32x8xf32>
    %9 = vector.shape_cast %8 : vector<1x1x32x8xf32> to vector<32x8xf32>
    %10 = arith.truncf %9 : vector<32x8xf32> to vector<32x8xbf16>
    %c1_10 = arith.constant 1 : index
    %c0_11 = arith.constant 0 : index
    %c0_12 = arith.constant 0 : index
    %11 = vector.load %arg2[%c1_10, %c0_11, %c0_12] : memref<5x8x16xbf16, #tpu.memory_space<vmem>>, vector<1x8x16xbf16>
    %12 = vector.shape_cast %11 : vector<1x8x16xbf16> to vector<8x16xbf16>
    %cst_13 = arith.constant dense<0.000000e+00> : vector<32x16xf32>
    %13 = tpu.matmul %10, %12, %cst_13 {dimension_numbers = #tpu.dot_dimension_numbers<[1], [0], [0], [1], [0, 0, 1, 1], [], []>} : vector<32x8xbf16>, vector<8x16xbf16>, vector<32x16xf32> -> vector<32x16xf32>
    %14 = arith.addf %7, %13 : vector<32x16xf32>
    %c0_14 = arith.constant 0 : index
    %c0_15 = arith.constant 0 : index
    %c1_16 = arith.constant 1 : index
    %c0_17 = arith.constant 0 : index
    %15 = vector.load %arg1[%c0_14, %c0_15, %c1_16, %c0_17] : memref<2x1x34x8xf32, #tpu.memory_space<vmem>>, vector<1x1x32x8xf32>
    %16 = vector.shape_cast %15 : vector<1x1x32x8xf32> to vector<32x8xf32>
    %17 = arith.truncf %16 : vector<32x8xf32> to vector<32x8xbf16>
    %c2 = arith.constant 2 : index
    %c0_18 = arith.constant 0 : index
    %c0_19 = arith.constant 0 : index
    %18 = vector.load %arg2[%c2, %c0_18, %c0_19] : memref<5x8x16xbf16, #tpu.memory_space<vmem>>, vector<1x8x16xbf16>
    %19 = vector.shape_cast %18 : vector<1x8x16xbf16> to vector<8x16xbf16>
    %cst_20 = arith.constant dense<0.000000e+00> : vector<32x16xf32>
    %20 = tpu.matmul %17, %19, %cst_20 {dimension_numbers = #tpu.dot_dimension_numbers<[1], [0], [0], [1], [0, 0, 1, 1], [], []>} : vector<32x8xbf16>, vector<8x16xbf16>, vector<32x16xf32> -> vector<32x16xf32>
    %21 = arith.addf %14, %20 : vector<32x16xf32>
    %c1_21 = arith.constant 1 : index
    %c0_22 = arith.constant 0 : index
    %c1_23 = arith.constant 1 : index
    %c0_24 = arith.constant 0 : index
    %22 = vector.load %arg1[%c1_21, %c0_22, %c1_23, %c0_24] : memref<2x1x34x8xf32, #tpu.memory_space<vmem>>, vector<1x1x32x8xf32>
    %23 = vector.shape_cast %22 : vector<1x1x32x8xf32> to vector<32x8xf32>
    %24 = arith.truncf %23 : vector<32x8xf32> to vector<32x8xbf16>
    %c3 = arith.constant 3 : index
    %c0_25 = arith.constant 0 : index
    %c0_26 = arith.constant 0 : index
    %25 = vector.load %arg2[%c3, %c0_25, %c0_26] : memref<5x8x16xbf16, #tpu.memory_space<vmem>>, vector<1x8x16xbf16>
    %26 = vector.shape_cast %25 : vector<1x8x16xbf16> to vector<8x16xbf16>
    %cst_27 = arith.constant dense<0.000000e+00> : vector<32x16xf32>
    %27 = tpu.matmul %24, %26, %cst_27 {dimension_numbers = #tpu.dot_dimension_numbers<[1], [0], [0], [1], [0, 0, 1, 1], [], []>} : vector<32x8xbf16>, vector<8x16xbf16>, vector<32x16xf32> -> vector<32x16xf32>
    %28 = arith.addf %21, %27 : vector<32x16xf32>
    %c0_28 = arith.constant 0 : index
    %c0_29 = arith.constant 0 : index
    %c2_30 = arith.constant 2 : index
    %c0_31 = arith.constant 0 : index
    %29 = vector.load %arg1[%c0_28, %c0_29, %c2_30, %c0_31] : memref<2x1x34x8xf32, #tpu.memory_space<vmem>>, vector<1x1x32x8xf32>
    %30 = vector.shape_cast %29 : vector<1x1x32x8xf32> to vector<32x8xf32>
    %31 = arith.truncf %30 : vector<32x8xf32> to vector<32x8xbf16>
    %c4 = arith.constant 4 : index
    %c0_32 = arith.constant 0 : index
    %c0_33 = arith.constant 0 : index
    %32 = vector.load %arg2[%c4, %c0_32, %c0_33] : memref<5x8x16xbf16, #tpu.memory_space<vmem>>, vector<1x8x16xbf16>
    %33 = vector.shape_cast %32 : vector<1x8x16xbf16> to vector<8x16xbf16>
    %cst_34 = arith.constant dense<0.000000e+00> : vector<32x16xf32>
    %34 = tpu.matmul %31, %33, %cst_34 {dimension_numbers = #tpu.dot_dimension_numbers<[1], [0], [0], [1], [0, 0, 1, 1], [], []>} : vector<32x8xbf16>, vector<8x16xbf16>, vector<32x16xf32> -> vector<32x16xf32>
    %35 = arith.addf %28, %34 : vector<32x16xf32>
    %c0_35 = arith.constant 0 : index
    %c0_36 = arith.constant 0 : index
    %36 = vector.load %arg3[%c0_35, %c0_36] : memref<1x16xf32, #tpu.memory_space<vmem>>, vector<1x16xf32>
    %37 = vector.broadcast %36 : vector<1x16xf32> to vector<32x16xf32>
    %38 = arith.addf %35, %37 : vector<32x16xf32>
    %cst_37 = arith.constant 0.000000e+00 : f32
    %39 = vector.broadcast %cst_37 : f32 to vector<32x16xf32>
    %40 = arith.cmpf oge, %38, %39 : vector<32x16xf32>
    %cst_38 = arith.constant 1.000000e-01 : f32
    %41 = vector.broadcast %cst_38 : f32 to vector<32x16xf32>
    %42 = arith.mulf %41, %38 : vector<32x16xf32>
    %43 = arith.select %40, %38, %42 : vector<32x16xi1>, vector<32x16xf32>
    %c0_39 = arith.constant 0 : index
    %c0_40 = arith.constant 0 : index
    %c0_41 = arith.constant 0 : index
    %44 = vector.load %arg4[%c0_39, %c0_40, %c0_41] : memref<1x32x16xf32, #tpu.memory_space<vmem>>, vector<1x32x16xf32>
    %45 = vector.shape_cast %44 : vector<1x32x16xf32> to vector<32x16xf32>
    %46 = vector.shape_cast %43 : vector<32x16xf32> to vector<1x32x16xf32>
    tpu.vector_store %arg4[%c0_39, %c0_40, %c0_41], %46 {strides = array<i32>} : memref<1x32x16xf32, #tpu.memory_space<vmem>>, vector<1x32x16xf32>,
    return
  }
  func.func @transform_0(%arg0: i32) -> (i32, i32, i32, i32) {
    %c0_i32 = arith.constant 0 : i32
    %c0_i32_0 = arith.constant 0 : i32
    %c0_i32_1 = arith.constant 0 : i32
    %c0_i32_2 = arith.constant 0 : i32
    return %c0_i32, %arg0, %c0_i32_0, %c0_i32_1 : i32, i32, i32, i32
  }
  func.func @transform_1(%arg0: i32) -> (i32, i32, i32) {
    %c0_i32 = arith.constant 0 : i32
    %c0_i32_0 = arith.constant 0 : i32
    %c0_i32_1 = arith.constant 0 : i32
    %c0_i32_2 = arith.constant 0 : i32
    return %c0_i32, %c0_i32_0, %c0_i32_1 : i32, i32, i32
  }
  func.func @transform_2(%arg0: i32) -> (i32, i32) {
    %c0_i32 = arith.constant 0 : i32
    %c0_i32_0 = arith.constant 0 : i32
    %c0_i32_1 = arith.constant 0 : i32
    return %c0_i32, %c0_i32_0 : i32, i32
  }
  func.func @transform_3(%arg0: i32) -> (i32, i32, i32) {
    %c0_i32 = arith.constant 0 : i32
    %c0_i32_0 = arith.constant 0 : i32
    %c0_i32_1 = arith.constant 0 : i32
    return %arg0, %c0_i32, %c0_i32_0 : i32, i32, i32
  }
}

module attributes {stable_mosaic.version = 11 : i64} {
  func.func @_conv_kernel(%arg0: i32, %arg1: memref<1x1x34x16xf32, #tpu.memory_space<vmem>>, %arg2: memref<3x16x1xbf16, #tpu.memory_space<vmem>>, %arg3: memref<1x1xf32, #tpu.memory_space<vmem>>, %arg4: memref<1x32x1xf32, #tpu.memory_space<vmem>>) attributes {dimension_semantics = [#tpu.dimension_semantics<parallel>], iteration_bounds = array<i64: 2>, scalar_prefetch = 0 : i64, scratch_operands = 0 : i64, tpu.core_type = #tpu.core_type<tc>, window_params = [{transform_indices = @transform_0, window_bounds = array<i64: 1, 1, 34, 16>}, {pipeline_mode = #tpu.pipeline_mode<synchronous>, transform_indices = @transform_1, window_bounds = array<i64: 3, 16, 1>}, {pipeline_mode = #tpu.pipeline_mode<synchronous>, transform_indices = @transform_2, window_bounds = array<i64: 1, 1>}, {transform_indices = @transform_3, window_bounds = array<i64: 1, 32, 1>}]} {
    %cst = arith.constant 0.000000e+00 : f32
    %0 = vector.broadcast %cst : f32 to vector<32x1xf32>
    %c0 = arith.constant 0 : index
    %c0_0 = arith.constant 0 : index
    %c0_1 = arith.constant 0 : index
    %c0_2 = arith.constant 0 : index
    %1 = vector.load %arg1[%c0, %c0_0, %c0_1, %c0_2] : memref<1x1x34x16xf32, #tpu.memory_space<vmem>>, vector<1x1x32x16xf32>
    %2 = vector.shape_cast %1 : vector<1x1x32x16xf32> to vector<32x16xf32>
    %3 = arith.truncf %2 : vector<32x16xf32> to vector<32x16xbf16>
    %c0_3 = arith.constant 0 : index
    %c0_4 = arith.constant 0 : index
    %c0_5 = arith.constant 0 : index
    %4 = vector.load %arg2[%c0_3, %c0_4, %c0_5] : memref<3x16x1xbf16, #tpu.memory_space<vmem>>, vector<1x16x1xbf16>
    %5 = vector.shape_cast %4 : vector<1x16x1xbf16> to vector<16x1xbf16>
    %cst_6 = arith.constant dense<0.000000e+00> : vector<32x1xf32>
    %6 = tpu.matmul %3, %5, %cst_6 {dimension_numbers = #tpu.dot_dimension_numbers<[1], [0], [0], [1], [0, 0, 1, 1], [], []>} : vector<32x16xbf16>, vector<16x1xbf16>, vector<32x1xf32> -> vector<32x1xf32>
    %7 = arith.addf %0, %6 : vector<32x1xf32>
    %c0_7 = arith.constant 0 : index
    %c0_8 = arith.constant 0 : index
    %c1 = arith.constant 1 : index
    %c0_9 = arith.constant 0 : index
    %8 = vector.load %arg1[%c0_7, %c0_8, %c1, %c0_9] : memref<1x1x34x16xf32, #tpu.memory_space<vmem>>, vector<1x1x32x16xf32>
    %9 = vector.shape_cast %8 : vector<1x1x32x16xf32> to vector<32x16xf32>
    %10 = arith.truncf %9 : vector<32x16xf32> to vector<32x16xbf16>
    %c1_10 = arith.constant 1 : index
    %c0_11 = arith.constant 0 : index
    %c0_12 = arith.constant 0 : index
    %11 = vector.load %arg2[%c1_10, %c0_11, %c0_12] : memref<3x16x1xbf16, #tpu.memory_space<vmem>>, vector<1x16x1xbf16>
    %12 = vector.shape_cast %11 : vector<1x16x1xbf16> to vector<16x1xbf16>
    %cst_13 = arith.constant dense<0.000000e+00> : vector<32x1xf32>
    %13 = tpu.matmul %10, %12, %cst_13 {dimension_numbers = #tpu.dot_dimension_numbers<[1], [0], [0], [1], [0, 0, 1, 1], [], []>} : vector<32x16xbf16>, vector<16x1xbf16>, vector<32x1xf32> -> vector<32x1xf32>
    %14 = arith.addf %7, %13 : vector<32x1xf32>
    %c0_14 = arith.constant 0 : index
    %c0_15 = arith.constant 0 : index
    %c2 = arith.constant 2 : index
    %c0_16 = arith.constant 0 : index
    %15 = vector.load %arg1[%c0_14, %c0_15, %c2, %c0_16] : memref<1x1x34x16xf32, #tpu.memory_space<vmem>>, vector<1x1x32x16xf32>
    %16 = vector.shape_cast %15 : vector<1x1x32x16xf32> to vector<32x16xf32>
    %17 = arith.truncf %16 : vector<32x16xf32> to vector<32x16xbf16>
    %c2_17 = arith.constant 2 : index
    %c0_18 = arith.constant 0 : index
    %c0_19 = arith.constant 0 : index
    %18 = vector.load %arg2[%c2_17, %c0_18, %c0_19] : memref<3x16x1xbf16, #tpu.memory_space<vmem>>, vector<1x16x1xbf16>
    %19 = vector.shape_cast %18 : vector<1x16x1xbf16> to vector<16x1xbf16>
    %cst_20 = arith.constant dense<0.000000e+00> : vector<32x1xf32>
    %20 = tpu.matmul %17, %19, %cst_20 {dimension_numbers = #tpu.dot_dimension_numbers<[1], [0], [0], [1], [0, 0, 1, 1], [], []>} : vector<32x16xbf16>, vector<16x1xbf16>, vector<32x1xf32> -> vector<32x1xf32>
    %21 = arith.addf %14, %20 : vector<32x1xf32>
    %c0_21 = arith.constant 0 : index
    %c0_22 = arith.constant 0 : index
    %22 = vector.load %arg3[%c0_21, %c0_22] : memref<1x1xf32, #tpu.memory_space<vmem>>, vector<1x1xf32>
    %23 = vector.broadcast %22 : vector<1x1xf32> to vector<32x1xf32>
    %24 = arith.addf %21, %23 : vector<32x1xf32>
    %c0_23 = arith.constant 0 : index
    %c0_24 = arith.constant 0 : index
    %c0_25 = arith.constant 0 : index
    %25 = vector.load %arg4[%c0_23, %c0_24, %c0_25] : memref<1x32x1xf32, #tpu.memory_space<vmem>>, vector<1x32x1xf32>
    %26 = vector.shape_cast %25 : vector<1x32x1xf32> to vector<32x1xf32>
    %27 = vector.shape_cast %24 : vector<32x1xf32> to vector<1x32x1xf32>
    tpu.vector_store %arg4[%c0_23, %c0_24, %c0_25], %27 {strides = array<i32>} : memref<1x32x1xf32, #tpu.memory_space<vmem>>, vector<1x32x1xf32>,
    return
  }
  func.func @transform_0(%arg0: i32) -> (i32, i32, i32, i32) {
    %c0_i32 = arith.constant 0 : i32
    %c0_i32_0 = arith.constant 0 : i32
    %c0_i32_1 = arith.constant 0 : i32
    %c0_i32_2 = arith.constant 0 : i32
    return %c0_i32, %arg0, %c0_i32_0, %c0_i32_1 : i32, i32, i32, i32
  }
  func.func @transform_1(%arg0: i32) -> (i32, i32, i32) {
    %c0_i32 = arith.constant 0 : i32
    %c0_i32_0 = arith.constant 0 : i32
    %c0_i32_1 = arith.constant 0 : i32
    %c0_i32_2 = arith.constant 0 : i32
    return %c0_i32, %c0_i32_0, %c0_i32_1 : i32, i32, i32
  }
  func.func @transform_2(%arg0: i32) -> (i32, i32) {
    %c0_i32 = arith.constant 0 : i32
    %c0_i32_0 = arith.constant 0 : i32
    %c0_i32_1 = arith.constant 0 : i32
    return %c0_i32, %c0_i32_0 : i32, i32
  }
  func.func @transform_3(%arg0: i32) -> (i32, i32, i32) {
    %c0_i32 = arith.constant 0 : i32
    %c0_i32_0 = arith.constant 0 : i32
    %c0_i32_1 = arith.constant 0 : i32
    return %arg0, %c0_i32, %c0_i32_0 : i32, i32, i32
  }
}

module attributes {stable_mosaic.version = 11 : i64} {
  func.func @_matmul_kernel(%arg0: i32, %arg1: i32, %arg2: i32, %arg3: memref<16x128xbf16, #tpu.memory_space<vmem>>, %arg4: memref<128x128xbf16, #tpu.memory_space<vmem>>, %arg5: memref<1x128xf32, #tpu.memory_space<vmem>>, %arg6: memref<16x128xf32, #tpu.memory_space<vmem>>, %arg7: memref<16x128xf32, #tpu.memory_space<vmem>>) attributes {dimension_semantics = [#tpu.dimension_semantics<parallel>, #tpu.dimension_semantics<parallel>, #tpu.dimension_semantics<arbitrary>], iteration_bounds = array<i64: 1, 1, 1>, scalar_prefetch = 0 : i64, scratch_operands = 1 : i64, tpu.core_type = #tpu.core_type<tc>, window_params = [{transform_indices = @transform_0, window_bounds = array<i64: 16, 128>}, {transform_indices = @transform_1, window_bounds = array<i64: 128, 128>}, {transform_indices = @transform_2, window_bounds = array<i64: 1, 128>}, {transform_indices = @transform_3, window_bounds = array<i64: 16, 128>}]} {
    %c0_i32 = arith.constant 0 : i32
    %0 = arith.cmpi eq, %arg2, %c0_i32 : i32
    %1 = arith.extui %0 : i1 to i32
    %c0_i32_0 = arith.constant 0 : i32
    %2 = arith.cmpi ne, %1, %c0_i32_0 : i32
    scf.if %2 {
      %cst_10 = arith.constant 0.000000e+00 : f32
      %12 = vector.broadcast %cst_10 : f32 to vector<16x128xf32>
      %c0_11 = arith.constant 0 : index
      %c0_12 = arith.constant 0 : index
      %13 = vector.load %arg7[%c0_11, %c0_12] : memref<16x128xf32, #tpu.memory_space<vmem>>, vector<16x128xf32>
      tpu.vector_store %arg7[%c0_11, %c0_12], %12 {strides = array<i32>} : memref<16x128xf32, #tpu.memory_space<vmem>>, vector<16x128xf32>,
    } else {
    }
    %c0 = arith.constant 0 : index
    %c0_1 = arith.constant 0 : index
    %3 = vector.load %arg7[%c0, %c0_1] : memref<16x128xf32, #tpu.memory_space<vmem>>, vector<16x128xf32>
    %c0_2 = arith.constant 0 : index
    %c0_3 = arith.constant 0 : index
    %4 = vector.load %arg3[%c0_2, %c0_3] : memref<16x128xbf16, #tpu.memory_space<vmem>>, vector<16x128xbf16>
    %c0_4 = arith.constant 0 : index
    %c0_5 = arith.constant 0 : index
    %5 = vector.load %arg4[%c0_4, %c0_5] : memref<128x128xbf16, #tpu.memory_space<vmem>>, vector<128x128xbf16>
    %cst = arith.constant dense<0.000000e+00> : vector<16x128xf32>
    %6 = tpu.matmul %4, %5, %cst {dimension_numbers = #tpu.dot_dimension_numbers<[1], [0], [0], [1], [0, 0, 1, 1], [], []>} : vector<16x128xbf16>, vector<128x128xbf16>, vector<16x128xf32> -> vector<16x128xf32>
    %7 = arith.addf %3, %6 : vector<16x128xf32>
    %c0_6 = arith.constant 0 : index
    %c0_7 = arith.constant 0 : index
    %8 = vector.load %arg7[%c0_6, %c0_7] : memref<16x128xf32, #tpu.memory_space<vmem>>, vector<16x128xf32>
    tpu.vector_store %arg7[%c0_6, %c0_7], %7 {strides = array<i32>} : memref<16x128xf32, #tpu.memory_space<vmem>>, vector<16x128xf32>,
    %c0_i32_8 = arith.constant 0 : i32
    %9 = arith.cmpi eq, %arg2, %c0_i32_8 : i32
    %10 = arith.extui %9 : i1 to i32
    %c0_i32_9 = arith.constant 0 : i32
    %11 = arith.cmpi ne, %10, %c0_i32_9 : i32
    scf.if %11 {
      %c0_10 = arith.constant 0 : index
      %c0_11 = arith.constant 0 : index
      %12 = vector.load %arg7[%c0_10, %c0_11] : memref<16x128xf32, #tpu.memory_space<vmem>>, vector<16x128xf32>
      %c0_12 = arith.constant 0 : index
      %c0_13 = arith.constant 0 : index
      %13 = vector.load %arg5[%c0_12, %c0_13] : memref<1x128xf32, #tpu.memory_space<vmem>>, vector<1x128xf32>
      %14 = vector.broadcast %13 : vector<1x128xf32> to vector<16x128xf32>
      %15 = arith.addf %12, %14 : vector<16x128xf32>
      %c0_14 = arith.constant 0 : index
      %c0_15 = arith.constant 0 : index
      %16 = vector.load %arg6[%c0_14, %c0_15] : memref<16x128xf32, #tpu.memory_space<vmem>>, vector<16x128xf32>
      tpu.vector_store %arg6[%c0_14, %c0_15], %15 {strides = array<i32>} : memref<16x128xf32, #tpu.memory_space<vmem>>, vector<16x128xf32>,
    } else {
    }
    return
  }
  func.func @transform_0(%arg0: i32, %arg1: i32, %arg2: i32) -> (i32, i32) {
    %c0_i32 = arith.constant 0 : i32
    return %arg0, %arg2 : i32, i32
  }
  func.func @transform_1(%arg0: i32, %arg1: i32, %arg2: i32) -> (i32, i32) {
    %c0_i32 = arith.constant 0 : i32
    return %arg2, %arg1 : i32, i32
  }
  func.func @transform_2(%arg0: i32, %arg1: i32, %arg2: i32) -> (i32, i32) {
    %c0_i32 = arith.constant 0 : i32
    %c0_i32_0 = arith.constant 0 : i32
    return %c0_i32, %arg1 : i32, i32
  }
  func.func @transform_3(%arg0: i32, %arg1: i32, %arg2: i32) -> (i32, i32) {
    %c0_i32 = arith.constant 0 : i32
    return %arg0, %arg1 : i32, i32
  }
}

module attributes {stable_mosaic.version = 11 : i64} {
  func.func @_matmul_kernel(%arg0: i32, %arg1: i32, %arg2: i32, %arg3: memref<16x128xbf16, #tpu.memory_space<vmem>>, %arg4: memref<128x128xbf16, #tpu.memory_space<vmem>>, %arg5: memref<1x128xf32, #tpu.memory_space<vmem>>, %arg6: memref<16x128xf32, #tpu.memory_space<vmem>>, %arg7: memref<16x128xf32, #tpu.memory_space<vmem>>) attributes {dimension_semantics = [#tpu.dimension_semantics<parallel>, #tpu.dimension_semantics<parallel>, #tpu.dimension_semantics<arbitrary>], iteration_bounds = array<i64: 1, 1, 1>, scalar_prefetch = 0 : i64, scratch_operands = 1 : i64, tpu.core_type = #tpu.core_type<tc>, window_params = [{transform_indices = @transform_0, window_bounds = array<i64: 16, 128>}, {transform_indices = @transform_1, window_bounds = array<i64: 128, 128>}, {transform_indices = @transform_2, window_bounds = array<i64: 1, 128>}, {transform_indices = @transform_3, window_bounds = array<i64: 16, 128>}]} {
    %c0_i32 = arith.constant 0 : i32
    %0 = arith.cmpi eq, %arg2, %c0_i32 : i32
    %1 = arith.extui %0 : i1 to i32
    %c0_i32_0 = arith.constant 0 : i32
    %2 = arith.cmpi ne, %1, %c0_i32_0 : i32
    scf.if %2 {
      %cst_10 = arith.constant 0.000000e+00 : f32
      %12 = vector.broadcast %cst_10 : f32 to vector<16x128xf32>
      %c0_11 = arith.constant 0 : index
      %c0_12 = arith.constant 0 : index
      %13 = vector.load %arg7[%c0_11, %c0_12] : memref<16x128xf32, #tpu.memory_space<vmem>>, vector<16x128xf32>
      tpu.vector_store %arg7[%c0_11, %c0_12], %12 {strides = array<i32>} : memref<16x128xf32, #tpu.memory_space<vmem>>, vector<16x128xf32>,
    } else {
    }
    %c0 = arith.constant 0 : index
    %c0_1 = arith.constant 0 : index
    %3 = vector.load %arg7[%c0, %c0_1] : memref<16x128xf32, #tpu.memory_space<vmem>>, vector<16x128xf32>
    %c0_2 = arith.constant 0 : index
    %c0_3 = arith.constant 0 : index
    %4 = vector.load %arg3[%c0_2, %c0_3] : memref<16x128xbf16, #tpu.memory_space<vmem>>, vector<16x128xbf16>
    %c0_4 = arith.constant 0 : index
    %c0_5 = arith.constant 0 : index
    %5 = vector.load %arg4[%c0_4, %c0_5] : memref<128x128xbf16, #tpu.memory_space<vmem>>, vector<128x128xbf16>
    %cst = arith.constant dense<0.000000e+00> : vector<16x128xf32>
    %6 = tpu.matmul %4, %5, %cst {dimension_numbers = #tpu.dot_dimension_numbers<[1], [0], [0], [1], [0, 0, 1, 1], [], []>} : vector<16x128xbf16>, vector<128x128xbf16>, vector<16x128xf32> -> vector<16x128xf32>
    %7 = arith.addf %3, %6 : vector<16x128xf32>
    %c0_6 = arith.constant 0 : index
    %c0_7 = arith.constant 0 : index
    %8 = vector.load %arg7[%c0_6, %c0_7] : memref<16x128xf32, #tpu.memory_space<vmem>>, vector<16x128xf32>
    tpu.vector_store %arg7[%c0_6, %c0_7], %7 {strides = array<i32>} : memref<16x128xf32, #tpu.memory_space<vmem>>, vector<16x128xf32>,
    %c0_i32_8 = arith.constant 0 : i32
    %9 = arith.cmpi eq, %arg2, %c0_i32_8 : i32
    %10 = arith.extui %9 : i1 to i32
    %c0_i32_9 = arith.constant 0 : i32
    %11 = arith.cmpi ne, %10, %c0_i32_9 : i32
    scf.if %11 {
      %c0_10 = arith.constant 0 : index
      %c0_11 = arith.constant 0 : index
      %12 = vector.load %arg7[%c0_10, %c0_11] : memref<16x128xf32, #tpu.memory_space<vmem>>, vector<16x128xf32>
      %c0_12 = arith.constant 0 : index
      %c0_13 = arith.constant 0 : index
      %13 = vector.load %arg5[%c0_12, %c0_13] : memref<1x128xf32, #tpu.memory_space<vmem>>, vector<1x128xf32>
      %14 = vector.broadcast %13 : vector<1x128xf32> to vector<16x128xf32>
      %15 = arith.addf %12, %14 : vector<16x128xf32>
      %cst_14 = arith.constant 0.000000e+00 : f32
      %16 = vector.broadcast %cst_14 : f32 to vector<16x128xf32>
      %17 = arith.maximumf %15, %16 : vector<16x128xf32>
      %c0_15 = arith.constant 0 : index
      %c0_16 = arith.constant 0 : index
      %18 = vector.load %arg6[%c0_15, %c0_16] : memref<16x128xf32, #tpu.memory_space<vmem>>, vector<16x128xf32>
      tpu.vector_store %arg6[%c0_15, %c0_16], %17 {strides = array<i32>} : memref<16x128xf32, #tpu.memory_space<vmem>>, vector<16x128xf32>,
    } else {
    }
    return
  }
  func.func @transform_0(%arg0: i32, %arg1: i32, %arg2: i32) -> (i32, i32) {
    %c0_i32 = arith.constant 0 : i32
    return %arg0, %arg2 : i32, i32
  }
  func.func @transform_1(%arg0: i32, %arg1: i32, %arg2: i32) -> (i32, i32) {
    %c0_i32 = arith.constant 0 : i32
    return %arg2, %arg1 : i32, i32
  }
  func.func @transform_2(%arg0: i32, %arg1: i32, %arg2: i32) -> (i32, i32) {
    %c0_i32 = arith.constant 0 : i32
    %c0_i32_0 = arith.constant 0 : i32
    return %c0_i32, %arg1 : i32, i32
  }
  func.func @transform_3(%arg0: i32, %arg1: i32, %arg2: i32) -> (i32, i32) {
    %c0_i32 = arith.constant 0 : i32
    return %arg0, %arg1 : i32, i32
  }
}

module attributes {stable_mosaic.version = 11 : i64} {
  func.func @_attn_kernel(%arg0: i32, %arg1: i32, %arg2: i32, %arg3: memref<2xi32, #tpu.memory_space<smem>>, %arg4: memref<1x1x8x8xf32, #tpu.memory_space<vmem>>, %arg5: memref<1x1x8x8xf32, #tpu.memory_space<vmem>>, %arg6: memref<1x1x8x8xf32, #tpu.memory_space<vmem>>, %arg7: memref<1x1x8x8xf32, #tpu.memory_space<vmem>>, %arg8: memref<8x1xf32, #tpu.memory_space<vmem>>, %arg9: memref<8x1xf32, #tpu.memory_space<vmem>>, %arg10: memref<8x8xf32, #tpu.memory_space<vmem>>) attributes {dimension_semantics = [#tpu.dimension_semantics<parallel>, #tpu.dimension_semantics<parallel>, #tpu.dimension_semantics<arbitrary>], iteration_bounds = array<i64: 2, 2, 1>, scalar_prefetch = 1 : i64, scratch_operands = 3 : i64, tpu.core_type = #tpu.core_type<tc>, window_params = [{transform_indices = @transform_0, window_bounds = array<i64: 1, 1, 8, 8>}, {transform_indices = @transform_1, window_bounds = array<i64: 1, 1, 8, 8>}, {transform_indices = @transform_2, window_bounds = array<i64: 1, 1, 8, 8>}, {transform_indices = @transform_3, window_bounds = array<i64: 1, 1, 8, 8>}]} {
    %c0_i32 = arith.constant 0 : i32
    %0 = arith.cmpi eq, %arg2, %c0_i32 : i32
    %1 = arith.extui %0 : i1 to i32
    %c0_i32_0 = arith.constant 0 : i32
    %2 = arith.cmpi ne, %1, %c0_i32_0 : i32
    scf.if %2 {
      %cst_34 = arith.constant -1.000000e+30 : f32
      %54 = vector.broadcast %cst_34 : f32 to vector<8x1xf32>
      %c0_35 = arith.constant 0 : index
      %c0_36 = arith.constant 0 : index
      %55 = vector.load %arg8[%c0_35, %c0_36] : memref<8x1xf32, #tpu.memory_space<vmem>>, vector<8x1xf32>
      tpu.vector_store %arg8[%c0_35, %c0_36], %54 {strides = array<i32>} : memref<8x1xf32, #tpu.memory_space<vmem>>, vector<8x1xf32>,
      %cst_37 = arith.constant 0.000000e+00 : f32
      %56 = vector.broadcast %cst_37 : f32 to vector<8x1xf32>
      %c0_38 = arith.constant 0 : index
      %c0_39 = arith.constant 0 : index
      %57 = vector.load %arg9[%c0_38, %c0_39] : memref<8x1xf32, #tpu.memory_space<vmem>>, vector<8x1xf32>
      tpu.vector_store %arg9[%c0_38, %c0_39], %56 {strides = array<i32>} : memref<8x1xf32, #tpu.memory_space<vmem>>, vector<8x1xf32>,
      %cst_40 = arith.constant 0.000000e+00 : f32
      %58 = vector.broadcast %cst_40 : f32 to vector<8x8xf32>
      %c0_41 = arith.constant 0 : index
      %c0_42 = arith.constant 0 : index
      %59 = vector.load %arg10[%c0_41, %c0_42] : memref<8x8xf32, #tpu.memory_space<vmem>>, vector<8x8xf32>
      tpu.vector_store %arg10[%c0_41, %c0_42], %58 {strides = array<i32>} : memref<8x8xf32, #tpu.memory_space<vmem>>, vector<8x8xf32>,
    } else {
    }
    %3 = arith.index_cast %arg0 : i32 to index
    %4 = memref.load %arg3[%3] : memref<2xi32, #tpu.memory_space<smem>>
    %c0 = arith.constant 0 : index
    %c0_1 = arith.constant 0 : index
    %c0_2 = arith.constant 0 : index
    %c0_3 = arith.constant 0 : index
    %5 = vector.load %arg4[%c0, %c0_1, %c0_2, %c0_3] : memref<1x1x8x8xf32, #tpu.memory_space<vmem>>, vector<1x1x8x8xf32>
    %6 = vector.shape_cast %5 : vector<1x1x8x8xf32> to vector<8x8xf32>
    %7 = arith.truncf %6 : vector<8x8xf32> to vector<8x8xbf16>
    %c0_4 = arith.constant 0 : index
    %c0_5 = arith.constant 0 : index
    %c0_6 = arith.constant 0 : index
    %c0_7 = arith.constant 0 : index
    %8 = vector.load %arg5[%c0_4, %c0_5, %c0_6, %c0_7] : memref<1x1x8x8xf32, #tpu.memory_space<vmem>>, vector<1x1x8x8xf32>
    %9 = vector.shape_cast %8 : vector<1x1x8x8xf32> to vector<8x8xf32>
    %10 = arith.truncf %9 : vector<8x8xf32> to vector<8x8xbf16>
    %c0_8 = arith.constant 0 : index
    %c0_9 = arith.constant 0 : index
    %c0_10 = arith.constant 0 : index
    %c0_11 = arith.constant 0 : index
    %11 = vector.load %arg6[%c0_8, %c0_9, %c0_10, %c0_11] : memref<1x1x8x8xf32, #tpu.memory_space<vmem>>, vector<1x1x8x8xf32>
    %12 = vector.shape_cast %11 : vector<1x1x8x8xf32> to vector<8x8xf32>
    %13 = arith.truncf %12 : vector<8x8xf32> to vector<8x8xbf16>
    %cst = arith.constant dense<0.000000e+00> : vector<8x8xf32>
    %14 = tpu.matmul %7, %10, %cst {dimension_numbers = #tpu.dot_dimension_numbers<[1], [1], [0], [0], [0, 0, 1, 0], [], []>} : vector<8x8xbf16>, vector<8x8xbf16>, vector<8x8xf32> -> vector<8x8xf32>
    %cst_12 = arith.constant 0.353553385 : f32
    %15 = vector.broadcast %cst_12 : f32 to vector<8x8xf32>
    %16 = arith.mulf %14, %15 : vector<8x8xf32>
    %17 = tpu.iota {dimensions = array<i32: 1>} : vector<8x8xi32>
    %c8_i32 = arith.constant 8 : i32
    %18 = arith.muli %arg2, %c8_i32 : i32
    %19 = vector.broadcast %18 : i32 to vector<8x8xi32>
    %20 = arith.addi %17, %19 : vector<8x8xi32>
    %21 = vector.broadcast %4 : i32 to vector<8x8xi32>
    %22 = arith.cmpi slt, %20, %21 : vector<8x8xi32>
    %cst_13 = arith.constant -1.000000e+30 : f32
    %23 = vector.broadcast %cst_13 : f32 to vector<8x8xf32>
    %24 = arith.select %22, %16, %23 : vector<8x8xi1>, vector<8x8xf32>
    %c0_14 = arith.constant 0 : index
    %c0_15 = arith.constant 0 : index
    %25 = vector.load %arg8[%c0_14, %c0_15] : memref<8x1xf32, #tpu.memory_space<vmem>>, vector<8x1xf32>
    %cst_16 = arith.constant dense<0xFF800000> : vector<8xf32>
    %26 = vector.multi_reduction <maximumf>, %24, %cst_16 [1] : vector<8x8xf32> to vector<8xf32>
    %27 = vector.shape_cast %26 : vector<8xf32> to vector<8x1xf32>
    %28 = arith.maximumf %25, %27 : vector<8x1xf32>
    %c0_17 = arith.constant 0 : index
    %c0_18 = arith.constant 0 : index
    %29 = vector.load %arg8[%c0_17, %c0_18] : memref<8x1xf32, #tpu.memory_space<vmem>>, vector<8x1xf32>
    %30 = arith.subf %29, %28 : vector<8x1xf32>
    %31 = math.exp %30 : vector<8x1xf32>
    %32 = vector.broadcast %28 : vector<8x1xf32> to vector<8x8xf32>
    %33 = arith.subf %24, %32 : vector<8x8xf32>
    %34 = math.exp %33 : vector<8x8xf32>
    %cst_19 = arith.constant 0.000000e+00 : f32
    %35 = vector.broadcast %cst_19 : f32 to vector<8x8xf32>
    %36 = arith.select %22, %34, %35 : vector<8x8xi1>, vector<8x8xf32>
    %c0_20 = arith.constant 0 : index
    %c0_21 = arith.constant 0 : index
    %37 = vector.load %arg9[%c0_20, %c0_21] : memref<8x1xf32, #tpu.memory_space<vmem>>, vector<8x1xf32>
    %38 = arith.mulf %31, %37 : vector<8x1xf32>
    %cst_22 = arith.constant dense<0.000000e+00> : vector<8xf32>
    %39 = vector.multi_reduction <add>, %36, %cst_22 [1] : vector<8x8xf32> to vector<8xf32>
    %40 = vector.shape_cast %39 : vector<8xf32> to vector<8x1xf32>
    %41 = arith.addf %38, %40 : vector<8x1xf32>
    %c0_23 = arith.constant 0 : index
    %c0_24 = arith.constant 0 : index
    %42 = vector.load %arg9[%c0_23, %c0_24] : memref<8x1xf32, #tpu.memory_space<vmem>>, vector<8x1xf32>
    tpu.vector_store %arg9[%c0_23, %c0_24], %41 {strides = array<i32>} : memref<8x1xf32, #tpu.memory_space<vmem>>, vector<8x1xf32>,
    %c0_25 = arith.constant 0 : index
    %c0_26 = arith.constant 0 : index
    %43 = vector.load %arg10[%c0_25, %c0_26] : memref<8x8xf32, #tpu.memory_space<vmem>>, vector<8x8xf32>
    %44 = vector.broadcast %31 : vector<8x1xf32> to vector<8x8xf32>
    %45 = arith.mulf %44, %43 : vector<8x8xf32>
    %46 = arith.truncf %36 : vector<8x8xf32> to vector<8x8xbf16>
    %cst_27 = arith.constant dense<0.000000e+00> : vector<8x8xf32>
    %47 = tpu.matmul %46, %13, %cst_27 {dimension_numbers = #tpu.dot_dimension_numbers<[1], [0], [0], [1], [0, 0, 1, 1], [], []>} : vector<8x8xbf16>, vector<8x8xbf16>, vector<8x8xf32> -> vector<8x8xf32>
    %48 = arith.addf %45, %47 : vector<8x8xf32>
    %c0_28 = arith.constant 0 : index
    %c0_29 = arith.constant 0 : index
    %49 = vector.load %arg10[%c0_28, %c0_29] : memref<8x8xf32, #tpu.memory_space<vmem>>, vector<8x8xf32>
    tpu.vector_store %arg10[%c0_28, %c0_29], %48 {strides = array<i32>} : memref<8x8xf32, #tpu.memory_space<vmem>>, vector<8x8xf32>,
    %c0_30 = arith.constant 0 : index
    %c0_31 = arith.constant 0 : index
    %50 = vector.load %arg8[%c0_30, %c0_31] : memref<8x1xf32, #tpu.memory_space<vmem>>, vector<8x1xf32>
    tpu.vector_store %arg8[%c0_30, %c0_31], %28 {strides = array<i32>} : memref<8x1xf32, #tpu.memory_space<vmem>>, vector<8x1xf32>,
    %c0_i32_32 = arith.constant 0 : i32
    %51 = arith.cmpi eq, %arg2, %c0_i32_32 : i32
    %52 = arith.extui %51 : i1 to i32
    %c0_i32_33 = arith.constant 0 : i32
    %53 = arith.cmpi ne, %52, %c0_i32_33 : i32
    scf.if %53 {
      %c0_34 = arith.constant 0 : index
      %c0_35 = arith.constant 0 : index
      %54 = vector.load %arg10[%c0_34, %c0_35] : memref<8x8xf32, #tpu.memory_space<vmem>>, vector<8x8xf32>
      %c0_36 = arith.constant 0 : index
      %c0_37 = arith.constant 0 : index
      %55 = vector.load %arg9[%c0_36, %c0_37] : memref<8x1xf32, #tpu.memory_space<vmem>>, vector<8x1xf32>
      %56 = tpu.reciprocal %55 {approx = true} : vector<8x1xf32> -> vector<8x1xf32>
      %57 = vector.broadcast %56 : vector<8x1xf32> to vector<8x8xf32>
      %58 = arith.mulf %54, %57 : vector<8x8xf32>
      %c0_38 = arith.constant 0 : index
      %c0_39 = arith.constant 0 : index
      %c0_40 = arith.constant 0 : index
      %c0_41 = arith.constant 0 : index
      %59 = vector.load %arg7[%c0_38, %c0_39, %c0_40, %c0_41] : memref<1x1x8x8xf32, #tpu.memory_space<vmem>>, vector<1x1x8x8xf32>
      %60 = vector.shape_cast %59 : vector<1x1x8x8xf32> to vector<8x8xf32>
      %61 = vector.shape_cast %58 : vector<8x8xf32> to vector<1x1x8x8xf32>
      tpu.vector_store %arg7[%c0_38, %c0_39, %c0_40, %c0_41], %61 {strides = array<i32>} : memref<1x1x8x8xf32, #tpu.memory_space<vmem>>, vector<1x1x8x8xf32>,
    } else {
    }
    return
  }
  func.func @transform_0(%arg0: i32, %arg1: i32, %arg2: i32, %arg3: memref<2xi32, #tpu.memory_space<smem>>) -> (i32, i32, i32, i32) {
    %c0_i32 = arith.constant 0 : i32
    %c0_i32_0 = arith.constant 0 : i32
    %c0_i32_1 = arith.constant 0 : i32
    return %arg0, %arg1, %c0_i32, %c0_i32_0 : i32, i32, i32, i32
  }
  func.func @transform_1(%arg0: i32, %arg1: i32, %arg2: i32, %arg3: memref<2xi32, #tpu.memory_space<smem>>) -> (i32, i32, i32, i32) {
    %c0_i32 = arith.constant 0 : i32
    %c0_i32_0 = arith.constant 0 : i32
    return %arg0, %arg1, %arg2, %c0_i32 : i32, i32, i32, i32
  }
  func.func @transform_2(%arg0: i32, %arg1: i32, %arg2: i32, %arg3: memref<2xi32, #tpu.memory_space<smem>>) -> (i32, i32, i32, i32) {
    %c0_i32 = arith.constant 0 : i32
    %c0_i32_0 = arith.constant 0 : i32
    return %arg0, %arg1, %arg2, %c0_i32 : i32, i32, i32, i32
  }
  func.func @transform_3(%arg0: i32, %arg1: i32, %arg2: i32, %arg3: memref<2xi32, #tpu.memory_space<smem>>) -> (i32, i32, i32, i32) {
    %c0_i32 = arith.constant 0 : i32
    %c0_i32_0 = arith.constant 0 : i32
    %c0_i32_1 = arith.constant 0 : i32
    return %arg0, %arg1, %c0_i32, %c0_i32_0 : i32, i32, i32, i32
  }
}

module attributes {stable_mosaic.version = 11 : i64} {
  func.func @_add_ln_kernel(%arg0: i32, %arg1: memref<16x16xf32, #tpu.memory_space<vmem>>, %arg2: memref<16x16xf32, #tpu.memory_space<vmem>>, %arg3: memref<1x16xf32, #tpu.memory_space<vmem>>, %arg4: memref<1x16xf32, #tpu.memory_space<vmem>>, %arg5: memref<16x16xf32, #tpu.memory_space<vmem>>) attributes {dimension_semantics = [#tpu.dimension_semantics<parallel>], iteration_bounds = array<i64: 1>, scalar_prefetch = 0 : i64, scratch_operands = 0 : i64, tpu.core_type = #tpu.core_type<tc>, window_params = [{transform_indices = @transform_0, window_bounds = array<i64: 16, 16>}, {transform_indices = @transform_1, window_bounds = array<i64: 16, 16>}, {pipeline_mode = #tpu.pipeline_mode<synchronous>, transform_indices = @transform_2, window_bounds = array<i64: 1, 16>}, {pipeline_mode = #tpu.pipeline_mode<synchronous>, transform_indices = @transform_3, window_bounds = array<i64: 1, 16>}, {transform_indices = @transform_4, window_bounds = array<i64: 16, 16>}]} {
    %c0 = arith.constant 0 : index
    %c0_0 = arith.constant 0 : index
    %0 = vector.load %arg1[%c0, %c0_0] : memref<16x16xf32, #tpu.memory_space<vmem>>, vector<16x16xf32>
    %c0_1 = arith.constant 0 : index
    %c0_2 = arith.constant 0 : index
    %1 = vector.load %arg2[%c0_1, %c0_2] : memref<16x16xf32, #tpu.memory_space<vmem>>, vector<16x16xf32>
    %2 = arith.addf %0, %1 : vector<16x16xf32>
    %cst = arith.constant dense<0.000000e+00> : vector<16xf32>
    %3 = vector.multi_reduction <add>, %2, %cst [1] : vector<16x16xf32> to vector<16xf32>
    %4 = vector.shape_cast %3 : vector<16xf32> to vector<16x1xf32>
    %cst_3 = arith.constant 1.600000e+01 : f32
    %5 = vector.broadcast %cst_3 : f32 to vector<16x1xf32>
    %6 = arith.divf %4, %5 : vector<16x1xf32>
    %7 = vector.broadcast %6 : vector<16x1xf32> to vector<16x16xf32>
    %8 = arith.subf %2, %7 : vector<16x16xf32>
    %9 = arith.mulf %8, %8 : vector<16x16xf32>
    %cst_4 = arith.constant dense<0.000000e+00> : vector<16xf32>
    %10 = vector.multi_reduction <add>, %9, %cst_4 [1] : vector<16x16xf32> to vector<16xf32>
    %11 = vector.shape_cast %10 : vector<16xf32> to vector<16x1xf32>
    %cst_5 = arith.constant 1.600000e+01 : f32
    %12 = vector.broadcast %cst_5 : f32 to vector<16x1xf32>
    %13 = arith.divf %11, %12 : vector<16x1xf32>
    %cst_6 = arith.constant 9.99999974E-6 : f32
    %14 = vector.broadcast %cst_6 : f32 to vector<16x1xf32>
    %15 = arith.addf %13, %14 : vector<16x1xf32>
    %16 = math.rsqrt %15 : vector<16x1xf32>
    %17 = vector.broadcast %16 : vector<16x1xf32> to vector<16x16xf32>
    %18 = arith.mulf %8, %17 : vector<16x16xf32>
    %c0_7 = arith.constant 0 : index
    %c0_8 = arith.constant 0 : index
    %19 = vector.load %arg3[%c0_7, %c0_8] : memref<1x16xf32, #tpu.memory_space<vmem>>, vector<1x16xf32>
    %20 = vector.broadcast %19 : vector<1x16xf32> to vector<16x16xf32>
    %21 = arith.mulf %18, %20 : vector<16x16xf32>
    %c0_9 = arith.constant 0 : index
    %c0_10 = arith.constant 0 : index
    %22 = vector.load %arg4[%c0_9, %c0_10] : memref<1x16xf32, #tpu.memory_space<vmem>>, vector<1x16xf32>
    %23 = vector.broadcast %22 : vector<1x16xf32> to vector<16x16xf32>
    %24 = arith.addf %21, %23 : vector<16x16xf32>
    %c0_11 = arith.constant 0 : index
    %c0_12 = arith.constant 0 : index
    %25 = vector.load %arg5[%c0_11, %c0_12] : memref<16x16xf32, #tpu.memory_space<vmem>>, vector<16x16xf32>
    tpu.vector_store %arg5[%c0_11, %c0_12], %24 {strides = array<i32>} : memref<16x16xf32, #tpu.memory_space<vmem>>, vector<16x16xf32>,
    return
  }
  func.func @transform_0(%arg0: i32) -> (i32, i32) {
    %c0_i32 = arith.constant 0 : i32
    %c0_i32_0 = arith.constant 0 : i32
    return %arg0, %c0_i32 : i32, i32
  }
  func.func @transform_1(%arg0: i32) -> (i32, i32) {
    %c0_i32 = arith.constant 0 : i32
    %c0_i32_0 = arith.constant 0 : i32
    return %arg0, %c0_i32 : i32, i32
  }
  func.func @transform_2(%arg0: i32) -> (i32, i32) {
    %c0_i32 = arith.constant 0 : i32
    %c0_i32_0 = arith.constant 0 : i32
    %c0_i32_1 = arith.constant 0 : i32
    return %c0_i32, %c0_i32_0 : i32, i32
  }
  func.func @transform_3(%arg0: i32) -> (i32, i32) {
    %c0_i32 = arith.constant 0 : i32
    %c0_i32_0 = arith.constant 0 : i32
    %c0_i32_1 = arith.constant 0 : i32
    return %c0_i32, %c0_i32_0 : i32, i32
  }
  func.func @transform_4(%arg0: i32) -> (i32, i32) {
    %c0_i32 = arith.constant 0 : i32
    %c0_i32_0 = arith.constant 0 : i32
    return %arg0, %c0_i32 : i32, i32
  }
}

</mosaic_0001>

<bundles_post_ra>
// kernel: vits_forward.36
= control target key start
LH: loop header
LB: loop body
LE: loop exit
PB: predicated region body
PF: predicated region fallthrough
CT: control target
= control target key end

     0   :  { %s311_s12 = smov 0   ;;  %s334_s0 = inlined_call_operand.vmem [shape: f32[1,2,16,8], index: 0, kind: input, shape index: {}]   ;;  %s335_s1 = inlined_call_operand.vmem [shape: bf16[1,8,16], index: 1, kind: input, shape index: {}]   ;;  %s336_s2 = inlined_call_operand.vmem [shape: f32[1,16], index: 2, kind: input, shape index: {}]   ;;  %s337_s3 = inlined_call_operand.vmem [shape: f32[2,16,16], index: 3, kind: output, shape index: {}]  }
   0x1 LB: > { %s260_s13 = sadd.s32 4294967295, %s289_s12   ;;  %p264_p0 = scmp.ge.s32.totalorder %s289_s12, 1  ;;  %s289_s12 = sphi %s311_s12, %s13_s12  }
   0x2   : > { %p137_p1 = scmp.lt.s32.totalorder %s289_s12, 3 }
   0x4   : > { %p138_p2 = pnand %p264_p0, %p137_p1 }
   0x5   : > { %p161_p3 = scmp.lt.s32.totalorder (!%p138_p2), %s260_s13, 1 }
   0x6   : > { %141 = sbr.rel (%p138_p2) target bundleno = 154 (0x9a), region = 32 }
   0xb   : > { %v175_v0 = vld [vmem:[%s335_s1] sm:$0xf]  ;;  %vm184_vm0 = vcmask 1043456   ;;  %s339_s13 = smov (!%p161_p3, %s260_s13), 1  ;;  %vm180_vm1 = vcmask 64512   ;;  %vm202_vm2 = vcmask 130048  }
   0xc   : > { %v186_v1 = vsel %vm184_vm0, %v175_v0, 0  ;;  %s272_s16 = sshll.u32 %s339_s13, 4  ;;  %v282_v5 = vld [vmem:[%s336_s2] ss:$0 sm:$0xff] }
   0xd   : > { %195 = vmatpush.bf16.msra.mxu0 %v186_v1  ;;  %s165_s19 = scalar_lea.vmem %s334_s0, %s272_s16  ;;  %s170_s24 = scalar_lea.vmem %s337_s3, %s272_s16 }
   0xe   : > { %v172_v2 = vld [vmem:[%s165_s19] sm:$0xff]  ;;  %v173_v3 = vld [vmem:[%s165_s19 + $0x8] sm:$0xff] }
   0xf   : > { %v174_v4 = vpack.c.bf16 %v173_v3, %v172_v2 }
  0x11   : > { %269 = vmatmul.msk.bf16.vlgmr.msra.gmra.mxu0 %vm180_vm1, %v174_v4 }
  0x8e   : > { %v197_v6 = vpop.f32.mrf.mxu0 }
  0x8f   : > { %v198_v7 = vadd.f32 %v282_v5, %v197_v6 }
  0x91   : > { %203 = vst.msk [vmem:[%s170_s24] sm:$0xff] %vm202_vm2, %v198_v7 }
  0x96   : > { %v199_v8 = vpop.f32.mrf.mxu0 }
  0x97   : > { %v200_v9 = vadd.f32 %v282_v5, %v199_v8 }
  0x99   : > { %204 = vst.msk [vmem:[%s170_s24 + $0x8] sm:$0xff] %vm202_vm2, %v200_v9 }
  0x9a PF: > { %s13_s12 = sadd.s32 1, %s289_s12  }
  0x9b   : > { %p10_p4 = scmp.ge.s32.totalorder %s13_s12, 4  }
  0x9d   :  { %12 = sbr.rel (!%p10_p4) target bundleno = 1 (0x1), region = 62 }

// kernel: vits_forward.39
= control target key start
LH: loop header
LB: loop body
LE: loop exit
PB: predicated region body
PF: predicated region fallthrough
CT: control target
= control target key end

     0   :  { %s319_s12 = smov 0   ;;  %s342_s0 = inlined_call_operand.vmem [shape: f32[1,2,16,16], index: 0, kind: input, shape index: {}]   ;;  %s343_s1 = inlined_call_operand.vmem [shape: bf16[1,16,32], index: 1, kind: input, shape index: {}]   ;;  %s344_s2 = inlined_call_operand.vmem [shape: f32[1,32], index: 2, kind: input, shape index: {}]   ;;  %s345_s3 = inlined_call_operand.vmem [shape: f32[2,16,32], index: 3, kind: output, shape index: {}]  }
   0x1 LB: > { %s263_s13 = sadd.s32 4294967295, %s297_s12   ;;  %p267_p0 = scmp.ge.s32.totalorder %s297_s12, 1  ;;  %s297_s12 = sphi %s319_s12, %s13_s12  }
   0x2   : > { %p137_p1 = scmp.lt.s32.totalorder %s297_s12, 3 }
   0x4   : > { %p138_p2 = pnand %p267_p0, %p137_p1 }
   0x5   : > { %p161_p3 = scmp.lt.s32.totalorder (!%p138_p2), %s263_s13, 1 }
   0x6   : > { %141 = sbr.rel (%p138_p2) target bundleno = 154 (0x9a), region = 32 }
   0xb   : > { %v281_v0 = vld [vmem:[%s343_s1] sm:$0xff]  ;;  %s347_s13 = smov (!%p161_p3, %s263_s13), 1  ;;  %vm187_vm0 = vcmask 130048   ;;  %vm205_vm1 = vcmask 261120  }
   0xc   : > { %198 = vmatpush.bf16.msra.mxu0 %v281_v0  ;;  %s279_s16 = sshll.u32 %s347_s13, 4  ;;  %v290_v4 = vld [vmem:[%s344_s2] ss:$0 sm:$0xff] }
   0xd   : > { %s165_s19 = scalar_lea.vmem %s342_s0, %s279_s16  ;;  %s170_s24 = scalar_lea.vmem %s345_s3, %s279_s16 }
   0xe   : > { %v172_v1 = vld [vmem:[%s165_s19] sm:$0xff]  ;;  %v173_v2 = vld [vmem:[%s165_s19 + $0x8] sm:$0xff] }
   0xf   : > { %v174_v3 = vpack.c.bf16 %v173_v2, %v172_v1 }
  0x11   : > { %276 = vmatmul.msk.bf16.vlgmr.msra.gmra.mxu0 %vm187_vm0, %v174_v3 }
  0x8e   : > { %v200_v5 = vpop.f32.mrf.mxu0 }
  0x8f   : > { %v201_v6 = vadd.f32 %v290_v4, %v200_v5 }
  0x91   : > { %206 = vst.msk [vmem:[%s170_s24] sm:$0xff] %vm205_vm1, %v201_v6 }
  0x96   : > { %v202_v7 = vpop.f32.mrf.mxu0 }
  0x97   : > { %v203_v8 = vadd.f32 %v290_v4, %v202_v7 }
  0x99   : > { %207 = vst.msk [vmem:[%s170_s24 + $0x8] sm:$0xff] %vm205_vm1, %v203_v8 }
  0x9a PF: > { %s13_s12 = sadd.s32 1, %s297_s12  }
  0x9b   : > { %p10_p4 = scmp.ge.s32.totalorder %s13_s12, 4  }
  0x9d   :  { %12 = sbr.rel (!%p10_p4) target bundleno = 1 (0x1), region = 62 }

// kernel: vits_forward.38
= control target key start
LH: loop header
LB: loop body
LE: loop exit
PB: predicated region body
PF: predicated region fallthrough
CT: control target
= control target key end

     0   :  { %s1138_s0 = inlined_call_operand.vmem [shape: f32[2,24,16], index: 0, kind: input, shape index: {}]   ;;  %s1139_s1 = inlined_call_operand.vmem [shape: f32[2,16,16], index: 1, kind: input, shape index: {}]   ;;  %s1140_s2 = inlined_call_operand.vmem [shape: f32[2,16,1], index: 2, kind: input, shape index: {}]   ;;  %s1141_s3 = inlined_call_operand.vmem [shape: bf16[5,16,32], index: 3, kind: input, shape index: {}]   ;;  %s1142_s4 = inlined_call_operand.vmem [shape: f32[1,32], index: 4, kind: input, shape index: {}]   ;;  %s1143_s5 = inlined_call_operand.vmem [shape: bf16[16,16], index: 5, kind: input, shape index: {}]   ;;  %s1144_s6 = inlined_call_operand.vmem [shape: f32[1,16], index: 6, kind: input, shape index: {}]   ;;  %s1145_s7 = inlined_call_operand.hbm [shape: f32[2,16,16], index: 7, kind: output, shape index: {0}]   ;;  %s1146_s8 = inlined_call_operand.vmem [shape: f32[2,16,16], index: 8, kind: output, shape index: {1}]  }
   0x1   :  { %1147 = sst [smem:[#allocation5_spill]] %s1138_s0 }
   0x2   :  { %1148 = sst [smem:[#allocation6_spill]] %s1140_s2 }
   0x3   :  { %14 = vsyncpa [#allocation3], 0 }
   0x4   :  { %16 = vsyncpa [#allocation3 + $0x1], 0  ;;  %s992_s27 = smov 0   ;;  %s994_s28 = smov 0  }
   0x5   :  { %s996_s29 = smov 0   ;;  %s998_s30 = smov 0  }
   0x6 LB: > { %s1013_s9 = sadd.s32 4294967295, %s941_s30   ;;  %s752_s10 = sadd.s32 4294967294, %s941_s30   ;;  %s941_s30 = sphi %s998_s30, %s1156_s30   ;;  %s937_s29 = sphi %s996_s29, %s1155_s29   ;;  %s933_s28 = sphi %s994_s28, %s1154_s28   ;;  %s929_s27 = sphi %s992_s27, %s1153_s27  }
   0x7   : > { %s1017_s11 = sadd.s32 1, %s941_s30   ;;  %s191_s12 = sadd.s32 1, %s937_s29 }
   0x8   : > { %s188_s13 = ssub.s32 %s941_s30, %s1017_s11  ;;  %p201_p0 = scmp.ne.s32.totalorder %s937_s29, %s933_s28 }
   0x9   : > { %p189_p1 = scmp.eq.s32.totalorder %s188_s13, 0  ;;  %p202_p2 = scmp.eq.s32.totalorder %s1013_s9, 1 }
   0xa   : > { %p207_p3 = scmp.ne.s32.totalorder %s933_s28, %s929_s27  ;;  %p208_p4 = scmp.eq.s32.totalorder %s752_s10, 1 }
   0xb   : > { %s1028_s14 = scalar_select %p189_p1, %s937_s29, %s191_s12  }
   0xc   : > { %p1030_p5 = por %p202_p2, %p201_p0  ;;  %p1034_p6 = por %p208_p4, %p207_p3 }
   0xd   : > { %p755_p7 = scmp.ge.s32.totalorder %s941_s30, 1  ;;  %p288_p8 = scmp.lt.s32.totalorder %s941_s30, 3 }
   0xf   : > { %p289_p9 = pnand %p755_p7, %p288_p8 }
  0x10   : > { %p337_p10 = scmp.lt.s32.totalorder (!%p289_p9), %s1013_s9, 1  ;;  %s327_s23 = sand.u32 (!%p289_p9), 1, %s933_s28  }
  0x11   : > { %292 = sbr.rel (%p289_p9) target bundleno = 472 (0x1d8), region = 48  ;;  %s756_s13 = sshll.u32 (!%p289_p9), %s327_s23, 4 }
  0x12   : > { %s1151_s0 = sld [smem:[#allocation5_spill]] (!%p289_p9)  ;;  %s1066_s21 = scalar_lea.vmem (!%p289_p9), [#allocation2], %s756_s13 }
  0x13   : > { %s943_s10 = smov (!%p289_p9), 112   ;;  %s1152_s2 = sld [smem:[#allocation6_spill]] (!%p289_p9) }
  0x16   : > { %v813_v0 = vld [vmem:[%s1141_s3 + $0x8] sm:$0xff]  ;;  %v812_v1 = vld [vmem:[%s1141_s3] sm:$0xff]  ;;  %v814_v2 = vld [vmem:[%s1141_s3 + $0x10] sm:$0xff]  ;;  %s1058_s12 = scalar_select %p337_p10, %s1013_s9, 1  ;;  %vm375_vm0 = vcmask 130048  }
  0x17   : > { %v815_v3 = vld [vmem:[%s1141_s3 + $0x18] sm:$0xff]  ;;  %v816_v4 = vld [vmem:[%s1141_s3 + $0x20] sm:$0xff]  ;;  %386 = vmatpush.bf16.msra.mxu0 %v813_v0  ;;  %409 = vmatpush.bf16.msra.mxu1 %v812_v1 }
  0x18   : > { %438 = vmatpush.bf16.msra.mxu2 %v814_v2  ;;  %469 = vmatpush.bf16.msra.mxu3 %v815_v3  ;;  %s819_s17 = smul.u32 24, %s1058_s12  ;;  %v865_v28 = vld [vmem:[%s1142_s4] ss:$0 sm:$0xff]  ;;  %s1084_s13 = sshll.u32 %s1058_s12, 4 }
  0x19   : > { %v817_v40 = vld [vmem:[%s1143_s5] sm:$0xff]  ;;  %s351_s19 = scalar_lea.vmem %s1152_s2, %s1084_s13  ;;  %s635_s12 = sshll.u32 %s1066_s21, 4  ;;  %s636_s12 = int_to_ptr.vmem [resolvable:$true] %s635_s12 }
  0x1a   : > { %s341_s20 = scalar_lea.vmem %s1151_s0, %s819_s17  ;;  %v595_v3 = vld [vmem:[%s351_s19] sm:$0xff] }
  0x1b   : > { %500 = vmatpush.bf16.msrb.mxu0 %v816_v4  ;;  %v363_v5 = vld [vmem:[%s341_s20 + $0x2] sm:$0xff]  ;;  %v364_v6 = vld [vmem:[%s341_s20 + $0xa] sm:$0xff]  ;;  %588 = vmatpush.bf16.msrb.mxu1 %v817_v40  ;;  %v944_v4 = vmov 0  }
  0x1c   : > { %v358_v7 = vld [vmem:[%s341_s20] sm:$0xff]  ;;  %v365_v8 = vpack.c.bf16 %v364_v6, %v363_v5  ;;  %v359_v9 = vld [vmem:[%s341_s20 + $0x8] sm:$0xff]  ;;  %v479_v17 = vld [vmem:[%s341_s20 + $0x10] sm:$0xff]  ;;  %863 = vset.pattern.permute.xlu1 %v944_v4  ;;  %864 = vset.pattern.permute.xlu0 %v944_v4 }
  0x1d   : > { %v416_v10 = vld [vmem:[%s341_s20 + $0x4] sm:$0xff]  ;;  %v417_v11 = vld [vmem:[%s341_s20 + $0xc] sm:$0xff]  ;;  %v360_v12 = vpack.c.bf16 %v359_v9, %v358_v7  ;;  %v480_v18 = vpack.c.bf16 %v479_v17, %v359_v9  ;;  %605 = vperm.xlu1 %863, %v595_v3  }
  0x1e   : > { %v418_v13 = vpack.c.bf16 %v417_v11, %v416_v10  ;;  %597 = vst.msk [vmem:[%s1066_s21] sm:$0xff] %vm375_vm0, %v416_v10  ;;  %v447_v14 = vld [vmem:[%s341_s20 + $0x6] sm:$0xff]  ;;  %v448_v15 = vld [vmem:[%s341_s20 + $0xe] sm:$0xff]  ;;  %770 = vmatmul.msk.bf16.vlgmr.msra.gmra.mxu0 %vm375_vm0, %v365_v8  ;;  %s818_s20 = sshll.u32 %s1013_s9, 4  ;;  %s899_s9 = scalar_lea.hbm %s1145_s7, 32 }
  0x1f   : > { %598 = vst.msk [vmem:[%s1066_s21 + $0x8] sm:$0xff] %vm375_vm0, %v417_v11  ;;  %v449_v16 = vpack.c.bf16 %v448_v15, %v447_v14  ;;  %775 = vmatmul.msk.bf16.vlgmr.msra.gmra.mxu1 %vm375_vm0, %v360_v12  ;;  %v596_v5 = vld [vmem:[%s351_s19 + $0x8] sm:$0xff]  ;;  %s634_s25 = scalar_lea.hbm %s1145_s7, %s818_s20 }
  0x20   : > { %782 = vmatmul.msk.bf16.vlgmr.msra.gmra.mxu2 %vm375_vm0, %v418_v13  ;;  %s637_s26 = sshll.u32 %s634_s25, 4  ;;  %s638_s26 = int_to_ptr.hbm [resolvable:$true] %s637_s26 }
  0x21   : > { %789 = vmatmul.msk.bf16.vlgmr.msra.gmra.mxu3 %vm375_vm0, %v449_v16  ;;  %s893_s17 = sshra.s32 %s638_s26, 4  ;;  %s894_s17 = int_to_ptr.hbm [resolvable:$true] %s893_s17 }
  0x22   : > { %s895_s18 = scalar_lea.hbm %s894_s17, 16  ;;  %p900_p0 = scmp.lt.s32.totalorder %s894_s17, %s1145_s7 }
  0x23   : > { %p896_p11 = scmp.ne.s32.totalorder %s894_s17, %s895_s18  ;;  %p901_p1 = scmp.lt.s32.totalorder %s899_s9, %s895_s18 }
  0x25   : > { %610 = vperm.xlu1 %863, %v596_v5   ;;  %p897_p12 = pnand %p896_p11, %p1030_p5  ;;  %p902_p2 = por %p901_p1, %p900_p0 }
  0x27   : > { %p898_p13 = pneg %p897_p12 }
  0x29   : > { %p903_p3 = pnand %p902_p2, %p898_p13 }
  0x2e   : > { %796 = vmatmul.msk.bf16.vlgmr.msrb.gmra.mxu0 %vm375_vm0, %v480_v18 }
  0x9b   : > { %v388_v19 = vpop.f32.mrf.mxu0 }
  0x9c   : > { %v411_v20 = vpop.f32.mrf.mxu1 }
  0x9d   : > { %v412_v23 = vadd.f32 %v411_v20, %v388_v19 }
  0xa3   : > { %v440_v21 = vpop.f32.mrf.mxu2  ;;  %v390_v22 = vpop.f32.mrf.mxu0 }
  0xa4   : > { %v445_v24 = vadd.f32 %v440_v21, %v412_v23  ;;  %v471_v25 = vpop.f32.mrf.mxu3  ;;  %v413_v26 = vpop.f32.mrf.mxu1 }
  0xa5   : > { %v414_v31 = vadd.f32 %v413_v26, %v390_v22 }
  0xa6   : > { %v476_v27 = vadd.f32 %v471_v25, %v445_v24 }
  0xab   : > { %v442_v29 = vpop.f32.mrf.mxu2  ;;  %v502_v30 = vpop.f32.mrf.mxu0 }
  0xac   : > { %v507_v32 = vadd.f32 %v502_v30, %v476_v27  ;;  %v446_v33 = vadd.f32 %v442_v29, %v414_v31  ;;  %v473_v36 = vpop.f32.mrf.mxu3 }
  0xae   : > { %v513_v34 = vadd.f32 %v865_v28, %v507_v32  ;;  %v477_v37 = vadd.f32 %v473_v36, %v446_v33 }
  0xb0   : > { %v797_v35 = vmul.f32 -1.442695, %v513_v34 }
  0xb2   : > { %867 = vpow2.f32 %v797_v35 }
  0xb3   : > { %v504_v38 = vpop.f32.mrf.mxu0 }
  0xb4   : > { %v508_v39 = vadd.f32 %v504_v38, %v477_v37 }
  0xb6   : > { %v514_v41 = vadd.f32 %v865_v28, %v508_v39 }
  0xb8   : > { %v868_v42 = vpop.eup %867  ;;  %v798_v43 = vmul.f32 -1.442695, %v514_v41 }
  0xb9   : > { %v523_v44 = vadd.f32 1.0, %v868_v42 }
  0xba   : > { %869 = vpow2.f32 %v798_v43 }
  0xbb   : > { %871 = vrcp.f32 %v523_v44  ;;  %v536_v50 = vand.u32 2147483648, %v523_v44  ;;  %v534_v52 = vand.u32 2147483647, %v523_v44  ;;  %vm530_vm2 = vweird.f32 %v523_v44 }
  0xbd   : > { %v537_v55 = vor.u32 1.1754944e-38, %v536_v50  ;;  %vm535_vm4 = vcmp.eq.f32.partialorder %v534_v52, 8.507059e+37 }
  0xc0   : > { %v870_v45 = vpop.eup %869 }
  0xc1   : > { %v872_v46 = vpop.eup %871  ;;  %v524_v47 = vadd.f32 1.0, %v870_v45 }
  0xc2   : > { %v526_v48 = vmul.f32 %v872_v46, %v523_v44  ;;  %vm531_vm1 = vweird.f32 %v872_v46 }
  0xc3   : > { %873 = vrcp.f32 %v524_v47  ;;  %vm532_vm3 = vmor %vm530_vm2, %vm531_vm1  ;;  %v551_v60 = vand.u32 2147483648, %v524_v47  ;;  %v549_v62 = vand.u32 2147483647, %v524_v47  ;;  %vm545_vm6 = vweird.f32 %v524_v47 }
  0xc4   : > { %v527_v49 = vsub.f32 1.0, %v526_v48  ;;  %875 = vtanh.f32 %v513_v34 }
  0xc5   : > { %v552_v0 = vor.u32 1.1754944e-38, %v551_v60  ;;  %vm550_vm8 = vcmp.eq.f32.partialorder %v549_v62, 8.507059e+37  ;;  %877 = vtanh.f32 %v514_v41 }
  0xc6   : > { %v528_v51 = vmul.f32 %v872_v46, %v527_v49 }
  0xc8   : > { %v529_v53 = vadd.f32 %v872_v46, %v528_v51 }
  0xc9   : > { %v874_v54 = vpop.eup %873 }
  0xca   : > { %v533_v56 = vsel %vm532_vm3, %v872_v46, %v529_v53  ;;  %v541_v57 = vmul.f32 %v874_v54, %v524_v47  ;;  %vm546_vm5 = vweird.f32 %v874_v54  ;;  %v876_v7 = vpop.eup %875 }
  0xcb   : > { %v538_v58 = vsel %vm535_vm4, %v537_v55, %v533_v56  ;;  %vm547_vm7 = vmor %vm545_vm6, %vm546_vm5  ;;  %v878_v8 = vpop.eup %877 }
  0xcc   : > { %557 = vrot.lane.b32.xlu0 %v538_v58, %s943_s10  ;;  %v542_v59 = vsub.f32 1.0, %v541_v57 }
  0xce   : > { %v543_v61 = vmul.f32 %v874_v54, %v542_v59 }
  0xd0   : > { %v544_v63 = vadd.f32 %v874_v54, %v543_v61 }
  0xd2   : > { %v548_v1 = vsel %vm547_vm7, %v874_v54, %v544_v63 }
  0xd3   : > { %v553_v2 = vsel %vm550_vm8, %v552_v0, %v548_v1 }
  0xd4   : > { %559 = vrot.lane.b32.xlu0 %v553_v2, %s943_s10  ;;  %s618_s10 = scalar_lea.sflag [#allocation3], %s327_s23 }
 0x13e   : > { %v558_v6 = vpop.permute.xlu0 %557 }
 0x13f   : > { %v563_v10 = vmul.f32 %v876_v7, %v558_v6 }
 0x146   : > { %v560_v9 = vpop.permute.xlu0 %559 }
 0x147   : > { %v564_v11 = vmul.f32 %v878_v8, %v560_v9 }
 0x149   : > { %v565_v12 = vpack.c.bf16 %v564_v11, %v563_v10 }
 0x14b   : > { %803 = vmatmul.msk.bf16.vlgmr.msrb.gmra.mxu1 %vm375_vm0, %v565_v12 }
 0x14c   : > { %906 = shalt.err (!%p903_p3)
}
 0x14d   : > { %s945_s23 = smov 128   ;;  %s946_s20 = smov 8   ;;  %v866_v13 = vld [vmem:[%s1144_s6] ss:$0 sm:$0xff]  ;;  %v606_v17 = vpop.permute.xlu1 %605 }
 0x14e   : > { %820 = dma.vmem_to_hbm [thread:$0]  (%p1030_p5), %s636_s12, 256, %s638_s26, %s618_s10, %s945_s23, %s945_s23, %s946_s20  }
 0x14f   : > { %s346_s0 = scalar_lea.vmem %s1139_s1, %s1084_s13  ;;  %s356_s18 = scalar_lea.vmem %s1146_s8, %s1084_s13 }
 0x150   : > { %v599_v15 = vld [vmem:[%s346_s0] sm:$0xff]  ;;  %v600_v21 = vld [vmem:[%s346_s0 + $0x8] sm:$0xff] }
 0x155   : > { %v611_v24 = vpop.permute.xlu1 %610 }
 0x1c8   : > { %v590_v14 = vpop.f32.mrf.mxu1 }
 0x1c9   : > { %v591_v16 = vadd.f32 %v866_v13, %v590_v14 }
 0x1cb   : > { %v601_v18 = vadd.f32 %v599_v15, %v591_v16 }
 0x1cd   : > { %v613_v19 = vmul.f32 %v606_v17, %v601_v18 }
 0x1cf   : > { %615 = vst.msk [vmem:[%s356_s18] sm:$0xff] %vm375_vm0, %v613_v19 }
 0x1d0   : > { %v592_v20 = vpop.f32.mrf.mxu1 }
 0x1d1   : > { %v593_v22 = vadd.f32 %v866_v13, %v592_v20 }
 0x1d3   : > { %v602_v23 = vadd.f32 %v600_v21, %v593_v22 }
 0x1d5   : > { %v614_v25 = vmul.f32 %v611_v24, %v602_v23 }
 0x1d7   : > { %616 = vst.msk [vmem:[%s356_s18 + $0x8] sm:$0xff] %vm375_vm0, %v614_v25 }
 0x1d8 PF: > { %p826_p4 = scmp.ge.s32.totalorder %s941_s30, 2  ;;  %s655_s15 = sand.u32 1, %s929_s27  }
 0x1d9   : > { %s656_s13 = scalar_lea.sflag [#allocation3], %s655_s15 }
 0x1da   : > { %p823_p5 = pnand %p826_p4, %p1034_p6 }
 0x1dc   : > { %p824_p7 = pneg %p823_p5 }
 0x1de   : > { %924 = dma.done.wait (%p824_p7), %s656_s13, 256  }
 0x1df   : > { %926 = vsyncadd (%p824_p7), %s656_s13, 4294967040  ;;  %p19_p8 = scmp.ge.s32.totalorder %s1017_s11, 4   ;;  %s1153_s27 = smov %s933_s28 }
 0x1e0   : > { %s1154_s28 = smov %s937_s29  ;;  %s1155_s29 = smov %s1028_s14 }
 0x1e1   : > { %s1156_s30 = smov %s1017_s11  ;;  %21 = sbr.rel (!%p19_p8) target bundleno = 6 (0x6), region = 105 }
 0x1e6   :  { %670 = vsyncpa [#allocation3], 1 }
 0x1e7   :  { %672 = vsyncpa [#allocation3 + $0x1], 1 }

// kernel: vits_forward.37
= control target key start
LH: loop header
LB: loop body
LE: loop exit
PB: predicated region body
PF: predicated region fallthrough
CT: control target
= control target key end

     0   :  { %s889_s27 = smov 0   ;;  %s971_s0 = inlined_call_operand.vmem [shape: f32[2,20,16], index: 0, kind: input, shape index: {}]   ;;  %s972_s1 = inlined_call_operand.vmem [shape: f32[2,16,16], index: 1, kind: input, shape index: {}]   ;;  %s973_s2 = inlined_call_operand.vmem [shape: f32[2,16,1], index: 2, kind: input, shape index: {}]   ;;  %s974_s3 = inlined_call_operand.vmem [shape: bf16[5,16,32], index: 3, kind: input, shape index: {}]   ;;  %s975_s4 = inlined_call_operand.vmem [shape: f32[1,32], index: 4, kind: input, shape index: {}]   ;;  %s976_s5 = inlined_call_operand.vmem [shape: bf16[16,32], index: 5, kind: input, shape index: {}]   ;;  %s977_s6 = inlined_call_operand.vmem [shape: f32[1,32], index: 6, kind: input, shape index: {}]   ;;  %s978_s7 = inlined_call_operand.vmem [shape: f32[2,16,16], index: 7, kind: output, shape index: {0}]   ;;  %s979_s8 = inlined_call_operand.vmem [shape: f32[2,16,16], index: 8, kind: output, shape index: {1}]  }
   0x1 LB: > { %s741_s28 = sadd.s32 4294967295, %s840_s27   ;;  %p745_p0 = scmp.ge.s32.totalorder %s840_s27, 1  ;;  %s840_s27 = sphi %s889_s27, %s19_s27  }
   0x2   : > { %p285_p1 = scmp.lt.s32.totalorder %s840_s27, 3 }
   0x4   : > { %p286_p2 = pnand %p745_p0, %p285_p1 }
   0x5   : > { %p334_p3 = scmp.lt.s32.totalorder (!%p286_p2), %s741_s28, 1  ;;  %s842_s25 = smov (!%p286_p2), 112  }
   0x6   : > { %289 = sbr.rel (%p286_p2) target bundleno = 549 (0x225), region = 48 }
   0xb   : > { %v802_v0 = vld [vmem:[%s974_s3 + $0x8] sm:$0xff]  ;;  %v801_v1 = vld [vmem:[%s974_s3] sm:$0xff]  ;;  %v803_v2 = vld [vmem:[%s974_s3 + $0x10] sm:$0xff]  ;;  %s981_s28 = smov (!%p334_p3, %s741_s28), 1  ;;  %vm377_vm0 = vcmask 130048  }
   0xc   : > { %v804_v3 = vld [vmem:[%s974_s3 + $0x18] sm:$0xff]  ;;  %v805_v4 = vld [vmem:[%s974_s3 + $0x20] sm:$0xff]  ;;  %388 = vmatpush.bf16.msra.mxu0 %v802_v0  ;;  %411 = vmatpush.bf16.msra.mxu1 %v801_v1  ;;  %s807_s17 = smul.u32 24, %s981_s28  ;;  %s938_s26 = sshll.u32 %s981_s28, 4 }
   0xd   : > { %440 = vmatpush.bf16.msra.mxu2 %v803_v2  ;;  %471 = vmatpush.bf16.msra.mxu3 %v804_v3  ;;  %v820_v29 = vld [vmem:[%s975_s4] ss:$0 sm:$0xff]  ;;  %s348_s9 = scalar_lea.vmem %s973_s2, %s938_s26  ;;  %s353_s13 = scalar_lea.vmem %s978_s7, %s938_s26 }
   0xe   : > { %s338_s20 = scalar_lea.vmem %s971_s0, %s807_s17  ;;  %v806_v41 = vld [vmem:[%s976_s5] sm:$0xff]  ;;  %s343_s16 = scalar_lea.vmem %s972_s1, %s938_s26 }
   0xf   : > { %v365_v5 = vld [vmem:[%s338_s20 + $0x1] sm:$0xff]  ;;  %v366_v6 = vld [vmem:[%s338_s20 + $0x9] sm:$0xff]  ;;  %s358_s19 = scalar_lea.vmem %s979_s8, %s938_s26 }
  0x10   : > { %502 = vmatpush.bf16.msrb.mxu0 %v805_v4  ;;  %v360_v7 = vld [vmem:[%s338_s20] sm:$0xff]  ;;  %v367_v8 = vpack.c.bf16 %v366_v6, %v365_v5  ;;  %v361_v9 = vld [vmem:[%s338_s20 + $0x8] sm:$0xff]  ;;  %590 = vmatpush.bf16.msrb.mxu1 %v806_v41  ;;  %v843_v5 = vmov 0  }
  0x11   : > { %v918_v10 = vld [vmem:[%s338_s20 + $0x2] sm:$0xff]  ;;  %v920_v11 = vld [vmem:[%s338_s20 + $0xa] sm:$0xff]  ;;  %v362_v12 = vpack.c.bf16 %v361_v9, %v360_v7  ;;  %818 = vset.pattern.permute.xlu1 %v843_v5  ;;  %819 = vset.pattern.permute.xlu0 %v843_v5 }
  0x12   : > { %v420_v13 = vpack.c.bf16 %v920_v11, %v918_v10  ;;  %v449_v14 = vld [vmem:[%s338_s20 + $0x3] sm:$0xff]  ;;  %v450_v15 = vld [vmem:[%s338_s20 + $0xb] sm:$0xff]  ;;  %761 = vmatmul.msk.bf16.vlgmr.msra.gmra.mxu0 %vm377_vm0, %v367_v8 }
  0x13   : > { %v451_v16 = vpack.c.bf16 %v450_v15, %v449_v14  ;;  %766 = vmatmul.msk.bf16.vlgmr.msra.gmra.mxu1 %vm377_vm0, %v362_v12  ;;  %v480_v17 = vld [vmem:[%s338_s20 + $0x4] sm:$0xff]  ;;  %v481_v18 = vld [vmem:[%s338_s20 + $0xc] sm:$0xff] }
  0x14   : > { %773 = vmatmul.msk.bf16.vlgmr.msra.gmra.mxu2 %vm377_vm0, %v420_v13  ;;  %v482_v19 = vpack.c.bf16 %v481_v18, %v480_v17  ;;  %v597_v4 = vld [vmem:[%s348_s9] sm:$0xff]  ;;  %v598_v6 = vld [vmem:[%s348_s9 + $0x8] sm:$0xff] }
  0x15   : > { %780 = vmatmul.msk.bf16.vlgmr.msra.gmra.mxu3 %vm377_vm0, %v451_v16  ;;  %603 = vperm.xlu1 %818, %v597_v4   ;;  %v821_v16 = vld [vmem:[%s977_s6] ss:$0 sm:$0xff] }
  0x1d   : > { %608 = vperm.xlu1 %818, %v598_v6  }
  0x22   : > { %787 = vmatmul.msk.bf16.vlgmr.msrb.gmra.mxu0 %vm377_vm0, %v482_v19 }
  0x87   : > { %v604_v18 = vpop.permute.xlu1 %603 }
  0x8f   : > { %v390_v20 = vpop.f32.mrf.mxu0 }
  0x90   : > { %v413_v21 = vpop.f32.mrf.mxu1 }
  0x91   : > { %v414_v24 = vadd.f32 %v413_v21, %v390_v20 }
  0x97   : > { %v442_v22 = vpop.f32.mrf.mxu2  ;;  %v392_v23 = vpop.f32.mrf.mxu0 }
  0x98   : > { %v447_v25 = vadd.f32 %v442_v22, %v414_v24  ;;  %v473_v26 = vpop.f32.mrf.mxu3  ;;  %v415_v27 = vpop.f32.mrf.mxu1 }
  0x99   : > { %v416_v32 = vadd.f32 %v415_v27, %v392_v23  ;;  %v609_v24 = vpop.permute.xlu1 %608 }
  0x9a   : > { %v478_v28 = vadd.f32 %v473_v26, %v447_v25 }
  0x9f   : > { %v444_v30 = vpop.f32.mrf.mxu2  ;;  %v504_v31 = vpop.f32.mrf.mxu0 }
  0xa0   : > { %v509_v33 = vadd.f32 %v504_v31, %v478_v28  ;;  %v448_v34 = vadd.f32 %v444_v30, %v416_v32  ;;  %v475_v37 = vpop.f32.mrf.mxu3 }
  0xa2   : > { %v515_v35 = vadd.f32 %v820_v29, %v509_v33  ;;  %v479_v38 = vadd.f32 %v475_v37, %v448_v34 }
  0xa4   : > { %v788_v36 = vmul.f32 -1.442695, %v515_v35 }
  0xa6   : > { %822 = vpow2.f32 %v788_v36 }
  0xa7   : > { %v506_v39 = vpop.f32.mrf.mxu0 }
  0xa8   : > { %v510_v40 = vadd.f32 %v506_v39, %v479_v38 }
  0xaa   : > { %v516_v42 = vadd.f32 %v820_v29, %v510_v40  ;;  %v616_v29 = vld [vmem:[%s343_s16 + $0x8] sm:$0xff] }
  0xac   : > { %v823_v43 = vpop.eup %822  ;;  %v789_v44 = vmul.f32 -1.442695, %v516_v42 }
  0xad   : > { %v525_v45 = vadd.f32 1.0, %v823_v43 }
  0xae   : > { %824 = vpow2.f32 %v789_v44 }
  0xaf   : > { %826 = vrcp.f32 %v525_v45  ;;  %v538_v51 = vand.u32 2147483648, %v525_v45  ;;  %v536_v53 = vand.u32 2147483647, %v525_v45  ;;  %vm532_vm2 = vweird.f32 %v525_v45 }
  0xb1   : > { %v539_v56 = vor.u32 1.1754944e-38, %v538_v51  ;;  %vm537_vm4 = vcmp.eq.f32.partialorder %v536_v53, 8.507059e+37 }
  0xb4   : > { %v825_v46 = vpop.eup %824 }
  0xb5   : > { %v827_v47 = vpop.eup %826  ;;  %v526_v48 = vadd.f32 1.0, %v825_v46 }
  0xb6   : > { %v528_v49 = vmul.f32 %v827_v47, %v525_v45  ;;  %vm533_vm1 = vweird.f32 %v827_v47 }
  0xb7   : > { %828 = vrcp.f32 %v526_v48  ;;  %vm534_vm3 = vmor %vm532_vm2, %vm533_vm1  ;;  %v553_v61 = vand.u32 2147483648, %v526_v48  ;;  %v551_v63 = vand.u32 2147483647, %v526_v48  ;;  %vm547_vm6 = vweird.f32 %v526_v48 }
  0xb8   : > { %v529_v50 = vsub.f32 1.0, %v528_v49  ;;  %830 = vtanh.f32 %v515_v35 }
  0xb9   : > { %v554_v1 = vor.u32 1.1754944e-38, %v553_v61  ;;  %vm552_vm8 = vcmp.eq.f32.partialorder %v551_v63, 8.507059e+37  ;;  %832 = vtanh.f32 %v516_v42 }
  0xba   : > { %v530_v52 = vmul.f32 %v827_v47, %v529_v50 }
  0xbc   : > { %v531_v54 = vadd.f32 %v827_v47, %v530_v52 }
  0xbd   : > { %v829_v55 = vpop.eup %828 }
  0xbe   : > { %v535_v57 = vsel %vm534_vm3, %v827_v47, %v531_v54  ;;  %v543_v58 = vmul.f32 %v829_v55, %v526_v48  ;;  %vm548_vm5 = vweird.f32 %v829_v55  ;;  %v831_v8 = vpop.eup %830 }
  0xbf   : > { %v540_v59 = vsel %vm537_vm4, %v539_v56, %v535_v57  ;;  %vm549_vm7 = vmor %vm547_vm6, %vm548_vm5  ;;  %v833_v9 = vpop.eup %832 }
  0xc0   : > { %559 = vrot.lane.b32.xlu0 %v540_v59, %s842_s25  ;;  %v544_v60 = vsub.f32 1.0, %v543_v58 }
  0xc2   : > { %v545_v62 = vmul.f32 %v829_v55, %v544_v60 }
  0xc4   : > { %v546_v0 = vadd.f32 %v829_v55, %v545_v62 }
  0xc6   : > { %v550_v2 = vsel %vm549_vm7, %v829_v55, %v546_v0 }
  0xc7   : > { %v555_v3 = vsel %vm552_vm8, %v554_v1, %v550_v2 }
  0xc8   : > { %561 = vrot.lane.b32.xlu0 %v555_v3, %s842_s25 }
 0x132   : > { %v560_v7 = vpop.permute.xlu0 %559 }
 0x133   : > { %v565_v13 = vmul.f32 %v831_v8, %v560_v7 }
 0x13a   : > { %v562_v12 = vpop.permute.xlu0 %561 }
 0x13b   : > { %v566_v14 = vmul.f32 %v833_v9, %v562_v12 }
 0x13d   : > { %v567_v15 = vpack.c.bf16 %v566_v14, %v565_v13 }
 0x13f   : > { %794 = vmatmul.msk.bf16.vlgmr.msrb.gmra.mxu1 %vm377_vm0, %v567_v15 }
 0x1bc   : > { %v592_v17 = vpop.f32.mrf.mxu1 }
 0x1bd   : > { %v593_v19 = vadd.f32 %v821_v16, %v592_v17 }
 0x1bf   : > { %619 = vrot.lane.b32.xlu2 %v593_v19, %s842_s25  ;;  %v599_v20 = vadd.f32 %v593_v19, %v918_v10  ;;  %v615_v10 = vld [vmem:[%s343_s16] sm:$0xff] }
 0x1c1   : > { %v611_v21 = vmul.f32 %v604_v18, %v599_v20 }
 0x1c3   : > { %613 = vst.msk [vmem:[%s353_s13] sm:$0xff] %vm377_vm0, %v611_v21 }
 0x1c4   : > { %v594_v22 = vpop.f32.mrf.mxu1 }
 0x1c5   : > { %v595_v23 = vadd.f32 %v821_v16, %v594_v22 }
 0x1c7   : > { %621 = vrot.lane.b32.xlu2 %v595_v23, %s842_s25  ;;  %v600_v25 = vadd.f32 %v595_v23, %v920_v11 }
 0x1c9   : > { %v612_v26 = vmul.f32 %v609_v24, %v600_v25 }
 0x1cb   : > { %614 = vst.msk [vmem:[%s353_s13 + $0x8] sm:$0xff] %vm377_vm0, %v612_v26 }
 0x219   : > { %v620_v27 = vpop.permute.xlu2 %619 }
 0x21a   : > { %v625_v28 = vadd.f32 %v620_v27, %v615_v10 }
 0x21c   : > { %627 = vst.msk [vmem:[%s358_s19] sm:$0xff] %vm377_vm0, %v625_v28 }
 0x221   : > { %v622_v30 = vpop.permute.xlu2 %621 }
 0x222   : > { %v626_v31 = vadd.f32 %v622_v30, %v616_v29 }
 0x224   : > { %628 = vst.msk [vmem:[%s358_s19 + $0x8] sm:$0xff] %vm377_vm0, %v626_v31 }
 0x225 PF: > { %s19_s27 = sadd.s32 1, %s840_s27  }
 0x226   : > { %p16_p4 = scmp.ge.s32.totalorder %s19_s27, 4  }
 0x228   :  { %18 = sbr.rel (!%p16_p4) target bundleno = 1 (0x1), region = 100 }

// kernel: reverse.1
= control target key start
LH: loop header
LB: loop body
LE: loop exit
PB: predicated region body
PF: predicated region fallthrough
CT: control target
= control target key end

     0   :  { %v2_v0 = vlaneseq  ;;  %s162_s0 = inlined_call_operand.vmem [shape: f32[2,16,8], index: 0, kind: input, shape index: {}]   ;;  %s163_s1 = inlined_call_operand.vmem [shape: f32[2,16,8], index: 1, kind: output, shape index: {}]  }
   0x1   :  { %v43_v2 = vld [vmem:[%s162_s0 + $0x10] sm:$0xff]  ;;  %v39_v3 = vld [vmem:[%s162_s0] sm:$0xff]  ;;  %v45_v4 = vld [vmem:[%s162_s0 + $0x18] sm:$0xff] }
   0x2   :  { %v3_v1 = vsub.s32 7, %v2_v0  ;;  %v41_v5 = vld [vmem:[%s162_s0 + $0x8] sm:$0xff] }
   0x4   :  { %4 = vset.pattern.permute.xlu0 %v3_v1  ;;  %127 = vset.pattern.permute.xlu1 %v3_v1 }
   0x5   :  { %63 = vperm.xlu1 %127, %v43_v2   ;;  %51 = vperm.xlu0 %4, %v39_v3  }
   0xd   :  { %69 = vperm.xlu1 %127, %v45_v4   ;;  %57 = vperm.xlu0 %4, %v41_v5  }
  0x77   :  { %v64_v6 = vpop.permute.xlu1 %63  ;;  %v52_v7 = vpop.permute.xlu0 %51 }
  0x78   :  { %111 = vst [vmem:[%s163_s1 + $0x10] sm:$0xff] %v64_v6 }
  0x79   :  { %107 = vst [vmem:[%s163_s1] sm:$0xff] %v52_v7 }
  0x7f   :  { %v70_v8 = vpop.permute.xlu1 %69  ;;  %v58_v9 = vpop.permute.xlu0 %57 }
  0x80   :  { %113 = vst [vmem:[%s163_s1 + $0x18] sm:$0xff] %v70_v8 }
  0x81   :  { %109 = vst [vmem:[%s163_s1 + $0x8] sm:$0xff] %v58_v9 }

// kernel: vits_forward.42
= control target key start
LH: loop header
LB: loop body
LE: loop exit
PB: predicated region body
PF: predicated region fallthrough
CT: control target
= control target key end

     0   :  { %s319_s12 = smov 0   ;;  %s342_s0 = inlined_call_operand.vmem [shape: f32[1,2,16,16], index: 0, kind: input, shape index: {}]   ;;  %s343_s1 = inlined_call_operand.vmem [shape: bf16[1,16,8], index: 1, kind: input, shape index: {}]   ;;  %s344_s2 = inlined_call_operand.vmem [shape: f32[1,8], index: 2, kind: input, shape index: {}]   ;;  %s345_s3 = inlined_call_operand.vmem [shape: f32[2,16,8], index: 3, kind: output, shape index: {}]  }
   0x1 LB: > { %s263_s13 = sadd.s32 4294967295, %s297_s12   ;;  %p267_p0 = scmp.ge.s32.totalorder %s297_s12, 1  ;;  %s297_s12 = sphi %s319_s12, %s13_s12  }
   0x2   : > { %p137_p1 = scmp.lt.s32.totalorder %s297_s12, 3 }
   0x4   : > { %p138_p2 = pnand %p267_p0, %p137_p1 }
   0x5   : > { %p161_p3 = scmp.lt.s32.totalorder (!%p138_p2), %s263_s13, 1 }
   0x6   : > { %141 = sbr.rel (%p138_p2) target bundleno = 154 (0x9a), region = 32 }
   0xb   : > { %v281_v0 = vld [vmem:[%s343_s1] sm:$0xff]  ;;  %s347_s13 = smov (!%p161_p3, %s263_s13), 1  ;;  %vm187_vm0 = vcmask 130048   ;;  %vm205_vm1 = vcmask 64512  }
   0xc   : > { %198 = vmatpush.bf16.msra.mxu0 %v281_v0  ;;  %s279_s16 = sshll.u32 %s347_s13, 4  ;;  %v290_v4 = vld [vmem:[%s344_s2] ss:$0 sm:$0xff] }
   0xd   : > { %s165_s19 = scalar_lea.vmem %s342_s0, %s279_s16  ;;  %s170_s24 = scalar_lea.vmem %s345_s3, %s279_s16 }
   0xe   : > { %v172_v1 = vld [vmem:[%s165_s19] sm:$0xff]  ;;  %v173_v2 = vld [vmem:[%s165_s19 + $0x8] sm:$0xff] }
   0xf   : > { %v174_v3 = vpack.c.bf16 %v173_v2, %v172_v1 }
  0x11   : > { %276 = vmatmul.msk.bf16.vlgmr.msra.gmra.mxu0 %vm187_vm0, %v174_v3 }
  0x8e   : > { %v200_v5 = vpop.f32.mrf.mxu0 }
  0x8f   : > { %v201_v6 = vadd.f32 %v290_v4, %v200_v5 }
  0x91   : > { %206 = vst.msk [vmem:[%s170_s24] sm:$0xff] %vm205_vm1, %v201_v6 }
  0x96   : > { %v202_v7 = vpop.f32.mrf.mxu0 }
  0x97   : > { %v203_v8 = vadd.f32 %v290_v4, %v202_v7 }
  0x99   : > { %207 = vst.msk [vmem:[%s170_s24 + $0x8] sm:$0xff] %vm205_vm1, %v203_v8 }
  0x9a PF: > { %s13_s12 = sadd.s32 1, %s297_s12  }
  0x9b   : > { %p10_p4 = scmp.ge.s32.totalorder %s13_s12, 4  }
  0x9d   :  { %12 = sbr.rel (!%p10_p4) target bundleno = 1 (0x1), region = 62 }

// kernel: vits_forward.41
= control target key start
LH: loop header
LB: loop body
LE: loop exit
PB: predicated region body
PF: predicated region fallthrough
CT: control target
= control target key end

     0   :  { %s1138_s0 = inlined_call_operand.vmem [shape: f32[2,20,16], index: 0, kind: input, shape index: {}]   ;;  %s1139_s1 = inlined_call_operand.vmem [shape: f32[2,16,16], index: 1, kind: input, shape index: {}]   ;;  %s1140_s2 = inlined_call_operand.vmem [shape: f32[2,16,1], index: 2, kind: input, shape index: {}]   ;;  %s1141_s3 = inlined_call_operand.vmem [shape: bf16[5,16,32], index: 3, kind: input, shape index: {}]   ;;  %s1142_s4 = inlined_call_operand.vmem [shape: f32[1,32], index: 4, kind: input, shape index: {}]   ;;  %s1143_s5 = inlined_call_operand.vmem [shape: bf16[16,16], index: 5, kind: input, shape index: {}]   ;;  %s1144_s6 = inlined_call_operand.vmem [shape: f32[1,16], index: 6, kind: input, shape index: {}]   ;;  %s1145_s7 = inlined_call_operand.hbm [shape: f32[2,16,16], index: 7, kind: output, shape index: {0}]   ;;  %s1146_s8 = inlined_call_operand.vmem [shape: f32[2,16,16], index: 8, kind: output, shape index: {1}]  }
   0x1   :  { %1147 = sst [smem:[#allocation5_spill]] %s1138_s0 }
   0x2   :  { %1148 = sst [smem:[#allocation6_spill]] %s1140_s2 }
   0x3   :  { %14 = vsyncpa [#allocation3], 0 }
   0x4   :  { %16 = vsyncpa [#allocation3 + $0x1], 0  ;;  %s992_s27 = smov 0   ;;  %s994_s28 = smov 0  }
   0x5   :  { %s996_s29 = smov 0   ;;  %s998_s30 = smov 0  }
   0x6 LB: > { %s1013_s9 = sadd.s32 4294967295, %s941_s30   ;;  %s752_s10 = sadd.s32 4294967294, %s941_s30   ;;  %s941_s30 = sphi %s998_s30, %s1156_s30   ;;  %s937_s29 = sphi %s996_s29, %s1155_s29   ;;  %s933_s28 = sphi %s994_s28, %s1154_s28   ;;  %s929_s27 = sphi %s992_s27, %s1153_s27  }
   0x7   : > { %s1017_s11 = sadd.s32 1, %s941_s30   ;;  %s191_s12 = sadd.s32 1, %s937_s29 }
   0x8   : > { %s188_s13 = ssub.s32 %s941_s30, %s1017_s11  ;;  %p201_p0 = scmp.ne.s32.totalorder %s937_s29, %s933_s28 }
   0x9   : > { %p189_p1 = scmp.eq.s32.totalorder %s188_s13, 0  ;;  %p202_p2 = scmp.eq.s32.totalorder %s1013_s9, 1 }
   0xa   : > { %p207_p3 = scmp.ne.s32.totalorder %s933_s28, %s929_s27  ;;  %p208_p4 = scmp.eq.s32.totalorder %s752_s10, 1 }
   0xb   : > { %s1028_s14 = scalar_select %p189_p1, %s937_s29, %s191_s12  }
   0xc   : > { %p1030_p5 = por %p202_p2, %p201_p0  ;;  %p1034_p6 = por %p208_p4, %p207_p3 }
   0xd   : > { %p755_p7 = scmp.ge.s32.totalorder %s941_s30, 1  ;;  %p288_p8 = scmp.lt.s32.totalorder %s941_s30, 3 }
   0xf   : > { %p289_p9 = pnand %p755_p7, %p288_p8 }
  0x10   : > { %p337_p10 = scmp.lt.s32.totalorder (!%p289_p9), %s1013_s9, 1  ;;  %s327_s23 = sand.u32 (!%p289_p9), 1, %s933_s28  }
  0x11   : > { %292 = sbr.rel (%p289_p9) target bundleno = 472 (0x1d8), region = 48  ;;  %s756_s13 = sshll.u32 (!%p289_p9), %s327_s23, 4 }
  0x12   : > { %s1151_s0 = sld [smem:[#allocation5_spill]] (!%p289_p9)  ;;  %s1066_s21 = scalar_lea.vmem (!%p289_p9), [#allocation2], %s756_s13 }
  0x13   : > { %s943_s10 = smov (!%p289_p9), 112   ;;  %s1152_s2 = sld [smem:[#allocation6_spill]] (!%p289_p9) }
  0x16   : > { %v813_v0 = vld [vmem:[%s1141_s3 + $0x8] sm:$0xff]  ;;  %v812_v1 = vld [vmem:[%s1141_s3] sm:$0xff]  ;;  %v814_v2 = vld [vmem:[%s1141_s3 + $0x10] sm:$0xff]  ;;  %s1058_s12 = scalar_select %p337_p10, %s1013_s9, 1  ;;  %vm375_vm0 = vcmask 130048  }
  0x17   : > { %v815_v3 = vld [vmem:[%s1141_s3 + $0x18] sm:$0xff]  ;;  %v816_v4 = vld [vmem:[%s1141_s3 + $0x20] sm:$0xff]  ;;  %386 = vmatpush.bf16.msra.mxu0 %v813_v0  ;;  %409 = vmatpush.bf16.msra.mxu1 %v812_v1 }
  0x18   : > { %438 = vmatpush.bf16.msra.mxu2 %v814_v2  ;;  %469 = vmatpush.bf16.msra.mxu3 %v815_v3  ;;  %s819_s17 = smul.u32 24, %s1058_s12  ;;  %v865_v29 = vld [vmem:[%s1142_s4] ss:$0 sm:$0xff]  ;;  %s1084_s13 = sshll.u32 %s1058_s12, 4 }
  0x19   : > { %v817_v41 = vld [vmem:[%s1143_s5] sm:$0xff]  ;;  %s351_s19 = scalar_lea.vmem %s1152_s2, %s1084_s13  ;;  %s635_s12 = sshll.u32 %s1066_s21, 4  ;;  %s636_s12 = int_to_ptr.vmem [resolvable:$true] %s635_s12 }
  0x1a   : > { %s341_s20 = scalar_lea.vmem %s1151_s0, %s819_s17 }
  0x1b   : > { %500 = vmatpush.bf16.msrb.mxu0 %v816_v4  ;;  %v363_v5 = vld [vmem:[%s341_s20 + $0x1] sm:$0xff]  ;;  %v364_v6 = vld [vmem:[%s341_s20 + $0x9] sm:$0xff]  ;;  %588 = vmatpush.bf16.msrb.mxu1 %v817_v41 }
  0x1c   : > { %v358_v7 = vld [vmem:[%s341_s20] sm:$0xff]  ;;  %v365_v8 = vpack.c.bf16 %v364_v6, %v363_v5  ;;  %v359_v9 = vld [vmem:[%s341_s20 + $0x8] sm:$0xff]  ;;  %v944_v5 = vmov 0  }
  0x1d   : > { %v416_v10 = vld [vmem:[%s341_s20 + $0x2] sm:$0xff]  ;;  %v417_v11 = vld [vmem:[%s341_s20 + $0xa] sm:$0xff]  ;;  %v360_v12 = vpack.c.bf16 %v359_v9, %v358_v7  ;;  %863 = vset.pattern.permute.xlu1 %v944_v5  ;;  %864 = vset.pattern.permute.xlu0 %v944_v5 }
  0x1e   : > { %v418_v13 = vpack.c.bf16 %v417_v11, %v416_v10  ;;  %597 = vst.msk [vmem:[%s1066_s21] sm:$0xff] %vm375_vm0, %v416_v10  ;;  %v447_v14 = vld [vmem:[%s341_s20 + $0x3] sm:$0xff]  ;;  %v448_v15 = vld [vmem:[%s341_s20 + $0xb] sm:$0xff]  ;;  %770 = vmatmul.msk.bf16.vlgmr.msra.gmra.mxu0 %vm375_vm0, %v365_v8 }
  0x1f   : > { %598 = vst.msk [vmem:[%s1066_s21 + $0x8] sm:$0xff] %vm375_vm0, %v417_v11  ;;  %v449_v16 = vpack.c.bf16 %v448_v15, %v447_v14  ;;  %775 = vmatmul.msk.bf16.vlgmr.msra.gmra.mxu1 %vm375_vm0, %v360_v12  ;;  %v478_v17 = vld [vmem:[%s341_s20 + $0x4] sm:$0xff]  ;;  %v479_v18 = vld [vmem:[%s341_s20 + $0xc] sm:$0xff]  ;;  %s818_s20 = sshll.u32 %s1013_s9, 4  ;;  %s899_s9 = scalar_lea.hbm %s1145_s7, 32 }
  0x20   : > { %782 = vmatmul.msk.bf16.vlgmr.msra.gmra.mxu2 %vm375_vm0, %v418_v13  ;;  %v480_v19 = vpack.c.bf16 %v479_v18, %v478_v17  ;;  %v595_v4 = vld [vmem:[%s351_s19] sm:$0xff]  ;;  %v596_v6 = vld [vmem:[%s351_s19 + $0x8] sm:$0xff]  ;;  %s634_s25 = scalar_lea.hbm %s1145_s7, %s818_s20 }
  0x21   : > { %789 = vmatmul.msk.bf16.vlgmr.msra.gmra.mxu3 %vm375_vm0, %v449_v16  ;;  %605 = vperm.xlu1 %863, %v595_v4   ;;  %s637_s26 = sshll.u32 %s634_s25, 4  ;;  %s638_s26 = int_to_ptr.hbm [resolvable:$true] %s637_s26 }
  0x22   : > { %s893_s17 = sshra.s32 %s638_s26, 4  ;;  %s894_s17 = int_to_ptr.hbm [resolvable:$true] %s893_s17 }
  0x23   : > { %s895_s18 = scalar_lea.hbm %s894_s17, 16  ;;  %p900_p0 = scmp.lt.s32.totalorder %s894_s17, %s1145_s7 }
  0x24   : > { %p896_p11 = scmp.ne.s32.totalorder %s894_s17, %s895_s18  ;;  %p901_p1 = scmp.lt.s32.totalorder %s899_s9, %s895_s18 }
  0x26   : > { %p897_p12 = pnand %p896_p11, %p1030_p5  ;;  %p902_p2 = por %p901_p1, %p900_p0 }
  0x28   : > { %p898_p13 = pneg %p897_p12 }
  0x29   : > { %610 = vperm.xlu1 %863, %v596_v6  }
  0x2a   : > { %p903_p3 = pnand %p902_p2, %p898_p13 }
  0x2e   : > { %796 = vmatmul.msk.bf16.vlgmr.msrb.gmra.mxu0 %vm375_vm0, %v480_v19 }
  0x9b   : > { %v388_v20 = vpop.f32.mrf.mxu0 }
  0x9c   : > { %v411_v21 = vpop.f32.mrf.mxu1 }
  0x9d   : > { %v412_v24 = vadd.f32 %v411_v21, %v388_v20 }
  0xa3   : > { %v440_v22 = vpop.f32.mrf.mxu2  ;;  %v390_v23 = vpop.f32.mrf.mxu0 }
  0xa4   : > { %v445_v25 = vadd.f32 %v440_v22, %v412_v24  ;;  %v471_v26 = vpop.f32.mrf.mxu3  ;;  %v413_v27 = vpop.f32.mrf.mxu1 }
  0xa5   : > { %v414_v32 = vadd.f32 %v413_v27, %v390_v23 }
  0xa6   : > { %v476_v28 = vadd.f32 %v471_v26, %v445_v25 }
  0xab   : > { %v442_v30 = vpop.f32.mrf.mxu2  ;;  %v502_v31 = vpop.f32.mrf.mxu0 }
  0xac   : > { %v507_v33 = vadd.f32 %v502_v31, %v476_v28  ;;  %v446_v34 = vadd.f32 %v442_v30, %v414_v32  ;;  %v473_v37 = vpop.f32.mrf.mxu3 }
  0xae   : > { %v513_v35 = vadd.f32 %v865_v29, %v507_v33  ;;  %v477_v38 = vadd.f32 %v473_v37, %v446_v34 }
  0xb0   : > { %v797_v36 = vmul.f32 -1.442695, %v513_v35 }
  0xb2   : > { %867 = vpow2.f32 %v797_v36 }
  0xb3   : > { %v504_v39 = vpop.f32.mrf.mxu0 }
  0xb4   : > { %v508_v40 = vadd.f32 %v504_v39, %v477_v38 }
  0xb6   : > { %v514_v42 = vadd.f32 %v865_v29, %v508_v40 }
  0xb8   : > { %v868_v43 = vpop.eup %867  ;;  %v798_v44 = vmul.f32 -1.442695, %v514_v42 }
  0xb9   : > { %v523_v45 = vadd.f32 1.0, %v868_v43 }
  0xba   : > { %869 = vpow2.f32 %v798_v44 }
  0xbb   : > { %871 = vrcp.f32 %v523_v45  ;;  %v536_v51 = vand.u32 2147483648, %v523_v45  ;;  %v534_v53 = vand.u32 2147483647, %v523_v45  ;;  %vm530_vm2 = vweird.f32 %v523_v45 }
  0xbd   : > { %v537_v56 = vor.u32 1.1754944e-38, %v536_v51  ;;  %vm535_vm4 = vcmp.eq.f32.partialorder %v534_v53, 8.507059e+37 }
  0xc0   : > { %v870_v46 = vpop.eup %869 }
  0xc1   : > { %v872_v47 = vpop.eup %871  ;;  %v524_v48 = vadd.f32 1.0, %v870_v46 }
  0xc2   : > { %v526_v49 = vmul.f32 %v872_v47, %v523_v45  ;;  %vm531_vm1 = vweird.f32 %v872_v47 }
  0xc3   : > { %873 = vrcp.f32 %v524_v48  ;;  %vm532_vm3 = vmor %vm530_vm2, %vm531_vm1  ;;  %v551_v61 = vand.u32 2147483648, %v524_v48  ;;  %v549_v63 = vand.u32 2147483647, %v524_v48  ;;  %vm545_vm6 = vweird.f32 %v524_v48 }
  0xc4   : > { %v527_v50 = vsub.f32 1.0, %v526_v49  ;;  %875 = vtanh.f32 %v513_v35 }
  0xc5   : > { %v552_v1 = vor.u32 1.1754944e-38, %v551_v61  ;;  %vm550_vm8 = vcmp.eq.f32.partialorder %v549_v63, 8.507059e+37  ;;  %877 = vtanh.f32 %v514_v42 }
  0xc6   : > { %v528_v52 = vmul.f32 %v872_v47, %v527_v50 }
  0xc8   : > { %v529_v54 = vadd.f32 %v872_v47, %v528_v52 }
  0xc9   : > { %v874_v55 = vpop.eup %873 }
  0xca   : > { %v533_v57 = vsel %vm532_vm3, %v872_v47, %v529_v54  ;;  %v541_v58 = vmul.f32 %v874_v55, %v524_v48  ;;  %vm546_vm5 = vweird.f32 %v874_v55  ;;  %v876_v8 = vpop.eup %875 }
  0xcb   : > { %v538_v59 = vsel %vm535_vm4, %v537_v56, %v533_v57  ;;  %vm547_vm7 = vmor %vm545_vm6, %vm546_vm5  ;;  %v878_v9 = vpop.eup %877 }
  0xcc   : > { %557 = vrot.lane.b32.xlu0 %v538_v59, %s943_s10  ;;  %v542_v60 = vsub.f32 1.0, %v541_v58 }
  0xce   : > { %v543_v62 = vmul.f32 %v874_v55, %v542_v60 }
  0xd0   : > { %v544_v0 = vadd.f32 %v874_v55, %v543_v62 }
  0xd2   : > { %v548_v2 = vsel %vm547_vm7, %v874_v55, %v544_v0 }
  0xd3   : > { %v553_v3 = vsel %vm550_vm8, %v552_v1, %v548_v2 }
  0xd4   : > { %559 = vrot.lane.b32.xlu0 %v553_v3, %s943_s10  ;;  %s618_s10 = scalar_lea.sflag [#allocation3], %s327_s23 }
 0x13e   : > { %v558_v7 = vpop.permute.xlu0 %557 }
 0x13f   : > { %v563_v11 = vmul.f32 %v876_v8, %v558_v7 }
 0x146   : > { %v560_v10 = vpop.permute.xlu0 %559 }
 0x147   : > { %v564_v12 = vmul.f32 %v878_v9, %v560_v10 }
 0x149   : > { %v565_v13 = vpack.c.bf16 %v564_v12, %v563_v11 }
 0x14b   : > { %803 = vmatmul.msk.bf16.vlgmr.msrb.gmra.mxu1 %vm375_vm0, %v565_v13 }
 0x14c   : > { %906 = shalt.err (!%p903_p3)
}
 0x14d   : > { %s945_s23 = smov 128   ;;  %s946_s20 = smov 8   ;;  %v866_v14 = vld [vmem:[%s1144_s6] ss:$0 sm:$0xff]  ;;  %v606_v18 = vpop.permute.xlu1 %605 }
 0x14e   : > { %820 = dma.vmem_to_hbm [thread:$0]  (%p1030_p5), %s636_s12, 256, %s638_s26, %s618_s10, %s945_s23, %s945_s23, %s946_s20  }
 0x14f   : > { %s346_s0 = scalar_lea.vmem %s1139_s1, %s1084_s13  ;;  %s356_s18 = scalar_lea.vmem %s1146_s8, %s1084_s13 }
 0x150   : > { %v599_v16 = vld [vmem:[%s346_s0] sm:$0xff]  ;;  %v600_v22 = vld [vmem:[%s346_s0 + $0x8] sm:$0xff] }
 0x155   : > { %v611_v25 = vpop.permute.xlu1 %610 }
 0x1c8   : > { %v590_v15 = vpop.f32.mrf.mxu1 }
 0x1c9   : > { %v591_v17 = vadd.f32 %v866_v14, %v590_v15 }
 0x1cb   : > { %v601_v19 = vadd.f32 %v599_v16, %v591_v17 }
 0x1cd   : > { %v613_v20 = vmul.f32 %v606_v18, %v601_v19 }
 0x1cf   : > { %615 = vst.msk [vmem:[%s356_s18] sm:$0xff] %vm375_vm0, %v613_v20 }
 0x1d0   : > { %v592_v21 = vpop.f32.mrf.mxu1 }
 0x1d1   : > { %v593_v23 = vadd.f32 %v866_v14, %v592_v21 }
 0x1d3   : > { %v602_v24 = vadd.f32 %v600_v22, %v593_v23 }
 0x1d5   : > { %v614_v26 = vmul.f32 %v611_v25, %v602_v24 }
 0x1d7   : > { %616 = vst.msk [vmem:[%s356_s18 + $0x8] sm:$0xff] %vm375_vm0, %v614_v26 }
 0x1d8 PF: > { %p826_p4 = scmp.ge.s32.totalorder %s941_s30, 2  ;;  %s655_s15 = sand.u32 1, %s929_s27  }
 0x1d9   : > { %s656_s13 = scalar_lea.sflag [#allocation3], %s655_s15 }
 0x1da   : > { %p823_p5 = pnand %p826_p4, %p1034_p6 }
 0x1dc   : > { %p824_p7 = pneg %p823_p5 }
 0x1de   : > { %924 = dma.done.wait (%p824_p7), %s656_s13, 256  }
 0x1df   : > { %926 = vsyncadd (%p824_p7), %s656_s13, 4294967040  ;;  %p19_p8 = scmp.ge.s32.totalorder %s1017_s11, 4   ;;  %s1153_s27 = smov %s933_s28 }
 0x1e0   : > { %s1154_s28 = smov %s937_s29  ;;  %s1155_s29 = smov %s1028_s14 }
 0x1e1   : > { %s1156_s30 = smov %s1017_s11  ;;  %21 = sbr.rel (!%p19_p8) target bundleno = 6 (0x6), region = 105 }
 0x1e6   :  { %670 = vsyncpa [#allocation3], 1 }
 0x1e7   :  { %672 = vsyncpa [#allocation3 + $0x1], 1 }

// kernel: vits_forward.49
= control target key start
LH: loop header
LB: loop body
LE: loop exit
PB: predicated region body
PF: predicated region fallthrough
CT: control target
= control target key end

     0   :  { %s1212_s12 = smov 0   ;;  %s1214_s13 = smov 0   ;;  %s1566_s0 = inlined_call_operand.vmem [shape: f32[2,2,130,1], index: 0, kind: input, shape index: {}]   ;;  %s1567_s1 = inlined_call_operand.vmem [shape: bf16[5,1,8], index: 1, kind: input, shape index: {}]   ;;  %s1568_s2 = inlined_call_operand.vmem [shape: f32[1,8], index: 2, kind: input, shape index: {}]   ;;  %s1569_s3 = inlined_call_operand.vmem [shape: f32[2,128,8], index: 3, kind: output, shape index: {}]  }
   0x1   :  { %s1216_s14 = smov 0  }
   0x2 LB: > { %s1048_s15 = sadd.s32 4294967295, %s1189_s14   ;;  %s1229_s16 = sadd.s32 1, %s1189_s14   ;;  %s1189_s14 = sphi %s1216_s14, %s1572_s14   ;;  %s1185_s13 = sphi %s1214_s13, %s1571_s13   ;;  %s1181_s12 = sphi %s1212_s12, %s1570_s12  }
   0x3   : > { %s17_s17 = ssub.s32 %s1189_s14, %s1229_s16  ;;  %s20_s18 = sadd.s32 1, %s1185_s13 }
   0x4   : > { %p18_p0 = scmp.eq.s32.totalorder %s17_s17, 0  ;;  %p27_p1 = scmp.ne.s32.totalorder %s1185_s13, %s1181_s12 }
   0x5   : > { %p28_p2 = scmp.eq.s32.totalorder %s1189_s14, 0  ;;  %p1051_p4 = scmp.ge.s32.totalorder %s1189_s14, 2 }
   0x6   : > { %s1238_s19 = scalar_select %p18_p0, %s1185_s13, %s20_s18  }
   0x7   : > { %p29_p3 = por %p28_p2, %p27_p1  ;;  %127 = sbr.rel (%p1051_p4) target bundleno = 51 (0x33), region = 24 }
   0xc   : > { %130 = sbr.rel (!%p29_p3) target bundleno = 51 (0x33), region = 28  ;;  %s132_s20 = sand.u32 (%p29_p3), 1, %s1185_s13  }
   0xd   : > { %s1139_s21 = smul.u32 (%p29_p3), 136, %s1189_s14 }
   0xe   : > { %s1138_s22 = smul.u32 (%p29_p3), 272, %s132_s20 }
   0xf   : > { %s1246_s25 = scalar_lea.vmem (%p29_p3), %s1566_s0, %s1139_s21 }
  0x10   : > { %v232_v0 = vld [vmem:[%s1246_s25] sm:$0xff] (%p29_p3)  ;;  %v234_v1 = vld [vmem:[%s1246_s25 + $0x8] sm:$0xff] (%p29_p3)  ;;  %v236_v2 = vld [vmem:[%s1246_s25 + $0x10] sm:$0xff] (%p29_p3)  ;;  %s1251_s26 = scalar_lea.vmem (%p29_p3), [#allocation2], %s1138_s22 }
  0x11   : > { %233 = vst [vmem:[%s1251_s26] sm:$0xff] %v232_v0  ;;  %v238_v3 = vld [vmem:[%s1246_s25 + $0x18] sm:$0xff]  ;;  %v240_v4 = vld [vmem:[%s1246_s25 + $0x20] sm:$0xff]  ;;  %v242_v5 = vld [vmem:[%s1246_s25 + $0x28] sm:$0xff] }
  0x12   : > { %235 = vst [vmem:[%s1251_s26 + $0x8] sm:$0xff] %v234_v1  ;;  %v244_v6 = vld [vmem:[%s1246_s25 + $0x30] sm:$0xff]  ;;  %v246_v7 = vld [vmem:[%s1246_s25 + $0x38] sm:$0xff]  ;;  %v248_v8 = vld [vmem:[%s1246_s25 + $0x40] sm:$0xff] }
  0x13   : > { %237 = vst [vmem:[%s1251_s26 + $0x10] sm:$0xff] %v236_v2  ;;  %v250_v9 = vld [vmem:[%s1246_s25 + $0x48] sm:$0xff]  ;;  %v252_v10 = vld [vmem:[%s1246_s25 + $0x50] sm:$0xff]  ;;  %v254_v11 = vld [vmem:[%s1246_s25 + $0x58] sm:$0xff] }
  0x14   : > { %239 = vst [vmem:[%s1251_s26 + $0x18] sm:$0xff] %v238_v3  ;;  %v256_v12 = vld [vmem:[%s1246_s25 + $0x60] sm:$0xff]  ;;  %v258_v13 = vld [vmem:[%s1246_s25 + $0x68] sm:$0xff]  ;;  %v260_v14 = vld [vmem:[%s1246_s25 + $0x70] sm:$0xff] }
  0x15   : > { %241 = vst [vmem:[%s1251_s26 + $0x20] sm:$0xff] %v240_v4  ;;  %v262_v15 = vld [vmem:[%s1246_s25 + $0x78] sm:$0xff]  ;;  %v264_v16 = vld [vmem:[%s1246_s25 + $0x80] sm:$0xff]  ;;  %v266_v17 = vld [vmem:[%s1246_s25 + $0x110] sm:$0xff] }
  0x16   : > { %243 = vst [vmem:[%s1251_s26 + $0x28] sm:$0xff] %v242_v5  ;;  %v268_v18 = vld [vmem:[%s1246_s25 + $0x118] sm:$0xff]  ;;  %v270_v19 = vld [vmem:[%s1246_s25 + $0x120] sm:$0xff]  ;;  %v272_v20 = vld [vmem:[%s1246_s25 + $0x128] sm:$0xff] }
  0x17   : > { %245 = vst [vmem:[%s1251_s26 + $0x30] sm:$0xff] %v244_v6  ;;  %v274_v21 = vld [vmem:[%s1246_s25 + $0x130] sm:$0xff]  ;;  %v276_v22 = vld [vmem:[%s1246_s25 + $0x138] sm:$0xff]  ;;  %v278_v23 = vld [vmem:[%s1246_s25 + $0x140] sm:$0xff] }
  0x18   : > { %247 = vst [vmem:[%s1251_s26 + $0x38] sm:$0xff] %v246_v7  ;;  %v280_v24 = vld [vmem:[%s1246_s25 + $0x148] sm:$0xff]  ;;  %v282_v25 = vld [vmem:[%s1246_s25 + $0x150] sm:$0xff]  ;;  %v284_v26 = vld [vmem:[%s1246_s25 + $0x158] sm:$0xff] }
  0x19   : > { %249 = vst [vmem:[%s1251_s26 + $0x40] sm:$0xff] %v248_v8  ;;  %v286_v27 = vld [vmem:[%s1246_s25 + $0x160] sm:$0xff]  ;;  %v288_v28 = vld [vmem:[%s1246_s25 + $0x168] sm:$0xff]  ;;  %v290_v29 = vld [vmem:[%s1246_s25 + $0x170] sm:$0xff] }
  0x1a   : > { %251 = vst [vmem:[%s1251_s26 + $0x48] sm:$0xff] %v250_v9  ;;  %v292_v30 = vld [vmem:[%s1246_s25 + $0x178] sm:$0xff]  ;;  %v294_v31 = vld [vmem:[%s1246_s25 + $0x180] sm:$0xff]  ;;  %v296_v32 = vld [vmem:[%s1246_s25 + $0x188] sm:$0xff] }
  0x1b   : > { %253 = vst [vmem:[%s1251_s26 + $0x50] sm:$0xff] %v252_v10  ;;  %v298_v33 = vld [vmem:[%s1246_s25 + $0x190] sm:$0xff] }
  0x1c   : > { %255 = vst [vmem:[%s1251_s26 + $0x58] sm:$0xff] %v254_v11 }
  0x1d   : > { %257 = vst [vmem:[%s1251_s26 + $0x60] sm:$0xff] %v256_v12 }
  0x1e   : > { %259 = vst [vmem:[%s1251_s26 + $0x68] sm:$0xff] %v258_v13 }
  0x1f   : > { %261 = vst [vmem:[%s1251_s26 + $0x70] sm:$0xff] %v260_v14 }
  0x20   : > { %263 = vst [vmem:[%s1251_s26 + $0x78] sm:$0xff] %v262_v15 }
  0x21   : > { %265 = vst [vmem:[%s1251_s26 + $0x80] sm:$0xff] %v264_v16 }
  0x22   : > { %267 = vst [vmem:[%s1251_s26 + $0x88] sm:$0xff] %v266_v17 }
  0x23   : > { %269 = vst [vmem:[%s1251_s26 + $0x90] sm:$0xff] %v268_v18 }
  0x24   : > { %271 = vst [vmem:[%s1251_s26 + $0x98] sm:$0xff] %v270_v19 }
  0x25   : > { %273 = vst [vmem:[%s1251_s26 + $0xa0] sm:$0xff] %v272_v20 }
  0x26   : > { %275 = vst [vmem:[%s1251_s26 + $0xa8] sm:$0xff] %v274_v21 }
  0x27   : > { %277 = vst [vmem:[%s1251_s26 + $0xb0] sm:$0xff] %v276_v22 }
  0x28   : > { %279 = vst [vmem:[%s1251_s26 + $0xb8] sm:$0xff] %v278_v23 }
  0x29   : > { %281 = vst [vmem:[%s1251_s26 + $0xc0] sm:$0xff] %v280_v24 }
  0x2a   : > { %283 = vst [vmem:[%s1251_s26 + $0xc8] sm:$0xff] %v282_v25 }
  0x2b   : > { %285 = vst [vmem:[%s1251_s26 + $0xd0] sm:$0xff] %v284_v26 }
  0x2c   : > { %287 = vst [vmem:[%s1251_s26 + $0xd8] sm:$0xff] %v286_v27 }
  0x2d   : > { %289 = vst [vmem:[%s1251_s26 + $0xe0] sm:$0xff] %v288_v28 }
  0x2e   : > { %291 = vst [vmem:[%s1251_s26 + $0xe8] sm:$0xff] %v290_v29 }
  0x2f   : > { %293 = vst [vmem:[%s1251_s26 + $0xf0] sm:$0xff] %v292_v30 }
  0x30   : > { %295 = vst [vmem:[%s1251_s26 + $0xf8] sm:$0xff] %v294_v31 }
  0x31   : > { %297 = vst [vmem:[%s1251_s26 + $0x100] sm:$0xff] %v296_v32 }
  0x32   : > { %299 = vst [vmem:[%s1251_s26 + $0x108] sm:$0xff] %v298_v33 }
  0x33 PF: > { %p1053_p5 = scmp.ge.s32.totalorder %s1189_s14, 1  ;;  %p304_p6 = scmp.lt.s32.totalorder %s1189_s14, 3 }
  0x35   : > { %p305_p7 = pnand %p1053_p5, %p304_p6 }
  0x36   : > { %s311_s29 = sand.u32 (!%p305_p7), 1, %s1181_s12   ;;  %p334_p8 = scmp.lt.s32.totalorder (!%p305_p7), %s1048_s15, 1 }
  0x37   : > { %308 = sbr.rel (%p305_p7) target bundleno = 363 (0x16b), region = 66 }
  0x38   : > { %s1140_s30 = smul.u32 (!%p305_p7), 272, %s311_s29 }
  0x3a   : > { %s1336_s12 = scalar_lea.vmem (!%p305_p7), [#allocation2], %s1140_s30 }
  0x3c   : > { %v1072_v34 = vld [vmem:[%s1567_s1 + $0x1] sm:$0x1]  ;;  %vm417_vm0 = vcmask 1040384   ;;  %v1191_v35 = vmov 0   ;;  %v1089_v37 = vld [vmem:[%s1567_s1 + $0x2] sm:$0x1] }
  0x3d   : > { %v419_v36 = vsel %vm417_vm0, 65535, %v1191_v35  ;;  %v1114_v38 = vld [vmem:[%s1567_s1 + $0x3] sm:$0x1]  ;;  %v364_v42 = vld [vmem:[%s1567_s1] sm:$0x1]  ;;  %v1060_v45 = vld [vmem:[%s1336_s12 + $0xa8] sm:$0xff] }
  0x3e   : > { %v421_v39 = vand.u32 %v1072_v34, %v419_v36  ;;  %v599_v40 = vand.u32 %v1089_v37, %v419_v36  ;;  %v717_v41 = vand.u32 %v1114_v38, %v419_v36  ;;  %v1123_v43 = vld [vmem:[%s1567_s1 + $0x4] sm:$0x1]  ;;  %vm392_vm1 = vcmask 7168   ;;  %v1064_v47 = vld [vmem:[%s1336_s12 + $0xc8] sm:$0xff]  ;;  %v1062_v58 = vld [vmem:[%s1336_s12 + $0xb8] sm:$0xff]  ;;  %s1574_s15 = smov (!%p334_p8, %s1048_s15), 1 }
  0x3f   : > { %v835_v44 = vand.u32 %v1123_v43, %v419_v36  ;;  %v1061_v46 = vld [vmem:[%s1336_s12 + $0xb0] sm:$0xff]  ;;  %v1068_v50 = vld [vmem:[%s1336_s12 + $0xe8] sm:$0xff]  ;;  %v497_v52 = vand.u32 %v419_v36, %v364_v42  ;;  %v1063_v59 = vld [vmem:[%s1336_s12 + $0xc0] sm:$0xff]  ;;  %s1134_s20 = sshll.u32 %s1574_s15, 7  ;;  %vm970_vm3 = vcmask 64512  }
  0x40   : > { %1135 = vmatpush.bf16.msra.mxu1 %v421_v39  ;;  %1136 = vmatpush.bf16.msra.mxu2 %v421_v39  ;;  %v384_v48 = vpack.c.bf16 %v1061_v46, %v1060_v45  ;;  %v1065_v49 = vld [vmem:[%s1336_s12 + $0xd0] sm:$0xff]  ;;  %v1056_v55 = vld [vmem:[%s1336_s12 + $0x88] sm:$0xff]  ;;  %v1066_v60 = vld [vmem:[%s1336_s12 + $0xd8] sm:$0xff]  ;;  %v385_v2 = vpack.c.bf16 %v1063_v59, %v1062_v58  ;;  %s1495_s23 = scalar_lea.vmem %s1569_s3, %s1134_s20 }
  0x41   : > { %1137 = vmatpush.bf16.msra.mxu3 %v421_v39  ;;  %430 = vmatpush.bf16.msra.mxu0 %v421_v39  ;;  %v1069_v51 = vld [vmem:[%s1336_s12 + $0xf0] sm:$0xff]  ;;  %v386_v53 = vpack.c.bf16 %v1065_v49, %v1064_v47  ;;  %v1067_v61 = vld [vmem:[%s1336_s12 + $0xe0] sm:$0xff]  ;;  %v1070_v62 = vld [vmem:[%s1336_s12 + $0xf8] sm:$0xff] }
  0x42   : > { %v388_v54 = vpack.c.bf16 %v1069_v51, %v1068_v50  ;;  %v1057_v56 = vld [vmem:[%s1336_s12 + $0x90] sm:$0xff]  ;;  %v1071_v63 = vld [vmem:[%s1336_s12 + $0x100] sm:$0xff]  ;;  %v1058_v0 = vld [vmem:[%s1336_s12 + $0x98] sm:$0xff]  ;;  %v387_v3 = vpack.c.bf16 %v1067_v61, %v1066_v60 }
  0x43   : > { %1075 = vmatmul.msk.bf16.vlgmr.msra.gmra.mxu1 %vm392_vm1, %v384_v48  ;;  %v382_v57 = vpack.c.bf16 %v1057_v56, %v1056_v55  ;;  %1077 = vmatmul.msk.bf16.vlgmr.msra.gmra.mxu2 %vm392_vm1, %v386_v53  ;;  %v1059_v1 = vld [vmem:[%s1336_s12 + $0xa0] sm:$0xff]  ;;  %v389_v4 = vpack.c.bf16 %v1071_v63, %v1070_v62  ;;  %v341_v7 = vld [vmem:[%s1336_s12 + $0x8] sm:$0xff]  ;;  %v1099_v11 = vld [vmem:[%s1336_s12 + $0x91] sm:$0xff] }
  0x44   : > { %608 = vmatpush.bf16.msrb.mxu2 %v599_v40  ;;  %1079 = vmatmul.msk.bf16.vlgmr.msra.gmra.mxu3 %vm392_vm1, %v388_v54  ;;  %v383_v5 = vpack.c.bf16 %v1059_v1, %v1058_v0  ;;  %v340_v6 = vld [vmem:[%s1336_s12] sm:$0xff]  ;;  %v549_v9 = vld [vmem:[%s1336_s12 + $0x9] sm:$0xff]  ;;  %v343_v19 = vld [vmem:[%s1336_s12 + $0x18] sm:$0xff] }
  0x45   : > { %726 = vmatpush.bf16.msrb.mxu3 %v717_v41  ;;  %844 = vmatpush.bf16.msrb.mxu0 %v835_v44  ;;  %v548_v8 = vld [vmem:[%s1336_s12 + $0x1] sm:$0xff]  ;;  %v1098_v10 = vld [vmem:[%s1336_s12 + $0x89] sm:$0xff]  ;;  %v356_v14 = vpack.c.bf16 %v341_v7, %v340_v6  ;;  %v550_v20 = vld [vmem:[%s1336_s12 + $0x11] sm:$0xff] }
  0x46   : > { %1073 = vmatmul.msk.bf16.vlgmr.msra.gmra.mxu0 %vm392_vm1, %v382_v57  ;;  %506 = vmatpush.bf16.msrb.mxu1 %v497_v52  ;;  %v784_v12 = vld [vmem:[%s1336_s12 + $0x2] sm:$0xff]  ;;  %v785_v13 = vld [vmem:[%s1336_s12 + $0xa] sm:$0xff]  ;;  %v564_v15 = vpack.c.bf16 %v549_v9, %v548_v8  ;;  %v682_v16 = vpack.c.bf16 %v1099_v11, %v1098_v10  ;;  %v551_v21 = vld [vmem:[%s1336_s12 + $0x19] sm:$0xff] }
  0x47   : > { %v800_v17 = vpack.c.bf16 %v785_v13, %v784_v12  ;;  %v342_v18 = vld [vmem:[%s1336_s12 + $0x10] sm:$0xff]  ;;  %v1100_v22 = vld [vmem:[%s1336_s12 + $0x99] sm:$0xff]  ;;  %v1101_v23 = vld [vmem:[%s1336_s12 + $0xa1] sm:$0xff]  ;;  %v565_v27 = vpack.c.bf16 %v551_v21, %v550_v20 }
  0x48   : > { %v786_v24 = vld [vmem:[%s1336_s12 + $0x12] sm:$0xff]  ;;  %v787_v25 = vld [vmem:[%s1336_s12 + $0x1a] sm:$0xff]  ;;  %v357_v26 = vpack.c.bf16 %v343_v19, %v342_v18  ;;  %v683_v28 = vpack.c.bf16 %v1101_v23, %v1100_v22  ;;  %v345_v31 = vld [vmem:[%s1336_s12 + $0x28] sm:$0xff] }
  0x49   : > { %v801_v29 = vpack.c.bf16 %v787_v25, %v786_v24  ;;  %v344_v30 = vld [vmem:[%s1336_s12 + $0x20] sm:$0xff]  ;;  %v553_v33 = vld [vmem:[%s1336_s12 + $0x29] sm:$0xff]  ;;  %v1103_v35 = vld [vmem:[%s1336_s12 + $0xb1] sm:$0xff] }
  0x4a   : > { %v552_v32 = vld [vmem:[%s1336_s12 + $0x21] sm:$0xff]  ;;  %v1102_v34 = vld [vmem:[%s1336_s12 + $0xa9] sm:$0xff]  ;;  %v358_v38 = vpack.c.bf16 %v345_v31, %v344_v30  ;;  %v347_v43 = vld [vmem:[%s1336_s12 + $0x38] sm:$0xff] }
  0x4b   : > { %v788_v36 = vld [vmem:[%s1336_s12 + $0x22] sm:$0xff]  ;;  %v789_v37 = vld [vmem:[%s1336_s12 + $0x2a] sm:$0xff]  ;;  %v566_v39 = vpack.c.bf16 %v553_v33, %v552_v32  ;;  %v684_v40 = vpack.c.bf16 %v1103_v35, %v1102_v34  ;;  %v555_v45 = vld [vmem:[%s1336_s12 + $0x39] sm:$0xff] }
  0x4c   : > { %v802_v41 = vpack.c.bf16 %v789_v37, %v788_v36  ;;  %v346_v42 = vld [vmem:[%s1336_s12 + $0x30] sm:$0xff]  ;;  %v1104_v46 = vld [vmem:[%s1336_s12 + $0xb9] sm:$0xff]  ;;  %v1105_v47 = vld [vmem:[%s1336_s12 + $0xc1] sm:$0xff] }
  0x4d   : > { %v554_v44 = vld [vmem:[%s1336_s12 + $0x31] sm:$0xff]  ;;  %v791_v49 = vld [vmem:[%s1336_s12 + $0x3a] sm:$0xff]  ;;  %v359_v50 = vpack.c.bf16 %v347_v43, %v346_v42  ;;  %v685_v52 = vpack.c.bf16 %v1105_v47, %v1104_v46  ;;  %v349_v55 = vld [vmem:[%s1336_s12 + $0x48] sm:$0xff] }
  0x4e   : > { %v790_v48 = vld [vmem:[%s1336_s12 + $0x32] sm:$0xff]  ;;  %v567_v51 = vpack.c.bf16 %v555_v45, %v554_v44  ;;  %v348_v54 = vld [vmem:[%s1336_s12 + $0x40] sm:$0xff]  ;;  %v557_v57 = vld [vmem:[%s1336_s12 + $0x49] sm:$0xff] }
  0x4f   : > { %v803_v53 = vpack.c.bf16 %v791_v49, %v790_v48  ;;  %v556_v56 = vld [vmem:[%s1336_s12 + $0x41] sm:$0xff]  ;;  %v1106_v58 = vld [vmem:[%s1336_s12 + $0xc9] sm:$0xff]  ;;  %v1107_v59 = vld [vmem:[%s1336_s12 + $0xd1] sm:$0xff]  ;;  %v360_v62 = vpack.c.bf16 %v349_v55, %v348_v54 }
  0x50   : > { %v792_v60 = vld [vmem:[%s1336_s12 + $0x42] sm:$0xff]  ;;  %v793_v61 = vld [vmem:[%s1336_s12 + $0x4a] sm:$0xff]  ;;  %v568_v63 = vpack.c.bf16 %v557_v57, %v556_v56  ;;  %v686_v0 = vpack.c.bf16 %v1107_v59, %v1106_v58  ;;  %v1108_v6 = vld [vmem:[%s1336_s12 + $0xd9] sm:$0xff] }
  0x51   : > { %v804_v1 = vpack.c.bf16 %v793_v61, %v792_v60  ;;  %v1109_v7 = vld [vmem:[%s1336_s12 + $0xe1] sm:$0xff]  ;;  %v794_v8 = vld [vmem:[%s1336_s12 + $0x52] sm:$0xff]  ;;  %v1110_v18 = vld [vmem:[%s1336_s12 + $0xe9] sm:$0xff] }
  0x52   : > { %v795_v9 = vld [vmem:[%s1336_s12 + $0x5a] sm:$0xff]  ;;  %v687_v12 = vpack.c.bf16 %v1109_v7, %v1108_v6  ;;  %v1111_v19 = vld [vmem:[%s1336_s12 + $0xf1] sm:$0xff]  ;;  %v796_v20 = vld [vmem:[%s1336_s12 + $0x62] sm:$0xff] }
  0x53   : > { %1076 = vmatmul.msk.bf16.gmra.mxu1 %vm392_vm1, %v385_v2  ;;  %1078 = vmatmul.msk.bf16.gmra.mxu2 %vm392_vm1, %v387_v3  ;;  %v350_v2 = vld [vmem:[%s1336_s12 + $0x50] sm:$0xff]  ;;  %v351_v3 = vld [vmem:[%s1336_s12 + $0x58] sm:$0xff]  ;;  %v805_v13 = vpack.c.bf16 %v795_v9, %v794_v8  ;;  %v688_v25 = vpack.c.bf16 %v1111_v19, %v1110_v18  ;;  %v1113_v37 = vld [vmem:[%s1336_s12 + $0x101] sm:$0xff] }
  0x54   : > { %1080 = vmatmul.msk.bf16.gmra.mxu3 %vm392_vm1, %v389_v4  ;;  %v558_v4 = vld [vmem:[%s1336_s12 + $0x51] sm:$0xff]  ;;  %v361_v10 = vpack.c.bf16 %v351_v3, %v350_v2  ;;  %v563_v35 = vld [vmem:[%s1336_s12 + $0x79] sm:$0xff] }
  0x55   : > { %v797_v21 = vld [vmem:[%s1336_s12 + $0x6a] sm:$0xff]  ;;  %v355_v33 = vld [vmem:[%s1336_s12 + $0x78] sm:$0xff] }
  0x56   : > { %1074 = vmatmul.msk.bf16.gmra.mxu0 %vm392_vm1, %v383_v5  ;;  %v559_v5 = vld [vmem:[%s1336_s12 + $0x59] sm:$0xff]  ;;  %v354_v32 = vld [vmem:[%s1336_s12 + $0x70] sm:$0xff] }
  0x57   : > { %v569_v11 = vpack.c.bf16 %v559_v5, %v558_v4  ;;  %v562_v34 = vld [vmem:[%s1336_s12 + $0x71] sm:$0xff]  ;;  %v1112_v36 = vld [vmem:[%s1336_s12 + $0xf9] sm:$0xff]  ;;  %v363_v42 = vpack.c.bf16 %v355_v33, %v354_v32 }
  0x58   : > { %v571_v44 = vpack.c.bf16 %v563_v35, %v562_v34  ;;  %v689_v45 = vpack.c.bf16 %v1113_v37, %v1112_v36 }
  0x63   : > { %1081 = vmatmul.msk.bf16.vlgmr.msrb.gmra.mxu1 %vm392_vm1, %v356_v14  ;;  %1090 = vmatmul.msk.bf16.vlgmr.msrb.gmra.mxu2 %vm392_vm1, %v564_v15  ;;  %v352_v14 = vld [vmem:[%s1336_s12 + $0x60] sm:$0xff]  ;;  %v353_v15 = vld [vmem:[%s1336_s12 + $0x68] sm:$0xff] }
  0x64   : > { %1115 = vmatmul.msk.bf16.vlgmr.msrb.gmra.mxu3 %vm392_vm1, %v682_v16  ;;  %v560_v16 = vld [vmem:[%s1336_s12 + $0x61] sm:$0xff]  ;;  %v362_v22 = vpack.c.bf16 %v353_v15, %v352_v14 }
  0x66   : > { %1124 = vmatmul.msk.bf16.vlgmr.msrb.gmra.mxu0 %vm392_vm1, %v800_v17  ;;  %v561_v17 = vld [vmem:[%s1336_s12 + $0x69] sm:$0xff] }
  0x67   : > { %v570_v24 = vpack.c.bf16 %v561_v17, %v560_v16 }
  0x73   : > { %1082 = vmatmul.msk.bf16.gmra.mxu1 %vm392_vm1, %v357_v26  ;;  %1091 = vmatmul.msk.bf16.gmra.mxu2 %vm392_vm1, %v565_v27  ;;  %v806_v26 = vpack.c.bf16 %v797_v21, %v796_v20 }
  0x74   : > { %1116 = vmatmul.msk.bf16.gmra.mxu3 %vm392_vm1, %v683_v28 }
  0x76   : > { %1125 = vmatmul.msk.bf16.gmra.mxu0 %vm392_vm1, %v801_v29 }
  0x83   : > { %1083 = vmatmul.msk.bf16.gmra.mxu1 %vm392_vm1, %v358_v38  ;;  %1092 = vmatmul.msk.bf16.gmra.mxu2 %vm392_vm1, %v566_v39  ;;  %v798_v38 = vld [vmem:[%s1336_s12 + $0x72] sm:$0xff]  ;;  %v799_v39 = vld [vmem:[%s1336_s12 + $0x7a] sm:$0xff] }
  0x84   : > { %1117 = vmatmul.msk.bf16.gmra.mxu3 %vm392_vm1, %v684_v40  ;;  %v807_v46 = vpack.c.bf16 %v799_v39, %v798_v38 }
  0x86   : > { %1126 = vmatmul.msk.bf16.gmra.mxu0 %vm392_vm1, %v802_v41 }
  0x93   : > { %1084 = vmatmul.msk.bf16.gmra.mxu1 %vm392_vm1, %v359_v50  ;;  %1093 = vmatmul.msk.bf16.gmra.mxu2 %vm392_vm1, %v567_v51 }
  0x94   : > { %1118 = vmatmul.msk.bf16.gmra.mxu3 %vm392_vm1, %v685_v52 }
  0x96   : > { %1127 = vmatmul.msk.bf16.gmra.mxu0 %vm392_vm1, %v803_v53 }
  0xa3   : > { %1085 = vmatmul.msk.bf16.gmra.mxu1 %vm392_vm1, %v360_v62  ;;  %1094 = vmatmul.msk.bf16.gmra.mxu2 %vm392_vm1, %v568_v63  ;;  %v1489_v62 = vld [vmem:[%s1568_s2] ss:$0 sm:$0xff] }
  0xa4   : > { %1119 = vmatmul.msk.bf16.gmra.mxu3 %vm392_vm1, %v686_v0 }
  0xa6   : > { %1128 = vmatmul.msk.bf16.gmra.mxu0 %vm392_vm1, %v804_v1 }
  0xb3   : > { %1086 = vmatmul.msk.bf16.gmra.mxu1 %vm392_vm1, %v361_v10  ;;  %1095 = vmatmul.msk.bf16.gmra.mxu2 %vm392_vm1, %v569_v11 }
  0xb4   : > { %1120 = vmatmul.msk.bf16.gmra.mxu3 %vm392_vm1, %v687_v12 }
  0xb6   : > { %1129 = vmatmul.msk.bf16.gmra.mxu0 %vm392_vm1, %v805_v13 }
  0xc0   : > { %v1442_v23 = vpop.f32.mrf.mxu1 }
  0xc3   : > { %v432_v27 = vpop.f32.mrf.mxu0  ;;  %1087 = vmatmul.msk.bf16.gmra.mxu1 %vm392_vm1, %v362_v22  ;;  %1096 = vmatmul.msk.bf16.gmra.mxu2 %vm392_vm1, %v570_v24 }
  0xc4   : > { %1121 = vmatmul.msk.bf16.gmra.mxu3 %vm392_vm1, %v688_v25 }
  0xc6   : > { %1130 = vmatmul.msk.bf16.gmra.mxu0 %vm392_vm1, %v806_v26  ;;  %v1448_v28 = vpop.f32.mrf.mxu2 }
  0xc7   : > { %v1450_v29 = vpop.f32.mrf.mxu3 }
  0xc8   : > { %v1452_v30 = vpop.f32.mrf.mxu1 }
  0xcb   : > { %v434_v31 = vpop.f32.mrf.mxu0 }
  0xce   : > { %v1462_v40 = vpop.f32.mrf.mxu2 }
  0xcf   : > { %v1464_v41 = vpop.f32.mrf.mxu3 }
  0xd0   : > { %v1466_v43 = vpop.f32.mrf.mxu1 }
  0xd3   : > { %v437_v47 = vpop.f32.mrf.mxu0  ;;  %1088 = vmatmul.msk.bf16.gmra.mxu1 %vm392_vm1, %v363_v42  ;;  %1097 = vmatmul.msk.bf16.gmra.mxu2 %vm392_vm1, %v571_v44 }
  0xd4   : > { %1122 = vmatmul.msk.bf16.gmra.mxu3 %vm392_vm1, %v689_v45 }
  0xd6   : > { %1131 = vmatmul.msk.bf16.gmra.mxu0 %vm392_vm1, %v807_v46  ;;  %v1472_v48 = vpop.f32.mrf.mxu2 }
  0xd7   : > { %v1474_v49 = vpop.f32.mrf.mxu3 }
  0xd8   : > { %v1476_v50 = vpop.f32.mrf.mxu1 }
  0xdb   : > { %v439_v51 = vpop.f32.mrf.mxu0 }
  0xde   : > { %v1478_v52 = vpop.f32.mrf.mxu2 }
  0xdf   : > { %v1480_v53 = vpop.f32.mrf.mxu3 }
  0xe0   : > { %v508_v54 = vpop.f32.mrf.mxu1 }
  0xe1   : > { %v509_v56 = vadd.f32 %v508_v54, %v432_v27 }
  0xe3   : > { %v846_v55 = vpop.f32.mrf.mxu0 }
  0xe6   : > { %v610_v57 = vpop.f32.mrf.mxu2 }
  0xe7   : > { %v728_v58 = vpop.f32.mrf.mxu3  ;;  %v650_v59 = vadd.f32 %v610_v57, %v509_v56 }
  0xe8   : > { %v510_v60 = vpop.f32.mrf.mxu1 }
  0xe9   : > { %v768_v61 = vadd.f32 %v728_v58, %v650_v59  ;;  %v511_v2 = vadd.f32 %v510_v60, %v434_v31 }
  0xeb   : > { %v848_v63 = vpop.f32.mrf.mxu0  ;;  %v886_v0 = vadd.f32 %v846_v55, %v768_v61 }
  0xed   : > { %v906_v1 = vadd.f32 %v1489_v62, %v886_v0 }
  0xee   : > { %v612_v3 = vpop.f32.mrf.mxu2 }
  0xef   : > { %v730_v4 = vpop.f32.mrf.mxu3  ;;  %vm922_vm2 = vcmp.ge.f32.partialorder %v906_v1, 0.0  ;;  %v938_v5 = vmul.f32 0.1, %v906_v1  ;;  %v651_v6 = vadd.f32 %v612_v3, %v511_v2 }
  0xf0   : > { %v513_v7 = vpop.f32.mrf.mxu1 }
  0xf1   : > { %v954_v8 = vsel %vm922_vm2, %v906_v1, %v938_v5  ;;  %v769_v9 = vadd.f32 %v730_v4, %v651_v6  ;;  %v514_v13 = vadd.f32 %v513_v7, %v437_v47 }
  0xf2   : > { %971 = vst.msk [vmem:[%s1495_s23] sm:$0xff] %vm970_vm3, %v954_v8 }
  0xf3   : > { %v851_v10 = vpop.f32.mrf.mxu0  ;;  %v887_v11 = vadd.f32 %v848_v63, %v769_v9 }
  0xf5   : > { %v907_v12 = vadd.f32 %v1489_v62, %v887_v11 }
  0xf6   : > { %v615_v14 = vpop.f32.mrf.mxu2 }
  0xf7   : > { %v733_v15 = vpop.f32.mrf.mxu3  ;;  %vm923_vm4 = vcmp.ge.f32.partialorder %v907_v12, 0.0  ;;  %v939_v16 = vmul.f32 0.1, %v907_v12  ;;  %v652_v17 = vadd.f32 %v615_v14, %v514_v13 }
  0xf8   : > { %v515_v18 = vpop.f32.mrf.mxu1 }
  0xf9   : > { %v955_v19 = vsel %vm923_vm4, %v907_v12, %v939_v16  ;;  %v770_v20 = vadd.f32 %v733_v15, %v652_v17  ;;  %v516_v25 = vadd.f32 %v515_v18, %v439_v51 }
  0xfa   : > { %972 = vst.msk [vmem:[%s1495_s23 + $0x8] sm:$0xff] %vm970_vm3, %v955_v19 }
  0xfb   : > { %v853_v21 = vpop.f32.mrf.mxu0  ;;  %v888_v22 = vadd.f32 %v851_v10, %v770_v20 }
  0xfd   : > { %v908_v24 = vadd.f32 %v1489_v62, %v888_v22 }
  0xfe   : > { %v617_v26 = vpop.f32.mrf.mxu2 }
  0xff   : > { %v735_v27 = vpop.f32.mrf.mxu3  ;;  %vm924_vm5 = vcmp.ge.f32.partialorder %v908_v24, 0.0  ;;  %v940_v31 = vmul.f32 0.1, %v908_v24  ;;  %v653_v32 = vadd.f32 %v617_v26, %v516_v25 }
 0x100   : > { %v518_v33 = vpop.f32.mrf.mxu1 }
 0x101   : > { %v956_v34 = vsel %vm924_vm5, %v908_v24, %v940_v31  ;;  %v771_v35 = vadd.f32 %v735_v27, %v653_v32  ;;  %v519_v39 = vadd.f32 %v518_v33, %v1442_v23 }
 0x102   : > { %973 = vst.msk [vmem:[%s1495_s23 + $0x10] sm:$0xff] %vm970_vm3, %v956_v34 }
 0x103   : > { %v856_v36 = vpop.f32.mrf.mxu0  ;;  %v889_v37 = vadd.f32 %v853_v21, %v771_v35 }
 0x105   : > { %v909_v38 = vadd.f32 %v1489_v62, %v889_v37 }
 0x106   : > { %v620_v42 = vpop.f32.mrf.mxu2 }
 0x107   : > { %v738_v44 = vpop.f32.mrf.mxu3  ;;  %vm925_vm6 = vcmp.ge.f32.partialorder %v909_v38, 0.0  ;;  %v941_v45 = vmul.f32 0.1, %v909_v38  ;;  %v654_v46 = vadd.f32 %v620_v42, %v519_v39 }
 0x108   : > { %v520_v47 = vpop.f32.mrf.mxu1 }
 0x109   : > { %v957_v51 = vsel %vm925_vm6, %v909_v38, %v941_v45  ;;  %v772_v54 = vadd.f32 %v738_v44, %v654_v46  ;;  %v521_v58 = vadd.f32 %v520_v47, %v1452_v30 }
 0x10a   : > { %974 = vst.msk [vmem:[%s1495_s23 + $0x18] sm:$0xff] %vm970_vm3, %v957_v51 }
 0x10b   : > { %v858_v55 = vpop.f32.mrf.mxu0  ;;  %v890_v56 = vadd.f32 %v856_v36, %v772_v54 }
 0x10d   : > { %v910_v57 = vadd.f32 %v1489_v62, %v890_v56 }
 0x10e   : > { %v622_v59 = vpop.f32.mrf.mxu2 }
 0x10f   : > { %v740_v60 = vpop.f32.mrf.mxu3  ;;  %vm926_vm7 = vcmp.ge.f32.partialorder %v910_v57, 0.0  ;;  %v942_v23 = vmul.f32 0.1, %v910_v57  ;;  %v655_v61 = vadd.f32 %v622_v59, %v521_v58 }
 0x110   : > { %v523_v63 = vpop.f32.mrf.mxu1 }
 0x111   : > { %v958_v0 = vsel %vm926_vm7, %v910_v57, %v942_v23  ;;  %v773_v1 = vadd.f32 %v740_v60, %v655_v61  ;;  %v524_v5 = vadd.f32 %v523_v63, %v1466_v43 }
 0x112   : > { %975 = vst.msk [vmem:[%s1495_s23 + $0x20] sm:$0xff] %vm970_vm3, %v958_v0 }
 0x113   : > { %v861_v2 = vpop.f32.mrf.mxu0  ;;  %v891_v3 = vadd.f32 %v858_v55, %v773_v1 }
 0x115   : > { %v911_v4 = vadd.f32 %v1489_v62, %v891_v3 }
 0x116   : > { %v625_v6 = vpop.f32.mrf.mxu2 }
 0x117   : > { %v743_v7 = vpop.f32.mrf.mxu3  ;;  %vm927_vm8 = vcmp.ge.f32.partialorder %v911_v4, 0.0  ;;  %v943_v30 = vmul.f32 0.1, %v911_v4  ;;  %v656_v8 = vadd.f32 %v625_v6, %v524_v5 }
 0x118   : > { %v525_v9 = vpop.f32.mrf.mxu1 }
 0x119   : > { %v959_v10 = vsel %vm927_vm8, %v911_v4, %v943_v30  ;;  %v774_v11 = vadd.f32 %v743_v7, %v656_v8  ;;  %v526_v15 = vadd.f32 %v525_v9, %v1476_v50 }
 0x11a   : > { %976 = vst.msk [vmem:[%s1495_s23 + $0x28] sm:$0xff] %vm970_vm3, %v959_v10 }
 0x11b   : > { %v863_v12 = vpop.f32.mrf.mxu0  ;;  %v892_v13 = vadd.f32 %v861_v2, %v774_v11 }
 0x11d   : > { %v912_v14 = vadd.f32 %v1489_v62, %v892_v13 }
 0x11e   : > { %v627_v16 = vpop.f32.mrf.mxu2 }
 0x11f   : > { %v745_v17 = vpop.f32.mrf.mxu3  ;;  %vm928_vm9 = vcmp.ge.f32.partialorder %v912_v14, 0.0  ;;  %v944_v43 = vmul.f32 0.1, %v912_v14  ;;  %v657_v18 = vadd.f32 %v627_v16, %v526_v15 }
 0x120   : > { %v528_v19 = vpop.f32.mrf.mxu1 }
 0x121   : > { %v960_v20 = vsel %vm928_vm9, %v912_v14, %v944_v43  ;;  %v775_v21 = vadd.f32 %v745_v17, %v657_v18  ;;  %v529_v26 = vadd.f32 %v528_v19, %v1448_v28 }
 0x122   : > { %977 = vst.msk [vmem:[%s1495_s23 + $0x30] sm:$0xff] %vm970_vm3, %v960_v20 }
 0x123   : > { %v866_v22 = vpop.f32.mrf.mxu0  ;;  %v893_v24 = vadd.f32 %v863_v12, %v775_v21 }
 0x125   : > { %v913_v25 = vadd.f32 %v1489_v62, %v893_v24 }
 0x126   : > { %v630_v27 = vpop.f32.mrf.mxu2 }
 0x127   : > { %v748_v31 = vpop.f32.mrf.mxu3  ;;  %vm929_vm10 = vcmp.ge.f32.partialorder %v913_v25, 0.0  ;;  %v945_v50 = vmul.f32 0.1, %v913_v25  ;;  %v658_v32 = vadd.f32 %v630_v27, %v529_v26 }
 0x128   : > { %v530_v33 = vpop.f32.mrf.mxu1 }
 0x129   : > { %v961_v34 = vsel %vm929_vm10, %v913_v25, %v945_v50  ;;  %v776_v35 = vadd.f32 %v748_v31, %v658_v32  ;;  %v531_v39 = vadd.f32 %v530_v33, %v1462_v40 }
 0x12a   : > { %978 = vst.msk [vmem:[%s1495_s23 + $0x38] sm:$0xff] %vm970_vm3, %v961_v34 }
 0x12b   : > { %v868_v36 = vpop.f32.mrf.mxu0  ;;  %v894_v37 = vadd.f32 %v866_v22, %v776_v35 }
 0x12d   : > { %v914_v38 = vadd.f32 %v1489_v62, %v894_v37 }
 0x12e   : > { %v632_v42 = vpop.f32.mrf.mxu2 }
 0x12f   : > { %v750_v44 = vpop.f32.mrf.mxu3  ;;  %vm930_vm11 = vcmp.ge.f32.partialorder %v914_v38, 0.0  ;;  %v946_v28 = vmul.f32 0.1, %v914_v38  ;;  %v659_v45 = vadd.f32 %v632_v42, %v531_v39 }
 0x130   : > { %v533_v46 = vpop.f32.mrf.mxu1 }
 0x131   : > { %v962_v47 = vsel %vm930_vm11, %v914_v38, %v946_v28  ;;  %v777_v51 = vadd.f32 %v750_v44, %v659_v45  ;;  %v534_v57 = vadd.f32 %v533_v46, %v1472_v48 }
 0x132   : > { %979 = vst.msk [vmem:[%s1495_s23 + $0x40] sm:$0xff] %vm970_vm3, %v962_v47 }
 0x133   : > { %v871_v54 = vpop.f32.mrf.mxu0  ;;  %v895_v55 = vadd.f32 %v868_v36, %v777_v51 }
 0x135   : > { %v915_v56 = vadd.f32 %v1489_v62, %v895_v55 }
 0x136   : > { %v635_v58 = vpop.f32.mrf.mxu2 }
 0x137   : > { %v753_v59 = vpop.f32.mrf.mxu3  ;;  %vm931_vm12 = vcmp.ge.f32.partialorder %v915_v56, 0.0  ;;  %v947_v40 = vmul.f32 0.1, %v915_v56  ;;  %v660_v60 = vadd.f32 %v635_v58, %v534_v57 }
 0x138   : > { %v535_v23 = vpop.f32.mrf.mxu1 }
 0x139   : > { %v963_v61 = vsel %vm931_vm12, %v915_v56, %v947_v40  ;;  %v778_v63 = vadd.f32 %v753_v59, %v660_v60  ;;  %v536_v3 = vadd.f32 %v535_v23, %v1478_v52 }
 0x13a   : > { %980 = vst.msk [vmem:[%s1495_s23 + $0x48] sm:$0xff] %vm970_vm3, %v963_v61 }
 0x13b   : > { %v873_v0 = vpop.f32.mrf.mxu0  ;;  %v896_v1 = vadd.f32 %v871_v54, %v778_v63 }
 0x13d   : > { %v916_v2 = vadd.f32 %v1489_v62, %v896_v1 }
 0x13e   : > { %v637_v4 = vpop.f32.mrf.mxu2 }
 0x13f   : > { %v755_v5 = vpop.f32.mrf.mxu3  ;;  %vm932_vm13 = vcmp.ge.f32.partialorder %v916_v2, 0.0  ;;  %v948_v48 = vmul.f32 0.1, %v916_v2  ;;  %v661_v6 = vadd.f32 %v637_v4, %v536_v3 }
 0x140   : > { %v538_v7 = vpop.f32.mrf.mxu1 }
 0x141   : > { %v964_v30 = vsel %vm932_vm13, %v916_v2, %v948_v48  ;;  %v779_v8 = vadd.f32 %v755_v5, %v661_v6  ;;  %v539_v12 = vadd.f32 %v538_v7, %v1450_v29 }
 0x142   : > { %981 = vst.msk [vmem:[%s1495_s23 + $0x50] sm:$0xff] %vm970_vm3, %v964_v30 }
 0x143   : > { %v897_v9 = vadd.f32 %v873_v0, %v779_v8  ;;  %v876_v10 = vpop.f32.mrf.mxu0 }
 0x145   : > { %v917_v11 = vadd.f32 %v1489_v62, %v897_v9 }
 0x146   : > { %v640_v13 = vpop.f32.mrf.mxu2 }
 0x147   : > { %v758_v14 = vpop.f32.mrf.mxu3  ;;  %vm933_vm14 = vcmp.ge.f32.partialorder %v917_v11, 0.0  ;;  %v949_v52 = vmul.f32 0.1, %v917_v11  ;;  %v662_v15 = vadd.f32 %v640_v13, %v539_v12 }
 0x148   : > { %v540_v16 = vpop.f32.mrf.mxu1 }
 0x149   : > { %v965_v17 = vsel %vm933_vm14, %v917_v11, %v949_v52  ;;  %v780_v43 = vadd.f32 %v758_v14, %v662_v15  ;;  %v541_v20 = vadd.f32 %v540_v16, %v1464_v41 }
 0x14a   : > { %982 = vst.msk [vmem:[%s1495_s23 + $0x58] sm:$0xff] %vm970_vm3, %v965_v17 }
 0x14b   : > { %v898_v18 = vadd.f32 %v876_v10, %v780_v43  ;;  %v878_v21 = vpop.f32.mrf.mxu0 }
 0x14d   : > { %v918_v19 = vadd.f32 %v1489_v62, %v898_v18 }
 0x14e   : > { %v642_v22 = vpop.f32.mrf.mxu2 }
 0x14f   : > { %v760_v24 = vpop.f32.mrf.mxu3  ;;  %vm934_vm15 = vcmp.ge.f32.partialorder %v918_v19, 0.0  ;;  %v950_v29 = vmul.f32 0.1, %v918_v19  ;;  %v663_v25 = vadd.f32 %v642_v22, %v541_v20 }
 0x150   : > { %v543_v26 = vpop.f32.mrf.mxu1 }
 0x151   : > { %v966_v27 = vsel %vm934_vm15, %v918_v19, %v950_v29  ;;  %v781_v31 = vadd.f32 %v760_v24, %v663_v25  ;;  %v544_v33 = vadd.f32 %v543_v26, %v1474_v49 }
 0x152   : > { %983 = vst.msk [vmem:[%s1495_s23 + $0x60] sm:$0xff] %vm970_vm3, %v966_v27 }
 0x153   : > { %v899_v50 = vadd.f32 %v878_v21, %v781_v31  ;;  %v881_v37 = vpop.f32.mrf.mxu0 }
 0x155   : > { %v919_v32 = vadd.f32 %v1489_v62, %v899_v50 }
 0x156   : > { %v645_v34 = vpop.f32.mrf.mxu2 }
 0x157   : > { %v763_v35 = vpop.f32.mrf.mxu3  ;;  %vm935_vm0 = vcmp.ge.f32.partialorder %v919_v32, 0.0  ;;  %v951_v41 = vmul.f32 0.1, %v919_v32  ;;  %v664_v36 = vadd.f32 %v645_v34, %v544_v33 }
 0x158   : > { %v545_v42 = vpop.f32.mrf.mxu1 }
 0x159   : > { %v967_v38 = vsel %vm935_vm0, %v919_v32, %v951_v41  ;;  %v782_v39 = vadd.f32 %v763_v35, %v664_v36  ;;  %v546_v45 = vadd.f32 %v545_v42, %v1480_v53 }
 0x15a   : > { %984 = vst.msk [vmem:[%s1495_s23 + $0x68] sm:$0xff] %vm970_vm3, %v967_v38 }
 0x15b   : > { %v900_v44 = vadd.f32 %v881_v37, %v782_v39  ;;  %v883_v56 = vpop.f32.mrf.mxu0 }
 0x15d   : > { %v920_v28 = vadd.f32 %v1489_v62, %v900_v44 }
 0x15e   : > { %v647_v46 = vpop.f32.mrf.mxu2 }
 0x15f   : > { %vm936_vm1 = vcmp.ge.f32.partialorder %v920_v28, 0.0  ;;  %v952_v49 = vmul.f32 0.1, %v920_v28  ;;  %v665_v47 = vadd.f32 %v647_v46, %v546_v45  ;;  %v765_v51 = vpop.f32.mrf.mxu3 }
 0x161   : > { %v968_v54 = vsel %vm936_vm1, %v920_v28, %v952_v49  ;;  %v783_v55 = vadd.f32 %v765_v51, %v665_v47 }
 0x162   : > { %985 = vst.msk [vmem:[%s1495_s23 + $0x70] sm:$0xff] %vm970_vm3, %v968_v54 }
 0x163   : > { %v901_v57 = vadd.f32 %v883_v56, %v783_v55 }
 0x165   : > { %v921_v58 = vadd.f32 %v1489_v62, %v901_v57 }
 0x167   : > { %vm937_vm2 = vcmp.ge.f32.partialorder %v921_v58, 0.0  ;;  %v953_v59 = vmul.f32 0.1, %v921_v58 }
 0x169   : > { %v969_v40 = vsel %vm937_vm2, %v921_v58, %v953_v59 }
 0x16a   : > { %986 = vst.msk [vmem:[%s1495_s23 + $0x78] sm:$0xff] %vm970_vm3, %v969_v40 }
 0x16b PF: > { %p10_p9 = scmp.ge.s32.totalorder %s1229_s16, 4   ;;  %s1570_s12 = smov %s1185_s13 }
 0x16c   : > { %s1571_s13 = smov %s1238_s19  ;;  %s1572_s14 = smov %s1229_s16 }
 0x16d   :  { %12 = sbr.rel (!%p10_p9) target bundleno = 2 (0x2), region = 110 }

// kernel: vits_forward.50
= control target key start
LH: loop header
LB: loop body
LE: loop exit
PB: predicated region body
PF: predicated region fallthrough
CT: control target
= control target key end

     0   :  { %s824_s12 = smov 0   ;;  %s826_s13 = smov 0   ;;  %s1035_s0 = inlined_call_operand.vmem [shape: f32[2,2,66,8], index: 0, kind: input, shape index: {}]   ;;  %s1036_s1 = inlined_call_operand.vmem [shape: bf16[5,8,16], index: 1, kind: input, shape index: {}]   ;;  %s1037_s2 = inlined_call_operand.vmem [shape: f32[1,16], index: 2, kind: input, shape index: {}]   ;;  %s1038_s3 = inlined_call_operand.vmem [shape: f32[2,64,16], index: 3, kind: output, shape index: {}]  }
   0x1   :  { %s828_s14 = smov 0  }
   0x2 LB: > { %s698_s15 = sadd.s32 4294967295, %s802_s14   ;;  %s841_s16 = sadd.s32 1, %s802_s14   ;;  %s802_s14 = sphi %s828_s14, %s1041_s14   ;;  %s798_s13 = sphi %s826_s13, %s1040_s13   ;;  %s794_s12 = sphi %s824_s12, %s1039_s12  }
   0x3   : > { %s17_s17 = ssub.s32 %s802_s14, %s841_s16  ;;  %s20_s18 = sadd.s32 1, %s798_s13 }
   0x4   : > { %p18_p0 = scmp.eq.s32.totalorder %s17_s17, 0  ;;  %p27_p1 = scmp.ne.s32.totalorder %s798_s13, %s794_s12 }
   0x5   : > { %p28_p2 = scmp.eq.s32.totalorder %s802_s14, 0  ;;  %p701_p4 = scmp.ge.s32.totalorder %s802_s14, 2 }
   0x6   : > { %s850_s19 = scalar_select %p18_p0, %s798_s13, %s20_s18  }
   0x7   : > { %p29_p3 = por %p28_p2, %p27_p1  ;;  %127 = sbr.rel (%p701_p4) target bundleno = 35 (0x23), region = 24 }
   0xc   : > { %130 = sbr.rel (!%p29_p3) target bundleno = 35 (0x23), region = 28  ;;  %s132_s20 = sand.u32 (%p29_p3), 1, %s798_s13  }
   0xd   : > { %s753_s21 = smul.u32 (%p29_p3), 72, %s802_s14 }
   0xe   : > { %s752_s22 = smul.u32 (%p29_p3), 144, %s132_s20 }
   0xf   : > { %s858_s25 = scalar_lea.vmem (%p29_p3), %s1035_s0, %s753_s21 }
  0x10   : > { %v200_v0 = vld [vmem:[%s858_s25] sm:$0xff] (%p29_p3)  ;;  %v202_v1 = vld [vmem:[%s858_s25 + $0x8] sm:$0xff] (%p29_p3)  ;;  %v204_v2 = vld [vmem:[%s858_s25 + $0x10] sm:$0xff] (%p29_p3)  ;;  %s863_s26 = scalar_lea.vmem (%p29_p3), [#allocation2], %s752_s22 }
  0x11   : > { %201 = vst [vmem:[%s863_s26] sm:$0xff] %v200_v0  ;;  %v206_v3 = vld [vmem:[%s858_s25 + $0x18] sm:$0xff]  ;;  %v208_v4 = vld [vmem:[%s858_s25 + $0x20] sm:$0xff]  ;;  %v210_v5 = vld [vmem:[%s858_s25 + $0x28] sm:$0xff] }
  0x12   : > { %203 = vst [vmem:[%s863_s26 + $0x8] sm:$0xff] %v202_v1  ;;  %v212_v6 = vld [vmem:[%s858_s25 + $0x30] sm:$0xff]  ;;  %v214_v7 = vld [vmem:[%s858_s25 + $0x38] sm:$0xff]  ;;  %v216_v8 = vld [vmem:[%s858_s25 + $0x40] sm:$0xff] }
  0x13   : > { %205 = vst [vmem:[%s863_s26 + $0x10] sm:$0xff] %v204_v2  ;;  %v218_v9 = vld [vmem:[%s858_s25 + $0x90] sm:$0xff]  ;;  %v220_v10 = vld [vmem:[%s858_s25 + $0x98] sm:$0xff]  ;;  %v222_v11 = vld [vmem:[%s858_s25 + $0xa0] sm:$0xff] }
  0x14   : > { %207 = vst [vmem:[%s863_s26 + $0x18] sm:$0xff] %v206_v3  ;;  %v224_v12 = vld [vmem:[%s858_s25 + $0xa8] sm:$0xff]  ;;  %v226_v13 = vld [vmem:[%s858_s25 + $0xb0] sm:$0xff]  ;;  %v228_v14 = vld [vmem:[%s858_s25 + $0xb8] sm:$0xff] }
  0x15   : > { %209 = vst [vmem:[%s863_s26 + $0x20] sm:$0xff] %v208_v4  ;;  %v230_v15 = vld [vmem:[%s858_s25 + $0xc0] sm:$0xff]  ;;  %v232_v16 = vld [vmem:[%s858_s25 + $0xc8] sm:$0xff]  ;;  %v234_v17 = vld [vmem:[%s858_s25 + $0xd0] sm:$0xff] }
  0x16   : > { %211 = vst [vmem:[%s863_s26 + $0x28] sm:$0xff] %v210_v5 }
  0x17   : > { %213 = vst [vmem:[%s863_s26 + $0x30] sm:$0xff] %v212_v6 }
  0x18   : > { %215 = vst [vmem:[%s863_s26 + $0x38] sm:$0xff] %v214_v7 }
  0x19   : > { %217 = vst [vmem:[%s863_s26 + $0x40] sm:$0xff] %v216_v8 }
  0x1a   : > { %219 = vst [vmem:[%s863_s26 + $0x48] sm:$0xff] %v218_v9 }
  0x1b   : > { %221 = vst [vmem:[%s863_s26 + $0x50] sm:$0xff] %v220_v10 }
  0x1c   : > { %223 = vst [vmem:[%s863_s26 + $0x58] sm:$0xff] %v222_v11 }
  0x1d   : > { %225 = vst [vmem:[%s863_s26 + $0x60] sm:$0xff] %v224_v12 }
  0x1e   : > { %227 = vst [vmem:[%s863_s26 + $0x68] sm:$0xff] %v226_v13 }
  0x1f   : > { %229 = vst [vmem:[%s863_s26 + $0x70] sm:$0xff] %v228_v14 }
  0x20   : > { %231 = vst [vmem:[%s863_s26 + $0x78] sm:$0xff] %v230_v15 }
  0x21   : > { %233 = vst [vmem:[%s863_s26 + $0x80] sm:$0xff] %v232_v16 }
  0x22   : > { %235 = vst [vmem:[%s863_s26 + $0x88] sm:$0xff] %v234_v17 }
  0x23 PF: > { %p703_p5 = scmp.ge.s32.totalorder %s802_s14, 1  ;;  %p240_p6 = scmp.lt.s32.totalorder %s802_s14, 3 }
  0x25   : > { %p241_p7 = pnand %p703_p5, %p240_p6 }
  0x26   : > { %s247_s29 = sand.u32 (!%p241_p7), 1, %s794_s12   ;;  %p270_p8 = scmp.lt.s32.totalorder (!%p241_p7), %s698_s15, 1 }
  0x27   : > { %244 = sbr.rel (%p241_p7) target bundleno = 268 (0x10c), region = 66 }
  0x28   : > { %s754_s30 = smul.u32 (!%p241_p7), 144, %s247_s29 }
  0x2a   : > { %s916_s12 = scalar_lea.vmem (!%p241_p7), [#allocation2], %s754_s30 }
  0x2c   : > { %v714_v18 = vld [vmem:[%s1036_s1 + $0x4] sm:$0xf]  ;;  %vm317_vm0 = vcmask 1043456   ;;  %v723_v20 = vld [vmem:[%s1036_s1 + $0x8] sm:$0xf]  ;;  %vm304_vm1 = vcmask 64512  }
  0x2d   : > { %v319_v19 = vsel %vm317_vm0, %v714_v18, 0  ;;  %v736_v21 = vld [vmem:[%s1036_s1 + $0xc] sm:$0xf]  ;;  %v421_v22 = vsel %vm317_vm0, %v723_v20, 0  ;;  %v288_v24 = vld [vmem:[%s1036_s1] sm:$0xf] }
  0x2e   : > { %749 = vmatpush.bf16.msra.mxu1 %v319_v19  ;;  %750 = vmatpush.bf16.msra.mxu2 %v319_v19  ;;  %v487_v23 = vsel %vm317_vm0, %v736_v21, 0  ;;  %v741_v25 = vld [vmem:[%s1036_s1 + $0x10] sm:$0xf]  ;;  %v363_v26 = vsel %vm317_vm0, %v288_v24, 0  ;;  %v708_v28 = vld [vmem:[%s916_s12 + $0x58] sm:$0xff]  ;;  %v710_v30 = vld [vmem:[%s916_s12 + $0x68] sm:$0xff] }
  0x2f   : > { %751 = vmatpush.bf16.msra.mxu3 %v319_v19  ;;  %328 = vmatpush.bf16.msra.mxu0 %v319_v19  ;;  %v553_v27 = vsel %vm317_vm0, %v741_v25, 0  ;;  %v709_v29 = vld [vmem:[%s916_s12 + $0x60] sm:$0xff]  ;;  %v711_v32 = vld [vmem:[%s916_s12 + $0x70] sm:$0xff]  ;;  %v712_v33 = vld [vmem:[%s916_s12 + $0x78] sm:$0xff]  ;;  %s1043_s15 = smov (!%p270_p8, %s698_s15), 1  ;;  %vm628_vm3 = vcmask 130048  }
  0x30   : > { %v299_v31 = vpack.c.bf16 %v709_v29, %v708_v28  ;;  %v713_v34 = vld [vmem:[%s916_s12 + $0x80] sm:$0xff]  ;;  %v300_v35 = vpack.c.bf16 %v711_v32, %v710_v30  ;;  %v706_v37 = vld [vmem:[%s916_s12 + $0x48] sm:$0xff]  ;;  %v707_v38 = vld [vmem:[%s916_s12 + $0x50] sm:$0xff]  ;;  %s748_s20 = sshll.u32 %s1043_s15, 6 }
  0x31   : > { %v301_v36 = vpack.c.bf16 %v713_v34, %v712_v33  ;;  %v298_v39 = vpack.c.bf16 %v707_v38, %v706_v37  ;;  %v276_v40 = vld [vmem:[%s916_s12] sm:$0xff]  ;;  %v277_v41 = vld [vmem:[%s916_s12 + $0x8] sm:$0xff]  ;;  %v729_v45 = vld [vmem:[%s916_s12 + $0x51] sm:$0xff]  ;;  %s997_s23 = scalar_lea.vmem %s1038_s3, %s748_s20 }
  0x32   : > { %430 = vmatpush.bf16.msrb.mxu2 %v421_v22  ;;  %372 = vmatpush.bf16.msrb.mxu1 %v363_v26  ;;  %v394_v42 = vld [vmem:[%s916_s12 + $0x1] sm:$0xff]  ;;  %v395_v43 = vld [vmem:[%s916_s12 + $0x9] sm:$0xff]  ;;  %v284_v48 = vpack.c.bf16 %v277_v41, %v276_v40  ;;  %v279_v53 = vld [vmem:[%s916_s12 + $0x18] sm:$0xff] }
  0x33   : > { %496 = vmatpush.bf16.msrb.mxu3 %v487_v23  ;;  %562 = vmatpush.bf16.msrb.mxu0 %v553_v27  ;;  %v728_v44 = vld [vmem:[%s916_s12 + $0x49] sm:$0xff]  ;;  %v402_v49 = vpack.c.bf16 %v395_v43, %v394_v42  ;;  %v396_v54 = vld [vmem:[%s916_s12 + $0x11] sm:$0xff]  ;;  %v397_v55 = vld [vmem:[%s916_s12 + $0x19] sm:$0xff] }
  0x34   : > { %716 = vmatmul.msk.bf16.vlgmr.msra.gmra.mxu1 %vm304_vm1, %v299_v31  ;;  %717 = vmatmul.msk.bf16.vlgmr.msra.gmra.mxu2 %vm304_vm1, %v300_v35  ;;  %v526_v46 = vld [vmem:[%s916_s12 + $0x2] sm:$0xff]  ;;  %v527_v47 = vld [vmem:[%s916_s12 + $0xa] sm:$0xff]  ;;  %v468_v50 = vpack.c.bf16 %v729_v45, %v728_v44  ;;  %v730_v56 = vld [vmem:[%s916_s12 + $0x59] sm:$0xff]  ;;  %v403_v61 = vpack.c.bf16 %v397_v55, %v396_v54 }
  0x35   : > { %718 = vmatmul.msk.bf16.vlgmr.msra.gmra.mxu3 %vm304_vm1, %v301_v36  ;;  %715 = vmatmul.msk.bf16.vlgmr.msra.gmra.mxu0 %vm304_vm1, %v298_v39  ;;  %v534_v51 = vpack.c.bf16 %v527_v47, %v526_v46  ;;  %v278_v52 = vld [vmem:[%s916_s12 + $0x10] sm:$0xff]  ;;  %v731_v57 = vld [vmem:[%s916_s12 + $0x61] sm:$0xff]  ;;  %v283_v13 = vld [vmem:[%s916_s12 + $0x38] sm:$0xff] }
  0x36   : > { %v528_v58 = vld [vmem:[%s916_s12 + $0x12] sm:$0xff]  ;;  %v529_v59 = vld [vmem:[%s916_s12 + $0x1a] sm:$0xff]  ;;  %v285_v60 = vpack.c.bf16 %v279_v53, %v278_v52  ;;  %v469_v62 = vpack.c.bf16 %v731_v57, %v730_v56  ;;  %v281_v1 = vld [vmem:[%s916_s12 + $0x28] sm:$0xff] }
  0x37   : > { %v535_v63 = vpack.c.bf16 %v529_v59, %v528_v58  ;;  %v280_v0 = vld [vmem:[%s916_s12 + $0x20] sm:$0xff]  ;;  %v399_v3 = vld [vmem:[%s916_s12 + $0x29] sm:$0xff]  ;;  %v733_v5 = vld [vmem:[%s916_s12 + $0x71] sm:$0xff] }
  0x38   : > { %v398_v2 = vld [vmem:[%s916_s12 + $0x21] sm:$0xff]  ;;  %v732_v4 = vld [vmem:[%s916_s12 + $0x69] sm:$0xff]  ;;  %v286_v8 = vpack.c.bf16 %v281_v1, %v280_v0  ;;  %v400_v14 = vld [vmem:[%s916_s12 + $0x31] sm:$0xff] }
  0x39   : > { %v530_v6 = vld [vmem:[%s916_s12 + $0x22] sm:$0xff]  ;;  %v531_v7 = vld [vmem:[%s916_s12 + $0x2a] sm:$0xff]  ;;  %v404_v9 = vpack.c.bf16 %v399_v3, %v398_v2  ;;  %v470_v10 = vpack.c.bf16 %v733_v5, %v732_v4  ;;  %v401_v15 = vld [vmem:[%s916_s12 + $0x39] sm:$0xff] }
  0x3a   : > { %v536_v11 = vpack.c.bf16 %v531_v7, %v530_v6  ;;  %v282_v12 = vld [vmem:[%s916_s12 + $0x30] sm:$0xff]  ;;  %v734_v16 = vld [vmem:[%s916_s12 + $0x79] sm:$0xff]  ;;  %v735_v17 = vld [vmem:[%s916_s12 + $0x81] sm:$0xff]  ;;  %v405_v21 = vpack.c.bf16 %v401_v15, %v400_v14 }
  0x3b   : > { %v532_v18 = vld [vmem:[%s916_s12 + $0x32] sm:$0xff]  ;;  %v533_v19 = vld [vmem:[%s916_s12 + $0x3a] sm:$0xff]  ;;  %v287_v20 = vpack.c.bf16 %v283_v13, %v282_v12  ;;  %v471_v22 = vpack.c.bf16 %v735_v17, %v734_v16 }
  0x3c   : > { %v537_v23 = vpack.c.bf16 %v533_v19, %v532_v18  ;;  %v991_v40 = vld [vmem:[%s1037_s2] ss:$0 sm:$0xff] }
  0x44   : > { %719 = vmatmul.msk.bf16.vlgmr.msrb.gmra.mxu1 %vm304_vm1, %v284_v48  ;;  %724 = vmatmul.msk.bf16.vlgmr.msrb.gmra.mxu2 %vm304_vm1, %v402_v49 }
  0x45   : > { %737 = vmatmul.msk.bf16.vlgmr.msrb.gmra.mxu3 %vm304_vm1, %v468_v50  ;;  %742 = vmatmul.msk.bf16.vlgmr.msrb.gmra.mxu0 %vm304_vm1, %v534_v51 }
  0x54   : > { %720 = vmatmul.msk.bf16.gmra.mxu1 %vm304_vm1, %v285_v60  ;;  %725 = vmatmul.msk.bf16.gmra.mxu2 %vm304_vm1, %v403_v61 }
  0x55   : > { %738 = vmatmul.msk.bf16.gmra.mxu3 %vm304_vm1, %v469_v62  ;;  %743 = vmatmul.msk.bf16.gmra.mxu0 %vm304_vm1, %v535_v63 }
  0x64   : > { %721 = vmatmul.msk.bf16.gmra.mxu1 %vm304_vm1, %v286_v8  ;;  %726 = vmatmul.msk.bf16.gmra.mxu2 %vm304_vm1, %v404_v9 }
  0x65   : > { %739 = vmatmul.msk.bf16.gmra.mxu3 %vm304_vm1, %v470_v10  ;;  %744 = vmatmul.msk.bf16.gmra.mxu0 %vm304_vm1, %v536_v11 }
  0x74   : > { %722 = vmatmul.msk.bf16.gmra.mxu1 %vm304_vm1, %v287_v20  ;;  %727 = vmatmul.msk.bf16.gmra.mxu2 %vm304_vm1, %v405_v21 }
  0x75   : > { %740 = vmatmul.msk.bf16.gmra.mxu3 %vm304_vm1, %v471_v22  ;;  %745 = vmatmul.msk.bf16.gmra.mxu0 %vm304_vm1, %v537_v23 }
  0xb1   : > { %v335_v24 = vpop.f32.mrf.mxu1 }
  0xb2   : > { %v330_v25 = vpop.f32.mrf.mxu0 }
  0xb7   : > { %v340_v26 = vpop.f32.mrf.mxu2 }
  0xb8   : > { %v978_v27 = vpop.f32.mrf.mxu3 }
  0xb9   : > { %v337_v28 = vpop.f32.mrf.mxu1 }
  0xba   : > { %v332_v29 = vpop.f32.mrf.mxu0 }
  0xbf   : > { %v980_v30 = vpop.f32.mrf.mxu2 }
  0xc0   : > { %v982_v31 = vpop.f32.mrf.mxu3 }
  0xc1   : > { %v374_v32 = vpop.f32.mrf.mxu1 }
  0xc2   : > { %v564_v33 = vpop.f32.mrf.mxu0  ;;  %v375_v34 = vadd.f32 %v374_v32, %v330_v25 }
  0xc7   : > { %v432_v35 = vpop.f32.mrf.mxu2 }
  0xc8   : > { %v498_v36 = vpop.f32.mrf.mxu3  ;;  %v452_v37 = vadd.f32 %v432_v35, %v375_v34 }
  0xc9   : > { %v376_v38 = vpop.f32.mrf.mxu1 }
  0xca   : > { %v518_v39 = vadd.f32 %v498_v36, %v452_v37  ;;  %v566_v41 = vpop.f32.mrf.mxu0  ;;  %v377_v44 = vadd.f32 %v376_v38, %v332_v29 }
  0xcc   : > { %v584_v42 = vadd.f32 %v564_v33, %v518_v39 }
  0xce   : > { %v596_v43 = vadd.f32 %v991_v40, %v584_v42 }
  0xcf   : > { %v434_v45 = vpop.f32.mrf.mxu2 }
  0xd0   : > { %v500_v46 = vpop.f32.mrf.mxu3  ;;  %vm604_vm2 = vcmp.ge.f32.partialorder %v596_v43, 0.0  ;;  %v612_v47 = vmul.f32 0.1, %v596_v43  ;;  %v453_v48 = vadd.f32 %v434_v45, %v377_v44 }
  0xd1   : > { %v379_v49 = vpop.f32.mrf.mxu1 }
  0xd2   : > { %v620_v50 = vsel %vm604_vm2, %v596_v43, %v612_v47  ;;  %v519_v51 = vadd.f32 %v500_v46, %v453_v48  ;;  %v569_v52 = vpop.f32.mrf.mxu0  ;;  %v380_v55 = vadd.f32 %v379_v49, %v335_v24 }
  0xd3   : > { %629 = vst.msk [vmem:[%s997_s23] sm:$0xff] %vm628_vm3, %v620_v50 }
  0xd4   : > { %v585_v53 = vadd.f32 %v566_v41, %v519_v51 }
  0xd6   : > { %v597_v54 = vadd.f32 %v991_v40, %v585_v53 }
  0xd7   : > { %v437_v56 = vpop.f32.mrf.mxu2 }
  0xd8   : > { %v503_v57 = vpop.f32.mrf.mxu3  ;;  %vm605_vm4 = vcmp.ge.f32.partialorder %v597_v54, 0.0  ;;  %v613_v58 = vmul.f32 0.1, %v597_v54  ;;  %v454_v59 = vadd.f32 %v437_v56, %v380_v55 }
  0xd9   : > { %v381_v60 = vpop.f32.mrf.mxu1 }
  0xda   : > { %v621_v61 = vsel %vm605_vm4, %v597_v54, %v613_v58  ;;  %v520_v62 = vadd.f32 %v503_v57, %v454_v59  ;;  %v571_v63 = vpop.f32.mrf.mxu0  ;;  %v382_v2 = vadd.f32 %v381_v60, %v337_v28 }
  0xdb   : > { %630 = vst.msk [vmem:[%s997_s23 + $0x8] sm:$0xff] %vm628_vm3, %v621_v61 }
  0xdc   : > { %v586_v0 = vadd.f32 %v569_v52, %v520_v62 }
  0xde   : > { %v598_v1 = vadd.f32 %v991_v40, %v586_v0 }
  0xdf   : > { %v439_v3 = vpop.f32.mrf.mxu2 }
  0xe0   : > { %v505_v4 = vpop.f32.mrf.mxu3  ;;  %vm606_vm5 = vcmp.ge.f32.partialorder %v598_v1, 0.0  ;;  %v614_v5 = vmul.f32 0.1, %v598_v1  ;;  %v455_v6 = vadd.f32 %v439_v3, %v382_v2 }
  0xe1   : > { %v384_v7 = vpop.f32.mrf.mxu1 }
  0xe2   : > { %v622_v8 = vsel %vm606_vm5, %v598_v1, %v614_v5  ;;  %v521_v9 = vadd.f32 %v505_v4, %v455_v6  ;;  %v574_v11 = vpop.f32.mrf.mxu0  ;;  %v385_v13 = vadd.f32 %v384_v7, %v340_v26 }
  0xe3   : > { %631 = vst.msk [vmem:[%s997_s23 + $0x10] sm:$0xff] %vm628_vm3, %v622_v8 }
  0xe4   : > { %v587_v10 = vadd.f32 %v571_v63, %v521_v9 }
  0xe6   : > { %v599_v12 = vadd.f32 %v991_v40, %v587_v10 }
  0xe7   : > { %v442_v14 = vpop.f32.mrf.mxu2 }
  0xe8   : > { %v508_v15 = vpop.f32.mrf.mxu3  ;;  %vm607_vm6 = vcmp.ge.f32.partialorder %v599_v12, 0.0  ;;  %v615_v16 = vmul.f32 0.1, %v599_v12  ;;  %v456_v17 = vadd.f32 %v442_v14, %v385_v13 }
  0xe9   : > { %v386_v18 = vpop.f32.mrf.mxu1 }
  0xea   : > { %v623_v19 = vsel %vm607_vm6, %v599_v12, %v615_v16  ;;  %v522_v20 = vadd.f32 %v508_v15, %v456_v17  ;;  %v387_v23 = vadd.f32 %v386_v18, %v980_v30  ;;  %v576_v24 = vpop.f32.mrf.mxu0 }
  0xeb   : > { %632 = vst.msk [vmem:[%s997_s23 + $0x18] sm:$0xff] %vm628_vm3, %v623_v19 }
  0xec   : > { %v588_v21 = vadd.f32 %v574_v11, %v522_v20 }
  0xee   : > { %v600_v22 = vadd.f32 %v991_v40, %v588_v21 }
  0xef   : > { %v444_v25 = vpop.f32.mrf.mxu2 }
  0xf0   : > { %v510_v28 = vpop.f32.mrf.mxu3  ;;  %vm608_vm7 = vcmp.ge.f32.partialorder %v600_v22, 0.0  ;;  %v616_v26 = vmul.f32 0.1, %v600_v22  ;;  %v457_v29 = vadd.f32 %v444_v25, %v387_v23 }
  0xf1   : > { %v389_v32 = vpop.f32.mrf.mxu1 }
  0xf2   : > { %v624_v33 = vsel %vm608_vm7, %v600_v22, %v616_v26  ;;  %v523_v34 = vadd.f32 %v510_v28, %v457_v29  ;;  %v390_v37 = vadd.f32 %v389_v32, %v978_v27  ;;  %v579_v42 = vpop.f32.mrf.mxu0 }
  0xf3   : > { %633 = vst.msk [vmem:[%s997_s23 + $0x20] sm:$0xff] %vm628_vm3, %v624_v33 }
  0xf4   : > { %v589_v35 = vadd.f32 %v576_v24, %v523_v34 }
  0xf6   : > { %v601_v36 = vadd.f32 %v991_v40, %v589_v35 }
  0xf7   : > { %v447_v38 = vpop.f32.mrf.mxu2 }
  0xf8   : > { %v513_v39 = vpop.f32.mrf.mxu3  ;;  %vm609_vm8 = vcmp.ge.f32.partialorder %v601_v36, 0.0  ;;  %v617_v30 = vmul.f32 0.1, %v601_v36  ;;  %v458_v41 = vadd.f32 %v447_v38, %v390_v37 }
  0xf9   : > { %v391_v45 = vpop.f32.mrf.mxu1 }
  0xfa   : > { %v625_v43 = vsel %vm609_vm8, %v601_v36, %v617_v30  ;;  %v524_v44 = vadd.f32 %v513_v39, %v458_v41  ;;  %v392_v48 = vadd.f32 %v391_v45, %v982_v31  ;;  %v581_v54 = vpop.f32.mrf.mxu0 }
  0xfb   : > { %634 = vst.msk [vmem:[%s997_s23 + $0x28] sm:$0xff] %vm628_vm3, %v625_v43 }
  0xfc   : > { %v590_v46 = vadd.f32 %v579_v42, %v524_v44 }
  0xfe   : > { %v602_v47 = vadd.f32 %v991_v40, %v590_v46 }
  0xff   : > { %v449_v49 = vpop.f32.mrf.mxu2 }
 0x100   : > { %vm610_vm9 = vcmp.ge.f32.partialorder %v602_v47, 0.0  ;;  %v618_v27 = vmul.f32 0.1, %v602_v47  ;;  %v459_v50 = vadd.f32 %v449_v49, %v392_v48  ;;  %v515_v51 = vpop.f32.mrf.mxu3 }
 0x102   : > { %v626_v52 = vsel %vm610_vm9, %v602_v47, %v618_v27  ;;  %v525_v53 = vadd.f32 %v515_v51, %v459_v50 }
 0x103   : > { %635 = vst.msk [vmem:[%s997_s23 + $0x30] sm:$0xff] %vm628_vm3, %v626_v52 }
 0x104   : > { %v591_v55 = vadd.f32 %v581_v54, %v525_v53 }
 0x106   : > { %v603_v56 = vadd.f32 %v991_v40, %v591_v55 }
 0x108   : > { %vm611_vm10 = vcmp.ge.f32.partialorder %v603_v56, 0.0  ;;  %v619_v57 = vmul.f32 0.1, %v603_v56 }
 0x10a   : > { %v627_v58 = vsel %vm611_vm10, %v603_v56, %v619_v57 }
 0x10b   : > { %636 = vst.msk [vmem:[%s997_s23 + $0x38] sm:$0xff] %vm628_vm3, %v627_v58 }
 0x10c PF: > { %p10_p9 = scmp.ge.s32.totalorder %s841_s16, 4   ;;  %s1039_s12 = smov %s798_s13 }
 0x10d   : > { %s1040_s13 = smov %s850_s19  ;;  %s1041_s14 = smov %s841_s16 }
 0x10e   :  { %12 = sbr.rel (!%p10_p9) target bundleno = 2 (0x2), region = 110 }

// kernel: vits_forward.51
= control target key start
LH: loop header
LB: loop body
LE: loop exit
PB: predicated region body
PF: predicated region fallthrough
CT: control target
= control target key end

     0   :  { %s530_s14 = smov 0   ;;  %s616_s0 = inlined_call_operand.vmem [shape: f32[1,2,66,16], index: 0, kind: input, shape index: {}]   ;;  %s617_s1 = inlined_call_operand.vmem [shape: bf16[3,16,1], index: 1, kind: input, shape index: {}]   ;;  %s618_s2 = inlined_call_operand.<no memory space> [shape: f32[1,1], index: 2, kind: input, shape index: {}]   ;;  %s619_s3 = inlined_call_operand.vmem [shape: f32[2,64,1], index: 3, kind: output, shape index: {}]  }
   0x1   :  { %v8_v0 = vstv %s618_s2 }
   0x2   :  { %9 = vst [vmem:[#allocation2] sm:$0x1] %v8_v0 }
   0x3 LB: > { %s444_s15 = sadd.s32 4294967295, %s505_s14   ;;  %p448_p0 = scmp.ge.s32.totalorder %s505_s14, 1  ;;  %s505_s14 = sphi %s530_s14, %s15_s14  }
   0x4   : > { %p139_p1 = scmp.lt.s32.totalorder %s505_s14, 3 }
   0x6   : > { %p140_p2 = pnand %p448_p0, %p139_p1 }
   0x7   : > { %p163_p3 = scmp.lt.s32.totalorder (!%p140_p2), %s444_s15, 1 }
   0x8   : > { %143 = sbr.rel (%p140_p2) target bundleno = 200 (0xc8), region = 32 }
   0xd   : > { %v484_v1 = vld [vmem:[%s617_s1 + $0x8] sm:$0xff]  ;;  %v483_v2 = vld [vmem:[%s617_s1] sm:$0xff]  ;;  %v485_v3 = vld [vmem:[%s617_s1 + $0x10] sm:$0xff]  ;;  %s621_s15 = smov (!%p163_p3, %s444_s15), 1  ;;  %vm209_vm0 = vcmask 130048   ;;  %vm380_vm1 = vcmask 7168  }
   0xe   : > { %229 = vmatpush.bf16.msra.mxu0 %v484_v1  ;;  %486 = vmatpush.bf16.msra.mxu3 %v484_v1  ;;  %s489_s21 = smul.u32 72, %s621_s15  ;;  %s482_s25 = sshll.u32 %s621_s15, 6  ;;  %v498_v45 = vld [vmem:[#allocation2] ss:$0 sm:$0xff] }
   0xf   : > { %487 = vmatpush.bf16.msra.mxu1 %v483_v2  ;;  %488 = vmatpush.bf16.msra.mxu2 %v485_v3  ;;  %s595_s28 = scalar_lea.vmem %s619_s3, %s482_s25 }
  0x10   : > { %s553_s24 = scalar_lea.vmem %s616_s0, %s489_s21 }
  0x11   : > { %v188_v4 = vld [vmem:[%s553_s24 + $0x1] sm:$0xff]  ;;  %v189_v5 = vld [vmem:[%s553_s24 + $0x9] sm:$0xff]  ;;  %v190_v6 = vld [vmem:[%s553_s24 + $0x11] sm:$0xff] }
  0x12   : > { %276 = vmatpush.bf16.msrb.mxu0 %v483_v2  ;;  %v196_v7 = vpack.c.bf16 %v189_v5, %v188_v4  ;;  %v191_v8 = vld [vmem:[%s553_s24 + $0x19] sm:$0xff]  ;;  %v176_v9 = vld [vmem:[%s553_s24 + $0x10] sm:$0xff]  ;;  %v192_v16 = vld [vmem:[%s553_s24 + $0x21] sm:$0xff] }
  0x13   : > { %v177_v10 = vld [vmem:[%s553_s24 + $0x18] sm:$0xff]  ;;  %v197_v11 = vpack.c.bf16 %v191_v8, %v190_v6  ;;  %v174_v17 = vld [vmem:[%s553_s24] sm:$0xff]  ;;  %v175_v18 = vld [vmem:[%s553_s24 + $0x8] sm:$0xff] }
  0x14   : > { %v183_v12 = vpack.c.bf16 %v177_v10, %v176_v9  ;;  %v300_v13 = vld [vmem:[%s553_s24 + $0x12] sm:$0xff]  ;;  %v301_v14 = vld [vmem:[%s553_s24 + $0x1a] sm:$0xff]  ;;  %458 = vmatmul.msk.bf16.vlgmr.msra.gmra.mxu0 %vm209_vm0, %v196_v7  ;;  %v193_v19 = vld [vmem:[%s553_s24 + $0x29] sm:$0xff]  ;;  %v182_v24 = vpack.c.bf16 %v175_v18, %v174_v17 }
  0x15   : > { %v307_v15 = vpack.c.bf16 %v301_v14, %v300_v13  ;;  %459 = vmatmul.msk.bf16.vlgmr.msra.gmra.mxu3 %vm209_vm0, %v197_v11  ;;  %v178_v20 = vld [vmem:[%s553_s24 + $0x20] sm:$0xff]  ;;  %v179_v21 = vld [vmem:[%s553_s24 + $0x28] sm:$0xff]  ;;  %v198_v25 = vpack.c.bf16 %v193_v19, %v192_v16  ;;  %v194_v28 = vld [vmem:[%s553_s24 + $0x31] sm:$0xff] }
  0x16   : > { %467 = vmatmul.msk.bf16.vlgmr.msra.gmra.mxu1 %vm209_vm0, %v183_v12  ;;  %338 = vmatpush.bf16.msra.mxu0 %v485_v3  ;;  %v302_v22 = vld [vmem:[%s553_s24 + $0x22] sm:$0xff]  ;;  %v303_v23 = vld [vmem:[%s553_s24 + $0x2a] sm:$0xff]  ;;  %v184_v26 = vpack.c.bf16 %v179_v21, %v178_v20  ;;  %v195_v31 = vld [vmem:[%s553_s24 + $0x39] sm:$0xff] }
  0x17   : > { %477 = vmatmul.msk.bf16.vlgmr.msra.gmra.mxu2 %vm209_vm0, %v307_v15  ;;  %v308_v27 = vpack.c.bf16 %v303_v23, %v302_v22  ;;  %v298_v29 = vld [vmem:[%s553_s24 + $0x2] sm:$0xff]  ;;  %v299_v30 = vld [vmem:[%s553_s24 + $0xa] sm:$0xff]  ;;  %v181_v33 = vld [vmem:[%s553_s24 + $0x38] sm:$0xff]  ;;  %v199_v37 = vpack.c.bf16 %v195_v31, %v194_v28 }
  0x18   : > { %v180_v32 = vld [vmem:[%s553_s24 + $0x30] sm:$0xff]  ;;  %v305_v35 = vld [vmem:[%s553_s24 + $0x3a] sm:$0xff]  ;;  %v306_v36 = vpack.c.bf16 %v299_v30, %v298_v29 }
  0x19   : > { %v304_v34 = vld [vmem:[%s553_s24 + $0x32] sm:$0xff]  ;;  %v185_v38 = vpack.c.bf16 %v181_v33, %v180_v32 }
  0x1a   : > { %v309_v39 = vpack.c.bf16 %v305_v35, %v304_v34 }
  0x24   : > { %466 = vmatmul.msk.bf16.vlgmr.msrb.gmra.mxu0 %vm209_vm0, %v182_v24 }
  0x25   : > { %460 = vmatmul.msk.bf16.gmra.mxu3 %vm209_vm0, %v198_v25 }
  0x26   : > { %468 = vmatmul.msk.bf16.gmra.mxu1 %vm209_vm0, %v184_v26 }
  0x27   : > { %478 = vmatmul.msk.bf16.gmra.mxu2 %vm209_vm0, %v308_v27 }
  0x34   : > { %476 = vmatmul.msk.bf16.vlgmr.msra.gmra.mxu0 %vm209_vm0, %v306_v36 }
  0x35   : > { %461 = vmatmul.msk.bf16.gmra.mxu3 %vm209_vm0, %v199_v37 }
  0x36   : > { %469 = vmatmul.msk.bf16.gmra.mxu1 %vm209_vm0, %v185_v38 }
  0x37   : > { %479 = vmatmul.msk.bf16.gmra.mxu2 %vm209_vm0, %v309_v39 }
  0x91   : > { %v231_v40 = vpop.f32.mrf.mxu0 }
  0x93   : > { %v283_v41 = vpop.f32.mrf.mxu1 }
  0x98   : > { %v236_v42 = vpop.f32.mrf.mxu3 }
  0x99   : > { %v284_v43 = vadd.f32 %v283_v41, %v236_v42  ;;  %v233_v46 = vpop.f32.mrf.mxu0 }
  0x9a   : > { %v345_v44 = vpop.f32.mrf.mxu2 }
  0x9b   : > { %v285_v47 = vpop.f32.mrf.mxu1  ;;  %v362_v48 = vadd.f32 %v345_v44, %v284_v43 }
  0x9d   : > { %v374_v49 = vadd.f32 %v498_v45, %v362_v48 }
  0x9f   : > { %383 = vst.msk [vmem:[%s595_s28 + $0x10] sm:$0xff] %vm380_vm1, %v374_v49 }
  0xa0   : > { %v238_v50 = vpop.f32.mrf.mxu3 }
  0xa1   : > { %v286_v51 = vadd.f32 %v285_v47, %v238_v50  ;;  %v278_v53 = vpop.f32.mrf.mxu0 }
  0xa2   : > { %v347_v52 = vpop.f32.mrf.mxu2  ;;  %v279_v0 = vadd.f32 %v278_v53, %v231_v40 }
  0xa3   : > { %v288_v54 = vpop.f32.mrf.mxu1  ;;  %v363_v55 = vadd.f32 %v347_v52, %v286_v51 }
  0xa5   : > { %v375_v56 = vadd.f32 %v498_v45, %v363_v55 }
  0xa7   : > { %384 = vst.msk [vmem:[%s595_s28 + $0x18] sm:$0xff] %vm380_vm1, %v375_v56 }
  0xa8   : > { %v241_v57 = vpop.f32.mrf.mxu3 }
  0xa9   : > { %v289_v58 = vadd.f32 %v288_v54, %v241_v57  ;;  %v280_v60 = vpop.f32.mrf.mxu0 }
  0xaa   : > { %v350_v59 = vpop.f32.mrf.mxu2  ;;  %v281_v10 = vadd.f32 %v280_v60, %v233_v46 }
  0xab   : > { %v364_v61 = vadd.f32 %v350_v59, %v289_v58  ;;  %v290_v62 = vpop.f32.mrf.mxu1 }
  0xad   : > { %v376_v63 = vadd.f32 %v498_v45, %v364_v61 }
  0xaf   : > { %385 = vst.msk [vmem:[%s595_s28 + $0x20] sm:$0xff] %vm380_vm1, %v376_v63 }
  0xb0   : > { %v243_v1 = vpop.f32.mrf.mxu3 }
  0xb1   : > { %v291_v2 = vadd.f32 %v290_v62, %v243_v1  ;;  %v340_v4 = vpop.f32.mrf.mxu0 }
  0xb2   : > { %v352_v3 = vpop.f32.mrf.mxu2  ;;  %v360_v5 = vadd.f32 %v340_v4, %v279_v0 }
  0xb3   : > { %v365_v6 = vadd.f32 %v352_v3, %v291_v2  ;;  %v293_v9 = vpop.f32.mrf.mxu1 }
  0xb4   : > { %v372_v7 = vadd.f32 %v498_v45, %v360_v5 }
  0xb5   : > { %v377_v8 = vadd.f32 %v498_v45, %v365_v6 }
  0xb6   : > { %381 = vst.msk [vmem:[%s595_s28] sm:$0xff] %vm380_vm1, %v372_v7 }
  0xb7   : > { %386 = vst.msk [vmem:[%s595_s28 + $0x28] sm:$0xff] %vm380_vm1, %v377_v8 }
  0xb8   : > { %v246_v11 = vpop.f32.mrf.mxu3 }
  0xb9   : > { %v294_v12 = vadd.f32 %v293_v9, %v246_v11  ;;  %v342_v14 = vpop.f32.mrf.mxu0 }
  0xba   : > { %v355_v13 = vpop.f32.mrf.mxu2  ;;  %v361_v15 = vadd.f32 %v342_v14, %v281_v10 }
  0xbb   : > { %v366_v16 = vadd.f32 %v355_v13, %v294_v12  ;;  %v295_v19 = vpop.f32.mrf.mxu1 }
  0xbc   : > { %v373_v17 = vadd.f32 %v498_v45, %v361_v15 }
  0xbd   : > { %v378_v18 = vadd.f32 %v498_v45, %v366_v16 }
  0xbe   : > { %382 = vst.msk [vmem:[%s595_s28 + $0x8] sm:$0xff] %vm380_vm1, %v373_v17 }
  0xbf   : > { %387 = vst.msk [vmem:[%s595_s28 + $0x30] sm:$0xff] %vm380_vm1, %v378_v18 }
  0xc0   : > { %v248_v20 = vpop.f32.mrf.mxu3 }
  0xc1   : > { %v296_v21 = vadd.f32 %v295_v19, %v248_v20 }
  0xc2   : > { %v357_v22 = vpop.f32.mrf.mxu2 }
  0xc3   : > { %v367_v23 = vadd.f32 %v357_v22, %v296_v21 }
  0xc5   : > { %v379_v24 = vadd.f32 %v498_v45, %v367_v23 }
  0xc7   : > { %388 = vst.msk [vmem:[%s595_s28 + $0x38] sm:$0xff] %vm380_vm1, %v379_v24 }
  0xc8 PF: > { %s15_s14 = sadd.s32 1, %s505_s14  }
  0xc9   : > { %p12_p4 = scmp.ge.s32.totalorder %s15_s14, 4  }
  0xcb   :  { %14 = sbr.rel (!%p12_p4) target bundleno = 3 (0x3), region = 64 }

// kernel: vits_forward.46
= control target key start
LH: loop header
LB: loop body
LE: loop exit
PB: predicated region body
PF: predicated region fallthrough
CT: control target
= control target key end

     0   :  { %s828_s12 = smov 0   ;;  %s830_s13 = smov 0   ;;  %s1039_s0 = inlined_call_operand.vmem [shape: f32[2,2,66,1], index: 0, kind: input, shape index: {}]   ;;  %s1040_s1 = inlined_call_operand.vmem [shape: bf16[5,1,8], index: 1, kind: input, shape index: {}]   ;;  %s1041_s2 = inlined_call_operand.vmem [shape: f32[1,8], index: 2, kind: input, shape index: {}]   ;;  %s1042_s3 = inlined_call_operand.vmem [shape: f32[2,64,8], index: 3, kind: output, shape index: {}]  }
   0x1   :  { %s832_s14 = smov 0  }
   0x2 LB: > { %s700_s15 = sadd.s32 4294967295, %s805_s14   ;;  %s845_s16 = sadd.s32 1, %s805_s14   ;;  %s805_s14 = sphi %s832_s14, %s1045_s14   ;;  %s801_s13 = sphi %s830_s13, %s1044_s13   ;;  %s797_s12 = sphi %s828_s12, %s1043_s12  }
   0x3   : > { %s17_s17 = ssub.s32 %s805_s14, %s845_s16  ;;  %s20_s18 = sadd.s32 1, %s801_s13 }
   0x4   : > { %p18_p0 = scmp.eq.s32.totalorder %s17_s17, 0  ;;  %p27_p1 = scmp.ne.s32.totalorder %s801_s13, %s797_s12 }
   0x5   : > { %p28_p2 = scmp.eq.s32.totalorder %s805_s14, 0  ;;  %p703_p4 = scmp.ge.s32.totalorder %s805_s14, 2 }
   0x6   : > { %s854_s19 = scalar_select %p18_p0, %s801_s13, %s20_s18  }
   0x7   : > { %p29_p3 = por %p28_p2, %p27_p1  ;;  %127 = sbr.rel (%p703_p4) target bundleno = 35 (0x23), region = 24 }
   0xc   : > { %130 = sbr.rel (!%p29_p3) target bundleno = 35 (0x23), region = 28  ;;  %s132_s20 = sand.u32 (%p29_p3), 1, %s801_s13  }
   0xd   : > { %s755_s21 = smul.u32 (%p29_p3), 72, %s805_s14 }
   0xe   : > { %s754_s22 = smul.u32 (%p29_p3), 144, %s132_s20 }
   0xf   : > { %s862_s25 = scalar_lea.vmem (%p29_p3), %s1039_s0, %s755_s21 }
  0x10   : > { %v200_v0 = vld [vmem:[%s862_s25] sm:$0xff] (%p29_p3)  ;;  %v202_v1 = vld [vmem:[%s862_s25 + $0x8] sm:$0xff] (%p29_p3)  ;;  %v204_v2 = vld [vmem:[%s862_s25 + $0x10] sm:$0xff] (%p29_p3)  ;;  %s867_s26 = scalar_lea.vmem (%p29_p3), [#allocation2], %s754_s22 }
  0x11   : > { %201 = vst [vmem:[%s867_s26] sm:$0xff] %v200_v0  ;;  %v206_v3 = vld [vmem:[%s862_s25 + $0x18] sm:$0xff]  ;;  %v208_v4 = vld [vmem:[%s862_s25 + $0x20] sm:$0xff]  ;;  %v210_v5 = vld [vmem:[%s862_s25 + $0x28] sm:$0xff] }
  0x12   : > { %203 = vst [vmem:[%s867_s26 + $0x8] sm:$0xff] %v202_v1  ;;  %v212_v6 = vld [vmem:[%s862_s25 + $0x30] sm:$0xff]  ;;  %v214_v7 = vld [vmem:[%s862_s25 + $0x38] sm:$0xff]  ;;  %v216_v8 = vld [vmem:[%s862_s25 + $0x40] sm:$0xff] }
  0x13   : > { %205 = vst [vmem:[%s867_s26 + $0x10] sm:$0xff] %v204_v2  ;;  %v218_v9 = vld [vmem:[%s862_s25 + $0x90] sm:$0xff]  ;;  %v220_v10 = vld [vmem:[%s862_s25 + $0x98] sm:$0xff]  ;;  %v222_v11 = vld [vmem:[%s862_s25 + $0xa0] sm:$0xff] }
  0x14   : > { %207 = vst [vmem:[%s867_s26 + $0x18] sm:$0xff] %v206_v3  ;;  %v224_v12 = vld [vmem:[%s862_s25 + $0xa8] sm:$0xff]  ;;  %v226_v13 = vld [vmem:[%s862_s25 + $0xb0] sm:$0xff]  ;;  %v228_v14 = vld [vmem:[%s862_s25 + $0xb8] sm:$0xff] }
  0x15   : > { %209 = vst [vmem:[%s867_s26 + $0x20] sm:$0xff] %v208_v4  ;;  %v230_v15 = vld [vmem:[%s862_s25 + $0xc0] sm:$0xff]  ;;  %v232_v16 = vld [vmem:[%s862_s25 + $0xc8] sm:$0xff]  ;;  %v234_v17 = vld [vmem:[%s862_s25 + $0xd0] sm:$0xff] }
  0x16   : > { %211 = vst [vmem:[%s867_s26 + $0x28] sm:$0xff] %v210_v5 }
  0x17   : > { %213 = vst [vmem:[%s867_s26 + $0x30] sm:$0xff] %v212_v6 }
  0x18   : > { %215 = vst [vmem:[%s867_s26 + $0x38] sm:$0xff] %v214_v7 }
  0x19   : > { %217 = vst [vmem:[%s867_s26 + $0x40] sm:$0xff] %v216_v8 }
  0x1a   : > { %219 = vst [vmem:[%s867_s26 + $0x48] sm:$0xff] %v218_v9 }
  0x1b   : > { %221 = vst [vmem:[%s867_s26 + $0x50] sm:$0xff] %v220_v10 }
  0x1c   : > { %223 = vst [vmem:[%s867_s26 + $0x58] sm:$0xff] %v222_v11 }
  0x1d   : > { %225 = vst [vmem:[%s867_s26 + $0x60] sm:$0xff] %v224_v12 }
  0x1e   : > { %227 = vst [vmem:[%s867_s26 + $0x68] sm:$0xff] %v226_v13 }
  0x1f   : > { %229 = vst [vmem:[%s867_s26 + $0x70] sm:$0xff] %v228_v14 }
  0x20   : > { %231 = vst [vmem:[%s867_s26 + $0x78] sm:$0xff] %v230_v15 }
  0x21   : > { %233 = vst [vmem:[%s867_s26 + $0x80] sm:$0xff] %v232_v16 }
  0x22   : > { %235 = vst [vmem:[%s867_s26 + $0x88] sm:$0xff] %v234_v17 }
  0x23 PF: > { %p705_p5 = scmp.ge.s32.totalorder %s805_s14, 1  ;;  %p240_p6 = scmp.lt.s32.totalorder %s805_s14, 3 }
  0x25   : > { %p241_p7 = pnand %p705_p5, %p240_p6 }
  0x26   : > { %s247_s29 = sand.u32 (!%p241_p7), 1, %s797_s12   ;;  %p270_p8 = scmp.lt.s32.totalorder (!%p241_p7), %s700_s15, 1 }
  0x27   : > { %244 = sbr.rel (%p241_p7) target bundleno = 267 (0x10b), region = 66 }
  0x28   : > { %s756_s30 = smul.u32 (!%p241_p7), 144, %s247_s29 }
  0x2a   : > { %s920_s12 = scalar_lea.vmem (!%p241_p7), [#allocation2], %s756_s30 }
  0x2c   : > { %v716_v18 = vld [vmem:[%s1040_s1 + $0x1] sm:$0x1]  ;;  %vm317_vm0 = vcmask 1040384   ;;  %v807_v19 = vmov 0   ;;  %v725_v21 = vld [vmem:[%s1040_s1 + $0x2] sm:$0x1] }
  0x2d   : > { %v319_v20 = vsel %vm317_vm0, 65535, %v807_v19  ;;  %v738_v22 = vld [vmem:[%s1040_s1 + $0x3] sm:$0x1]  ;;  %v288_v26 = vld [vmem:[%s1040_s1] sm:$0x1]  ;;  %v710_v29 = vld [vmem:[%s920_s12 + $0x58] sm:$0xff] }
  0x2e   : > { %v321_v23 = vand.u32 %v716_v18, %v319_v20  ;;  %v423_v24 = vand.u32 %v725_v21, %v319_v20  ;;  %v489_v25 = vand.u32 %v738_v22, %v319_v20  ;;  %v743_v27 = vld [vmem:[%s1040_s1 + $0x4] sm:$0x1]  ;;  %vm304_vm1 = vcmask 7168   ;;  %v712_v31 = vld [vmem:[%s920_s12 + $0x68] sm:$0xff]  ;;  %v714_v34 = vld [vmem:[%s920_s12 + $0x78] sm:$0xff]  ;;  %s1047_s15 = smov (!%p270_p8, %s700_s15), 1 }
  0x2f   : > { %v555_v28 = vand.u32 %v743_v27, %v319_v20  ;;  %v711_v30 = vld [vmem:[%s920_s12 + $0x60] sm:$0xff]  ;;  %v713_v33 = vld [vmem:[%s920_s12 + $0x70] sm:$0xff]  ;;  %v365_v36 = vand.u32 %v319_v20, %v288_v26  ;;  %v708_v39 = vld [vmem:[%s920_s12 + $0x48] sm:$0xff]  ;;  %s750_s20 = sshll.u32 %s1047_s15, 6  ;;  %vm630_vm3 = vcmask 64512  }
  0x30   : > { %751 = vmatpush.bf16.msra.mxu1 %v321_v23  ;;  %752 = vmatpush.bf16.msra.mxu2 %v321_v23  ;;  %v299_v32 = vpack.c.bf16 %v711_v30, %v710_v29  ;;  %v715_v35 = vld [vmem:[%s920_s12 + $0x80] sm:$0xff]  ;;  %v300_v37 = vpack.c.bf16 %v713_v33, %v712_v31  ;;  %v709_v40 = vld [vmem:[%s920_s12 + $0x50] sm:$0xff]  ;;  %v277_v43 = vld [vmem:[%s920_s12 + $0x8] sm:$0xff]  ;;  %s1001_s23 = scalar_lea.vmem %s1042_s3, %s750_s20 }
  0x31   : > { %753 = vmatpush.bf16.msra.mxu3 %v321_v23  ;;  %330 = vmatpush.bf16.msra.mxu0 %v321_v23  ;;  %v301_v38 = vpack.c.bf16 %v715_v35, %v714_v34  ;;  %v298_v41 = vpack.c.bf16 %v709_v40, %v708_v39  ;;  %v276_v42 = vld [vmem:[%s920_s12] sm:$0xff]  ;;  %v397_v45 = vld [vmem:[%s920_s12 + $0x9] sm:$0xff]  ;;  %v731_v47 = vld [vmem:[%s920_s12 + $0x51] sm:$0xff] }
  0x32   : > { %v396_v44 = vld [vmem:[%s920_s12 + $0x1] sm:$0xff]  ;;  %v730_v46 = vld [vmem:[%s920_s12 + $0x49] sm:$0xff]  ;;  %v284_v50 = vpack.c.bf16 %v277_v43, %v276_v42  ;;  %v279_v55 = vld [vmem:[%s920_s12 + $0x18] sm:$0xff] }
  0x33   : > { %718 = vmatmul.msk.bf16.vlgmr.msra.gmra.mxu1 %vm304_vm1, %v299_v32  ;;  %719 = vmatmul.msk.bf16.vlgmr.msra.gmra.mxu2 %vm304_vm1, %v300_v37  ;;  %v528_v48 = vld [vmem:[%s920_s12 + $0x2] sm:$0xff]  ;;  %v529_v49 = vld [vmem:[%s920_s12 + $0xa] sm:$0xff]  ;;  %v404_v51 = vpack.c.bf16 %v397_v45, %v396_v44  ;;  %v470_v52 = vpack.c.bf16 %v731_v47, %v730_v46  ;;  %v399_v57 = vld [vmem:[%s920_s12 + $0x19] sm:$0xff] }
  0x34   : > { %432 = vmatpush.bf16.msrb.mxu2 %v423_v24  ;;  %720 = vmatmul.msk.bf16.vlgmr.msra.gmra.mxu3 %vm304_vm1, %v301_v38  ;;  %v536_v53 = vpack.c.bf16 %v529_v49, %v528_v48  ;;  %v278_v54 = vld [vmem:[%s920_s12 + $0x10] sm:$0xff]  ;;  %v732_v58 = vld [vmem:[%s920_s12 + $0x59] sm:$0xff]  ;;  %v733_v59 = vld [vmem:[%s920_s12 + $0x61] sm:$0xff] }
  0x35   : > { %498 = vmatpush.bf16.msrb.mxu3 %v489_v25  ;;  %564 = vmatpush.bf16.msrb.mxu0 %v555_v28  ;;  %v398_v56 = vld [vmem:[%s920_s12 + $0x11] sm:$0xff]  ;;  %v531_v61 = vld [vmem:[%s920_s12 + $0x1a] sm:$0xff]  ;;  %v285_v62 = vpack.c.bf16 %v279_v55, %v278_v54  ;;  %v471_v0 = vpack.c.bf16 %v733_v59, %v732_v58  ;;  %v281_v3 = vld [vmem:[%s920_s12 + $0x28] sm:$0xff] }
  0x36   : > { %717 = vmatmul.msk.bf16.vlgmr.msra.gmra.mxu0 %vm304_vm1, %v298_v41  ;;  %374 = vmatpush.bf16.msrb.mxu1 %v365_v36  ;;  %v530_v60 = vld [vmem:[%s920_s12 + $0x12] sm:$0xff]  ;;  %v405_v63 = vpack.c.bf16 %v399_v57, %v398_v56  ;;  %v280_v2 = vld [vmem:[%s920_s12 + $0x20] sm:$0xff]  ;;  %v401_v5 = vld [vmem:[%s920_s12 + $0x29] sm:$0xff] }
  0x37   : > { %v537_v1 = vpack.c.bf16 %v531_v61, %v530_v60  ;;  %v400_v4 = vld [vmem:[%s920_s12 + $0x21] sm:$0xff]  ;;  %v734_v6 = vld [vmem:[%s920_s12 + $0x69] sm:$0xff]  ;;  %v735_v7 = vld [vmem:[%s920_s12 + $0x71] sm:$0xff]  ;;  %v286_v10 = vpack.c.bf16 %v281_v3, %v280_v2 }
  0x38   : > { %v532_v8 = vld [vmem:[%s920_s12 + $0x22] sm:$0xff]  ;;  %v533_v9 = vld [vmem:[%s920_s12 + $0x2a] sm:$0xff]  ;;  %v406_v11 = vpack.c.bf16 %v401_v5, %v400_v4  ;;  %v472_v12 = vpack.c.bf16 %v735_v7, %v734_v6  ;;  %v283_v15 = vld [vmem:[%s920_s12 + $0x38] sm:$0xff] }
  0x39   : > { %v538_v13 = vpack.c.bf16 %v533_v9, %v532_v8  ;;  %v282_v14 = vld [vmem:[%s920_s12 + $0x30] sm:$0xff]  ;;  %v403_v17 = vld [vmem:[%s920_s12 + $0x39] sm:$0xff]  ;;  %v737_v19 = vld [vmem:[%s920_s12 + $0x81] sm:$0xff] }
  0x3a   : > { %v402_v16 = vld [vmem:[%s920_s12 + $0x31] sm:$0xff]  ;;  %v736_v18 = vld [vmem:[%s920_s12 + $0x79] sm:$0xff]  ;;  %v287_v22 = vpack.c.bf16 %v283_v15, %v282_v14 }
  0x3b   : > { %v534_v20 = vld [vmem:[%s920_s12 + $0x32] sm:$0xff]  ;;  %v535_v21 = vld [vmem:[%s920_s12 + $0x3a] sm:$0xff]  ;;  %v407_v23 = vpack.c.bf16 %v403_v17, %v402_v16  ;;  %v473_v24 = vpack.c.bf16 %v737_v19, %v736_v18 }
  0x3c   : > { %v539_v25 = vpack.c.bf16 %v535_v21, %v534_v20  ;;  %v995_v42 = vld [vmem:[%s1041_s2] ss:$0 sm:$0xff] }
  0x43   : > { %721 = vmatmul.msk.bf16.vlgmr.msrb.gmra.mxu1 %vm304_vm1, %v284_v50  ;;  %726 = vmatmul.msk.bf16.vlgmr.msrb.gmra.mxu2 %vm304_vm1, %v404_v51 }
  0x44   : > { %739 = vmatmul.msk.bf16.vlgmr.msrb.gmra.mxu3 %vm304_vm1, %v470_v52 }
  0x46   : > { %744 = vmatmul.msk.bf16.vlgmr.msrb.gmra.mxu0 %vm304_vm1, %v536_v53 }
  0x53   : > { %722 = vmatmul.msk.bf16.gmra.mxu1 %vm304_vm1, %v285_v62  ;;  %727 = vmatmul.msk.bf16.gmra.mxu2 %vm304_vm1, %v405_v63 }
  0x54   : > { %740 = vmatmul.msk.bf16.gmra.mxu3 %vm304_vm1, %v471_v0 }
  0x56   : > { %745 = vmatmul.msk.bf16.gmra.mxu0 %vm304_vm1, %v537_v1 }
  0x63   : > { %723 = vmatmul.msk.bf16.gmra.mxu1 %vm304_vm1, %v286_v10  ;;  %728 = vmatmul.msk.bf16.gmra.mxu2 %vm304_vm1, %v406_v11 }
  0x64   : > { %741 = vmatmul.msk.bf16.gmra.mxu3 %vm304_vm1, %v472_v12 }
  0x66   : > { %746 = vmatmul.msk.bf16.gmra.mxu0 %vm304_vm1, %v538_v13 }
  0x73   : > { %724 = vmatmul.msk.bf16.gmra.mxu1 %vm304_vm1, %v287_v22  ;;  %729 = vmatmul.msk.bf16.gmra.mxu2 %vm304_vm1, %v407_v23 }
  0x74   : > { %742 = vmatmul.msk.bf16.gmra.mxu3 %vm304_vm1, %v473_v24 }
  0x76   : > { %747 = vmatmul.msk.bf16.gmra.mxu0 %vm304_vm1, %v539_v25 }
  0xb0   : > { %v337_v26 = vpop.f32.mrf.mxu1 }
  0xb3   : > { %v332_v27 = vpop.f32.mrf.mxu0 }
  0xb6   : > { %v342_v28 = vpop.f32.mrf.mxu2 }
  0xb7   : > { %v982_v29 = vpop.f32.mrf.mxu3 }
  0xb8   : > { %v339_v30 = vpop.f32.mrf.mxu1 }
  0xbb   : > { %v334_v31 = vpop.f32.mrf.mxu0 }
  0xbe   : > { %v984_v32 = vpop.f32.mrf.mxu2 }
  0xbf   : > { %v986_v33 = vpop.f32.mrf.mxu3 }
  0xc0   : > { %v376_v34 = vpop.f32.mrf.mxu1 }
  0xc1   : > { %v377_v36 = vadd.f32 %v376_v34, %v332_v27 }
  0xc3   : > { %v566_v35 = vpop.f32.mrf.mxu0 }
  0xc6   : > { %v434_v37 = vpop.f32.mrf.mxu2 }
  0xc7   : > { %v500_v38 = vpop.f32.mrf.mxu3  ;;  %v454_v39 = vadd.f32 %v434_v37, %v377_v36 }
  0xc8   : > { %v378_v40 = vpop.f32.mrf.mxu1 }
  0xc9   : > { %v520_v41 = vadd.f32 %v500_v38, %v454_v39  ;;  %v379_v46 = vadd.f32 %v378_v40, %v334_v31 }
  0xcb   : > { %v568_v43 = vpop.f32.mrf.mxu0  ;;  %v586_v44 = vadd.f32 %v566_v35, %v520_v41 }
  0xcd   : > { %v598_v45 = vadd.f32 %v995_v42, %v586_v44 }
  0xce   : > { %v436_v47 = vpop.f32.mrf.mxu2 }
  0xcf   : > { %v502_v48 = vpop.f32.mrf.mxu3  ;;  %vm606_vm2 = vcmp.ge.f32.partialorder %v598_v45, 0.0  ;;  %v614_v49 = vmul.f32 0.1, %v598_v45  ;;  %v455_v50 = vadd.f32 %v436_v47, %v379_v46 }
  0xd0   : > { %v381_v51 = vpop.f32.mrf.mxu1 }
  0xd1   : > { %v622_v52 = vsel %vm606_vm2, %v598_v45, %v614_v49  ;;  %v521_v53 = vadd.f32 %v502_v48, %v455_v50  ;;  %v382_v57 = vadd.f32 %v381_v51, %v337_v26 }
  0xd2   : > { %631 = vst.msk [vmem:[%s1001_s23] sm:$0xff] %vm630_vm3, %v622_v52 }
  0xd3   : > { %v571_v54 = vpop.f32.mrf.mxu0  ;;  %v587_v55 = vadd.f32 %v568_v43, %v521_v53 }
  0xd5   : > { %v599_v56 = vadd.f32 %v995_v42, %v587_v55 }
  0xd6   : > { %v439_v58 = vpop.f32.mrf.mxu2 }
  0xd7   : > { %v505_v59 = vpop.f32.mrf.mxu3  ;;  %vm607_vm4 = vcmp.ge.f32.partialorder %v599_v56, 0.0  ;;  %v615_v60 = vmul.f32 0.1, %v599_v56  ;;  %v456_v61 = vadd.f32 %v439_v58, %v382_v57 }
  0xd8   : > { %v383_v62 = vpop.f32.mrf.mxu1 }
  0xd9   : > { %v623_v63 = vsel %vm607_vm4, %v599_v56, %v615_v60  ;;  %v522_v0 = vadd.f32 %v505_v59, %v456_v61  ;;  %v384_v4 = vadd.f32 %v383_v62, %v339_v30 }
  0xda   : > { %632 = vst.msk [vmem:[%s1001_s23 + $0x8] sm:$0xff] %vm630_vm3, %v623_v63 }
  0xdb   : > { %v573_v1 = vpop.f32.mrf.mxu0  ;;  %v588_v2 = vadd.f32 %v571_v54, %v522_v0 }
  0xdd   : > { %v600_v3 = vadd.f32 %v995_v42, %v588_v2 }
  0xde   : > { %v441_v5 = vpop.f32.mrf.mxu2 }
  0xdf   : > { %v507_v6 = vpop.f32.mrf.mxu3  ;;  %vm608_vm5 = vcmp.ge.f32.partialorder %v600_v3, 0.0  ;;  %v616_v7 = vmul.f32 0.1, %v600_v3  ;;  %v457_v8 = vadd.f32 %v441_v5, %v384_v4 }
  0xe0   : > { %v386_v9 = vpop.f32.mrf.mxu1 }
  0xe1   : > { %v624_v10 = vsel %vm608_vm5, %v600_v3, %v616_v7  ;;  %v523_v11 = vadd.f32 %v507_v6, %v457_v8  ;;  %v387_v15 = vadd.f32 %v386_v9, %v342_v28 }
  0xe2   : > { %633 = vst.msk [vmem:[%s1001_s23 + $0x10] sm:$0xff] %vm630_vm3, %v624_v10 }
  0xe3   : > { %v589_v12 = vadd.f32 %v573_v1, %v523_v11  ;;  %v576_v13 = vpop.f32.mrf.mxu0 }
  0xe5   : > { %v601_v14 = vadd.f32 %v995_v42, %v589_v12 }
  0xe6   : > { %v444_v16 = vpop.f32.mrf.mxu2 }
  0xe7   : > { %v510_v17 = vpop.f32.mrf.mxu3  ;;  %vm609_vm6 = vcmp.ge.f32.partialorder %v601_v14, 0.0  ;;  %v617_v18 = vmul.f32 0.1, %v601_v14  ;;  %v458_v19 = vadd.f32 %v444_v16, %v387_v15 }
  0xe8   : > { %v388_v20 = vpop.f32.mrf.mxu1 }
  0xe9   : > { %v625_v21 = vsel %vm609_vm6, %v601_v14, %v617_v18  ;;  %v524_v22 = vadd.f32 %v510_v17, %v458_v19  ;;  %v389_v25 = vadd.f32 %v388_v20, %v984_v32 }
  0xea   : > { %634 = vst.msk [vmem:[%s1001_s23 + $0x18] sm:$0xff] %vm630_vm3, %v625_v21 }
  0xeb   : > { %v590_v23 = vadd.f32 %v576_v13, %v524_v22  ;;  %v578_v26 = vpop.f32.mrf.mxu0 }
  0xed   : > { %v602_v24 = vadd.f32 %v995_v42, %v590_v23 }
  0xee   : > { %v446_v27 = vpop.f32.mrf.mxu2 }
  0xef   : > { %v512_v30 = vpop.f32.mrf.mxu3  ;;  %vm610_vm7 = vcmp.ge.f32.partialorder %v602_v24, 0.0  ;;  %v618_v28 = vmul.f32 0.1, %v602_v24  ;;  %v459_v31 = vadd.f32 %v446_v27, %v389_v25 }
  0xf0   : > { %v391_v34 = vpop.f32.mrf.mxu1 }
  0xf1   : > { %v626_v35 = vsel %vm610_vm7, %v602_v24, %v618_v28  ;;  %v525_v36 = vadd.f32 %v512_v30, %v459_v31  ;;  %v392_v39 = vadd.f32 %v391_v34, %v982_v29 }
  0xf2   : > { %635 = vst.msk [vmem:[%s1001_s23 + $0x20] sm:$0xff] %vm630_vm3, %v626_v35 }
  0xf3   : > { %v591_v37 = vadd.f32 %v578_v26, %v525_v36  ;;  %v581_v44 = vpop.f32.mrf.mxu0 }
  0xf5   : > { %v603_v38 = vadd.f32 %v995_v42, %v591_v37 }
  0xf6   : > { %v449_v40 = vpop.f32.mrf.mxu2 }
  0xf7   : > { %v515_v41 = vpop.f32.mrf.mxu3  ;;  %vm611_vm8 = vcmp.ge.f32.partialorder %v603_v38, 0.0  ;;  %v619_v32 = vmul.f32 0.1, %v603_v38  ;;  %v460_v43 = vadd.f32 %v449_v40, %v392_v39 }
  0xf8   : > { %v393_v47 = vpop.f32.mrf.mxu1 }
  0xf9   : > { %v627_v45 = vsel %vm611_vm8, %v603_v38, %v619_v32  ;;  %v526_v46 = vadd.f32 %v515_v41, %v460_v43  ;;  %v394_v50 = vadd.f32 %v393_v47, %v986_v33 }
  0xfa   : > { %636 = vst.msk [vmem:[%s1001_s23 + $0x28] sm:$0xff] %vm630_vm3, %v627_v45 }
  0xfb   : > { %v592_v48 = vadd.f32 %v581_v44, %v526_v46  ;;  %v583_v56 = vpop.f32.mrf.mxu0 }
  0xfd   : > { %v604_v49 = vadd.f32 %v995_v42, %v592_v48 }
  0xfe   : > { %v451_v51 = vpop.f32.mrf.mxu2 }
  0xff   : > { %vm612_vm9 = vcmp.ge.f32.partialorder %v604_v49, 0.0  ;;  %v620_v29 = vmul.f32 0.1, %v604_v49  ;;  %v461_v52 = vadd.f32 %v451_v51, %v394_v50  ;;  %v517_v53 = vpop.f32.mrf.mxu3 }
 0x101   : > { %v628_v54 = vsel %vm612_vm9, %v604_v49, %v620_v29  ;;  %v527_v55 = vadd.f32 %v517_v53, %v461_v52 }
 0x102   : > { %637 = vst.msk [vmem:[%s1001_s23 + $0x30] sm:$0xff] %vm630_vm3, %v628_v54 }
 0x103   : > { %v593_v57 = vadd.f32 %v583_v56, %v527_v55 }
 0x105   : > { %v605_v58 = vadd.f32 %v995_v42, %v593_v57 }
 0x107   : > { %vm613_vm10 = vcmp.ge.f32.partialorder %v605_v58, 0.0  ;;  %v621_v59 = vmul.f32 0.1, %v605_v58 }
 0x109   : > { %v629_v60 = vsel %vm613_vm10, %v605_v58, %v621_v59 }
 0x10a   : > { %638 = vst.msk [vmem:[%s1001_s23 + $0x38] sm:$0xff] %vm630_vm3, %v629_v60 }
 0x10b PF: > { %p10_p9 = scmp.ge.s32.totalorder %s845_s16, 4   ;;  %s1043_s12 = smov %s801_s13 }
 0x10c   : > { %s1044_s13 = smov %s854_s19  ;;  %s1045_s14 = smov %s845_s16 }
 0x10d   :  { %12 = sbr.rel (!%p10_p9) target bundleno = 2 (0x2), region = 110 }

// kernel: vits_forward.47
= control target key start
LH: loop header
LB: loop body
LE: loop exit
PB: predicated region body
PF: predicated region fallthrough
CT: control target
= control target key end

     0   :  { %s630_s12 = smov 0   ;;  %s632_s13 = smov 0   ;;  %s744_s0 = inlined_call_operand.vmem [shape: f32[2,2,34,8], index: 0, kind: input, shape index: {}]   ;;  %s745_s1 = inlined_call_operand.vmem [shape: bf16[5,8,16], index: 1, kind: input, shape index: {}]   ;;  %s746_s2 = inlined_call_operand.vmem [shape: f32[1,16], index: 2, kind: input, shape index: {}]   ;;  %s747_s3 = inlined_call_operand.vmem [shape: f32[2,32,16], index: 3, kind: output, shape index: {}]  }
   0x1   :  { %s634_s14 = smov 0  }
   0x2 LB: > { %s524_s15 = sadd.s32 4294967295, %s608_s14   ;;  %s647_s16 = sadd.s32 1, %s608_s14   ;;  %s608_s14 = sphi %s634_s14, %s750_s14   ;;  %s604_s13 = sphi %s632_s13, %s749_s13   ;;  %s600_s12 = sphi %s630_s12, %s748_s12  }
   0x3   : > { %s17_s17 = ssub.s32 %s608_s14, %s647_s16  ;;  %s20_s18 = sadd.s32 1, %s604_s13 }
   0x4   : > { %p18_p0 = scmp.eq.s32.totalorder %s17_s17, 0  ;;  %p27_p1 = scmp.ne.s32.totalorder %s604_s13, %s600_s12 }
   0x5   : > { %p28_p2 = scmp.eq.s32.totalorder %s608_s14, 0  ;;  %p527_p4 = scmp.ge.s32.totalorder %s608_s14, 2 }
   0x6   : > { %s656_s19 = scalar_select %p18_p0, %s604_s13, %s20_s18  }
   0x7   : > { %p29_p3 = por %p28_p2, %p27_p1  ;;  %127 = sbr.rel (%p527_p4) target bundleno = 27 (0x1b), region = 24 }
   0xc   : > { %130 = sbr.rel (!%p29_p3) target bundleno = 27 (0x1b), region = 28  ;;  %s132_s20 = sand.u32 (%p29_p3), 1, %s604_s13  }
   0xd   : > { %s559_s21 = smul.u32 (%p29_p3), 40, %s608_s14 }
   0xe   : > { %s558_s22 = smul.u32 (%p29_p3), 80, %s132_s20 }
   0xf   : > { %s137_s25 = scalar_lea.vmem (%p29_p3), %s744_s0, %s559_s21 }
  0x10   : > { %v184_v0 = vld [vmem:[%s137_s25] sm:$0xff] (%p29_p3)  ;;  %v186_v1 = vld [vmem:[%s137_s25 + $0x8] sm:$0xff] (%p29_p3)  ;;  %v188_v2 = vld [vmem:[%s137_s25 + $0x10] sm:$0xff] (%p29_p3)  ;;  %s134_s26 = scalar_lea.vmem (%p29_p3), [#allocation2], %s558_s22 }
  0x11   : > { %185 = vst [vmem:[%s134_s26] sm:$0xff] %v184_v0  ;;  %v190_v3 = vld [vmem:[%s137_s25 + $0x18] sm:$0xff]  ;;  %v192_v4 = vld [vmem:[%s137_s25 + $0x20] sm:$0xff]  ;;  %v194_v5 = vld [vmem:[%s137_s25 + $0x50] sm:$0xff] }
  0x12   : > { %187 = vst [vmem:[%s134_s26 + $0x8] sm:$0xff] %v186_v1  ;;  %v196_v6 = vld [vmem:[%s137_s25 + $0x58] sm:$0xff]  ;;  %v198_v7 = vld [vmem:[%s137_s25 + $0x60] sm:$0xff]  ;;  %v200_v8 = vld [vmem:[%s137_s25 + $0x68] sm:$0xff] }
  0x13   : > { %189 = vst [vmem:[%s134_s26 + $0x10] sm:$0xff] %v188_v2  ;;  %v202_v9 = vld [vmem:[%s137_s25 + $0x70] sm:$0xff] }
  0x14   : > { %191 = vst [vmem:[%s134_s26 + $0x18] sm:$0xff] %v190_v3 }
  0x15   : > { %193 = vst [vmem:[%s134_s26 + $0x20] sm:$0xff] %v192_v4 }
  0x16   : > { %195 = vst [vmem:[%s134_s26 + $0x28] sm:$0xff] %v194_v5 }
  0x17   : > { %197 = vst [vmem:[%s134_s26 + $0x30] sm:$0xff] %v196_v6 }
  0x18   : > { %199 = vst [vmem:[%s134_s26 + $0x38] sm:$0xff] %v198_v7 }
  0x19   : > { %201 = vst [vmem:[%s134_s26 + $0x40] sm:$0xff] %v200_v8 }
  0x1a   : > { %203 = vst [vmem:[%s134_s26 + $0x48] sm:$0xff] %v202_v9 }
  0x1b PF: > { %p529_p5 = scmp.ge.s32.totalorder %s608_s14, 1  ;;  %p208_p6 = scmp.lt.s32.totalorder %s608_s14, 3 }
  0x1d   : > { %p209_p7 = pnand %p529_p5, %p208_p6 }
  0x1e   : > { %s215_s29 = sand.u32 (!%p209_p7), 1, %s600_s12   ;;  %p238_p8 = scmp.lt.s32.totalorder (!%p209_p7), %s524_s15, 1 }
  0x1f   : > { %212 = sbr.rel (%p209_p7) target bundleno = 223 (0xdf), region = 66 }
  0x20   : > { %s560_s30 = smul.u32 (!%p209_p7), 80, %s215_s29 }
  0x22   : > { %s682_s12 = scalar_lea.vmem (!%p209_p7), [#allocation2], %s560_s30 }
  0x24   : > { %v536_v10 = vld [vmem:[%s745_s1 + $0x4] sm:$0xf]  ;;  %vm267_vm0 = vcmask 1043456   ;;  %v250_v12 = vld [vmem:[%s745_s1] sm:$0xf]  ;;  %v532_v20 = vld [vmem:[%s682_s12 + $0x28] sm:$0xff] }
  0x25   : > { %v269_v11 = vsel %vm267_vm0, %v536_v10, 0  ;;  %v541_v13 = vld [vmem:[%s745_s1 + $0x8] sm:$0xf]  ;;  %v297_v14 = vsel %vm267_vm0, %v250_v12, 0  ;;  %v548_v16 = vld [vmem:[%s745_s1 + $0xc] sm:$0xf] }
  0x26   : > { %278 = vmatpush.bf16.msra.mxu0 %v269_v11  ;;  %557 = vmatpush.bf16.msra.mxu1 %v269_v11  ;;  %v333_v15 = vsel %vm267_vm0, %v541_v13, 0  ;;  %v551_v17 = vld [vmem:[%s745_s1 + $0x10] sm:$0xf]  ;;  %v373_v18 = vsel %vm267_vm0, %v548_v16, 0  ;;  %vm260_vm1 = vcmask 64512   ;;  %v534_v22 = vld [vmem:[%s682_s12 + $0x38] sm:$0xff] }
  0x27   : > { %342 = vmatpush.bf16.msra.mxu2 %v333_v15  ;;  %v413_v19 = vsel %vm267_vm0, %v551_v17, 0  ;;  %v533_v21 = vld [vmem:[%s682_s12 + $0x30] sm:$0xff]  ;;  %382 = vmatpush.bf16.msra.mxu3 %v373_v18  ;;  %v535_v24 = vld [vmem:[%s682_s12 + $0x40] sm:$0xff]  ;;  %v245_v35 = vld [vmem:[%s682_s12 + $0x8] sm:$0xff]  ;;  %s752_s15 = smov (!%p238_p8, %s524_s15), 1  ;;  %vm458_vm3 = vcmask 130048  }
  0x28   : > { %v256_v23 = vpack.c.bf16 %v533_v21, %v532_v20  ;;  %v318_v25 = vld [vmem:[%s682_s12 + $0x1] sm:$0xff]  ;;  %v319_v26 = vld [vmem:[%s682_s12 + $0x9] sm:$0xff]  ;;  %v257_v27 = vpack.c.bf16 %v535_v24, %v534_v22  ;;  %v545_v30 = vld [vmem:[%s682_s12 + $0x31] sm:$0xff]  ;;  %s556_s20 = sshll.u32 %s752_s15, 5 }
  0x29   : > { %v322_v28 = vpack.c.bf16 %v319_v26, %v318_v25  ;;  %v544_v29 = vld [vmem:[%s682_s12 + $0x29] sm:$0xff]  ;;  %v244_v32 = vld [vmem:[%s682_s12] sm:$0xff]  ;;  %v320_v36 = vld [vmem:[%s682_s12 + $0x11] sm:$0xff]  ;;  %s724_s23 = scalar_lea.vmem %s747_s3, %s556_s20 }
  0x2a   : > { %306 = vmatpush.bf16.msrb.mxu1 %v297_v14  ;;  %422 = vmatpush.bf16.msrb.mxu0 %v413_v19  ;;  %v362_v31 = vpack.c.bf16 %v545_v30, %v544_v29  ;;  %v398_v33 = vld [vmem:[%s682_s12 + $0x2] sm:$0xff]  ;;  %v399_v34 = vld [vmem:[%s682_s12 + $0xa] sm:$0xff]  ;;  %v321_v37 = vld [vmem:[%s682_s12 + $0x19] sm:$0xff]  ;;  %v248_v41 = vpack.c.bf16 %v245_v35, %v244_v32 }
  0x2b   : > { %537 = vmatmul.msk.bf16.vlgmr.msra.gmra.mxu0 %vm260_vm1, %v256_v23  ;;  %538 = vmatmul.msk.bf16.vlgmr.msra.gmra.mxu1 %vm260_vm1, %v257_v27  ;;  %v546_v38 = vld [vmem:[%s682_s12 + $0x39] sm:$0xff]  ;;  %v547_v39 = vld [vmem:[%s682_s12 + $0x41] sm:$0xff]  ;;  %v402_v40 = vpack.c.bf16 %v399_v34, %v398_v33  ;;  %v323_v42 = vpack.c.bf16 %v321_v37, %v320_v36  ;;  %v246_v46 = vld [vmem:[%s682_s12 + $0x10] sm:$0xff] }
  0x2c   : > { %542 = vmatmul.msk.bf16.vlgmr.msra.gmra.mxu2 %vm260_vm1, %v322_v28  ;;  %549 = vmatmul.msk.bf16.vlgmr.msra.gmra.mxu3 %vm260_vm1, %v362_v31  ;;  %v363_v43 = vpack.c.bf16 %v547_v39, %v546_v38  ;;  %v400_v44 = vld [vmem:[%s682_s12 + $0x12] sm:$0xff]  ;;  %v401_v45 = vld [vmem:[%s682_s12 + $0x1a] sm:$0xff] }
  0x2d   : > { %v247_v47 = vld [vmem:[%s682_s12 + $0x18] sm:$0xff]  ;;  %v403_v48 = vpack.c.bf16 %v401_v45, %v400_v44  ;;  %v585_v61 = vld [vmem:[%s746_s2] ss:$0 sm:$0xff] }
  0x2e   : > { %v249_v49 = vpack.c.bf16 %v247_v47, %v246_v46 }
  0x3b   : > { %552 = vmatmul.msk.bf16.vlgmr.msrb.gmra.mxu0 %vm260_vm1, %v402_v40  ;;  %539 = vmatmul.msk.bf16.vlgmr.msrb.gmra.mxu1 %vm260_vm1, %v248_v41 }
  0x3c   : > { %543 = vmatmul.msk.bf16.gmra.mxu2 %vm260_vm1, %v323_v42  ;;  %550 = vmatmul.msk.bf16.gmra.mxu3 %vm260_vm1, %v363_v43 }
  0x4b   : > { %553 = vmatmul.msk.bf16.gmra.mxu0 %vm260_vm1, %v403_v48  ;;  %540 = vmatmul.msk.bf16.gmra.mxu1 %vm260_vm1, %v249_v49 }
  0xa8   : > { %v280_v50 = vpop.f32.mrf.mxu0  ;;  %v285_v51 = vpop.f32.mrf.mxu1 }
  0xaf   : > { %v344_v54 = vpop.f32.mrf.mxu2  ;;  %v384_v55 = vpop.f32.mrf.mxu3 }
  0xb0   : > { %v282_v52 = vpop.f32.mrf.mxu0  ;;  %v287_v53 = vpop.f32.mrf.mxu1 }
  0xb7   : > { %v346_v62 = vpop.f32.mrf.mxu2  ;;  %v386_v0 = vpop.f32.mrf.mxu3 }
  0xb8   : > { %v308_v56 = vpop.f32.mrf.mxu1  ;;  %v424_v57 = vpop.f32.mrf.mxu0 }
  0xb9   : > { %v309_v58 = vadd.f32 %v308_v56, %v280_v50 }
  0xbb   : > { %v354_v59 = vadd.f32 %v344_v54, %v309_v58 }
  0xbd   : > { %v394_v60 = vadd.f32 %v384_v55, %v354_v59 }
  0xbf   : > { %v434_v63 = vadd.f32 %v424_v57, %v394_v60  ;;  %v349_v10 = vpop.f32.mrf.mxu2  ;;  %v389_v14 = vpop.f32.mrf.mxu3 }
  0xc0   : > { %v310_v1 = vpop.f32.mrf.mxu1  ;;  %v426_v4 = vpop.f32.mrf.mxu0 }
  0xc1   : > { %v442_v2 = vadd.f32 %v585_v61, %v434_v63  ;;  %v311_v3 = vadd.f32 %v310_v1, %v282_v52 }
  0xc3   : > { %vm446_vm2 = vcmp.ge.f32.partialorder %v442_v2, 0.0  ;;  %v450_v5 = vmul.f32 0.1, %v442_v2  ;;  %v355_v6 = vadd.f32 %v346_v62, %v311_v3 }
  0xc5   : > { %v454_v7 = vsel %vm446_vm2, %v442_v2, %v450_v5  ;;  %v395_v8 = vadd.f32 %v386_v0, %v355_v6 }
  0xc6   : > { %459 = vst.msk [vmem:[%s724_s23] sm:$0xff] %vm458_vm3, %v454_v7 }
  0xc7   : > { %v435_v9 = vadd.f32 %v426_v4, %v395_v8  ;;  %v351_v24 = vpop.f32.mrf.mxu2  ;;  %v391_v27 = vpop.f32.mrf.mxu3 }
  0xc8   : > { %v313_v11 = vpop.f32.mrf.mxu1  ;;  %v429_v17 = vpop.f32.mrf.mxu0 }
  0xc9   : > { %v443_v12 = vadd.f32 %v585_v61, %v435_v9  ;;  %v314_v13 = vadd.f32 %v313_v11, %v285_v51 }
  0xcb   : > { %vm447_vm4 = vcmp.ge.f32.partialorder %v443_v12, 0.0  ;;  %v451_v15 = vmul.f32 0.1, %v443_v12  ;;  %v356_v16 = vadd.f32 %v349_v10, %v314_v13 }
  0xcd   : > { %v455_v18 = vsel %vm447_vm4, %v443_v12, %v451_v15  ;;  %v396_v19 = vadd.f32 %v389_v14, %v356_v16 }
  0xce   : > { %460 = vst.msk [vmem:[%s724_s23 + $0x8] sm:$0xff] %vm458_vm3, %v455_v18 }
  0xcf   : > { %v436_v20 = vadd.f32 %v429_v17, %v396_v19 }
  0xd0   : > { %v315_v21 = vpop.f32.mrf.mxu1  ;;  %v431_v30 = vpop.f32.mrf.mxu0 }
  0xd1   : > { %v444_v22 = vadd.f32 %v585_v61, %v436_v20  ;;  %v316_v23 = vadd.f32 %v315_v21, %v287_v53 }
  0xd3   : > { %vm448_vm5 = vcmp.ge.f32.partialorder %v444_v22, 0.0  ;;  %v452_v25 = vmul.f32 0.1, %v444_v22  ;;  %v357_v26 = vadd.f32 %v351_v24, %v316_v23 }
  0xd5   : > { %v456_v28 = vsel %vm448_vm5, %v444_v22, %v452_v25  ;;  %v397_v29 = vadd.f32 %v391_v27, %v357_v26 }
  0xd6   : > { %461 = vst.msk [vmem:[%s724_s23 + $0x10] sm:$0xff] %vm458_vm3, %v456_v28 }
  0xd7   : > { %v437_v31 = vadd.f32 %v431_v30, %v397_v29 }
  0xd9   : > { %v445_v32 = vadd.f32 %v585_v61, %v437_v31 }
  0xdb   : > { %vm449_vm6 = vcmp.ge.f32.partialorder %v445_v32, 0.0  ;;  %v453_v33 = vmul.f32 0.1, %v445_v32 }
  0xdd   : > { %v457_v34 = vsel %vm449_vm6, %v445_v32, %v453_v33 }
  0xde   : > { %462 = vst.msk [vmem:[%s724_s23 + $0x18] sm:$0xff] %vm458_vm3, %v457_v34 }
  0xdf PF: > { %p10_p9 = scmp.ge.s32.totalorder %s647_s16, 4   ;;  %s748_s12 = smov %s604_s13 }
  0xe0   : > { %s749_s13 = smov %s656_s19  ;;  %s750_s14 = smov %s647_s16 }
  0xe1   :  { %12 = sbr.rel (!%p10_p9) target bundleno = 2 (0x2), region = 110 }

// kernel: vits_forward.48
= control target key start
LH: loop header
LB: loop body
LE: loop exit
PB: predicated region body
PF: predicated region fallthrough
CT: control target
= control target key end

     0   :  { %s444_s14 = smov 0   ;;  %s484_s0 = inlined_call_operand.vmem [shape: f32[1,2,34,16], index: 0, kind: input, shape index: {}]   ;;  %s485_s1 = inlined_call_operand.vmem [shape: bf16[3,16,1], index: 1, kind: input, shape index: {}]   ;;  %s486_s2 = inlined_call_operand.<no memory space> [shape: f32[1,1], index: 2, kind: input, shape index: {}]   ;;  %s487_s3 = inlined_call_operand.vmem [shape: f32[2,32,1], index: 3, kind: output, shape index: {}]  }
   0x1   :  { %v8_v0 = vstv %s486_s2 }
   0x2   :  { %9 = vst [vmem:[#allocation2] sm:$0x1] %v8_v0 }
   0x3 LB: > { %s366_s15 = sadd.s32 4294967295, %s419_s14   ;;  %p370_p0 = scmp.ge.s32.totalorder %s419_s14, 1  ;;  %s419_s14 = sphi %s444_s14, %s15_s14  }
   0x4   : > { %p139_p1 = scmp.lt.s32.totalorder %s419_s14, 3 }
   0x6   : > { %p140_p2 = pnand %p370_p0, %p139_p1 }
   0x7   : > { %p163_p3 = scmp.lt.s32.totalorder (!%p140_p2), %s366_s15, 1 }
   0x8   : > { %143 = sbr.rel (%p140_p2) target bundleno = 183 (0xb7), region = 32 }
   0xd   : > { %v400_v1 = vld [vmem:[%s485_s1 + $0x8] sm:$0xff]  ;;  %v399_v2 = vld [vmem:[%s485_s1] sm:$0xff]  ;;  %v401_v3 = vld [vmem:[%s485_s1 + $0x10] sm:$0xff]  ;;  %s489_s15 = smov (!%p163_p3, %s366_s15), 1  ;;  %vm197_vm0 = vcmask 130048   ;;  %vm306_vm1 = vcmask 7168  }
   0xe   : > { %211 = vmatpush.bf16.msra.mxu0 %v400_v1  ;;  %242 = vmatpush.bf16.msra.mxu1 %v399_v2  ;;  %s403_s21 = smul.u32 40, %s489_s15  ;;  %s398_s25 = sshll.u32 %s489_s15, 5  ;;  %v412_v25 = vld [vmem:[#allocation2] ss:$0 sm:$0xff] }
   0xf   : > { %282 = vmatpush.bf16.msra.mxu2 %v401_v3  ;;  %402 = vmatpush.bf16.msra.mxu3 %v400_v1  ;;  %s172_s28 = scalar_lea.vmem %s487_s3, %s398_s25 }
  0x10   : > { %s167_s24 = scalar_lea.vmem %s484_s0, %s403_s21 }
  0x11   : > { %v182_v4 = vld [vmem:[%s167_s24 + $0x1] sm:$0xff]  ;;  %v183_v5 = vld [vmem:[%s167_s24 + $0x9] sm:$0xff]  ;;  %v184_v13 = vld [vmem:[%s167_s24 + $0x11] sm:$0xff] }
  0x12   : > { %v174_v6 = vld [vmem:[%s167_s24] sm:$0xff]  ;;  %v186_v7 = vpack.c.bf16 %v183_v5, %v182_v4  ;;  %v175_v8 = vld [vmem:[%s167_s24 + $0x8] sm:$0xff]  ;;  %v176_v16 = vld [vmem:[%s167_s24 + $0x10] sm:$0xff] }
  0x13   : > { %v254_v9 = vld [vmem:[%s167_s24 + $0x2] sm:$0xff]  ;;  %v255_v10 = vld [vmem:[%s167_s24 + $0xa] sm:$0xff]  ;;  %v178_v11 = vpack.c.bf16 %v175_v8, %v174_v6  ;;  %v185_v14 = vld [vmem:[%s167_s24 + $0x19] sm:$0xff] }
  0x14   : > { %v258_v12 = vpack.c.bf16 %v255_v10, %v254_v9  ;;  %380 = vmatmul.msk.bf16.vlgmr.msra.gmra.mxu0 %vm197_vm0, %v186_v7  ;;  %v187_v15 = vpack.c.bf16 %v185_v14, %v184_v13  ;;  %v177_v17 = vld [vmem:[%s167_s24 + $0x18] sm:$0xff] }
  0x15   : > { %386 = vmatmul.msk.bf16.vlgmr.msra.gmra.mxu1 %vm197_vm0, %v178_v11  ;;  %v256_v18 = vld [vmem:[%s167_s24 + $0x12] sm:$0xff]  ;;  %v257_v19 = vld [vmem:[%s167_s24 + $0x1a] sm:$0xff]  ;;  %v179_v20 = vpack.c.bf16 %v177_v17, %v176_v16 }
  0x16   : > { %394 = vmatmul.msk.bf16.vlgmr.msra.gmra.mxu2 %vm197_vm0, %v258_v12  ;;  %381 = vmatmul.msk.bf16.vlgmr.msra.gmra.mxu3 %vm197_vm0, %v187_v15  ;;  %v259_v21 = vpack.c.bf16 %v257_v19, %v256_v18 }
  0x25   : > { %387 = vmatmul.msk.bf16.gmra.mxu1 %vm197_vm0, %v179_v20 }
  0x26   : > { %395 = vmatmul.msk.bf16.gmra.mxu2 %vm197_vm0, %v259_v21 }
  0x91   : > { %v213_v22 = vpop.f32.mrf.mxu0 }
  0x92   : > { %v244_v23 = vpop.f32.mrf.mxu1 }
  0x93   : > { %v245_v24 = vadd.f32 %v244_v23, %v213_v22 }
  0x99   : > { %v284_v26 = vpop.f32.mrf.mxu2  ;;  %v215_v30 = vpop.f32.mrf.mxu0 }
  0x9a   : > { %v294_v27 = vadd.f32 %v284_v26, %v245_v24  ;;  %v246_v28 = vpop.f32.mrf.mxu1  ;;  %v218_v36 = vpop.f32.mrf.mxu3 }
  0x9b   : > { %v247_v31 = vadd.f32 %v246_v28, %v215_v30 }
  0x9c   : > { %v302_v29 = vadd.f32 %v412_v25, %v294_v27 }
  0x9e   : > { %307 = vst.msk [vmem:[%s172_s28] sm:$0xff] %vm306_vm1, %v302_v29 }
  0xa1   : > { %v286_v32 = vpop.f32.mrf.mxu2 }
  0xa2   : > { %v295_v33 = vadd.f32 %v286_v32, %v247_v31  ;;  %v249_v34 = vpop.f32.mrf.mxu1  ;;  %v220_v42 = vpop.f32.mrf.mxu3 }
  0xa3   : > { %v250_v37 = vadd.f32 %v249_v34, %v218_v36 }
  0xa4   : > { %v303_v35 = vadd.f32 %v412_v25, %v295_v33 }
  0xa6   : > { %308 = vst.msk [vmem:[%s172_s28 + $0x8] sm:$0xff] %vm306_vm1, %v303_v35 }
  0xa9   : > { %v289_v38 = vpop.f32.mrf.mxu2 }
  0xaa   : > { %v296_v39 = vadd.f32 %v289_v38, %v250_v37  ;;  %v251_v41 = vpop.f32.mrf.mxu1 }
  0xab   : > { %v252_v43 = vadd.f32 %v251_v41, %v220_v42 }
  0xac   : > { %v304_v40 = vadd.f32 %v412_v25, %v296_v39 }
  0xae   : > { %309 = vst.msk [vmem:[%s172_s28 + $0x10] sm:$0xff] %vm306_vm1, %v304_v40 }
  0xb1   : > { %v291_v44 = vpop.f32.mrf.mxu2 }
  0xb2   : > { %v297_v45 = vadd.f32 %v291_v44, %v252_v43 }
  0xb4   : > { %v305_v46 = vadd.f32 %v412_v25, %v297_v45 }
  0xb6   : > { %310 = vst.msk [vmem:[%s172_s28 + $0x18] sm:$0xff] %vm306_vm1, %v305_v46 }
  0xb7 PF: > { %s15_s14 = sadd.s32 1, %s419_s14  }
  0xb8   : > { %p12_p4 = scmp.ge.s32.totalorder %s15_s14, 4  }
  0xba   :  { %14 = sbr.rel (!%p12_p4) target bundleno = 3 (0x3), region = 64 }

// kernel: vits_forward.29
= control target key start
LH: loop header
LB: loop body
LE: loop exit
PB: predicated region body
PF: predicated region fallthrough
CT: control target
= control target key end

     0   :  { %s231_s1 = inlined_call_operand.vmem [shape: bf16[128,128], index: 1, kind: input, shape index: {}]   ;;  %s232_s2 = inlined_call_operand.vmem [shape: f32[1,128], index: 2, kind: input, shape index: {}]   ;;  %s233_s0 = inlined_call_operand.vmem [shape: bf16[16,128], index: 0, kind: input, shape index: {}]   ;;  %s234_s3 = inlined_call_operand.vmem [shape: f32[16,128], index: 3, kind: output, shape index: {}]  }
   0x1   :  { %v173_v0 = vld [vmem:[%s231_s1 + $0x38] sm:$0xff]  ;;  %v172_v1 = vld [vmem:[%s231_s1 + $0x30] sm:$0xff]  ;;  %v171_v2 = vld [vmem:[%s231_s1 + $0x28] sm:$0xff] }
   0x2   :  { %94 = vmatpush.bf16.msra.mxu0 %v173_v0  ;;  %v170_v3 = vld [vmem:[%s231_s1 + $0x20] sm:$0xff]  ;;  %v169_v4 = vld [vmem:[%s231_s1 + $0x18] sm:$0xff]  ;;  %v168_v5 = vld [vmem:[%s231_s1 + $0x10] sm:$0xff] }
   0x3   :  { %v167_v6 = vld [vmem:[%s231_s1 + $0x8] sm:$0xff]  ;;  %v166_v7 = vld [vmem:[%s231_s1] sm:$0xff] }
   0x4   :  { %v165_v8 = vld [vmem:[%s233_s0] sm:$0xff] }
   0x5   :  { %v174_v9 = vld [vmem:[%s232_s2] ss:$0 sm:$0xff] }
   0x6   :  { %95 = vmatpush.bf16.msra.mxu0 %v172_v1 }
   0xa   :  { %96 = vmatpush.bf16.msra.mxu0 %v171_v2 }
   0xe   :  { %97 = vmatpush.bf16.msra.mxu0 %v170_v3 }
  0x12   :  { %98 = vmatpush.bf16.msra.mxu0 %v169_v4 }
  0x16   :  { %99 = vmatpush.bf16.msra.mxu0 %v168_v5 }
  0x1a   :  { %100 = vmatpush.bf16.msra.mxu0 %v167_v6 }
  0x1e   :  { %101 = vmatpush.bf16.msra.mxu0 %v166_v7 }
  0x21   :  { %102 = vmatmul.bf16.vlgmr.msra.gmra.mxu0 %v165_v8 }
  0x9e   :  { %v103_v10 = vpop.f32.mrf.mxu0 }
  0x9f   :  { %v121_v11 = vadd.f32 %v174_v9, %v103_v10 }
  0xa1   :  { %123 = vst [vmem:[%s234_s3] sm:$0xff] %v121_v11 }
  0xa6   :  { %v105_v12 = vpop.f32.mrf.mxu0 }
  0xa7   :  { %v122_v13 = vadd.f32 %v174_v9, %v105_v12 }
  0xa9   :  { %124 = vst [vmem:[%s234_s3 + $0x8] sm:$0xff] %v122_v13 }

// kernel: vits_forward.33
= control target key start
LH: loop header
LB: loop body
LE: loop exit
PB: predicated region body
PF: predicated region fallthrough
CT: control target
= control target key end

     0   :  { %s233_s1 = inlined_call_operand.vmem [shape: bf16[128,128], index: 1, kind: input, shape index: {}]   ;;  %s234_s2 = inlined_call_operand.vmem [shape: f32[1,128], index: 2, kind: input, shape index: {}]   ;;  %s235_s0 = inlined_call_operand.vmem [shape: bf16[16,128], index: 0, kind: input, shape index: {}]   ;;  %s236_s3 = inlined_call_operand.vmem [shape: f32[16,128], index: 3, kind: output, shape index: {}]  }
   0x1   :  { %v175_v0 = vld [vmem:[%s233_s1 + $0x38] sm:$0xff]  ;;  %v174_v1 = vld [vmem:[%s233_s1 + $0x30] sm:$0xff]  ;;  %v173_v2 = vld [vmem:[%s233_s1 + $0x28] sm:$0xff] }
   0x2   :  { %94 = vmatpush.bf16.msra.mxu0 %v175_v0  ;;  %v172_v3 = vld [vmem:[%s233_s1 + $0x20] sm:$0xff]  ;;  %v171_v4 = vld [vmem:[%s233_s1 + $0x18] sm:$0xff]  ;;  %v170_v5 = vld [vmem:[%s233_s1 + $0x10] sm:$0xff] }
   0x3   :  { %v169_v6 = vld [vmem:[%s233_s1 + $0x8] sm:$0xff]  ;;  %v168_v7 = vld [vmem:[%s233_s1] sm:$0xff] }
   0x4   :  { %v167_v8 = vld [vmem:[%s235_s0] sm:$0xff] }
   0x5   :  { %v176_v9 = vld [vmem:[%s234_s2] ss:$0 sm:$0xff] }
   0x6   :  { %95 = vmatpush.bf16.msra.mxu0 %v174_v1 }
   0xa   :  { %96 = vmatpush.bf16.msra.mxu0 %v173_v2 }
   0xe   :  { %97 = vmatpush.bf16.msra.mxu0 %v172_v3 }
  0x12   :  { %98 = vmatpush.bf16.msra.mxu0 %v171_v4 }
  0x16   :  { %99 = vmatpush.bf16.msra.mxu0 %v170_v5 }
  0x1a   :  { %100 = vmatpush.bf16.msra.mxu0 %v169_v6 }
  0x1e   :  { %101 = vmatpush.bf16.msra.mxu0 %v168_v7 }
  0x21   :  { %102 = vmatmul.bf16.vlgmr.msra.gmra.mxu0 %v167_v8 }
  0x9e   :  { %v103_v10 = vpop.f32.mrf.mxu0 }
  0x9f   :  { %v121_v11 = vadd.f32 %v176_v9, %v103_v10 }
  0xa1   :  { %v123_v12 = vmax.f32 %v121_v11, 0.0 }
  0xa3   :  { %125 = vst [vmem:[%s236_s3] sm:$0xff] %v123_v12 }
  0xa6   :  { %v105_v13 = vpop.f32.mrf.mxu0 }
  0xa7   :  { %v122_v14 = vadd.f32 %v176_v9, %v105_v13 }
  0xa9   :  { %v124_v15 = vmax.f32 %v122_v14, 0.0 }
  0xab   :  { %126 = vst [vmem:[%s236_s3 + $0x8] sm:$0xff] %v124_v15 }

// kernel: vits_forward.32
= control target key start
LH: loop header
LB: loop body
LE: loop exit
PB: predicated region body
PF: predicated region fallthrough
CT: control target
= control target key end

     0   :  { %vm23_vm0 = vcmask 130048   ;;  %v102_v8 = vmov 16.0   ;;  %s158_s0 = inlined_call_operand.vmem [shape: f32[16,16], index: 0, kind: input, shape index: {}]   ;;  %s159_s1 = inlined_call_operand.vmem [shape: f32[16,16], index: 1, kind: input, shape index: {}]   ;;  %s160_s2 = inlined_call_operand.vmem [shape: f32[1,16], index: 2, kind: input, shape index: {}]   ;;  %s161_s3 = inlined_call_operand.vmem [shape: f32[1,16], index: 3, kind: input, shape index: {}]   ;;  %s162_s4 = inlined_call_operand.vmem [shape: f32[16,16], index: 4, kind: output, shape index: {}]  }
   0x1   :  { %v17_v0 = vld [vmem:[%s158_s0] sm:$0xff]  ;;  %v18_v3 = vld [vmem:[%s158_s0 + $0x8] sm:$0xff]  ;;  %96 = vrcp.f32 %v102_v8 }
   0x2   :  { %v19_v1 = vld [vmem:[%s159_s1] sm:$0xff]  ;;  %v20_v4 = vld [vmem:[%s159_s1 + $0x8] sm:$0xff] }
   0x3   :  { %v21_v2 = vadd.f32 %v19_v1, %v17_v0  ;;  %v22_v6 = vadd.f32 %v20_v4, %v18_v3  ;;  %v94_v39 = vld [vmem:[%s160_s2] ss:$0 sm:$0xff] }
   0x4   :  { %v95_v42 = vld [vmem:[%s161_s3] ss:$0 sm:$0xff] }
   0x5   :  { %v24_v5 = vsel %vm23_vm0, %v21_v2, 0.0  ;;  %v27_v7 = vsel %vm23_vm0, %v22_v6, 0.0 }
   0x6   :  { %25 = vadd.xlane.f32.xlu0 %v24_v5 }
   0x7   :  { %v97_v9 = vpop.eup %96 }
   0x8   :  { %v31_v10 = vmul.f32 16.0, %v97_v9  ;;  %vm35_vm1 = vweird.f32 %v97_v9 }
   0xa   :  { %v32_v11 = vsub.f32 1.0, %v31_v10 }
   0xc   :  { %v33_v12 = vmul.f32 %v97_v9, %v32_v11 }
   0xe   :  { %28 = vadd.xlane.f32.xlu0 %v27_v7  ;;  %v34_v13 = vadd.f32 %v97_v9, %v33_v12 }
  0x10   :  { %v36_v14 = vsel %vm35_vm1, %v97_v9, %v34_v13 }
  0x79   :  { %v26_v15 = vpop.xlane.xlu0 %25 }
  0x7a   :  { %v37_v16 = vmul.f32 %v36_v14, %v26_v15 }
  0x7c   :  { %v39_v17 = vsub.f32 %v21_v2, %v37_v16 }
  0x7e   :  { %v41_v18 = vmul.f32 %v39_v17, %v39_v17 }
  0x80   :  { %v43_v19 = vsel %vm23_vm0, %v41_v18, 0.0 }
  0x81   :  { %44 = vadd.xlane.f32.xlu1 %v43_v19  ;;  %v29_v20 = vpop.xlane.xlu0 %28 }
  0x82   :  { %v38_v21 = vmul.f32 %v36_v14, %v29_v20 }
  0x84   :  { %v40_v22 = vsub.f32 %v22_v6, %v38_v21 }
  0x86   :  { %v42_v23 = vmul.f32 %v40_v22, %v40_v22 }
  0x88   :  { %v46_v24 = vsel %vm23_vm0, %v42_v23, 0.0 }
  0x89   :  { %47 = vadd.xlane.f32.xlu1 %v46_v24 }
  0xf4   :  { %v45_v25 = vpop.xlane.xlu1 %44 }
  0xf5   :  { %v49_v26 = vmul.f32 %v45_v25, %v36_v14 }
  0xf7   :  { %v51_v27 = vadd.f32 1e-05, %v49_v26 }
  0xf9   :  { %98 = vrsqrt.f32 %v51_v27  ;;  %vm59_vm3 = vweird.f32 %v51_v27 }
  0xfc   :  { %v48_v28 = vpop.xlane.xlu1 %47 }
  0xfd   :  { %v50_v29 = vmul.f32 %v48_v28, %v36_v14 }
  0xff   :  { %v99_v30 = vpop.eup %98  ;;  %v52_v31 = vadd.f32 1e-05, %v50_v29 }
 0x100   :  { %v54_v32 = vmul.f32 %v99_v30, %v51_v27  ;;  %vm60_vm2 = vweird.f32 %v99_v30 }
 0x101   :  { %100 = vrsqrt.f32 %v52_v31  ;;  %vm61_vm4 = vmor %vm59_vm3, %vm60_vm2  ;;  %vm69_vm6 = vweird.f32 %v52_v31 }
 0x102   :  { %v55_v33 = vmul.f32 %v99_v30, %v54_v32 }
 0x104   :  { %v56_v34 = vmul.f32 0.5, %v55_v33 }
 0x106   :  { %v57_v35 = vsub.f32 1.5, %v56_v34 }
 0x107   :  { %v101_v36 = vpop.eup %100 }
 0x108   :  { %v58_v37 = vmul.f32 %v99_v30, %v57_v35  ;;  %v64_v38 = vmul.f32 %v101_v36, %v52_v31  ;;  %vm70_vm5 = vweird.f32 %v101_v36 }
 0x109   :  { %vm71_vm7 = vmor %vm69_vm6, %vm70_vm5 }
 0x10a   :  { %v62_v40 = vsel %vm61_vm4, %v99_v30, %v58_v37  ;;  %v65_v41 = vmul.f32 %v101_v36, %v64_v38 }
 0x10b   :  { %v73_v43 = vmul.f32 %v62_v40, %v39_v17 }
 0x10c   :  { %v66_v44 = vmul.f32 0.5, %v65_v41 }
 0x10d   :  { %v79_v45 = vmul.f32 %v94_v39, %v73_v43 }
 0x10e   :  { %v67_v46 = vsub.f32 1.5, %v66_v44 }
 0x10f   :  { %v85_v47 = vadd.f32 %v95_v42, %v79_v45 }
 0x110   :  { %v68_v48 = vmul.f32 %v101_v36, %v67_v46 }
 0x111   :  { %87 = vst.msk [vmem:[%s162_s4] sm:$0xff] %vm23_vm0, %v85_v47 }
 0x112   :  { %v72_v49 = vsel %vm71_vm7, %v101_v36, %v68_v48 }
 0x113   :  { %v74_v50 = vmul.f32 %v72_v49, %v40_v22 }
 0x115   :  { %v80_v51 = vmul.f32 %v94_v39, %v74_v50 }
 0x117   :  { %v86_v52 = vadd.f32 %v95_v42, %v80_v51 }
 0x119   :  { %88 = vst.msk [vmem:[%s162_s4 + $0x8] sm:$0xff] %vm23_vm0, %v86_v52 }

// kernel: vits_forward.30
= control target key start
LH: loop header
LB: loop body
LE: loop exit
PB: predicated region body
PF: predicated region fallthrough
CT: control target
= control target key end

     0   :  { %s672_s18 = smov [#allocation6]   ;;  %s792_s0 = inlined_call_operand.vmem [shape: s32[2], index: 0, kind: input, shape index: {}]   ;;  %s793_s1 = inlined_call_operand.vmem [shape: f32[2,2,8,8], index: 1, kind: input, shape index: {}]   ;;  %s794_s2 = inlined_call_operand.vmem [shape: f32[2,2,8,8], index: 2, kind: input, shape index: {}]   ;;  %s795_s3 = inlined_call_operand.vmem [shape: f32[2,2,8,8], index: 3, kind: input, shape index: {}]   ;;  %s796_s4 = inlined_call_operand.vmem [shape: f32[2,2,8,8], index: 4, kind: output, shape index: {}]  }
   0x1   :  { %s10_s17 = sshll.u32 %s792_s0, 4  ;;  %s11_s17 = int_to_ptr.vmem [resolvable:$true] %s10_s17 }
   0x2   :  { %13 = dma.vmem_to_smem %s11_s17, 16, %s672_s18, [#allocation5] }
   0x3   :  { %650 = dma.done.wait [#allocation5], 16 }
   0x4   :  { %651 = vsyncadd [#allocation5], 4294967280 }
   0x5   :  { %16 = sfence }
   0x6   :  { %s704_s19 = smov 0   ;;  %s706_s20 = smov 0  }
   0x7   :  { %s708_s21 = smov 0   ;;  %s710_s22 = smov 0  }
   0x8   :  { %s712_s23 = smov 0  }
   0x9 LB: > { %s37_s0 = sadd.s32 1, %s662_s21  ;;  %s41_s24 = sadd.s32 1, %s666_s22  ;;  %s670_s23 = sphi %s712_s23, %s22_s23   ;;  %s666_s22 = sphi %s710_s22, %s802_s22   ;;  %s662_s21 = sphi %s708_s21, %s801_s21   ;;  %s658_s20 = sphi %s706_s20, %s800_s20   ;;  %s654_s19 = sphi %s704_s19, %s799_s19  }
   0xa   : > { %p39_p0 = scmp.ge.s32.totalorder %s37_s0, 2  ;;  %p552_p1 = scmp.ge.s32.totalorder %s670_s23, 1 }
   0xb   : > { %p212_p2 = scmp.lt.s32.totalorder %s670_s23, 5 }
   0xc   : > { %s804_s0 = smov (%p39_p0, %s37_s0), 0  ;;  %s806_s24 = smov (!%p39_p0, %s41_s24), %s666_s22 }
   0xd   : > { %p213_p3 = pnand %p552_p1, %p212_p2  ;;  %p43_p4 = scmp.ge.s32.totalorder %s806_s24, 2 }
   0xe   : > { %p264_p5 = scmp.lt.s32.totalorder (!%p213_p3), %s658_s20, 1  ;;  %p266_p6 = scmp.lt.s32.totalorder (!%p213_p3), %s654_s19, 1 }
   0xf   : > { %s808_s24 = smov (%p43_p4, %s806_s24), 0  ;;  %216 = sbr.rel (%p213_p3) target bundleno = 640 (0x280), region = 32 }
  0x10   : > { %s312_s9 = sld [smem:[#allocation6 + %s658_s20]] (!%p213_p3) }
  0x14   : > { %s265_s25 = scalar_select %p264_p5, %s658_s20, 1  ;;  %vm310_vm0 = vcmask 64512   ;;  %vm307_vm1 = vcmask 7168   ;;  %v673_v5 = vmov -1e+30   ;;  %v340_v6 = vlaneseq }
  0x15   : > { %s810_s19 = smov (!%p266_p6, %s654_s19), 1  ;;  %308 = vst.msk [vmem:[#allocation2] sm:$0xff] %vm307_vm1, %v673_v5  ;;  %v674_v15 = vmov 0   ;;  %v675_v16 = vmov 0.0   ;;  %vm384_vm3 = vcmask 1043456  }
  0x16   : > { %s553_s26 = sshll.u32 %s265_s25, 1  ;;  %v341_v7 = vand.u32 127, %v340_v6  ;;  %v345_v8 = vstv %s312_s9  ;;  %609 = vset.pattern.permute.xlu0 %v674_v15  ;;  %610 = vset.pattern.permute.xlu1 %v674_v15  ;;  %309 = vst.msk [vmem:[#allocation3] sm:$0xff] %vm307_vm1, %v675_v16 }
  0x17   : > { %s269_s27 = sadd.s32 %s553_s26, %s810_s19  ;;  %611 = vset.pattern.permute.xlu2 %v674_v15  ;;  %311 = vst.msk [vmem:[#allocation4] sm:$0xff] %vm310_vm0, %v675_v16 }
  0x18   : > { %s738_s28 = sshll.u32 %s269_s27, 3  ;;  %vm752_vm2 = vcmp.lt.s32.totalorder %v341_v7, %v345_v8 }
  0x19   : > { %s282_s5 = scalar_lea.vmem %s794_s2, %s738_s28  ;;  %s271_s8 = scalar_lea.vmem %s793_s1, %s738_s28 }
  0x1a   : > { %v315_v0 = vld [vmem:[%s282_s5] sm:$0xff]  ;;  %s293_s12 = scalar_lea.vmem %s795_s3, %s738_s28  ;;  %s301_s15 = scalar_lea.vmem %s796_s4, %s738_s28 }
  0x1b   : > { %v316_v1 = vpack.c.bf16 %v315_v0, %v315_v0  ;;  %v313_v3 = vld [vmem:[%s271_s8] sm:$0xff] }
  0x1c   : > { %v314_v4 = vpack.c.bf16 %v313_v3, %v313_v3  ;;  %v348_v17 = vld [vmem:[#allocation2] sm:$0xff] }
  0x1d   : > { %v324_v2 = vsel %vm310_vm0, %v316_v1, 0  ;;  %v317_v21 = vld [vmem:[%s293_s12] sm:$0xff]  ;;  %v365_v33 = vld [vmem:[#allocation3] sm:$0xff] }
  0x1e   : > { %333 = vmatpush.bf16.xpose.msra.mxu0 %v324_v2  ;;  %v318_v22 = vpack.c.bf16 %v317_v21, %v317_v21  ;;  %v373_v41 = vld [vmem:[#allocation4] sm:$0xff] }
  0x20   : > { %v386_v23 = vsel %vm384_vm3, %v318_v22, 0 }
  0x21   : > { %395 = vmatpush.bf16.msra.mxu1 %v386_v23 }
  0x25   : > { %561 = vmatmul.msk.bf16.vlgmr.msra.gmra.mxu0 %vm310_vm0, %v314_v4 }
  0xa2   : > { %v335_v9 = vpop.f32.mrf.mxu0 }
  0xa3   : > { %v339_v11 = vmul.f32 0.35355338, %v335_v9 }
  0xa5   : > { %v347_v12 = vsel %vm752_vm2, %v339_v11, -1e+30 }
  0xa6   : > { %v349_v13 = vsel %vm310_vm0, %v347_v12, -inf }
  0xa7   : > { %350 = vmax.xlane.f32.xlu0 %v349_v13 }
  0xaa   : > { %v337_v14 = vpop.f32.mrf.mxu0 }
 0x11a   : > { %v351_v18 = vpop.xlane.xlu0 %350 }
 0x11b   : > { %v352_v19 = vmax.f32 %v348_v17, %v351_v18 }
 0x11d   : > { %v353_v20 = vsub.f32 %v348_v17, %v352_v19  ;;  %403 = vst.msk [vmem:[#allocation2] sm:$0xff] %vm307_vm1, %v352_v19  ;;  %358 = vperm.xlu0 %609, %v352_v19  }
 0x11f   : > { %v354_v31 = vmul.f32 1.442695, %v353_v20 }
 0x18f   : > { %v359_v24 = vpop.permute.xlu0 %358 }
 0x190   : > { %v361_v25 = vsub.f32 %v347_v12, %v359_v24 }
 0x192   : > { %v362_v26 = vmul.f32 1.442695, %v361_v25 }
 0x194   : > { %612 = vpow2.f32 %v362_v26 }
 0x195   : > { %614 = vpow2.f32 %v354_v31 }
 0x19a   : > { %v613_v27 = vpop.eup %612 }
 0x19b   : > { %v364_v28 = vsel %vm752_vm2, %v613_v27, 0.0  ;;  %v615_v32 = vpop.eup %614 }
 0x19c   : > { %v367_v29 = vsel %vm310_vm0, %v364_v28, 0.0  ;;  %v380_v30 = vpack.c.bf16 %v364_v28, %v364_v28  ;;  %v366_v34 = vmul.f32 %v615_v32, %v365_v33 }
 0x19d   : > { %368 = vadd.xlane.f32.xlu1 %v367_v29 }
 0x19e   : > { %562 = vmatmul.msk.bf16.vlgmr.msra.gmra.mxu1 %vm310_vm0, %v380_v30 }
 0x1b6   : > { %376 = vperm.xlu1 %610, %v615_v32  }
 0x210   : > { %v369_v35 = vpop.xlane.xlu1 %368 }
 0x211   : > { %v370_v36 = vadd.f32 %v369_v35, %v366_v34 }
 0x213   : > { %372 = vst.msk [vmem:[#allocation3] sm:$0xff] %vm307_vm1, %v370_v36 }
 0x21a   : > { %v408_v37 = vld [vmem:[#allocation3] sm:$0xff] }
 0x21b   : > { %v397_v38 = vpop.f32.mrf.mxu1  ;;  %616 = vrcp.f32 %v408_v37 }
 0x221   : > { %v617_v39 = vpop.eup %616 }
 0x222   : > { %412 = vperm.xlu2 %611, %v617_v39  }
 0x223   : > { %v399_v40 = vpop.f32.mrf.mxu1 }
 0x228   : > { %v377_v42 = vpop.permute.xlu1 %376 }
 0x229   : > { %v379_v43 = vmul.f32 %v377_v42, %v373_v41 }
 0x22b   : > { %v401_v44 = vadd.f32 %v397_v38, %v379_v43 }
 0x22d   : > { %402 = vst.msk [vmem:[#allocation4] sm:$0xff] %vm310_vm0, %v401_v44 }
 0x234   : > { %v407_v45 = vld [vmem:[#allocation4] sm:$0xff] }
 0x27c   : > { %v413_v46 = vpop.permute.xlu2 %412 }
 0x27d   : > { %v415_v47 = vmul.f32 %v413_v46, %v407_v45 }
 0x27f   : > { %416 = vst.msk [vmem:[%s301_s15] sm:$0xff] %vm310_vm0, %v415_v47 }
 0x280 PF: > { %s22_s23 = sadd.s32 1, %s670_s23   ;;  %s799_s19 = smov %s662_s21 }
 0x281   : > { %p19_p7 = scmp.ge.s32.totalorder %s22_s23, 6   ;;  %s800_s20 = smov %s666_s22 }
 0x282   : > { %s801_s21 = smov %s804_s0  ;;  %s802_s22 = smov %s808_s24 }
 0x283   :  { %21 = sbr.rel (!%p19_p7) target bundleno = 9 (0x9), region = 76 }

</bundles_post_ra>
